<compile_context>
chip_gen: v6e
topology: v6e:2x2x1
jax: 0.10.0
libtpu: 0.0.40
codegen_flags: <defaults>
</compile_context>

<pallas_src>
import jax
import jax.numpy as jnp
from jax.experimental import pallas as pl
from jax.experimental.pallas import tpu as pltpu

_LANE = 128


def _mish_f32(z):
    # mish(z) = z * tanh(softplus(z)) = z * (n - 1) / (n + 1) with n = (1+e^z)^2
    # -> one exp (EUP) + one approx reciprocal (EUP) instead of exp+log+tanh.
    # Clamp: for z > 20, tanh(softplus(z)) == 1 to f32 precision.
    e = jnp.exp(jnp.minimum(z, 20.0))
    n = (1.0 + e) * (1.0 + e)
    return z * (n - 1.0) * pl.reciprocal(n + 1.0, approx=True)


def _resblock_kernel(x_ref, xup_ref, xdn_ref, w1_ref, b1_ref, w2_ref, b2_ref,
                     o_ref, hpad_ref, acc_ref):
    # x_ref   : (1, TH, W, C)        current row-tile of the input (NHWC, f32)
    # xup_ref : (1, 1, W, C)         row above the tile (clamped at image top)
    # xdn_ref : (1, 1, W, C)         row below the tile (clamped at image bottom)
    # w1_ref  : (C, Chid_p)   bf16   1x1 conv weight, BN1 scale folded, lane-padded
    # b1_ref  : (1, Chid_p)   f32    BN1 bias (zero in padded lanes)
    # w2_ref  : (9, Chid_p, C) bf16  3x3 conv weight, per-tap, BN2 scale folded
    # b2_ref  : (1, C)        f32    BN2 bias
    # o_ref   : (1, TH, W, C)        output tile
    # hpad_ref: (TH+2, W+2, Chid_p)  bf16 scratch: spatially padded hidden act
    # acc_ref : (TH*W, C)     f32    scratch: 3x3-conv accumulator
    _, TH, W, C = x_ref.shape
    Chid = w1_ref.shape[1]                       # lane-padded hidden width
    i = pl.program_id(1)
    n_ht = pl.num_programs(1)
    M = TH * W

    w1 = w1_ref[...]
    b1 = b1_ref[...]

    # ---- stage 1: 1x1 conv + bias + Mish, written straight into hpad ----
    # zero the left/right padding columns (covers the corners too)
    zcol = jnp.zeros((TH + 2, 1, Chid), jnp.bfloat16)
    hpad_ref[:, 0:1, :] = zcol
    hpad_ref[:, W + 1:W + 2, :] = zcol

    h_main = jnp.dot(x_ref[0].reshape(M, C).astype(jnp.bfloat16), w1,
                     preferred_element_type=jnp.float32)
    h_main = _mish_f32(h_main + b1)
    hpad_ref[1:TH + 1, 1:W + 1, :] = h_main.reshape(TH, W, Chid).astype(jnp.bfloat16)

    # halo rows: computed from the clamped neighbour rows, masked to zero when
    # the halo falls outside the image (top of first tile / bottom of last).
    up_mask = (i > 0).astype(jnp.float32)
    h_up = jnp.dot(xup_ref[0, 0].astype(jnp.bfloat16), w1,
                   preferred_element_type=jnp.float32)
    h_up = _mish_f32(h_up + b1) * up_mask
    hpad_ref[0:1, 1:W + 1, :] = h_up.reshape(1, W, Chid).astype(jnp.bfloat16)

    dn_mask = (i < n_ht - 1).astype(jnp.float32)
    h_dn = jnp.dot(xdn_ref[0, 0].astype(jnp.bfloat16), w1,
                   preferred_element_type=jnp.float32)
    h_dn = _mish_f32(h_dn + b1) * dn_mask
    hpad_ref[TH + 1:TH + 2, 1:W + 1, :] = h_dn.reshape(1, W, Chid).astype(jnp.bfloat16)

    # ---- stage 2: 3x3 conv = nine accumulating MXU matmuls (no im2col slab) ----
    for kh in range(3):
        for kw in range(3):
            j = kh * 3 + kw
            patch = hpad_ref[kh:kh + TH, kw:kw + W, :].reshape(M, Chid)
            t = jnp.dot(patch, w2_ref[j], preferred_element_type=jnp.float32)
            if j == 0:
                acc_ref[...] = t
            else:
                acc_ref[...] += t

    y = _mish_f32(acc_ref[...] + b2_ref[...])                  # (M, C) f32
    # residual add in f32, re-reading x_ref (no long-lived f32 copy of x)
    o_ref[0] = (x_ref[0] + y.reshape(TH, W, C)).astype(o_ref.dtype)


def _fold_bn(gamma, beta, mean, var, eps=1e-5):
    scale = gamma / jnp.sqrt(var + eps)
    bias = beta - mean * scale
    return scale, bias


def _round_up(v, m):
    return ((v + m - 1) // m) * m


def _vmem_limit_bytes():
    """Chip-aware scoped-VMEM limit: ~3/4 of physical per-core VMEM, capped."""
    cap = 64 * 1024 * 1024
    try:
        info = pltpu.get_tpu_info()
        cap = int(getattr(info, "vmem_capacity_bytes", cap) or cap)
    except Exception:
        pass
    return int(min(cap * 3 // 4, 100 * 1024 * 1024))


def _pick_row_tile(H, W, C, Chid_p, tile_budget_bytes):
    """Largest divisor of H whose rough per-tile VMEM footprint fits the budget."""
    best = 1
    for th in range(1, H + 1):
        if H % th:
            continue
        io = 2 * 2 * th * W * C * 4                 # in + out tiles, double-buffered f32
        halo = 2 * 2 * W * C * 4                    # two 1-row halos, double-buffered
        hpad = (th + 2) * (W + 2) * Chid_p * 2      # bf16 padded hidden activation
        acc = th * W * C * 4                        # f32 accumulator scratch
        temps = 2 * th * W * max(C, Chid_p) * 4     # rough f32 temporaries
        if io + halo + hpad + acc + temps <= tile_budget_bytes:
            best = th
    return best


def resblock_forward(x_nchw, params, row_tile=None):
    """x_nchw: (N, C, H, W) float32. Returns (N, C, H, W) float32."""
    w1, (g1, be1, m1, v1), w2, (g2, be2, m2, v2) = params
    N, C, H, W = x_nchw.shape
    Chid = w1.shape[0]
    Chid_p = _round_up(Chid, _LANE)   # lane-pad hidden dim (VMEM-only, no HBM cost)

    # NCHW -> NHWC (channels map to lanes).
    # TODO(synk): for production, keep the surrounding network NHWC end-to-end so
    # these two extra HBM passes (and the f32 activation dtype) go away.
    x = jnp.transpose(x_nchw, (0, 2, 3, 1))

    s1, b1 = _fold_bn(g1, be1, m1, v1)
    s2, b2 = _fold_bn(g2, be2, m2, v2)

    # Fold BN scales into bf16 MXU weights (once, outside the kernel); pad hidden dim.
    w1_mat = jnp.zeros((C, Chid_p), jnp.float32).at[:, :Chid].set(
        jnp.transpose(w1[:, :, 0, 0], (1, 0)) * s1[None, :]).astype(jnp.bfloat16)
    w2_taps = (jnp.transpose(w2, (2, 3, 1, 0)) * s2[None, None, None, :]
               ).reshape(9, Chid, C)
    w2_mat = jnp.zeros((9, Chid_p, C), jnp.float32).at[:, :Chid, :].set(
        w2_taps).astype(jnp.bfloat16)
    b1v = jnp.zeros((1, Chid_p), jnp.float32).at[:, :Chid].set(b1.reshape(1, Chid))
    b2v = b2.reshape(1, C).astype(jnp.float32)

    vmem_limit = _vmem_limit_bytes()
    # Resident weight/bias footprint (counted double-buffered to be safe).
    resident = 2 * (C * Chid_p * 2 + 9 * Chid_p * C * 2 + Chid_p * 4 + C * 4)
    tile_budget = int(max(vmem_limit - resident - (2 << 20), 1 << 20) * 0.8)

    TH = row_tile if row_tile is not None else _pick_row_tile(H, W, C, Chid_p, tile_budget)
    assert H % TH == 0, "row_tile must divide H"
    # Keep both TensorCores busy on v7x: prefer >= 2 grid points.
    if row_tile is None and N * (H // TH) < 2:
        for th in range(TH - 1, 0, -1):
            if H % th == 0:
                TH = th
                break
    n_ht = H // TH

    flops = 2 * N * H * W * (C * Chid_p + 9 * Chid_p * C)
    transcendentals = 2 * N * H * W * (Chid_p + C)
    bytes_accessed = (2 * x.size * x.dtype.itemsize
                      + w1_mat.size * 2 + w2_mat.size * 2 + (Chid_p + C) * 4)

    def _call(single_buffer_weights):
        wkw = ({"pipeline_mode": pl.Buffered(1)} if single_buffer_weights else {})
        in_specs = [
            # current tile
            pl.BlockSpec((1, TH, W, C), lambda n, i: (n, i, 0, 0)),
            # one halo row above / below (clamped at image edges; masked in-kernel)
            pl.BlockSpec((1, 1, W, C),
                         lambda n, i: (n, jnp.maximum(i * TH - 1, 0), 0, 0)),
            pl.BlockSpec((1, 1, W, C),
                         lambda n, i: (n, jnp.minimum(i * TH + TH, H - 1), 0, 0)),
            # weights / biases: constant-index (resident), single-buffered if supported
            pl.BlockSpec((C, Chid_p), lambda n, i: (0, 0), **wkw),
            pl.BlockSpec((1, Chid_p), lambda n, i: (0, 0), **wkw),
            pl.BlockSpec((9, Chid_p, C), lambda n, i: (0, 0, 0), **wkw),
            pl.BlockSpec((1, C), lambda n, i: (0, 0), **wkw),
        ]
        return pl.pallas_call(
            _resblock_kernel,
            out_shape=jax.ShapeDtypeStruct((N, H, W, C), x.dtype),
            grid=(N, n_ht),
            in_specs=in_specs,
            out_specs=pl.BlockSpec((1, TH, W, C), lambda n, i: (n, i, 0, 0)),
            scratch_shapes=[
                pltpu.VMEM((TH + 2, W + 2, Chid_p), jnp.bfloat16),  # padded hidden act
                pltpu.VMEM((TH * W, C), jnp.float32),               # 3x3 accumulator
            ],
            compiler_params=pltpu.CompilerParams(
                dimension_semantics=("parallel", "parallel"),
                vmem_limit_bytes=vmem_limit),
            cost_estimate=pl.CostEstimate(
                flops=int(flops), transcendentals=int(transcendentals),
                bytes_accessed=int(bytes_accessed)),
        )(x, x, x, w1_mat, b1v, w2_mat, b2v)

    try:
        out = _call(True)
    except Exception:
        # Older Pallas without per-operand pipeline_mode: default double-buffered weights.
        out = _call(False)

    # NHWC -> NCHW
    return jnp.transpose(out, (0, 3, 1, 2))


def resblock_reference(x_nchw, params):
    """Pure-JAX reference (lax conv, f32) for validation."""
    w1, (g1, be1, m1, v1), w2, (g2, be2, m2, v2) = params

    def basic_conv(x, w, bn, pad):
        y = jax.lax.conv_general_dilated(
            x, w, window_strides=(1, 1), padding=[(pad, pad), (pad, pad)],
            dimension_numbers=("NCHW", "OIHW", "NCHW"))
        g, be, m, v = bn
        s = g / jnp.sqrt(v + 1e-5)
        b = be - m * s
        y = y * s[None, :, None, None] + b[None, :, None, None]
        return y * jnp.tanh(jax.nn.softplus(y))

    h = basic_conv(x_nchw, w1, (g1, be1, m1, v1), 0)
    y = basic_conv(h, w2, (g2, be2, m2, v2), 1)
    return x_nchw + y


if __name__ == "__main__":
    key = jax.random.PRNGKey(0)
    N, C, H, W = 2, 4, 16, 16
    Chid = C  # hidden_channels defaults to channels

    ks = jax.random.split(key, 10)
    x = jax.random.normal(ks[0], (N, C, H, W), jnp.float32)

    w1 = jax.random.normal(ks[1], (Chid, C, 1, 1), jnp.float32) * 0.2
    g1 = 1.0 + 0.1 * jax.random.normal(ks[2], (Chid,), jnp.float32)
    be1 = 0.1 * jax.random.normal(ks[3], (Chid,), jnp.float32)
    m1 = 0.1 * jax.random.normal(ks[4], (Chid,), jnp.float32)
    v1 = jnp.abs(jax.random.normal(ks[5], (Chid,), jnp.float32)) + 0.5

    w2 = jax.random.normal(ks[6], (C, Chid, 3, 3), jnp.float32) * 0.2
    g2 = 1.0 + 0.1 * jax.random.normal(ks[7], (C,), jnp.float32)
    be2 = 0.1 * jax.random.normal(ks[8], (C,), jnp.float32)
    m2 = 0.1 * jax.random.normal(ks[9], (C,), jnp.float32)
    v2 = jnp.abs(jax.random.normal(ks[0], (C,), jnp.float32)) + 0.5

    params = (w1, (g1, be1, m1, v1), w2, (g2, be2, m2, v2))

    # row_tile=8 -> grid (2, 2): exercises both interior-halo and image-edge paths.
    out = jax.block_until_ready(resblock_forward(x, params, row_tile=8))
    ref = jax.block_until_ready(resblock_reference(x, params))

    assert out.shape == (N, C, H, W)
    # bf16 MXU operands (f32 accumulation / residual) -> bf16-level tolerance.
    assert jnp.allclose(out, ref, rtol=2e-2, atol=2e-2), (
        float(jnp.max(jnp.abs(out - ref))))
    print("KERNEL_OK")
</pallas_src>

<mosaic_0001>
module attributes {stable_mosaic.version = 11 : i64} {
  func.func @_resblock_kernel(%arg0: i32, %arg1: i32, %arg2: memref<1x8x16x4xf32, #tpu.memory_space<vmem>>, %arg3: memref<1x1x16x4xf32, #tpu.memory_space<vmem>>, %arg4: memref<1x1x16x4xf32, #tpu.memory_space<vmem>>, %arg5: memref<4x128xbf16, #tpu.memory_space<vmem>>, %arg6: memref<1x128xf32, #tpu.memory_space<vmem>>, %arg7: memref<9x128x4xbf16, #tpu.memory_space<vmem>>, %arg8: memref<1x4xf32, #tpu.memory_space<vmem>>, %arg9: memref<1x8x16x4xf32, #tpu.memory_space<vmem>>, %arg10: memref<10x18x128xbf16, #tpu.memory_space<vmem>>, %arg11: memref<128x4xf32, #tpu.memory_space<vmem>>) attributes {dimension_semantics = [#tpu.dimension_semantics<parallel>, #tpu.dimension_semantics<parallel>], iteration_bounds = array<i64: 2, 2>, scalar_prefetch = 0 : i64, scratch_operands = 2 : i64, tpu.core_type = #tpu.core_type<tc>, window_params = [{transform_indices = @transform_0, window_bounds = array<i64: 1, 8, 16, 4>}, {transform_indices = @transform_1, window_bounds = array<i64: 1, 1, 16, 4>}, {transform_indices = @transform_2, window_bounds = array<i64: 1, 1, 16, 4>}, {pipeline_mode = #tpu.pipeline_mode<synchronous>, transform_indices = @transform_3, window_bounds = array<i64: 4, 128>}, {pipeline_mode = #tpu.pipeline_mode<synchronous>, transform_indices = @transform_4, window_bounds = array<i64: 1, 128>}, {pipeline_mode = #tpu.pipeline_mode<synchronous>, transform_indices = @transform_5, window_bounds = array<i64: 9, 128, 4>}, {pipeline_mode = #tpu.pipeline_mode<synchronous>, transform_indices = @transform_6, window_bounds = array<i64: 1, 4>}, {transform_indices = @transform_7, window_bounds = array<i64: 1, 8, 16, 4>}]} {
    %c0 = arith.constant 0 : index
    %c0_0 = arith.constant 0 : index
    %0 = vector.load %arg5[%c0, %c0_0] : memref<4x128xbf16, #tpu.memory_space<vmem>>, vector<4x128xbf16>
    %c0_1 = arith.constant 0 : index
    %c0_2 = arith.constant 0 : index
    %1 = vector.load %arg6[%c0_1, %c0_2] : memref<1x128xf32, #tpu.memory_space<vmem>>, vector<1x128xf32>
    %cst = arith.constant 0.000000e+00 : bf16
    %2 = vector.broadcast %cst : bf16 to vector<10x1x128xbf16>
    %c0_3 = arith.constant 0 : index
    %c0_4 = arith.constant 0 : index
    %c0_5 = arith.constant 0 : index
    %3 = vector.load %arg10[%c0_3, %c0_4, %c0_5] : memref<10x18x128xbf16, #tpu.memory_space<vmem>>, vector<10x1x128xbf16>
    tpu.vector_store %arg10[%c0_3, %c0_4, %c0_5], %2 {strides = array<i32>} : memref<10x18x128xbf16, #tpu.memory_space<vmem>>, vector<10x1x128xbf16>,
    %c0_6 = arith.constant 0 : index
    %c17 = arith.constant 17 : index
    %c0_7 = arith.constant 0 : index
    %4 = vector.load %arg10[%c0_6, %c17, %c0_7] : memref<10x18x128xbf16, #tpu.memory_space<vmem>>, vector<10x1x128xbf16>
    tpu.vector_store %arg10[%c0_6, %c17, %c0_7], %2 {strides = array<i32>} : memref<10x18x128xbf16, #tpu.memory_space<vmem>>, vector<10x1x128xbf16>,
    %c0_8 = arith.constant 0 : index
    %c0_9 = arith.constant 0 : index
    %c0_10 = arith.constant 0 : index
    %c0_11 = arith.constant 0 : index
    %5 = vector.load %arg2[%c0_8, %c0_9, %c0_10, %c0_11] : memref<1x8x16x4xf32, #tpu.memory_space<vmem>>, vector<1x8x16x4xf32>
    %6 = vector.shape_cast %5 : vector<1x8x16x4xf32> to vector<8x16x4xf32>
    %7 = vector.shape_cast %6 : vector<8x16x4xf32> to vector<128x4xf32>
    %8 = arith.truncf %7 : vector<128x4xf32> to vector<128x4xbf16>
    %cst_12 = arith.constant dense<0.000000e+00> : vector<128x128xf32>
    %9 = tpu.matmul %8, %0, %cst_12 {dimension_numbers = #tpu.dot_dimension_numbers<[1], [0], [0], [1], [0, 0, 1, 1], [], []>} : vector<128x4xbf16>, vector<4x128xbf16>, vector<128x128xf32> -> vector<128x128xf32>
    %10 = vector.broadcast %1 : vector<1x128xf32> to vector<128x128xf32>
    %11 = arith.addf %9, %10 : vector<128x128xf32>
    %cst_13 = arith.constant 2.000000e+01 : f32
    %12 = vector.broadcast %cst_13 : f32 to vector<128x128xf32>
    %13 = arith.minimumf %11, %12 : vector<128x128xf32>
    %14 = math.exp %13 : vector<128x128xf32>
    %cst_14 = arith.constant 1.000000e+00 : f32
    %15 = vector.broadcast %cst_14 : f32 to vector<128x128xf32>
    %16 = arith.addf %15, %14 : vector<128x128xf32>
    %cst_15 = arith.constant 1.000000e+00 : f32
    %17 = vector.broadcast %cst_15 : f32 to vector<128x128xf32>
    %18 = arith.addf %17, %14 : vector<128x128xf32>
    %19 = arith.mulf %16, %18 : vector<128x128xf32>
    %cst_16 = arith.constant 1.000000e+00 : f32
    %20 = vector.broadcast %cst_16 : f32 to vector<128x128xf32>
    %21 = arith.subf %19, %20 : vector<128x128xf32>
    %22 = arith.mulf %11, %21 : vector<128x128xf32>
    %cst_17 = arith.constant 1.000000e+00 : f32
    %23 = vector.broadcast %cst_17 : f32 to vector<128x128xf32>
    %24 = arith.addf %19, %23 : vector<128x128xf32>
    %25 = tpu.reciprocal %24 {approx = true} : vector<128x128xf32> -> vector<128x128xf32>
    %26 = arith.mulf %22, %25 : vector<128x128xf32>
    %27 = vector.shape_cast %26 : vector<128x128xf32> to vector<8x16x128xf32>
    %28 = arith.truncf %27 : vector<8x16x128xf32> to vector<8x16x128xbf16>
    %c1 = arith.constant 1 : index
    %c1_18 = arith.constant 1 : index
    %c0_19 = arith.constant 0 : index
    %29 = vector.load %arg10[%c1, %c1_18, %c0_19] : memref<10x18x128xbf16, #tpu.memory_space<vmem>>, vector<8x16x128xbf16>
    tpu.vector_store %arg10[%c1, %c1_18, %c0_19], %28 {strides = array<i32>} : memref<10x18x128xbf16, #tpu.memory_space<vmem>>, vector<8x16x128xbf16>,
    %c0_i32 = arith.constant 0 : i32
    %30 = arith.cmpi sgt, %arg1, %c0_i32 : i32
    %31 = arith.extui %30 : i1 to i32
    %32 = arith.sitofp %31 : i32 to f32
    %c0_20 = arith.constant 0 : index
    %c0_21 = arith.constant 0 : index
    %c0_22 = arith.constant 0 : index
    %c0_23 = arith.constant 0 : index
    %33 = vector.load %arg3[%c0_20, %c0_21, %c0_22, %c0_23] : memref<1x1x16x4xf32, #tpu.memory_space<vmem>>, vector<1x1x16x4xf32>
    %34 = vector.shape_cast %33 : vector<1x1x16x4xf32> to vector<16x4xf32>
    %35 = arith.truncf %34 : vector<16x4xf32> to vector<16x4xbf16>
    %cst_24 = arith.constant dense<0.000000e+00> : vector<16x128xf32>
    %36 = tpu.matmul %35, %0, %cst_24 {dimension_numbers = #tpu.dot_dimension_numbers<[1], [0], [0], [1], [0, 0, 1, 1], [], []>} : vector<16x4xbf16>, vector<4x128xbf16>, vector<16x128xf32> -> vector<16x128xf32>
    %37 = vector.broadcast %1 : vector<1x128xf32> to vector<16x128xf32>
    %38 = arith.addf %36, %37 : vector<16x128xf32>
    %cst_25 = arith.constant 2.000000e+01 : f32
    %39 = vector.broadcast %cst_25 : f32 to vector<16x128xf32>
    %40 = arith.minimumf %38, %39 : vector<16x128xf32>
    %41 = math.exp %40 : vector<16x128xf32>
    %cst_26 = arith.constant 1.000000e+00 : f32
    %42 = vector.broadcast %cst_26 : f32 to vector<16x128xf32>
    %43 = arith.addf %42, %41 : vector<16x128xf32>
    %cst_27 = arith.constant 1.000000e+00 : f32
    %44 = vector.broadcast %cst_27 : f32 to vector<16x128xf32>
    %45 = arith.addf %44, %41 : vector<16x128xf32>
    %46 = arith.mulf %43, %45 : vector<16x128xf32>
    %cst_28 = arith.constant 1.000000e+00 : f32
    %47 = vector.broadcast %cst_28 : f32 to vector<16x128xf32>
    %48 = arith.subf %46, %47 : vector<16x128xf32>
    %49 = arith.mulf %38, %48 : vector<16x128xf32>
    %cst_29 = arith.constant 1.000000e+00 : f32
    %50 = vector.broadcast %cst_29 : f32 to vector<16x128xf32>
    %51 = arith.addf %46, %50 : vector<16x128xf32>
    %52 = tpu.reciprocal %51 {approx = true} : vector<16x128xf32> -> vector<16x128xf32>
    %53 = arith.mulf %49, %52 : vector<16x128xf32>
    %54 = vector.broadcast %32 : f32 to vector<16x128xf32>
    %55 = arith.mulf %53, %54 : vector<16x128xf32>
    %56 = vector.shape_cast %55 : vector<16x128xf32> to vector<1x16x128xf32>
    %57 = arith.truncf %56 : vector<1x16x128xf32> to vector<1x16x128xbf16>
    %c0_30 = arith.constant 0 : index
    %c1_31 = arith.constant 1 : index
    %c0_32 = arith.constant 0 : index
    %58 = vector.load %arg10[%c0_30, %c1_31, %c0_32] : memref<10x18x128xbf16, #tpu.memory_space<vmem>>, vector<1x16x128xbf16>
    tpu.vector_store %arg10[%c0_30, %c1_31, %c0_32], %57 {strides = array<i32>} : memref<10x18x128xbf16, #tpu.memory_space<vmem>>, vector<1x16x128xbf16>,
    %c1_i32 = arith.constant 1 : i32
    %59 = arith.cmpi slt, %arg1, %c1_i32 : i32
    %60 = arith.extui %59 : i1 to i32
    %61 = arith.sitofp %60 : i32 to f32
    %c0_33 = arith.constant 0 : index
    %c0_34 = arith.constant 0 : index
    %c0_35 = arith.constant 0 : index
    %c0_36 = arith.constant 0 : index
    %62 = vector.load %arg4[%c0_33, %c0_34, %c0_35, %c0_36] : memref<1x1x16x4xf32, #tpu.memory_space<vmem>>, vector<1x1x16x4xf32>
    %63 = vector.shape_cast %62 : vector<1x1x16x4xf32> to vector<16x4xf32>
    %64 = arith.truncf %63 : vector<16x4xf32> to vector<16x4xbf16>
    %cst_37 = arith.constant dense<0.000000e+00> : vector<16x128xf32>
    %65 = tpu.matmul %64, %0, %cst_37 {dimension_numbers = #tpu.dot_dimension_numbers<[1], [0], [0], [1], [0, 0, 1, 1], [], []>} : vector<16x4xbf16>, vector<4x128xbf16>, vector<16x128xf32> -> vector<16x128xf32>
    %66 = vector.broadcast %1 : vector<1x128xf32> to vector<16x128xf32>
    %67 = arith.addf %65, %66 : vector<16x128xf32>
    %cst_38 = arith.constant 2.000000e+01 : f32
    %68 = vector.broadcast %cst_38 : f32 to vector<16x128xf32>
    %69 = arith.minimumf %67, %68 : vector<16x128xf32>
    %70 = math.exp %69 : vector<16x128xf32>
    %cst_39 = arith.constant 1.000000e+00 : f32
    %71 = vector.broadcast %cst_39 : f32 to vector<16x128xf32>
    %72 = arith.addf %71, %70 : vector<16x128xf32>
    %cst_40 = arith.constant 1.000000e+00 : f32
    %73 = vector.broadcast %cst_40 : f32 to vector<16x128xf32>
    %74 = arith.addf %73, %70 : vector<16x128xf32>
    %75 = arith.mulf %72, %74 : vector<16x128xf32>
    %cst_41 = arith.constant 1.000000e+00 : f32
    %76 = vector.broadcast %cst_41 : f32 to vector<16x128xf32>
    %77 = arith.subf %75, %76 : vector<16x128xf32>
    %78 = arith.mulf %67, %77 : vector<16x128xf32>
    %cst_42 = arith.constant 1.000000e+00 : f32
    %79 = vector.broadcast %cst_42 : f32 to vector<16x128xf32>
    %80 = arith.addf %75, %79 : vector<16x128xf32>
    %81 = tpu.reciprocal %80 {approx = true} : vector<16x128xf32> -> vector<16x128xf32>
    %82 = arith.mulf %78, %81 : vector<16x128xf32>
    %83 = vector.broadcast %61 : f32 to vector<16x128xf32>
    %84 = arith.mulf %82, %83 : vector<16x128xf32>
    %85 = vector.shape_cast %84 : vector<16x128xf32> to vector<1x16x128xf32>
    %86 = arith.truncf %85 : vector<1x16x128xf32> to vector<1x16x128xbf16>
    %c9 = arith.constant 9 : index
    %c1_43 = arith.constant 1 : index
    %c0_44 = arith.constant 0 : index
    %87 = vector.load %arg10[%c9, %c1_43, %c0_44] : memref<10x18x128xbf16, #tpu.memory_space<vmem>>, vector<1x16x128xbf16>
    tpu.vector_store %arg10[%c9, %c1_43, %c0_44], %86 {strides = array<i32>} : memref<10x18x128xbf16, #tpu.memory_space<vmem>>, vector<1x16x128xbf16>,
    %c0_45 = arith.constant 0 : index
    %c0_46 = arith.constant 0 : index
    %c0_47 = arith.constant 0 : index
    %88 = vector.load %arg10[%c0_45, %c0_46, %c0_47] : memref<10x18x128xbf16, #tpu.memory_space<vmem>>, vector<8x16x128xbf16>
    %89 = vector.shape_cast %88 : vector<8x16x128xbf16> to vector<128x128xbf16>
    %c0_48 = arith.constant 0 : index
    %c0_49 = arith.constant 0 : index
    %c0_50 = arith.constant 0 : index
    %90 = vector.load %arg7[%c0_48, %c0_49, %c0_50] : memref<9x128x4xbf16, #tpu.memory_space<vmem>>, vector<1x128x4xbf16>
    %91 = vector.shape_cast %90 : vector<1x128x4xbf16> to vector<128x4xbf16>
    %cst_51 = arith.constant dense<0.000000e+00> : vector<128x4xf32>
    %92 = tpu.matmul %89, %91, %cst_51 {dimension_numbers = #tpu.dot_dimension_numbers<[1], [0], [0], [1], [0, 0, 1, 1], [], []>} : vector<128x128xbf16>, vector<128x4xbf16>, vector<128x4xf32> -> vector<128x4xf32>
    %c0_52 = arith.constant 0 : index
    %c0_53 = arith.constant 0 : index
    %93 = vector.load %arg11[%c0_52, %c0_53] : memref<128x4xf32, #tpu.memory_space<vmem>>, vector<128x4xf32>
    tpu.vector_store %arg11[%c0_52, %c0_53], %92 {strides = array<i32>} : memref<128x4xf32, #tpu.memory_space<vmem>>, vector<128x4xf32>,
    %c0_54 = arith.constant 0 : index
    %c1_55 = arith.constant 1 : index
    %c0_56 = arith.constant 0 : index
    %94 = vector.load %arg10[%c0_54, %c1_55, %c0_56] : memref<10x18x128xbf16, #tpu.memory_space<vmem>>, vector<8x16x128xbf16>
    %95 = vector.shape_cast %94 : vector<8x16x128xbf16> to vector<128x128xbf16>
    %c1_57 = arith.constant 1 : index
    %c0_58 = arith.constant 0 : index
    %c0_59 = arith.constant 0 : index
    %96 = vector.load %arg7[%c1_57, %c0_58, %c0_59] : memref<9x128x4xbf16, #tpu.memory_space<vmem>>, vector<1x128x4xbf16>
    %97 = vector.shape_cast %96 : vector<1x128x4xbf16> to vector<128x4xbf16>
    %cst_60 = arith.constant dense<0.000000e+00> : vector<128x4xf32>
    %98 = tpu.matmul %95, %97, %cst_60 {dimension_numbers = #tpu.dot_dimension_numbers<[1], [0], [0], [1], [0, 0, 1, 1], [], []>} : vector<128x128xbf16>, vector<128x4xbf16>, vector<128x4xf32> -> vector<128x4xf32>
    %c0_61 = arith.constant 0 : index
    %c0_62 = arith.constant 0 : index
    %99 = vector.load %arg11[%c0_61, %c0_62] : memref<128x4xf32, #tpu.memory_space<vmem>>, vector<128x4xf32>
    %100 = arith.addf %99, %98 : vector<128x4xf32>
    %c0_63 = arith.constant 0 : index
    %c0_64 = arith.constant 0 : index
    %101 = vector.load %arg11[%c0_63, %c0_64] : memref<128x4xf32, #tpu.memory_space<vmem>>, vector<128x4xf32>
    tpu.vector_store %arg11[%c0_63, %c0_64], %100 {strides = array<i32>} : memref<128x4xf32, #tpu.memory_space<vmem>>, vector<128x4xf32>,
    %c0_65 = arith.constant 0 : index
    %c2 = arith.constant 2 : index
    %c0_66 = arith.constant 0 : index
    %102 = vector.load %arg10[%c0_65, %c2, %c0_66] : memref<10x18x128xbf16, #tpu.memory_space<vmem>>, vector<8x16x128xbf16>
    %103 = vector.shape_cast %102 : vector<8x16x128xbf16> to vector<128x128xbf16>
    %c2_67 = arith.constant 2 : index
    %c0_68 = arith.constant 0 : index
    %c0_69 = arith.constant 0 : index
    %104 = vector.load %arg7[%c2_67, %c0_68, %c0_69] : memref<9x128x4xbf16, #tpu.memory_space<vmem>>, vector<1x128x4xbf16>
    %105 = vector.shape_cast %104 : vector<1x128x4xbf16> to vector<128x4xbf16>
    %cst_70 = arith.constant dense<0.000000e+00> : vector<128x4xf32>
    %106 = tpu.matmul %103, %105, %cst_70 {dimension_numbers = #tpu.dot_dimension_numbers<[1], [0], [0], [1], [0, 0, 1, 1], [], []>} : vector<128x128xbf16>, vector<128x4xbf16>, vector<128x4xf32> -> vector<128x4xf32>
    %c0_71 = arith.constant 0 : index
    %c0_72 = arith.constant 0 : index
    %107 = vector.load %arg11[%c0_71, %c0_72] : memref<128x4xf32, #tpu.memory_space<vmem>>, vector<128x4xf32>
    %108 = arith.addf %107, %106 : vector<128x4xf32>
    %c0_73 = arith.constant 0 : index
    %c0_74 = arith.constant 0 : index
    %109 = vector.load %arg11[%c0_73, %c0_74] : memref<128x4xf32, #tpu.memory_space<vmem>>, vector<128x4xf32>
    tpu.vector_store %arg11[%c0_73, %c0_74], %108 {strides = array<i32>} : memref<128x4xf32, #tpu.memory_space<vmem>>, vector<128x4xf32>,
    %c1_75 = arith.constant 1 : index
    %c0_76 = arith.constant 0 : index
    %c0_77 = arith.constant 0 : index
    %110 = vector.load %arg10[%c1_75, %c0_76, %c0_77] : memref<10x18x128xbf16, #tpu.memory_space<vmem>>, vector<8x16x128xbf16>
    %111 = vector.shape_cast %110 : vector<8x16x128xbf16> to vector<128x128xbf16>
    %c3 = arith.constant 3 : index
    %c0_78 = arith.constant 0 : index
    %c0_79 = arith.constant 0 : index
    %112 = vector.load %arg7[%c3, %c0_78, %c0_79] : memref<9x128x4xbf16, #tpu.memory_space<vmem>>, vector<1x128x4xbf16>
    %113 = vector.shape_cast %112 : vector<1x128x4xbf16> to vector<128x4xbf16>
    %cst_80 = arith.constant dense<0.000000e+00> : vector<128x4xf32>
    %114 = tpu.matmul %111, %113, %cst_80 {dimension_numbers = #tpu.dot_dimension_numbers<[1], [0], [0], [1], [0, 0, 1, 1], [], []>} : vector<128x128xbf16>, vector<128x4xbf16>, vector<128x4xf32> -> vector<128x4xf32>
    %c0_81 = arith.constant 0 : index
    %c0_82 = arith.constant 0 : index
    %115 = vector.load %arg11[%c0_81, %c0_82] : memref<128x4xf32, #tpu.memory_space<vmem>>, vector<128x4xf32>
    %116 = arith.addf %115, %114 : vector<128x4xf32>
    %c0_83 = arith.constant 0 : index
    %c0_84 = arith.constant 0 : index
    %117 = vector.load %arg11[%c0_83, %c0_84] : memref<128x4xf32, #tpu.memory_space<vmem>>, vector<128x4xf32>
    tpu.vector_store %arg11[%c0_83, %c0_84], %116 {strides = array<i32>} : memref<128x4xf32, #tpu.memory_space<vmem>>, vector<128x4xf32>,
    %c1_85 = arith.constant 1 : index
    %c1_86 = arith.constant 1 : index
    %c0_87 = arith.constant 0 : index
    %118 = vector.load %arg10[%c1_85, %c1_86, %c0_87] : memref<10x18x128xbf16, #tpu.memory_space<vmem>>, vector<8x16x128xbf16>
    %119 = vector.shape_cast %118 : vector<8x16x128xbf16> to vector<128x128xbf16>
    %c4 = arith.constant 4 : index
    %c0_88 = arith.constant 0 : index
    %c0_89 = arith.constant 0 : index
    %120 = vector.load %arg7[%c4, %c0_88, %c0_89] : memref<9x128x4xbf16, #tpu.memory_space<vmem>>, vector<1x128x4xbf16>
    %121 = vector.shape_cast %120 : vector<1x128x4xbf16> to vector<128x4xbf16>
    %cst_90 = arith.constant dense<0.000000e+00> : vector<128x4xf32>
    %122 = tpu.matmul %119, %121, %cst_90 {dimension_numbers = #tpu.dot_dimension_numbers<[1], [0], [0], [1], [0, 0, 1, 1], [], []>} : vector<128x128xbf16>, vector<128x4xbf16>, vector<128x4xf32> -> vector<128x4xf32>
    %c0_91 = arith.constant 0 : index
    %c0_92 = arith.constant 0 : index
    %123 = vector.load %arg11[%c0_91, %c0_92] : memref<128x4xf32, #tpu.memory_space<vmem>>, vector<128x4xf32>
    %124 = arith.addf %123, %122 : vector<128x4xf32>
    %c0_93 = arith.constant 0 : index
    %c0_94 = arith.constant 0 : index
    %125 = vector.load %arg11[%c0_93, %c0_94] : memref<128x4xf32, #tpu.memory_space<vmem>>, vector<128x4xf32>
    tpu.vector_store %arg11[%c0_93, %c0_94], %124 {strides = array<i32>} : memref<128x4xf32, #tpu.memory_space<vmem>>, vector<128x4xf32>,
    %c1_95 = arith.constant 1 : index
    %c2_96 = arith.constant 2 : index
    %c0_97 = arith.constant 0 : index
    %126 = vector.load %arg10[%c1_95, %c2_96, %c0_97] : memref<10x18x128xbf16, #tpu.memory_space<vmem>>, vector<8x16x128xbf16>
    %127 = vector.shape_cast %126 : vector<8x16x128xbf16> to vector<128x128xbf16>
    %c5 = arith.constant 5 : index
    %c0_98 = arith.constant 0 : index
    %c0_99 = arith.constant 0 : index
    %128 = vector.load %arg7[%c5, %c0_98, %c0_99] : memref<9x128x4xbf16, #tpu.memory_space<vmem>>, vector<1x128x4xbf16>
    %129 = vector.shape_cast %128 : vector<1x128x4xbf16> to vector<128x4xbf16>
    %cst_100 = arith.constant dense<0.000000e+00> : vector<128x4xf32>
    %130 = tpu.matmul %127, %129, %cst_100 {dimension_numbers = #tpu.dot_dimension_numbers<[1], [0], [0], [1], [0, 0, 1, 1], [], []>} : vector<128x128xbf16>, vector<128x4xbf16>, vector<128x4xf32> -> vector<128x4xf32>
    %c0_101 = arith.constant 0 : index
    %c0_102 = arith.constant 0 : index
    %131 = vector.load %arg11[%c0_101, %c0_102] : memref<128x4xf32, #tpu.memory_space<vmem>>, vector<128x4xf32>
    %132 = arith.addf %131, %130 : vector<128x4xf32>
    %c0_103 = arith.constant 0 : index
    %c0_104 = arith.constant 0 : index
    %133 = vector.load %arg11[%c0_103, %c0_104] : memref<128x4xf32, #tpu.memory_space<vmem>>, vector<128x4xf32>
    tpu.vector_store %arg11[%c0_103, %c0_104], %132 {strides = array<i32>} : memref<128x4xf32, #tpu.memory_space<vmem>>, vector<128x4xf32>,
    %c2_105 = arith.constant 2 : index
    %c0_106 = arith.constant 0 : index
    %c0_107 = arith.constant 0 : index
    %134 = vector.load %arg10[%c2_105, %c0_106, %c0_107] : memref<10x18x128xbf16, #tpu.memory_space<vmem>>, vector<8x16x128xbf16>
    %135 = vector.shape_cast %134 : vector<8x16x128xbf16> to vector<128x128xbf16>
    %c6 = arith.constant 6 : index
    %c0_108 = arith.constant 0 : index
    %c0_109 = arith.constant 0 : index
    %136 = vector.load %arg7[%c6, %c0_108, %c0_109] : memref<9x128x4xbf16, #tpu.memory_space<vmem>>, vector<1x128x4xbf16>
    %137 = vector.shape_cast %136 : vector<1x128x4xbf16> to vector<128x4xbf16>
    %cst_110 = arith.constant dense<0.000000e+00> : vector<128x4xf32>
    %138 = tpu.matmul %135, %137, %cst_110 {dimension_numbers = #tpu.dot_dimension_numbers<[1], [0], [0], [1], [0, 0, 1, 1], [], []>} : vector<128x128xbf16>, vector<128x4xbf16>, vector<128x4xf32> -> vector<128x4xf32>
    %c0_111 = arith.constant 0 : index
    %c0_112 = arith.constant 0 : index
    %139 = vector.load %arg11[%c0_111, %c0_112] : memref<128x4xf32, #tpu.memory_space<vmem>>, vector<128x4xf32>
    %140 = arith.addf %139, %138 : vector<128x4xf32>
    %c0_113 = arith.constant 0 : index
    %c0_114 = arith.constant 0 : index
    %141 = vector.load %arg11[%c0_113, %c0_114] : memref<128x4xf32, #tpu.memory_space<vmem>>, vector<128x4xf32>
    tpu.vector_store %arg11[%c0_113, %c0_114], %140 {strides = array<i32>} : memref<128x4xf32, #tpu.memory_space<vmem>>, vector<128x4xf32>,
    %c2_115 = arith.constant 2 : index
    %c1_116 = arith.constant 1 : index
    %c0_117 = arith.constant 0 : index
    %142 = vector.load %arg10[%c2_115, %c1_116, %c0_117] : memref<10x18x128xbf16, #tpu.memory_space<vmem>>, vector<8x16x128xbf16>
    %143 = vector.shape_cast %142 : vector<8x16x128xbf16> to vector<128x128xbf16>
    %c7 = arith.constant 7 : index
    %c0_118 = arith.constant 0 : index
    %c0_119 = arith.constant 0 : index
    %144 = vector.load %arg7[%c7, %c0_118, %c0_119] : memref<9x128x4xbf16, #tpu.memory_space<vmem>>, vector<1x128x4xbf16>
    %145 = vector.shape_cast %144 : vector<1x128x4xbf16> to vector<128x4xbf16>
    %cst_120 = arith.constant dense<0.000000e+00> : vector<128x4xf32>
    %146 = tpu.matmul %143, %145, %cst_120 {dimension_numbers = #tpu.dot_dimension_numbers<[1], [0], [0], [1], [0, 0, 1, 1], [], []>} : vector<128x128xbf16>, vector<128x4xbf16>, vector<128x4xf32> -> vector<128x4xf32>
    %c0_121 = arith.constant 0 : index
    %c0_122 = arith.constant 0 : index
    %147 = vector.load %arg11[%c0_121, %c0_122] : memref<128x4xf32, #tpu.memory_space<vmem>>, vector<128x4xf32>
    %148 = arith.addf %147, %146 : vector<128x4xf32>
    %c0_123 = arith.constant 0 : index
    %c0_124 = arith.constant 0 : index
    %149 = vector.load %arg11[%c0_123, %c0_124] : memref<128x4xf32, #tpu.memory_space<vmem>>, vector<128x4xf32>
    tpu.vector_store %arg11[%c0_123, %c0_124], %148 {strides = array<i32>} : memref<128x4xf32, #tpu.memory_space<vmem>>, vector<128x4xf32>,
    %c2_125 = arith.constant 2 : index
    %c2_126 = arith.constant 2 : index
    %c0_127 = arith.constant 0 : index
    %150 = vector.load %arg10[%c2_125, %c2_126, %c0_127] : memref<10x18x128xbf16, #tpu.memory_space<vmem>>, vector<8x16x128xbf16>
    %151 = vector.shape_cast %150 : vector<8x16x128xbf16> to vector<128x128xbf16>
    %c8 = arith.constant 8 : index
    %c0_128 = arith.constant 0 : index
    %c0_129 = arith.constant 0 : index
    %152 = vector.load %arg7[%c8, %c0_128, %c0_129] : memref<9x128x4xbf16, #tpu.memory_space<vmem>>, vector<1x128x4xbf16>
    %153 = vector.shape_cast %152 : vector<1x128x4xbf16> to vector<128x4xbf16>
    %cst_130 = arith.constant dense<0.000000e+00> : vector<128x4xf32>
    %154 = tpu.matmul %151, %153, %cst_130 {dimension_numbers = #tpu.dot_dimension_numbers<[1], [0], [0], [1], [0, 0, 1, 1], [], []>} : vector<128x128xbf16>, vector<128x4xbf16>, vector<128x4xf32> -> vector<128x4xf32>
    %c0_131 = arith.constant 0 : index
    %c0_132 = arith.constant 0 : index
    %155 = vector.load %arg11[%c0_131, %c0_132] : memref<128x4xf32, #tpu.memory_space<vmem>>, vector<128x4xf32>
    %156 = arith.addf %155, %154 : vector<128x4xf32>
    %c0_133 = arith.constant 0 : index
    %c0_134 = arith.constant 0 : index
    %157 = vector.load %arg11[%c0_133, %c0_134] : memref<128x4xf32, #tpu.memory_space<vmem>>, vector<128x4xf32>
    tpu.vector_store %arg11[%c0_133, %c0_134], %156 {strides = array<i32>} : memref<128x4xf32, #tpu.memory_space<vmem>>, vector<128x4xf32>,
    %c0_135 = arith.constant 0 : index
    %c0_136 = arith.constant 0 : index
    %158 = vector.load %arg11[%c0_135, %c0_136] : memref<128x4xf32, #tpu.memory_space<vmem>>, vector<128x4xf32>
    %c0_137 = arith.constant 0 : index
    %c0_138 = arith.constant 0 : index
    %159 = vector.load %arg8[%c0_137, %c0_138] : memref<1x4xf32, #tpu.memory_space<vmem>>, vector<1x4xf32>
    %160 = vector.broadcast %159 : vector<1x4xf32> to vector<128x4xf32>
    %161 = arith.addf %158, %160 : vector<128x4xf32>
    %cst_139 = arith.constant 2.000000e+01 : f32
    %162 = vector.broadcast %cst_139 : f32 to vector<128x4xf32>
    %163 = arith.minimumf %161, %162 : vector<128x4xf32>
    %164 = math.exp %163 : vector<128x4xf32>
    %cst_140 = arith.constant 1.000000e+00 : f32
    %165 = vector.broadcast %cst_140 : f32 to vector<128x4xf32>
    %166 = arith.addf %165, %164 : vector<128x4xf32>
    %cst_141 = arith.constant 1.000000e+00 : f32
    %167 = vector.broadcast %cst_141 : f32 to vector<128x4xf32>
    %168 = arith.addf %167, %164 : vector<128x4xf32>
    %169 = arith.mulf %166, %168 : vector<128x4xf32>
    %cst_142 = arith.constant 1.000000e+00 : f32
    %170 = vector.broadcast %cst_142 : f32 to vector<128x4xf32>
    %171 = arith.subf %169, %170 : vector<128x4xf32>
    %172 = arith.mulf %161, %171 : vector<128x4xf32>
    %cst_143 = arith.constant 1.000000e+00 : f32
    %173 = vector.broadcast %cst_143 : f32 to vector<128x4xf32>
    %174 = arith.addf %169, %173 : vector<128x4xf32>
    %175 = tpu.reciprocal %174 {approx = true} : vector<128x4xf32> -> vector<128x4xf32>
    %176 = arith.mulf %172, %175 : vector<128x4xf32>
    %c0_144 = arith.constant 0 : index
    %c0_145 = arith.constant 0 : index
    %c0_146 = arith.constant 0 : index
    %c0_147 = arith.constant 0 : index
    %177 = vector.load %arg2[%c0_144, %c0_145, %c0_146, %c0_147] : memref<1x8x16x4xf32, #tpu.memory_space<vmem>>, vector<1x8x16x4xf32>
    %178 = vector.shape_cast %177 : vector<1x8x16x4xf32> to vector<8x16x4xf32>
    %179 = vector.shape_cast %176 : vector<128x4xf32> to vector<8x16x4xf32>
    %180 = arith.addf %178, %179 : vector<8x16x4xf32>
    %c0_148 = arith.constant 0 : index
    %c0_149 = arith.constant 0 : index
    %c0_150 = arith.constant 0 : index
    %c0_151 = arith.constant 0 : index
    %181 = vector.load %arg9[%c0_148, %c0_149, %c0_150, %c0_151] : memref<1x8x16x4xf32, #tpu.memory_space<vmem>>, vector<1x8x16x4xf32>
    %182 = vector.shape_cast %181 : vector<1x8x16x4xf32> to vector<8x16x4xf32>
    %183 = vector.shape_cast %180 : vector<8x16x4xf32> to vector<1x8x16x4xf32>
    tpu.vector_store %arg9[%c0_148, %c0_149, %c0_150, %c0_151], %183 {strides = array<i32>} : memref<1x8x16x4xf32, #tpu.memory_space<vmem>>, vector<1x8x16x4xf32>,
    return
  }
  func.func @transform_0(%arg0: i32, %arg1: i32) -> (i32, i32, i32, i32) {
    %c0_i32 = arith.constant 0 : i32
    %c0_i32_0 = arith.constant 0 : i32
    %c0_i32_1 = arith.constant 0 : i32
    return %arg0, %arg1, %c0_i32, %c0_i32_0 : i32, i32, i32, i32
  }
  func.func @transform_1(%arg0: i32, %arg1: i32) -> (i32, i32, i32, i32) {
    %c8_i32 = arith.constant 8 : i32
    %0 = arith.muli %arg1, %c8_i32 : i32
    %c1_i32 = arith.constant 1 : i32
    %1 = arith.subi %0, %c1_i32 : i32
    %c0_i32 = arith.constant 0 : i32
    %2 = arith.maxsi %1, %c0_i32 : i32
    %c0_i32_0 = arith.constant 0 : i32
    %c0_i32_1 = arith.constant 0 : i32
    %c0_i32_2 = arith.constant 0 : i32
    return %arg0, %2, %c0_i32_0, %c0_i32_1 : i32, i32, i32, i32
  }
  func.func @transform_2(%arg0: i32, %arg1: i32) -> (i32, i32, i32, i32) {
    %c8_i32 = arith.constant 8 : i32
    %0 = arith.muli %arg1, %c8_i32 : i32
    %c8_i32_0 = arith.constant 8 : i32
    %1 = arith.addi %0, %c8_i32_0 : i32
    %c15_i32 = arith.constant 15 : i32
    %2 = arith.minsi %1, %c15_i32 : i32
    %c0_i32 = arith.constant 0 : i32
    %c0_i32_1 = arith.constant 0 : i32
    %c0_i32_2 = arith.constant 0 : i32
    return %arg0, %2, %c0_i32, %c0_i32_1 : i32, i32, i32, i32
  }
  func.func @transform_3(%arg0: i32, %arg1: i32) -> (i32, i32) {
    %c0_i32 = arith.constant 0 : i32
    %c0_i32_0 = arith.constant 0 : i32
    %c0_i32_1 = arith.constant 0 : i32
    return %c0_i32, %c0_i32_0 : i32, i32
  }
  func.func @transform_4(%arg0: i32, %arg1: i32) -> (i32, i32) {
    %c0_i32 = arith.constant 0 : i32
    %c0_i32_0 = arith.constant 0 : i32
    %c0_i32_1 = arith.constant 0 : i32
    return %c0_i32, %c0_i32_0 : i32, i32
  }
  func.func @transform_5(%arg0: i32, %arg1: i32) -> (i32, i32, i32) {
    %c0_i32 = arith.constant 0 : i32
    %c0_i32_0 = arith.constant 0 : i32
    %c0_i32_1 = arith.constant 0 : i32
    %c0_i32_2 = arith.constant 0 : i32
    return %c0_i32, %c0_i32_0, %c0_i32_1 : i32, i32, i32
  }
  func.func @transform_6(%arg0: i32, %arg1: i32) -> (i32, i32) {
    %c0_i32 = arith.constant 0 : i32
    %c0_i32_0 = arith.constant 0 : i32
    %c0_i32_1 = arith.constant 0 : i32
    return %c0_i32, %c0_i32_0 : i32, i32
  }
  func.func @transform_7(%arg0: i32, %arg1: i32) -> (i32, i32, i32, i32) {
    %c0_i32 = arith.constant 0 : i32
    %c0_i32_0 = arith.constant 0 : i32
    %c0_i32_1 = arith.constant 0 : i32
    return %arg0, %arg1, %c0_i32, %c0_i32_0 : i32, i32, i32, i32
  }
}

module attributes {stable_mosaic.version = 11 : i64} {
  func.func @_resblock_kernel(%arg0: i32, %arg1: i32, %arg2: memref<1x8x16x4xf32, #tpu.memory_space<vmem>>, %arg3: memref<1x1x16x4xf32, #tpu.memory_space<vmem>>, %arg4: memref<1x1x16x4xf32, #tpu.memory_space<vmem>>, %arg5: memref<4x128xbf16, #tpu.memory_space<vmem>>, %arg6: memref<1x128xf32, #tpu.memory_space<vmem>>, %arg7: memref<9x128x4xbf16, #tpu.memory_space<vmem>>, %arg8: memref<1x4xf32, #tpu.memory_space<vmem>>, %arg9: memref<1x8x16x4xf32, #tpu.memory_space<vmem>>, %arg10: memref<10x18x128xbf16, #tpu.memory_space<vmem>>, %arg11: memref<128x4xf32, #tpu.memory_space<vmem>>) attributes {dimension_semantics = [#tpu.dimension_semantics<parallel>, #tpu.dimension_semantics<parallel>], iteration_bounds = array<i64: 2, 2>, scalar_prefetch = 0 : i64, scratch_operands = 2 : i64, tpu.core_type = #tpu.core_type<tc>, window_params = [{transform_indices = @transform_0, window_bounds = array<i64: 1, 8, 16, 4>}, {transform_indices = @transform_1, window_bounds = array<i64: 1, 1, 16, 4>}, {transform_indices = @transform_2, window_bounds = array<i64: 1, 1, 16, 4>}, {pipeline_mode = #tpu.pipeline_mode<synchronous>, transform_indices = @transform_3, window_bounds = array<i64: 4, 128>}, {pipeline_mode = #tpu.pipeline_mode<synchronous>, transform_indices = @transform_4, window_bounds = array<i64: 1, 128>}, {pipeline_mode = #tpu.pipeline_mode<synchronous>, transform_indices = @transform_5, window_bounds = array<i64: 9, 128, 4>}, {pipeline_mode = #tpu.pipeline_mode<synchronous>, transform_indices = @transform_6, window_bounds = array<i64: 1, 4>}, {transform_indices = @transform_7, window_bounds = array<i64: 1, 8, 16, 4>}]} {
    %c0 = arith.constant 0 : index
    %c0_0 = arith.constant 0 : index
    %0 = vector.load %arg5[%c0, %c0_0] : memref<4x128xbf16, #tpu.memory_space<vmem>>, vector<4x128xbf16>
    %c0_1 = arith.constant 0 : index
    %c0_2 = arith.constant 0 : index
    %1 = vector.load %arg6[%c0_1, %c0_2] : memref<1x128xf32, #tpu.memory_space<vmem>>, vector<1x128xf32>
    %cst = arith.constant 0.000000e+00 : bf16
    %2 = vector.broadcast %cst : bf16 to vector<10x1x128xbf16>
    %c0_3 = arith.constant 0 : index
    %c0_4 = arith.constant 0 : index
    %c0_5 = arith.constant 0 : index
    %3 = vector.load %arg10[%c0_3, %c0_4, %c0_5] : memref<10x18x128xbf16, #tpu.memory_space<vmem>>, vector<10x1x128xbf16>
    tpu.vector_store %arg10[%c0_3, %c0_4, %c0_5], %2 {strides = array<i32>} : memref<10x18x128xbf16, #tpu.memory_space<vmem>>, vector<10x1x128xbf16>,
    %c0_6 = arith.constant 0 : index
    %c17 = arith.constant 17 : index
    %c0_7 = arith.constant 0 : index
    %4 = vector.load %arg10[%c0_6, %c17, %c0_7] : memref<10x18x128xbf16, #tpu.memory_space<vmem>>, vector<10x1x128xbf16>
    tpu.vector_store %arg10[%c0_6, %c17, %c0_7], %2 {strides = array<i32>} : memref<10x18x128xbf16, #tpu.memory_space<vmem>>, vector<10x1x128xbf16>,
    %c0_8 = arith.constant 0 : index
    %c0_9 = arith.constant 0 : index
    %c0_10 = arith.constant 0 : index
    %c0_11 = arith.constant 0 : index
    %5 = vector.load %arg2[%c0_8, %c0_9, %c0_10, %c0_11] : memref<1x8x16x4xf32, #tpu.memory_space<vmem>>, vector<1x8x16x4xf32>
    %6 = vector.shape_cast %5 : vector<1x8x16x4xf32> to vector<8x16x4xf32>
    %7 = vector.shape_cast %6 : vector<8x16x4xf32> to vector<128x4xf32>
    %8 = arith.truncf %7 : vector<128x4xf32> to vector<128x4xbf16>
    %cst_12 = arith.constant dense<0.000000e+00> : vector<128x128xf32>
    %9 = tpu.matmul %8, %0, %cst_12 {dimension_numbers = #tpu.dot_dimension_numbers<[1], [0], [0], [1], [0, 0, 1, 1], [], []>} : vector<128x4xbf16>, vector<4x128xbf16>, vector<128x128xf32> -> vector<128x128xf32>
    %10 = vector.broadcast %1 : vector<1x128xf32> to vector<128x128xf32>
    %11 = arith.addf %9, %10 : vector<128x128xf32>
    %cst_13 = arith.constant 2.000000e+01 : f32
    %12 = vector.broadcast %cst_13 : f32 to vector<128x128xf32>
    %13 = arith.minimumf %11, %12 : vector<128x128xf32>
    %14 = math.exp %13 : vector<128x128xf32>
    %cst_14 = arith.constant 1.000000e+00 : f32
    %15 = vector.broadcast %cst_14 : f32 to vector<128x128xf32>
    %16 = arith.addf %15, %14 : vector<128x128xf32>
    %cst_15 = arith.constant 1.000000e+00 : f32
    %17 = vector.broadcast %cst_15 : f32 to vector<128x128xf32>
    %18 = arith.addf %17, %14 : vector<128x128xf32>
    %19 = arith.mulf %16, %18 : vector<128x128xf32>
    %cst_16 = arith.constant 1.000000e+00 : f32
    %20 = vector.broadcast %cst_16 : f32 to vector<128x128xf32>
    %21 = arith.subf %19, %20 : vector<128x128xf32>
    %22 = arith.mulf %11, %21 : vector<128x128xf32>
    %cst_17 = arith.constant 1.000000e+00 : f32
    %23 = vector.broadcast %cst_17 : f32 to vector<128x128xf32>
    %24 = arith.addf %19, %23 : vector<128x128xf32>
    %25 = tpu.reciprocal %24 {approx = true} : vector<128x128xf32> -> vector<128x128xf32>
    %26 = arith.mulf %22, %25 : vector<128x128xf32>
    %27 = vector.shape_cast %26 : vector<128x128xf32> to vector<8x16x128xf32>
    %28 = arith.truncf %27 : vector<8x16x128xf32> to vector<8x16x128xbf16>
    %c1 = arith.constant 1 : index
    %c1_18 = arith.constant 1 : index
    %c0_19 = arith.constant 0 : index
    %29 = vector.load %arg10[%c1, %c1_18, %c0_19] : memref<10x18x128xbf16, #tpu.memory_space<vmem>>, vector<8x16x128xbf16>
    tpu.vector_store %arg10[%c1, %c1_18, %c0_19], %28 {strides = array<i32>} : memref<10x18x128xbf16, #tpu.memory_space<vmem>>, vector<8x16x128xbf16>,
    %c0_i32 = arith.constant 0 : i32
    %30 = arith.cmpi sgt, %arg1, %c0_i32 : i32
    %31 = arith.extui %30 : i1 to i32
    %32 = arith.sitofp %31 : i32 to f32
    %c0_20 = arith.constant 0 : index
    %c0_21 = arith.constant 0 : index
    %c0_22 = arith.constant 0 : index
    %c0_23 = arith.constant 0 : index
    %33 = vector.load %arg3[%c0_20, %c0_21, %c0_22, %c0_23] : memref<1x1x16x4xf32, #tpu.memory_space<vmem>>, vector<1x1x16x4xf32>
    %34 = vector.shape_cast %33 : vector<1x1x16x4xf32> to vector<16x4xf32>
    %35 = arith.truncf %34 : vector<16x4xf32> to vector<16x4xbf16>
    %cst_24 = arith.constant dense<0.000000e+00> : vector<16x128xf32>
    %36 = tpu.matmul %35, %0, %cst_24 {dimension_numbers = #tpu.dot_dimension_numbers<[1], [0], [0], [1], [0, 0, 1, 1], [], []>} : vector<16x4xbf16>, vector<4x128xbf16>, vector<16x128xf32> -> vector<16x128xf32>
    %37 = vector.broadcast %1 : vector<1x128xf32> to vector<16x128xf32>
    %38 = arith.addf %36, %37 : vector<16x128xf32>
    %cst_25 = arith.constant 2.000000e+01 : f32
    %39 = vector.broadcast %cst_25 : f32 to vector<16x128xf32>
    %40 = arith.minimumf %38, %39 : vector<16x128xf32>
    %41 = math.exp %40 : vector<16x128xf32>
    %cst_26 = arith.constant 1.000000e+00 : f32
    %42 = vector.broadcast %cst_26 : f32 to vector<16x128xf32>
    %43 = arith.addf %42, %41 : vector<16x128xf32>
    %cst_27 = arith.constant 1.000000e+00 : f32
    %44 = vector.broadcast %cst_27 : f32 to vector<16x128xf32>
    %45 = arith.addf %44, %41 : vector<16x128xf32>
    %46 = arith.mulf %43, %45 : vector<16x128xf32>
    %cst_28 = arith.constant 1.000000e+00 : f32
    %47 = vector.broadcast %cst_28 : f32 to vector<16x128xf32>
    %48 = arith.subf %46, %47 : vector<16x128xf32>
    %49 = arith.mulf %38, %48 : vector<16x128xf32>
    %cst_29 = arith.constant 1.000000e+00 : f32
    %50 = vector.broadcast %cst_29 : f32 to vector<16x128xf32>
    %51 = arith.addf %46, %50 : vector<16x128xf32>
    %52 = tpu.reciprocal %51 {approx = true} : vector<16x128xf32> -> vector<16x128xf32>
    %53 = arith.mulf %49, %52 : vector<16x128xf32>
    %54 = vector.broadcast %32 : f32 to vector<16x128xf32>
    %55 = arith.mulf %53, %54 : vector<16x128xf32>
    %56 = vector.shape_cast %55 : vector<16x128xf32> to vector<1x16x128xf32>
    %57 = arith.truncf %56 : vector<1x16x128xf32> to vector<1x16x128xbf16>
    %c0_30 = arith.constant 0 : index
    %c1_31 = arith.constant 1 : index
    %c0_32 = arith.constant 0 : index
    %58 = vector.load %arg10[%c0_30, %c1_31, %c0_32] : memref<10x18x128xbf16, #tpu.memory_space<vmem>>, vector<1x16x128xbf16>
    tpu.vector_store %arg10[%c0_30, %c1_31, %c0_32], %57 {strides = array<i32>} : memref<10x18x128xbf16, #tpu.memory_space<vmem>>, vector<1x16x128xbf16>,
    %c1_i32 = arith.constant 1 : i32
    %59 = arith.cmpi slt, %arg1, %c1_i32 : i32
    %60 = arith.extui %59 : i1 to i32
    %61 = arith.sitofp %60 : i32 to f32
    %c0_33 = arith.constant 0 : index
    %c0_34 = arith.constant 0 : index
    %c0_35 = arith.constant 0 : index
    %c0_36 = arith.constant 0 : index
    %62 = vector.load %arg4[%c0_33, %c0_34, %c0_35, %c0_36] : memref<1x1x16x4xf32, #tpu.memory_space<vmem>>, vector<1x1x16x4xf32>
    %63 = vector.shape_cast %62 : vector<1x1x16x4xf32> to vector<16x4xf32>
    %64 = arith.truncf %63 : vector<16x4xf32> to vector<16x4xbf16>
    %cst_37 = arith.constant dense<0.000000e+00> : vector<16x128xf32>
    %65 = tpu.matmul %64, %0, %cst_37 {dimension_numbers = #tpu.dot_dimension_numbers<[1], [0], [0], [1], [0, 0, 1, 1], [], []>} : vector<16x4xbf16>, vector<4x128xbf16>, vector<16x128xf32> -> vector<16x128xf32>
    %66 = vector.broadcast %1 : vector<1x128xf32> to vector<16x128xf32>
    %67 = arith.addf %65, %66 : vector<16x128xf32>
    %cst_38 = arith.constant 2.000000e+01 : f32
    %68 = vector.broadcast %cst_38 : f32 to vector<16x128xf32>
    %69 = arith.minimumf %67, %68 : vector<16x128xf32>
    %70 = math.exp %69 : vector<16x128xf32>
    %cst_39 = arith.constant 1.000000e+00 : f32
    %71 = vector.broadcast %cst_39 : f32 to vector<16x128xf32>
    %72 = arith.addf %71, %70 : vector<16x128xf32>
    %cst_40 = arith.constant 1.000000e+00 : f32
    %73 = vector.broadcast %cst_40 : f32 to vector<16x128xf32>
    %74 = arith.addf %73, %70 : vector<16x128xf32>
    %75 = arith.mulf %72, %74 : vector<16x128xf32>
    %cst_41 = arith.constant 1.000000e+00 : f32
    %76 = vector.broadcast %cst_41 : f32 to vector<16x128xf32>
    %77 = arith.subf %75, %76 : vector<16x128xf32>
    %78 = arith.mulf %67, %77 : vector<16x128xf32>
    %cst_42 = arith.constant 1.000000e+00 : f32
    %79 = vector.broadcast %cst_42 : f32 to vector<16x128xf32>
    %80 = arith.addf %75, %79 : vector<16x128xf32>
    %81 = tpu.reciprocal %80 {approx = true} : vector<16x128xf32> -> vector<16x128xf32>
    %82 = arith.mulf %78, %81 : vector<16x128xf32>
    %83 = vector.broadcast %61 : f32 to vector<16x128xf32>
    %84 = arith.mulf %82, %83 : vector<16x128xf32>
    %85 = vector.shape_cast %84 : vector<16x128xf32> to vector<1x16x128xf32>
    %86 = arith.truncf %85 : vector<1x16x128xf32> to vector<1x16x128xbf16>
    %c9 = arith.constant 9 : index
    %c1_43 = arith.constant 1 : index
    %c0_44 = arith.constant 0 : index
    %87 = vector.load %arg10[%c9, %c1_43, %c0_44] : memref<10x18x128xbf16, #tpu.memory_space<vmem>>, vector<1x16x128xbf16>
    tpu.vector_store %arg10[%c9, %c1_43, %c0_44], %86 {strides = array<i32>} : memref<10x18x128xbf16, #tpu.memory_space<vmem>>, vector<1x16x128xbf16>,
    %c0_45 = arith.constant 0 : index
    %c0_46 = arith.constant 0 : index
    %c0_47 = arith.constant 0 : index
    %88 = vector.load %arg10[%c0_45, %c0_46, %c0_47] : memref<10x18x128xbf16, #tpu.memory_space<vmem>>, vector<8x16x128xbf16>
    %89 = vector.shape_cast %88 : vector<8x16x128xbf16> to vector<128x128xbf16>
    %c0_48 = arith.constant 0 : index
    %c0_49 = arith.constant 0 : index
    %c0_50 = arith.constant 0 : index
    %90 = vector.load %arg7[%c0_48, %c0_49, %c0_50] : memref<9x128x4xbf16, #tpu.memory_space<vmem>>, vector<1x128x4xbf16>
    %91 = vector.shape_cast %90 : vector<1x128x4xbf16> to vector<128x4xbf16>
    %cst_51 = arith.constant dense<0.000000e+00> : vector<128x4xf32>
    %92 = tpu.matmul %89, %91, %cst_51 {dimension_numbers = #tpu.dot_dimension_numbers<[1], [0], [0], [1], [0, 0, 1, 1], [], []>} : vector<128x128xbf16>, vector<128x4xbf16>, vector<128x4xf32> -> vector<128x4xf32>
    %c0_52 = arith.constant 0 : index
    %c0_53 = arith.constant 0 : index
    %93 = vector.load %arg11[%c0_52, %c0_53] : memref<128x4xf32, #tpu.memory_space<vmem>>, vector<128x4xf32>
    tpu.vector_store %arg11[%c0_52, %c0_53], %92 {strides = array<i32>} : memref<128x4xf32, #tpu.memory_space<vmem>>, vector<128x4xf32>,
    %c0_54 = arith.constant 0 : index
    %c1_55 = arith.constant 1 : index
    %c0_56 = arith.constant 0 : index
    %94 = vector.load %arg10[%c0_54, %c1_55, %c0_56] : memref<10x18x128xbf16, #tpu.memory_space<vmem>>, vector<8x16x128xbf16>
    %95 = vector.shape_cast %94 : vector<8x16x128xbf16> to vector<128x128xbf16>
    %c1_57 = arith.constant 1 : index
    %c0_58 = arith.constant 0 : index
    %c0_59 = arith.constant 0 : index
    %96 = vector.load %arg7[%c1_57, %c0_58, %c0_59] : memref<9x128x4xbf16, #tpu.memory_space<vmem>>, vector<1x128x4xbf16>
    %97 = vector.shape_cast %96 : vector<1x128x4xbf16> to vector<128x4xbf16>
    %cst_60 = arith.constant dense<0.000000e+00> : vector<128x4xf32>
    %98 = tpu.matmul %95, %97, %cst_60 {dimension_numbers = #tpu.dot_dimension_numbers<[1], [0], [0], [1], [0, 0, 1, 1], [], []>} : vector<128x128xbf16>, vector<128x4xbf16>, vector<128x4xf32> -> vector<128x4xf32>
    %c0_61 = arith.constant 0 : index
    %c0_62 = arith.constant 0 : index
    %99 = vector.load %arg11[%c0_61, %c0_62] : memref<128x4xf32, #tpu.memory_space<vmem>>, vector<128x4xf32>
    %100 = arith.addf %99, %98 : vector<128x4xf32>
    %c0_63 = arith.constant 0 : index
    %c0_64 = arith.constant 0 : index
    %101 = vector.load %arg11[%c0_63, %c0_64] : memref<128x4xf32, #tpu.memory_space<vmem>>, vector<128x4xf32>
    tpu.vector_store %arg11[%c0_63, %c0_64], %100 {strides = array<i32>} : memref<128x4xf32, #tpu.memory_space<vmem>>, vector<128x4xf32>,
    %c0_65 = arith.constant 0 : index
    %c2 = arith.constant 2 : index
    %c0_66 = arith.constant 0 : index
    %102 = vector.load %arg10[%c0_65, %c2, %c0_66] : memref<10x18x128xbf16, #tpu.memory_space<vmem>>, vector<8x16x128xbf16>
    %103 = vector.shape_cast %102 : vector<8x16x128xbf16> to vector<128x128xbf16>
    %c2_67 = arith.constant 2 : index
    %c0_68 = arith.constant 0 : index
    %c0_69 = arith.constant 0 : index
    %104 = vector.load %arg7[%c2_67, %c0_68, %c0_69] : memref<9x128x4xbf16, #tpu.memory_space<vmem>>, vector<1x128x4xbf16>
    %105 = vector.shape_cast %104 : vector<1x128x4xbf16> to vector<128x4xbf16>
    %cst_70 = arith.constant dense<0.000000e+00> : vector<128x4xf32>
    %106 = tpu.matmul %103, %105, %cst_70 {dimension_numbers = #tpu.dot_dimension_numbers<[1], [0], [0], [1], [0, 0, 1, 1], [], []>} : vector<128x128xbf16>, vector<128x4xbf16>, vector<128x4xf32> -> vector<128x4xf32>
    %c0_71 = arith.constant 0 : index
    %c0_72 = arith.constant 0 : index
    %107 = vector.load %arg11[%c0_71, %c0_72] : memref<128x4xf32, #tpu.memory_space<vmem>>, vector<128x4xf32>
    %108 = arith.addf %107, %106 : vector<128x4xf32>
    %c0_73 = arith.constant 0 : index
    %c0_74 = arith.constant 0 : index
    %109 = vector.load %arg11[%c0_73, %c0_74] : memref<128x4xf32, #tpu.memory_space<vmem>>, vector<128x4xf32>
    tpu.vector_store %arg11[%c0_73, %c0_74], %108 {strides = array<i32>} : memref<128x4xf32, #tpu.memory_space<vmem>>, vector<128x4xf32>,
    %c1_75 = arith.constant 1 : index
    %c0_76 = arith.constant 0 : index
    %c0_77 = arith.constant 0 : index
    %110 = vector.load %arg10[%c1_75, %c0_76, %c0_77] : memref<10x18x128xbf16, #tpu.memory_space<vmem>>, vector<8x16x128xbf16>
    %111 = vector.shape_cast %110 : vector<8x16x128xbf16> to vector<128x128xbf16>
    %c3 = arith.constant 3 : index
    %c0_78 = arith.constant 0 : index
    %c0_79 = arith.constant 0 : index
    %112 = vector.load %arg7[%c3, %c0_78, %c0_79] : memref<9x128x4xbf16, #tpu.memory_space<vmem>>, vector<1x128x4xbf16>
    %113 = vector.shape_cast %112 : vector<1x128x4xbf16> to vector<128x4xbf16>
    %cst_80 = arith.constant dense<0.000000e+00> : vector<128x4xf32>
    %114 = tpu.matmul %111, %113, %cst_80 {dimension_numbers = #tpu.dot_dimension_numbers<[1], [0], [0], [1], [0, 0, 1, 1], [], []>} : vector<128x128xbf16>, vector<128x4xbf16>, vector<128x4xf32> -> vector<128x4xf32>
    %c0_81 = arith.constant 0 : index
    %c0_82 = arith.constant 0 : index
    %115 = vector.load %arg11[%c0_81, %c0_82] : memref<128x4xf32, #tpu.memory_space<vmem>>, vector<128x4xf32>
    %116 = arith.addf %115, %114 : vector<128x4xf32>
    %c0_83 = arith.constant 0 : index
    %c0_84 = arith.constant 0 : index
    %117 = vector.load %arg11[%c0_83, %c0_84] : memref<128x4xf32, #tpu.memory_space<vmem>>, vector<128x4xf32>
    tpu.vector_store %arg11[%c0_83, %c0_84], %116 {strides = array<i32>} : memref<128x4xf32, #tpu.memory_space<vmem>>, vector<128x4xf32>,
    %c1_85 = arith.constant 1 : index
    %c1_86 = arith.constant 1 : index
    %c0_87 = arith.constant 0 : index
    %118 = vector.load %arg10[%c1_85, %c1_86, %c0_87] : memref<10x18x128xbf16, #tpu.memory_space<vmem>>, vector<8x16x128xbf16>
    %119 = vector.shape_cast %118 : vector<8x16x128xbf16> to vector<128x128xbf16>
    %c4 = arith.constant 4 : index
    %c0_88 = arith.constant 0 : index
    %c0_89 = arith.constant 0 : index
    %120 = vector.load %arg7[%c4, %c0_88, %c0_89] : memref<9x128x4xbf16, #tpu.memory_space<vmem>>, vector<1x128x4xbf16>
    %121 = vector.shape_cast %120 : vector<1x128x4xbf16> to vector<128x4xbf16>
    %cst_90 = arith.constant dense<0.000000e+00> : vector<128x4xf32>
    %122 = tpu.matmul %119, %121, %cst_90 {dimension_numbers = #tpu.dot_dimension_numbers<[1], [0], [0], [1], [0, 0, 1, 1], [], []>} : vector<128x128xbf16>, vector<128x4xbf16>, vector<128x4xf32> -> vector<128x4xf32>
    %c0_91 = arith.constant 0 : index
    %c0_92 = arith.constant 0 : index
    %123 = vector.load %arg11[%c0_91, %c0_92] : memref<128x4xf32, #tpu.memory_space<vmem>>, vector<128x4xf32>
    %124 = arith.addf %123, %122 : vector<128x4xf32>
    %c0_93 = arith.constant 0 : index
    %c0_94 = arith.constant 0 : index
    %125 = vector.load %arg11[%c0_93, %c0_94] : memref<128x4xf32, #tpu.memory_space<vmem>>, vector<128x4xf32>
    tpu.vector_store %arg11[%c0_93, %c0_94], %124 {strides = array<i32>} : memref<128x4xf32, #tpu.memory_space<vmem>>, vector<128x4xf32>,
    %c1_95 = arith.constant 1 : index
    %c2_96 = arith.constant 2 : index
    %c0_97 = arith.constant 0 : index
    %126 = vector.load %arg10[%c1_95, %c2_96, %c0_97] : memref<10x18x128xbf16, #tpu.memory_space<vmem>>, vector<8x16x128xbf16>
    %127 = vector.shape_cast %126 : vector<8x16x128xbf16> to vector<128x128xbf16>
    %c5 = arith.constant 5 : index
    %c0_98 = arith.constant 0 : index
    %c0_99 = arith.constant 0 : index
    %128 = vector.load %arg7[%c5, %c0_98, %c0_99] : memref<9x128x4xbf16, #tpu.memory_space<vmem>>, vector<1x128x4xbf16>
    %129 = vector.shape_cast %128 : vector<1x128x4xbf16> to vector<128x4xbf16>
    %cst_100 = arith.constant dense<0.000000e+00> : vector<128x4xf32>
    %130 = tpu.matmul %127, %129, %cst_100 {dimension_numbers = #tpu.dot_dimension_numbers<[1], [0], [0], [1], [0, 0, 1, 1], [], []>} : vector<128x128xbf16>, vector<128x4xbf16>, vector<128x4xf32> -> vector<128x4xf32>
    %c0_101 = arith.constant 0 : index
    %c0_102 = arith.constant 0 : index
    %131 = vector.load %arg11[%c0_101, %c0_102] : memref<128x4xf32, #tpu.memory_space<vmem>>, vector<128x4xf32>
    %132 = arith.addf %131, %130 : vector<128x4xf32>
    %c0_103 = arith.constant 0 : index
    %c0_104 = arith.constant 0 : index
    %133 = vector.load %arg11[%c0_103, %c0_104] : memref<128x4xf32, #tpu.memory_space<vmem>>, vector<128x4xf32>
    tpu.vector_store %arg11[%c0_103, %c0_104], %132 {strides = array<i32>} : memref<128x4xf32, #tpu.memory_space<vmem>>, vector<128x4xf32>,
    %c2_105 = arith.constant 2 : index
    %c0_106 = arith.constant 0 : index
    %c0_107 = arith.constant 0 : index
    %134 = vector.load %arg10[%c2_105, %c0_106, %c0_107] : memref<10x18x128xbf16, #tpu.memory_space<vmem>>, vector<8x16x128xbf16>
    %135 = vector.shape_cast %134 : vector<8x16x128xbf16> to vector<128x128xbf16>
    %c6 = arith.constant 6 : index
    %c0_108 = arith.constant 0 : index
    %c0_109 = arith.constant 0 : index
    %136 = vector.load %arg7[%c6, %c0_108, %c0_109] : memref<9x128x4xbf16, #tpu.memory_space<vmem>>, vector<1x128x4xbf16>
    %137 = vector.shape_cast %136 : vector<1x128x4xbf16> to vector<128x4xbf16>
    %cst_110 = arith.constant dense<0.000000e+00> : vector<128x4xf32>
    %138 = tpu.matmul %135, %137, %cst_110 {dimension_numbers = #tpu.dot_dimension_numbers<[1], [0], [0], [1], [0, 0, 1, 1], [], []>} : vector<128x128xbf16>, vector<128x4xbf16>, vector<128x4xf32> -> vector<128x4xf32>
    %c0_111 = arith.constant 0 : index
    %c0_112 = arith.constant 0 : index
    %139 = vector.load %arg11[%c0_111, %c0_112] : memref<128x4xf32, #tpu.memory_space<vmem>>, vector<128x4xf32>
    %140 = arith.addf %139, %138 : vector<128x4xf32>
    %c0_113 = arith.constant 0 : index
    %c0_114 = arith.constant 0 : index
    %141 = vector.load %arg11[%c0_113, %c0_114] : memref<128x4xf32, #tpu.memory_space<vmem>>, vector<128x4xf32>
    tpu.vector_store %arg11[%c0_113, %c0_114], %140 {strides = array<i32>} : memref<128x4xf32, #tpu.memory_space<vmem>>, vector<128x4xf32>,
    %c2_115 = arith.constant 2 : index
    %c1_116 = arith.constant 1 : index
    %c0_117 = arith.constant 0 : index
    %142 = vector.load %arg10[%c2_115, %c1_116, %c0_117] : memref<10x18x128xbf16, #tpu.memory_space<vmem>>, vector<8x16x128xbf16>
    %143 = vector.shape_cast %142 : vector<8x16x128xbf16> to vector<128x128xbf16>
    %c7 = arith.constant 7 : index
    %c0_118 = arith.constant 0 : index
    %c0_119 = arith.constant 0 : index
    %144 = vector.load %arg7[%c7, %c0_118, %c0_119] : memref<9x128x4xbf16, #tpu.memory_space<vmem>>, vector<1x128x4xbf16>
    %145 = vector.shape_cast %144 : vector<1x128x4xbf16> to vector<128x4xbf16>
    %cst_120 = arith.constant dense<0.000000e+00> : vector<128x4xf32>
    %146 = tpu.matmul %143, %145, %cst_120 {dimension_numbers = #tpu.dot_dimension_numbers<[1], [0], [0], [1], [0, 0, 1, 1], [], []>} : vector<128x128xbf16>, vector<128x4xbf16>, vector<128x4xf32> -> vector<128x4xf32>
    %c0_121 = arith.constant 0 : index
    %c0_122 = arith.constant 0 : index
    %147 = vector.load %arg11[%c0_121, %c0_122] : memref<128x4xf32, #tpu.memory_space<vmem>>, vector<128x4xf32>
    %148 = arith.addf %147, %146 : vector<128x4xf32>
    %c0_123 = arith.constant 0 : index
    %c0_124 = arith.constant 0 : index
    %149 = vector.load %arg11[%c0_123, %c0_124] : memref<128x4xf32, #tpu.memory_space<vmem>>, vector<128x4xf32>
    tpu.vector_store %arg11[%c0_123, %c0_124], %148 {strides = array<i32>} : memref<128x4xf32, #tpu.memory_space<vmem>>, vector<128x4xf32>,
    %c2_125 = arith.constant 2 : index
    %c2_126 = arith.constant 2 : index
    %c0_127 = arith.constant 0 : index
    %150 = vector.load %arg10[%c2_125, %c2_126, %c0_127] : memref<10x18x128xbf16, #tpu.memory_space<vmem>>, vector<8x16x128xbf16>
    %151 = vector.shape_cast %150 : vector<8x16x128xbf16> to vector<128x128xbf16>
    %c8 = arith.constant 8 : index
    %c0_128 = arith.constant 0 : index
    %c0_129 = arith.constant 0 : index
    %152 = vector.load %arg7[%c8, %c0_128, %c0_129] : memref<9x128x4xbf16, #tpu.memory_space<vmem>>, vector<1x128x4xbf16>
    %153 = vector.shape_cast %152 : vector<1x128x4xbf16> to vector<128x4xbf16>
    %cst_130 = arith.constant dense<0.000000e+00> : vector<128x4xf32>
    %154 = tpu.matmul %151, %153, %cst_130 {dimension_numbers = #tpu.dot_dimension_numbers<[1], [0], [0], [1], [0, 0, 1, 1], [], []>} : vector<128x128xbf16>, vector<128x4xbf16>, vector<128x4xf32> -> vector<128x4xf32>
    %c0_131 = arith.constant 0 : index
    %c0_132 = arith.constant 0 : index
    %155 = vector.load %arg11[%c0_131, %c0_132] : memref<128x4xf32, #tpu.memory_space<vmem>>, vector<128x4xf32>
    %156 = arith.addf %155, %154 : vector<128x4xf32>
    %c0_133 = arith.constant 0 : index
    %c0_134 = arith.constant 0 : index
    %157 = vector.load %arg11[%c0_133, %c0_134] : memref<128x4xf32, #tpu.memory_space<vmem>>, vector<128x4xf32>
    tpu.vector_store %arg11[%c0_133, %c0_134], %156 {strides = array<i32>} : memref<128x4xf32, #tpu.memory_space<vmem>>, vector<128x4xf32>,
    %c0_135 = arith.constant 0 : index
    %c0_136 = arith.constant 0 : index
    %158 = vector.load %arg11[%c0_135, %c0_136] : memref<128x4xf32, #tpu.memory_space<vmem>>, vector<128x4xf32>
    %c0_137 = arith.constant 0 : index
    %c0_138 = arith.constant 0 : index
    %159 = vector.load %arg8[%c0_137, %c0_138] : memref<1x4xf32, #tpu.memory_space<vmem>>, vector<1x4xf32>
    %160 = vector.broadcast %159 : vector<1x4xf32> to vector<128x4xf32>
    %161 = arith.addf %158, %160 : vector<128x4xf32>
    %cst_139 = arith.constant 2.000000e+01 : f32
    %162 = vector.broadcast %cst_139 : f32 to vector<128x4xf32>
    %163 = arith.minimumf %161, %162 : vector<128x4xf32>
    %164 = math.exp %163 : vector<128x4xf32>
    %cst_140 = arith.constant 1.000000e+00 : f32
    %165 = vector.broadcast %cst_140 : f32 to vector<128x4xf32>
    %166 = arith.addf %165, %164 : vector<128x4xf32>
    %cst_141 = arith.constant 1.000000e+00 : f32
    %167 = vector.broadcast %cst_141 : f32 to vector<128x4xf32>
    %168 = arith.addf %167, %164 : vector<128x4xf32>
    %169 = arith.mulf %166, %168 : vector<128x4xf32>
    %cst_142 = arith.constant 1.000000e+00 : f32
    %170 = vector.broadcast %cst_142 : f32 to vector<128x4xf32>
    %171 = arith.subf %169, %170 : vector<128x4xf32>
    %172 = arith.mulf %161, %171 : vector<128x4xf32>
    %cst_143 = arith.constant 1.000000e+00 : f32
    %173 = vector.broadcast %cst_143 : f32 to vector<128x4xf32>
    %174 = arith.addf %169, %173 : vector<128x4xf32>
    %175 = tpu.reciprocal %174 {approx = true} : vector<128x4xf32> -> vector<128x4xf32>
    %176 = arith.mulf %172, %175 : vector<128x4xf32>
    %c0_144 = arith.constant 0 : index
    %c0_145 = arith.constant 0 : index
    %c0_146 = arith.constant 0 : index
    %c0_147 = arith.constant 0 : index
    %177 = vector.load %arg2[%c0_144, %c0_145, %c0_146, %c0_147] : memref<1x8x16x4xf32, #tpu.memory_space<vmem>>, vector<1x8x16x4xf32>
    %178 = vector.shape_cast %177 : vector<1x8x16x4xf32> to vector<8x16x4xf32>
    %179 = vector.shape_cast %176 : vector<128x4xf32> to vector<8x16x4xf32>
    %180 = arith.addf %178, %179 : vector<8x16x4xf32>
    %c0_148 = arith.constant 0 : index
    %c0_149 = arith.constant 0 : index
    %c0_150 = arith.constant 0 : index
    %c0_151 = arith.constant 0 : index
    %181 = vector.load %arg9[%c0_148, %c0_149, %c0_150, %c0_151] : memref<1x8x16x4xf32, #tpu.memory_space<vmem>>, vector<1x8x16x4xf32>
    %182 = vector.shape_cast %181 : vector<1x8x16x4xf32> to vector<8x16x4xf32>
    %183 = vector.shape_cast %180 : vector<8x16x4xf32> to vector<1x8x16x4xf32>
    tpu.vector_store %arg9[%c0_148, %c0_149, %c0_150, %c0_151], %183 {strides = array<i32>} : memref<1x8x16x4xf32, #tpu.memory_space<vmem>>, vector<1x8x16x4xf32>,
    return
  }
  func.func @transform_0(%arg0: i32, %arg1: i32) -> (i32, i32, i32, i32) {
    %c0_i32 = arith.constant 0 : i32
    %c0_i32_0 = arith.constant 0 : i32
    %c0_i32_1 = arith.constant 0 : i32
    return %arg0, %arg1, %c0_i32, %c0_i32_0 : i32, i32, i32, i32
  }
  func.func @transform_1(%arg0: i32, %arg1: i32) -> (i32, i32, i32, i32) {
    %c8_i32 = arith.constant 8 : i32
    %0 = arith.muli %arg1, %c8_i32 : i32
    %c1_i32 = arith.constant 1 : i32
    %1 = arith.subi %0, %c1_i32 : i32
    %c0_i32 = arith.constant 0 : i32
    %2 = arith.maxsi %1, %c0_i32 : i32
    %c0_i32_0 = arith.constant 0 : i32
    %c0_i32_1 = arith.constant 0 : i32
    %c0_i32_2 = arith.constant 0 : i32
    return %arg0, %2, %c0_i32_0, %c0_i32_1 : i32, i32, i32, i32
  }
  func.func @transform_2(%arg0: i32, %arg1: i32) -> (i32, i32, i32, i32) {
    %c8_i32 = arith.constant 8 : i32
    %0 = arith.muli %arg1, %c8_i32 : i32
    %c8_i32_0 = arith.constant 8 : i32
    %1 = arith.addi %0, %c8_i32_0 : i32
    %c15_i32 = arith.constant 15 : i32
    %2 = arith.minsi %1, %c15_i32 : i32
    %c0_i32 = arith.constant 0 : i32
    %c0_i32_1 = arith.constant 0 : i32
    %c0_i32_2 = arith.constant 0 : i32
    return %arg0, %2, %c0_i32, %c0_i32_1 : i32, i32, i32, i32
  }
  func.func @transform_3(%arg0: i32, %arg1: i32) -> (i32, i32) {
    %c0_i32 = arith.constant 0 : i32
    %c0_i32_0 = arith.constant 0 : i32
    %c0_i32_1 = arith.constant 0 : i32
    return %c0_i32, %c0_i32_0 : i32, i32
  }
  func.func @transform_4(%arg0: i32, %arg1: i32) -> (i32, i32) {
    %c0_i32 = arith.constant 0 : i32
    %c0_i32_0 = arith.constant 0 : i32
    %c0_i32_1 = arith.constant 0 : i32
    return %c0_i32, %c0_i32_0 : i32, i32
  }
  func.func @transform_5(%arg0: i32, %arg1: i32) -> (i32, i32, i32) {
    %c0_i32 = arith.constant 0 : i32
    %c0_i32_0 = arith.constant 0 : i32
    %c0_i32_1 = arith.constant 0 : i32
    %c0_i32_2 = arith.constant 0 : i32
    return %c0_i32, %c0_i32_0, %c0_i32_1 : i32, i32, i32
  }
  func.func @transform_6(%arg0: i32, %arg1: i32) -> (i32, i32) {
    %c0_i32 = arith.constant 0 : i32
    %c0_i32_0 = arith.constant 0 : i32
    %c0_i32_1 = arith.constant 0 : i32
    return %c0_i32, %c0_i32_0 : i32, i32
  }
  func.func @transform_7(%arg0: i32, %arg1: i32) -> (i32, i32, i32, i32) {
    %c0_i32 = arith.constant 0 : i32
    %c0_i32_0 = arith.constant 0 : i32
    %c0_i32_1 = arith.constant 0 : i32
    return %arg0, %arg1, %c0_i32, %c0_i32_0 : i32, i32, i32, i32
  }
}

</mosaic_0001>

<bundles_post_ra>
// kernel: tpu_custom_call.1
= control target key start
LH: loop header
LB: loop body
LE: loop exit
PB: predicated region body
PF: predicated region fallthrough
CT: control target
= control target key end

     0   :  { %s6190_s24 = smov 0   ;;  %s6192_s25 = smov 0   ;;  %s7548_s0 = inlined_call_operand.vmem [shape: f32[2,16,16,4], index: 0, kind: input, shape index: {}]   ;;  %s7549_s1 = inlined_call_operand.vmem [shape: f32[2,16,16,4], index: 1, kind: input, shape index: {}]   ;;  %s7550_s2 = inlined_call_operand.vmem [shape: f32[2,16,16,4], index: 2, kind: input, shape index: {}]   ;;  %s7551_s3 = inlined_call_operand.vmem [shape: bf16[4,128], index: 3, kind: input, shape index: {}]   ;;  %s7552_s4 = inlined_call_operand.vmem [shape: f32[1,128], index: 4, kind: input, shape index: {}]   ;;  %s7553_s5 = inlined_call_operand.vmem [shape: bf16[9,128,4], index: 5, kind: input, shape index: {}]   ;;  %s7554_s6 = inlined_call_operand.vmem [shape: f32[1,4], index: 6, kind: input, shape index: {}]   ;;  %s7555_s7 = inlined_call_operand.vmem [shape: f32[2,16,16,4], index: 7, kind: output, shape index: {}]  }
   0x1   :  { %s6194_s26 = smov 0   ;;  %s6196_s27 = smov 0  }
   0x2   :  { %s6198_s28 = smov 0  }
   0x3 LB: > { %s26_s29 = sadd.s32 1, %s6138_s26  ;;  %s29_s30 = sadd.s32 1, %s6142_s27  ;;  %s6146_s28 = sphi %s6198_s28, %s17_s28   ;;  %s6142_s27 = sphi %s6196_s27, %s7572_s27   ;;  %s6138_s26 = sphi %s6194_s26, %s7571_s26   ;;  %s6134_s25 = sphi %s6192_s25, %s7570_s25   ;;  %s6130_s24 = sphi %s6190_s24, %s7569_s24  }
   0x4   : > { %p27_p0 = scmp.ge.s32.totalorder %s26_s29, 2  ;;  %p4919_p1 = scmp.ge.s32.totalorder %s6146_s28, 1 }
   0x5   : > { %p323_p2 = scmp.lt.s32.totalorder %s6146_s28, 5 }
   0x6   : > { %s7574_s29 = smov (%p27_p0, %s26_s29), 0  ;;  %s7576_s30 = smov (!%p27_p0, %s29_s30), %s6142_s27 }
   0x7   : > { %p324_p3 = pnand %p4919_p1, %p323_p2  ;;  %p31_p4 = scmp.ge.s32.totalorder %s7576_s30, 2 }
   0x8   : > { %s6226_s10 = sshll.u32 (!%p324_p3), %s6130_s24, 3  ;;  %p392_p5 = scmp.lt.s32.totalorder (!%p324_p3), %s6134_s25, 1 }
   0x9   : > { %s7578_s30 = smov (%p31_p4, %s7576_s30), 0  ;;  %327 = sbr.rel (%p324_p3) target bundleno = 737 (0x2e1), region = 48 }
   0xa   : > { %p394_p6 = scmp.lt.s32.totalorder (!%p324_p3), %s6226_s10, 15  ;;  %s6233_s11 = sadd.s32 (!%p324_p3), 4294967295, %s6226_s10 }
   0xb   : > { %p404_p7 = scmp.gt.s32.totalorder (!%p324_p3), %s6233_s11, 0  ;;  %p4926_p8 = scmp.lt.s32.totalorder (!%p324_p3), %s6233_s11, 15 }
   0xc   : > { %s420_s16 = sadd.s32 (!%p324_p3), 8, %s6226_s10  ;;  %p1100_p10 = scmp.gt.s32.totalorder (!%p324_p3), %s6130_s24, 0 }
   0xd   : > { %p6258_p9 = scmp.lt.s32.totalorder (!%p324_p3), %s420_s16, 15  ;;  %p1206_p11 = scmp.lt.s32.totalorder (!%p324_p3), %s6130_s24, 1 }
   0xe   : > { %v448_v0 = vld [vmem:[%s7551_s3] sm:$0x3]  ;;  %vm570_vm0 = vcmask 1041408   ;;  %v6148_v2 = vmov 0.0   ;;  %vm450_vm1 = vcmask 1040384   ;;  %s7580_s25 = smov (!%p392_p5, %s6134_s25), 1 }
   0xf   : > { %v6228_v1 = vsel %vm570_vm0, %v448_v0, 0  ;;  %5824 = vmatprep.subr.msk.bf16.mxu0 %vm570_vm0, %v448_v0  ;;  %5508 = vmatprep.subr.bf16.mxu1 %v6148_v2  ;;  %vm451_vm2 = vsmask.f32 256  ;;  %v459_v3 = vld [vmem:[#allocation2 + $0x18] sm:$0x1]  ;;  %s395_s12 = scalar_select %p394_p6, %s6226_s10, 15 }
  0x10   : > { %5491 = vmatpush3.bf16.msra.mxu0 %v6228_v1  ;;  %5509 = vmatpush3.bf16.msra.mxu1 %v6228_v1  ;;  %vm6149_vm3 = vmmov 0   ;;  %vm6243_vm4 = vmand %vm450_vm1, %vm451_vm2  ;;  %s6247_s13 = sshll.u32 %s7580_s25, 5  ;;  %vm545_vm5 = vcmask 31744   ;;  %s7582_s16 = smov (!%p6258_p9, %s420_s16), 15  ;;  %vm483_vm6 = vsmask.f32 7938 }
  0x11   : > { %5510 = vmatprep.mubr.msk.bf16.mxu1 %vm6149_vm3, %v6148_v2  ;;  %5514 = vmatprep.subr.bf16.mxu1 %v6148_v2  ;;  %v460_v5 = vsel %vm6243_vm4, 0, %v459_v3  ;;  %s4921_s14 = sshll.u32 %s395_s12, 1  ;;  %s7586_s16 = smov (!%p6258_p9, %s7582_s16), 15  ;;  %vm6317_vm7 = vmand %vm450_vm1, %vm483_vm6  ;;  %v456_v37 = vld [vmem:[#allocation2 + $0xc] sm:$0x1]  ;;  %v5867_v61 = vld [vmem:[%s7553_s5 + $0x38] sm:$0xff]  }
  0x12   : > { %461 = vst [vmem:[#allocation2 + $0x18] sm:$0x1] %v460_v5  ;;  %s6254_s15 = sadd.s32 %s6247_s13, %s4921_s14  ;;  %s4938_s8 = sshll.u32 %s7586_s16, 1  ;;  %v457_v38 = vsel %vm6243_vm4, 0, %v456_v37  ;;  %v453_v39 = vld [vmem:[#allocation2] sm:$0x1]  ;;  %5520 = vmatprep.subr.bf16.mxu0 %v5867_v61 }
  0x13   : > { %s4923_s17 = sshll.u32 %s6254_s15, 3  ;;  %s429_s10 = sadd.s32 %s4938_s8, %s6247_s13  ;;  %458 = vst [vmem:[#allocation2 + $0xc] sm:$0x1] %v457_v38  ;;  %v491_v40 = vld [vmem:[#allocation2 + $0x20] sm:$0x1]  ;;  %v454_v41 = vsel %vm6243_vm4, 0, %v453_v39 }
  0x14   : > { %s6267_s21 = scalar_lea.vmem %s7548_s0, %s4923_s17  ;;  %s4940_s18 = sshll.u32 %s429_s10, 3  ;;  %v492_v42 = vsel %vm6317_vm7, 0, %v491_v40  ;;  %455 = vst [vmem:[#allocation2] sm:$0x1] %v454_v41  ;;  %v488_v43 = vld [vmem:[#allocation2 + $0x14] sm:$0x1] }
  0x15   : > { %v515_v6 = vld [vmem:[%s6267_s21] sm:$0xff]  ;;  %v516_v7 = vld [vmem:[%s6267_s21 + $0x8] sm:$0xff]  ;;  %v517_v8 = vld [vmem:[%s6267_s21 + $0x10] sm:$0xff]  ;;  %s405_s22 = scalar_select %p404_p7, %s6233_s11, 0  ;;  %493 = vst [vmem:[#allocation2 + $0x20] sm:$0x1] %v492_v42 }
  0x16   : > { %v531_v9 = vpack.c.bf16 %v516_v7, %v515_v6  ;;  %v518_v10 = vld [vmem:[%s6267_s21 + $0x18] sm:$0xff]  ;;  %v519_v11 = vld [vmem:[%s6267_s21 + $0x20] sm:$0xff]  ;;  %v520_v12 = vld [vmem:[%s6267_s21 + $0x28] sm:$0xff]  ;;  %v489_v44 = vsel %vm6317_vm7, 0, %v488_v43  ;;  %s6468_s19 = scalar_select %p1206_p11, 1, 0 }
  0x17   : > { %v532_v13 = vpack.c.bf16 %v518_v10, %v517_v8  ;;  %s7584_s22 = smov (!%p4926_p8, %s405_s22), 15  ;;  %v533_v14 = vpack.c.bf16 %v520_v12, %v519_v11  ;;  %v521_v15 = vld [vmem:[%s6267_s21 + $0x30] sm:$0xff]  ;;  %v522_v16 = vld [vmem:[%s6267_s21 + $0x38] sm:$0xff]  ;;  %v523_v17 = vld [vmem:[%s6267_s21 + $0x40] sm:$0xff]  ;;  %490 = vst [vmem:[#allocation2 + $0x14] sm:$0x1] %v489_v44  ;;  %s7454_s12 = scalar_lea.vmem %s7555_s7, %s4923_s17 }
  0x18   : > { %5492 = vmatprep.mubr.msk.bf16.mxu0 %vm545_vm5, %v531_v9  ;;  %s4931_s23 = sshll.u32 %s7584_s22, 1  ;;  %v524_v18 = vld [vmem:[%s6267_s21 + $0x48] sm:$0xff]  ;;  %v534_v21 = vpack.c.bf16 %v522_v16, %v521_v15  ;;  %s431_s22 = scalar_lea.vmem %s7550_s2, %s4940_s18  ;;  %v525_v26 = vld [vmem:[%s6267_s21 + $0x50] sm:$0xff]  ;;  %v526_v27 = vld [vmem:[%s6267_s21 + $0x58] sm:$0xff]  ;;  %vm1042_vm8 = vcmask 1043456   ;;  %vm2063_vm15 = vcmask 1042432  }
  0x19   : > { %5493 = vmatmul.mubr.msk.bf16.vlgmr.msra.gmra.mxu0 %vm545_vm5, %v532_v13  ;;  %s412_s25 = sadd.s32 %s4931_s23, %s6247_s13  ;;  %v535_v23 = vpack.c.bf16 %v524_v18, %v523_v17  ;;  %v1209_v24 = vld [vmem:[%s431_s22] sm:$0xff]  ;;  %v1210_v25 = vld [vmem:[%s431_s22 + $0x8] sm:$0xff]  ;;  %v536_v31 = vpack.c.bf16 %v526_v27, %v525_v26  ;;  %v529_v33 = vld [vmem:[%s6267_s21 + $0x70] sm:$0xff]  ;;  %s1208_s20 = scvt.s32.f32 %s6468_s19  ;;  %vm879_vm9 = vsmask.f32 4368  ;;  %vm2064_vm0 = vcmask 1046532  }
  0x1a   : > { %5496 = vmatprep.mubr.msk.bf16.mxu0 %vm545_vm5, %v533_v14  ;;  %s4933_s9 = sshll.u32 %s412_s25, 3  ;;  %v527_v28 = vld [vmem:[%s6267_s21 + $0x60] sm:$0xff]  ;;  %v528_v29 = vld [vmem:[%s6267_s21 + $0x68] sm:$0xff]  ;;  %v1211_v30 = vpack.c.bf16 %v1210_v25, %v1209_v24  ;;  %v530_v34 = vld [vmem:[%s6267_s21 + $0x78] sm:$0xff]  ;;  %5521 = vmatpush3.bf16.msra.mxu0 %v5867_v61  ;;  %vm1578_vm12 = vsmask.f32 3328 }
  0x1b   : > { %s414_s14 = scalar_lea.vmem %s7549_s1, %s4933_s9  ;;  %v537_v32 = vpack.c.bf16 %v528_v29, %v527_v28  ;;  %v538_v35 = vpack.c.bf16 %v530_v34, %v529_v33  ;;  %v485_v45 = vld [vmem:[#allocation2 + $0x8] sm:$0x1]  ;;  %v465_v47 = vld [vmem:[#allocation2 + $0x30] sm:$0x1]  ;;  %v462_v49 = vld [vmem:[#allocation2 + $0x24] sm:$0x1] }
  0x1c   : > { %v1103_v19 = vld [vmem:[%s414_s14] sm:$0xff]  ;;  %v1104_v20 = vld [vmem:[%s414_s14 + $0x8] sm:$0xff]  ;;  %v486_v46 = vsel %vm6317_vm7, 0, %v485_v45  ;;  %v466_v48 = vsel %vm6243_vm4, 0, %v465_v47  ;;  %v463_v50 = vsel %vm6243_vm4, 0, %v462_v49  ;;  %v5868_v62 = vld [vmem:[%s7553_s5 + $0x30] sm:$0xff]  }
  0x1d   : > { %v1105_v22 = vpack.c.bf16 %v1104_v20, %v1103_v19  ;;  %487 = vst [vmem:[#allocation2 + $0x8] sm:$0x1] %v486_v46  ;;  %467 = vst [vmem:[#allocation2 + $0x30] sm:$0x1] %v466_v48  ;;  %v497_v51 = vld [vmem:[#allocation2 + $0x38] sm:$0x1]  ;;  %5522 = vmatprep.subr.bf16.mxu0 %v5868_v62 }
  0x1e   : > { %464 = vst [vmem:[#allocation2 + $0x24] sm:$0x1] %v463_v50  ;;  %v498_v52 = vsel %vm6317_vm7, 0, %v497_v51  ;;  %v494_v53 = vld [vmem:[#allocation2 + $0x2c] sm:$0x1]  ;;  %5523 = vmatpush3.bf16.msra.mxu0 %v5868_v62  ;;  %v5870_v5 = vld [vmem:[%s7553_s5 + $0x78] sm:$0xff]   ;;  %vm6540_vm10 = vmand %vm1042_vm8, %vm483_vm6 }
  0x1f   : > { %5511 = vmatmul.mubr.msk.bf16.vlgmr.msra.gmra.mxu1 %vm545_vm5, %v1105_v22  ;;  %499 = vst [vmem:[#allocation2 + $0x38] sm:$0x1] %v498_v52  ;;  %v495_v54 = vsel %vm6317_vm7, 0, %v494_v53  ;;  %v471_v55 = vld [vmem:[#allocation2 + $0x48] sm:$0x1]  ;;  %v5871_v7 = vld [vmem:[%s7553_s5 + $0x20] sm:$0xff]   ;;  %vm6557_vm11 = vmor %vm451_vm2, %vm879_vm9 }
  0x20   : > { %5515 = vmatpush3.bf16.msra.mxu1 %v6228_v1  ;;  %5516 = vmatprep.mubr.msk.bf16.mxu1 %vm6149_vm3, %v6148_v2  ;;  %496 = vst [vmem:[#allocation2 + $0x2c] sm:$0x1] %v495_v54  ;;  %v472_v56 = vsel %vm6243_vm4, 0, %v471_v55  ;;  %v468_v57 = vld [vmem:[#allocation2 + $0x3c] sm:$0x1]  ;;  %v5869_v3 = vld [vmem:[%s7553_s5 + $0x28] sm:$0xff]   ;;  %vm6805_vm1 = vmor %vm2063_vm15, %vm2064_vm0 }
  0x21   : > { %5497 = vmatmul.mubr.msk.bf16.gmra.mxu0 %vm545_vm5, %v534_v21  ;;  %473 = vst [vmem:[#allocation2 + $0x48] sm:$0x1] %v472_v56  ;;  %v469_v58 = vsel %vm6243_vm4, 0, %v468_v57  ;;  %v503_v59 = vld [vmem:[#allocation2 + $0x50] sm:$0x1]  ;;  %5524 = vmatprep.subr.bf16.mxu0 %v5869_v3  ;;  %v5873_v10 = vld [vmem:[%s7553_s5 + $0x18] sm:$0xff]  }
  0x22   : > { %5500 = vmatprep.mubr.msk.bf16.mxu0 %vm545_vm5, %v535_v23  ;;  %470 = vst [vmem:[#allocation2 + $0x3c] sm:$0x1] %v469_v58  ;;  %v504_v60 = vsel %vm6317_vm7, 0, %v503_v59  ;;  %v500_v63 = vld [vmem:[#allocation2 + $0x44] sm:$0x1]  ;;  %5525 = vmatpush3.bf16.msra.mxu0 %v5869_v3  ;;  %v5872_v9 = vld [vmem:[%s7553_s5 + $0x70] sm:$0xff]  }
  0x23   : > { %505 = vst [vmem:[#allocation2 + $0x50] sm:$0x1] %v504_v60  ;;  %v501_v0 = vsel %vm6317_vm7, 0, %v500_v63  ;;  %v477_v1 = vld [vmem:[#allocation2 + $0x60] sm:$0x1]  ;;  %5552 = vmatprep.subr.bf16.mxu1 %v5870_v5  ;;  %5526 = vmatprep.subr.bf16.mxu0 %v5871_v7  ;;  %v5874_v11 = vld [vmem:[%s7553_s5 + $0x68] sm:$0xff]  }
  0x24   : > { %502 = vst [vmem:[#allocation2 + $0x44] sm:$0x1] %v501_v0  ;;  %v478_v2 = vsel %vm6243_vm4, 0, %v477_v1  ;;  %v474_v6 = vld [vmem:[#allocation2 + $0x54] sm:$0x1]  ;;  %v5876_v13 = vld [vmem:[%s7553_s5 + $0x60] sm:$0xff]  }
  0x25   : > { %479 = vst [vmem:[#allocation2 + $0x60] sm:$0x1] %v478_v2  ;;  %v475_v8 = vsel %vm6243_vm4, 0, %v474_v6  ;;  %v5875_v12 = vld [vmem:[%s7553_s5 + $0x10] sm:$0xff]   ;;  %v5877_v14 = vld [vmem:[%s7553_s5 + $0x8] sm:$0xff]   ;;  %v5878_v15 = vld [vmem:[%s7553_s5 + $0x58] sm:$0xff]  }
  0x26   : > { %476 = vst [vmem:[#allocation2 + $0x54] sm:$0x1] %v475_v8  ;;  %5527 = vmatpush3.bf16.msra.mxu0 %v5871_v7  ;;  %v5879_v16 = vld [vmem:[%s7553_s5] sm:$0xff]   ;;  %v5880_v17 = vld [vmem:[%s7553_s5 + $0x50] sm:$0xff]   ;;  %v509_v18 = vld [vmem:[#allocation2 + $0x68] sm:$0x1] }
  0x27   : > { %5517 = vmatmul.mubr.msk.bf16.vlgmr.msra.gmra.mxu1 %vm545_vm5, %v1211_v30  ;;  %5528 = vmatprep.subr.bf16.mxu0 %v5873_v10  ;;  %v510_v19 = vsel %vm6317_vm7, 0, %v509_v18  ;;  %v6398_v20 = vld [vmem:[%s7553_s5 + $0xb8] sm:$0xff]   ;;  %v5885_v21 = vld [vmem:[%s7553_s5 + $0x48] sm:$0xff]   ;;  %v5887_v24 = vld [vmem:[%s7553_s5 + $0x40] sm:$0xff]   ;;  %s6460_s18 = scalar_select %p1100_p10, 1, 0 }
  0x28   : > { %5553 = vmatpush3.bf16.msra.mxu1 %v5870_v5  ;;  %511 = vst [vmem:[#allocation2 + $0x68] sm:$0x1] %v510_v19  ;;  %v506_v22 = vld [vmem:[#allocation2 + $0x5c] sm:$0x1]  ;;  %v6415_v26 = vld [vmem:[%s7552_s4] ss:$0 sm:$0xff] }
  0x29   : > { %5501 = vmatmul.mubr.msk.bf16.gmra.mxu0 %vm545_vm5, %v536_v31  ;;  %5554 = vmatprep.subr.bf16.mxu1 %v5872_v9  ;;  %v507_v23 = vsel %vm6317_vm7, 0, %v506_v22  ;;  %v5891_v25 = vld [vmem:[%s7553_s5 + $0xf8] sm:$0xff]   ;;  %v480_v28 = vld [vmem:[#allocation2 + $0x6c] sm:$0x1]  ;;  %v512_v29 = vld [vmem:[#allocation2 + $0x74] sm:$0x1]  ;;  %s1102_s24 = scvt.s32.f32 %s6460_s18 }
  0x2a   : > { %5504 = vmatprep.mubr.msk.bf16.mxu0 %vm545_vm5, %v537_v32  ;;  %5529 = vmatpush3.bf16.msra.mxu0 %v5873_v10  ;;  %508 = vst [vmem:[#allocation2 + $0x5c] sm:$0x1] %v507_v23  ;;  %v481_v31 = vsel %vm6243_vm4, 0, %v480_v28  ;;  %v513_v32 = vsel %vm6317_vm7, 0, %v512_v29  ;;  %vm1579_vm13 = vsmask.f32 7440 }
  0x2b   : > { %5530 = vmatprep.subr.bf16.mxu0 %v5875_v12  ;;  %482 = vst [vmem:[#allocation2 + $0x6c] sm:$0x1] %v481_v31  ;;  %514 = vst [vmem:[#allocation2 + $0x74] sm:$0x1] %v513_v32 }
  0x2c   : > { %5555 = vmatpush3.bf16.msra.mxu1 %v5872_v9  ;;  %vm6651_vm14 = vmor %vm1578_vm12, %vm1579_vm13 }
  0x2d   : > { %5556 = vmatprep.subr.bf16.mxu1 %v5874_v11 }
  0x2e   : > { %5531 = vmatpush3.bf16.msra.mxu0 %v5875_v12 }
  0x2f   : > { %5532 = vmatprep.subr.bf16.mxu0 %v5877_v14 }
  0x30   : > { %5557 = vmatpush3.bf16.msra.mxu1 %v5874_v11 }
  0x31   : > { %5505 = vmatmul.mubr.msk.bf16.gmra.mxu0 %vm545_vm5, %v538_v35  ;;  %5558 = vmatprep.subr.bf16.mxu1 %v5876_v13 }
  0x32   : > { %5533 = vmatpush3.bf16.msra.mxu0 %v5877_v14 }
  0x33   : > { %5534 = vmatprep.subr.bf16.mxu0 %v5879_v16 }
  0x34   : > { %5559 = vmatpush3.bf16.msra.mxu1 %v5876_v13 }
  0x35   : > { %5560 = vmatprep.subr.bf16.mxu1 %v5878_v15 }
  0x36   : > { %5535 = vmatpush3.bf16.msra.mxu0 %v5879_v16 }
  0x37   : > { %5584 = vmatprep.subr.bf16.mxu0 %v6398_v20 }
  0x38   : > { %5561 = vmatpush3.bf16.msra.mxu1 %v5878_v15 }
  0x39   : > { %5562 = vmatprep.subr.bf16.mxu1 %v5880_v17 }
  0x3c   : > { %5563 = vmatpush3.bf16.msra.mxu1 %v5880_v17 }
  0x3d   : > { %5564 = vmatprep.subr.bf16.mxu1 %v5885_v21 }
  0x40   : > { %5565 = vmatpush3.bf16.msra.mxu1 %v5885_v21 }
  0x41   : > { %5566 = vmatprep.subr.bf16.mxu1 %v5887_v24 }
  0x44   : > { %5567 = vmatpush3.bf16.msra.mxu1 %v5887_v24 }
  0x45   : > { %5616 = vmatprep.subr.bf16.mxu1 %v5891_v25 }
  0xd9   : > { %v5494_v27 = vpop.f32.mrf.mxu0 }
  0xda   : > { %v6418_v30 = vadd.f32 %v5494_v27, %v6415_v26 }
  0xdb   : > { %v608_v33 = vpop.f32.mrf.mxu0 }
  0xdc   : > { %v673_v34 = vmin.f32 %v6418_v30, 20.0  ;;  %v6426_v35 = vadd.f32 %v6415_v26, %v608_v33 }
  0xdd   : > { %v5495_v37 = vpop.f32.mrf.mxu0 }
  0xde   : > { %v691_v38 = vmul.f32 1.442695, %v673_v34  ;;  %v671_v39 = vmin.f32 %v6426_v35, 20.0  ;;  %v6430_v40 = vadd.f32 %v5495_v37, %v6415_v26 }
  0xdf   : > { %v611_v41 = vpop.f32.mrf.mxu0  ;;  %v1143_v42 = vpop.f32.mrf.mxu1 }
  0xe0   : > { %5963 = vpow2.f32 %v691_v38  ;;  %v687_v36 = vmul.f32 1.442695, %v671_v39  ;;  %v674_v43 = vmin.f32 %v6430_v40, 20.0  ;;  %v6434_v44 = vadd.f32 %v6415_v26, %v611_v41 }
  0xe1   : > { %v6437_v45 = vadd.f32 %v6415_v26, %v1143_v42  ;;  %v5498_v46 = vpop.f32.mrf.mxu0  ;;  %v5512_v48 = vpop.f32.mrf.mxu1 }
  0xe2   : > { %5965 = vpow2.f32 %v687_v36  ;;  %v693_v47 = vmul.f32 1.442695, %v674_v43  ;;  %v672_v49 = vmin.f32 %v6434_v44, 20.0  ;;  %v6441_v50 = vadd.f32 %v5498_v46, %v6415_v26 }
  0xe3   : > { %v1150_v51 = vmin.f32 %v6437_v45, 20.0  ;;  %v624_v52 = vpop.f32.mrf.mxu0  ;;  %v1146_v54 = vpop.f32.mrf.mxu1  ;;  %v6492_v36 = vstv %s1102_s24  ;;  %v6498_v46 = vstv %s1208_s20 }
  0xe4   : > { %5967 = vpow2.f32 %v693_v47  ;;  %v689_v53 = vmul.f32 1.442695, %v672_v49  ;;  %v677_v55 = vmin.f32 %v6441_v50, 20.0  ;;  %v6447_v56 = vadd.f32 %v6415_v26, %v624_v52 }
  0xe5   : > { %v1152_v57 = vmul.f32 1.442695, %v1150_v51  ;;  %v6450_v58 = vadd.f32 %v6415_v26, %v1146_v54  ;;  %v5499_v59 = vpop.f32.mrf.mxu0  ;;  %v5513_v61 = vpop.f32.mrf.mxu1 }
  0xe6   : > { %5969 = vpow2.f32 %v689_v53  ;;  %v699_v60 = vmul.f32 1.442695, %v677_v55  ;;  %v675_v62 = vmin.f32 %v6447_v56, 20.0  ;;  %v6455_v63 = vadd.f32 %v5499_v59, %v6415_v26 }
  0xe7   : > { %5971 = vpow2.f32 %v1152_v57  ;;  %v1151_v0 = vmin.f32 %v6450_v58, 20.0  ;;  %v627_v1 = vpop.f32.mrf.mxu0  ;;  %v1249_v6 = vpop.f32.mrf.mxu1 }
  0xe8   : > { %5973 = vpow2.f32 %v699_v60  ;;  %v695_v2 = vmul.f32 1.442695, %v675_v62  ;;  %v678_v3 = vmin.f32 %v6455_v63, 20.0  ;;  %v6464_v5 = vadd.f32 %v6415_v26, %v627_v1 }
  0xe9   : > { %v1154_v7 = vmul.f32 1.442695, %v1151_v0  ;;  %v5502_v8 = vpop.f32.mrf.mxu0  ;;  %v6471_v9 = vadd.f32 %v6415_v26, %v1249_v6  ;;  %v5518_v13 = vpop.f32.mrf.mxu1 }
  0xea   : > { %5975 = vpow2.f32 %v695_v2  ;;  %v701_v10 = vmul.f32 1.442695, %v678_v3  ;;  %v676_v11 = vmin.f32 %v6464_v5, 20.0  ;;  %v6475_v12 = vadd.f32 %v5502_v8, %v6415_v26 }
  0xeb   : > { %5977 = vpow2.f32 %v1154_v7  ;;  %v640_v14 = vpop.f32.mrf.mxu0  ;;  %v1256_v15 = vmin.f32 %v6471_v9, 20.0  ;;  %v1252_v19 = vpop.f32.mrf.mxu1 }
  0xec   : > { %v697_v16 = vmul.f32 1.442695, %v676_v11  ;;  %v681_v17 = vmin.f32 %v6475_v12, 20.0  ;;  %v6480_v18 = vadd.f32 %v6415_v26, %v640_v14  ;;  %5979 = vpow2.f32 %v701_v10 }
  0xed   : > { %v5964_v21 = vpop.eup %5963  ;;  %v5503_v22 = vpop.f32.mrf.mxu0  ;;  %v1258_v23 = vmul.f32 1.442695, %v1256_v15  ;;  %v6485_v24 = vadd.f32 %v6415_v26, %v1252_v19 }
  0xee   : > { %v721_v25 = vadd.f32 1.0, %v5964_v21  ;;  %5981 = vpow2.f32 %v697_v16  ;;  %v707_v27 = vmul.f32 1.442695, %v681_v17  ;;  %v679_v28 = vmin.f32 %v6480_v18, 20.0  ;;  %v5519_v29 = vpop.f32.mrf.mxu1 }
  0xef   : > { %v5966_v31 = vpop.eup %5965  ;;  %v6489_v32 = vadd.f32 %v5503_v22, %v6415_v26  ;;  %v643_v33 = vpop.f32.mrf.mxu0  ;;  %v1257_v34 = vmin.f32 %v6485_v24, 20.0 }
  0xf0   : > { %v737_v37 = vmul.f32 %v721_v25, %v721_v25  ;;  %v719_v38 = vadd.f32 1.0, %v5966_v31  ;;  %5983 = vpow2.f32 %v707_v27  ;;  %v703_v39 = vmul.f32 1.442695, %v679_v28 }
  0xf1   : > { %v5968_v41 = vpop.eup %5967  ;;  %v682_v42 = vmin.f32 %v6489_v32, 20.0  ;;  %v6496_v43 = vadd.f32 %v6415_v26, %v643_v33  ;;  %5985 = vpow2.f32 %v1258_v23  ;;  %v5506_v54 = vpop.f32.mrf.mxu0  ;;  %v6501_v55 = vmul.f32 1.442695, %v1257_v34 }
  0xf2   : > { %v785_v47 = vadd.f32 1.0, %v737_v37  ;;  %v735_v48 = vmul.f32 %v719_v38, %v719_v38  ;;  %v722_v49 = vadd.f32 1.0, %v5968_v41  ;;  %5987 = vpow2.f32 %v703_v39 }
  0xf3   : > { %v5970_v51 = vpop.eup %5969  ;;  %v709_v52 = vmul.f32 1.442695, %v682_v42  ;;  %v680_v53 = vmin.f32 %v6496_v43, 20.0  ;;  %v4956_v59 = vadd.f32 -1.0, %v737_v37  ;;  %v6504_v7 = vadd.f32 %v5506_v54, %v6415_v26 }
  0xf4   : > { %v5972_v57 = vpop.eup %5971  ;;  %5989 = vrcp.f32 %v785_v47  ;;  %v4954_v60 = vadd.f32 -1.0, %v735_v48  ;;  %v783_v61 = vadd.f32 1.0, %v735_v48  ;;  %v738_v1 = vmul.f32 %v722_v49, %v722_v49 }
  0xf5   : > { %v5974_v62 = vpop.eup %5973  ;;  %v1156_v0 = vadd.f32 1.0, %v5972_v57  ;;  %v720_v2 = vadd.f32 1.0, %v5970_v51  ;;  %5991 = vpow2.f32 %v709_v52  ;;  %v705_v6 = vmul.f32 1.442695, %v680_v53 }
  0xf6   : > { %5993 = vrcp.f32 %v783_v61  ;;  %v725_v3 = vadd.f32 1.0, %v5974_v62  ;;  %v4957_v11 = vadd.f32 -1.0, %v738_v1  ;;  %v786_v13 = vadd.f32 1.0, %v738_v1 }
  0xf7   : > { %v5976_v8 = vpop.eup %5975  ;;  %v1158_v10 = vmul.f32 %v1156_v0, %v1156_v0  ;;  %v736_v14 = vmul.f32 %v720_v2, %v720_v2  ;;  %v769_v16 = vmul.f32 %v4956_v59, %v6418_v30  ;;  %5995 = vpow2.f32 %v705_v6 }
  0xf8   : > { %v5978_v15 = vpop.eup %5977  ;;  %v741_v17 = vmul.f32 %v725_v3, %v725_v3  ;;  %v723_v19 = vadd.f32 1.0, %v5976_v8  ;;  %v767_v21 = vmul.f32 %v4954_v60, %v6426_v35  ;;  %5997 = vrcp.f32 %v786_v13 }
  0xf9   : > { %v4987_v22 = vadd.f32 -1.0, %v1158_v10  ;;  %v1164_v23 = vadd.f32 1.0, %v1158_v10  ;;  %v5980_v25 = vpop.eup %5979  ;;  %v6509_v27 = vmul.f32 %v4957_v11, %v6430_v40  ;;  %v784_v28 = vadd.f32 1.0, %v736_v14 }
  0xfa   : > { %v1157_v29 = vadd.f32 1.0, %v5978_v15  ;;  %v685_v31 = vmin.f32 %v6504_v7, 20.0  ;;  %v4955_v34 = vadd.f32 -1.0, %v736_v14  ;;  %v789_v30 = vadd.f32 1.0, %v741_v17 }
  0xfb   : > { %v5982_v33 = vpop.eup %5981  ;;  %5999 = vrcp.f32 %v1164_v23  ;;  %v739_v37 = vmul.f32 %v723_v19, %v723_v19  ;;  %v6513_v38 = vmul.f32 %v4987_v22, %v6437_v45  ;;  %v4960_v39 = vadd.f32 -1.0, %v741_v17 }
  0xfc   : > { %6001 = vrcp.f32 %v784_v28  ;;  %v1159_v35 = vmul.f32 %v1157_v29, %v1157_v29  ;;  %v726_v47 = vadd.f32 1.0, %v5980_v25  ;;  %v724_v51 = vadd.f32 1.0, %v5982_v33 }
  0xfd   : > { %v5984_v41 = vpop.eup %5983  ;;  %6003 = vrcp.f32 %v789_v30  ;;  %v4958_v42 = vadd.f32 -1.0, %v739_v37  ;;  %v787_v40 = vadd.f32 1.0, %v739_v37  ;;  %v768_v54 = vmul.f32 %v4955_v34, %v6434_v44 }
  0xfe   : > { %v4988_v48 = vadd.f32 -1.0, %v1159_v35  ;;  %v1165_v49 = vadd.f32 1.0, %v1159_v35  ;;  %v729_v52 = vadd.f32 1.0, %v5984_v41  ;;  %v6515_v53 = vpop.eup %5985  ;;  %v742_v45 = vmul.f32 %v726_v47, %v726_v47 }
  0xff   : > { %6005 = vrcp.f32 %v787_v40  ;;  %v715_v57 = vmul.f32 1.442695, %v685_v31  ;;  %v5988_v59 = vpop.eup %5987  ;;  %v773_v60 = vmul.f32 %v4960_v39, %v6441_v50  ;;  %v740_v61 = vmul.f32 %v724_v51, %v724_v51 }
 0x100   : > { %6007 = vrcp.f32 %v1165_v49  ;;  %v745_v62 = vmul.f32 %v729_v52, %v729_v52  ;;  %v6520_v1 = vmul.f32 %v4958_v42, %v6447_v56  ;;  %v4961_v2 = vadd.f32 -1.0, %v742_v45 }
 0x101   : > { %v5990_v0 = vpop.eup %5989  ;;  %v790_v3 = vadd.f32 1.0, %v742_v45  ;;  %v727_v6 = vadd.f32 1.0, %v5988_v59  ;;  %v6523_v44 = vmul.f32 %v4988_v48, %v6450_v58  ;;  %v4959_v11 = vadd.f32 -1.0, %v740_v61  ;;  %v1044_v59 = vld [vmem:[#allocation2 + $0xc] sm:$0xf] }
 0x102   : > { %v5992_v8 = vpop.eup %5991  ;;  %v817_v10 = vmul.f32 %v5990_v0, %v769_v16  ;;  %v788_v13 = vadd.f32 1.0, %v740_v61  ;;  %v4964_v15 = vadd.f32 -1.0, %v745_v62  ;;  %v793_v50 = vadd.f32 1.0, %v745_v62 }
 0x103   : > { %v5994_v14 = vpop.eup %5993  ;;  %v743_v17 = vmul.f32 %v727_v6, %v727_v6  ;;  %6009 = vpow2.f32 %v715_v57  ;;  %v6526_v56 = vmul.f32 %v4961_v2, %v6455_v63  ;;  %v6529_v16 = vmul.f32 %v4959_v11, %v6464_v5 }
 0x104   : > { %v5315_v19 = vpack.c.bf16 %v817_v10, %v817_v10  ;;  %v815_v22 = vmul.f32 %v5994_v14, %v767_v21  ;;  %6011 = vrcp.f32 %v790_v3  ;;  %v5996_v23 = vpop.eup %5995  ;;  %v730_v33 = vadd.f32 1.0, %v5992_v8 }
 0x105   : > { %6013 = vrcp.f32 %v788_v13  ;;  %v4962_v58 = vadd.f32 -1.0, %v743_v17  ;;  %v791_v25 = vadd.f32 1.0, %v743_v17  ;;  %v5998_v28 = vpop.eup %5997  ;;  %v6533_v21 = vmul.f32 %v4964_v15, %v6475_v12  ;;  %v1055_v17 = vld [vmem:[#allocation2 + $0x20] sm:$0x1] }
 0x106   : > { %v899_v29 = vshrl.u32 %v5315_v19, 16  ;;  %v5313_v31 = vpack.c.bf16 %v815_v22, %v815_v22  ;;  %6015 = vrcp.f32 %v793_v50  ;;  %v818_v34 = vmul.f32 %v5998_v28, %v6509_v27  ;;  %v1051_v27 = vld [vmem:[#allocation2 + $0x18] sm:$0xf] }
 0x107   : > { %6017 = vrcp.f32 %v791_v25  ;;  %v728_v63 = vadd.f32 1.0, %v5996_v23  ;;  %v902_v35 = vshll.u32 %v5315_v19, 16  ;;  %v6536_v39 = vmul.f32 %v4962_v58, %v6480_v18 }
 0x108   : > { %v6000_v30 = vpop.eup %5999  ;;  %v901_v37 = vrot.slane %v899_v29, 7  ;;  %v882_v5 = vshrl.u32 %v5313_v31, 16  ;;  %v885_v40 = vshll.u32 %v5313_v31, 16  ;;  %v5316_v47 = vpack.c.bf16 %v818_v34, %v818_v34 }
 0x109   : > { %v6002_v41 = vpop.eup %6001  ;;  %v1168_v12 = vmul.f32 %v6000_v30, %v6513_v38  ;;  %v6545_v48 = vmul.f32 %v730_v33, %v730_v33  ;;  %v6547_v18 = vmul.f32 %v728_v63, %v728_v63  ;;  %v656_v63 = vpop.f32.mrf.mxu0 }
 0x10a   : > { %v6004_v49 = vpop.eup %6003  ;;  %v904_v51 = vor.u32 %v902_v35, %v901_v37  ;;  %v884_v52 = vrot.slane %v882_v5, 7  ;;  %v816_v45 = vmul.f32 %v6002_v41, %v768_v54  ;;  %v905_v57 = vrot.slane %v901_v37, 4  ;;  %v1048_v5 = vld [vmem:[#allocation2 + $0x14] sm:$0x1] }
 0x10b   : > { %v1171_v61 = vmul.f32 %v6492_v36, %v1168_v12  ;;  %v907_v62 = vshrl.u32 %v5316_v47, 16  ;;  %v821_v0 = vmul.f32 %v6004_v49, %v773_v60  ;;  %v910_v6 = vshll.u32 %v5316_v47, 16 }
 0x10c   : > { %v6006_v2 = vpop.eup %6005  ;;  %v1052_v3 = vsel %vm6540_vm10, %v904_v51, %v1051_v27  ;;  %v887_v38 = vor.u32 %v885_v40, %v884_v52  ;;  %v5314_v8 = vpack.c.bf16 %v816_v45, %v816_v45  ;;  %v888_v15 = vrot.slane %v884_v52, 4  ;;  %v1199_v40 = vld [vmem:[#allocation2] sm:$0xf] }
 0x10d   : > { %v6008_v10 = vpop.eup %6007  ;;  %1053 = vst [vmem:[#allocation2 + $0x18] sm:$0xf] %v1052_v3  ;;  %v5329_v11 = vpack.c.bf16 %v1171_v61, %v1171_v61  ;;  %v909_v13 = vrot.slane %v907_v62, 7  ;;  %v5319_v54 = vpack.c.bf16 %v821_v0, %v821_v0  ;;  %v819_v14 = vmul.f32 %v6006_v2, %v6520_v1  ;;  %v1065_v3 = vld [vmem:[#allocation2 + $0x30] sm:$0xf] }
 0x10e   : > { %v1045_v50 = vsel %vm6540_vm10, %v887_v38, %v1044_v59  ;;  %v890_v19 = vshrl.u32 %v5314_v8, 16  ;;  %v1169_v22 = vmul.f32 %v6008_v10, %v6523_v44  ;;  %v893_v28 = vshll.u32 %v5314_v8, 16 }
 0x10f   : > { %1046 = vst [vmem:[#allocation2 + $0xc] sm:$0xf] %v1045_v50  ;;  %v1180_v23 = vshrl.u32 %v5329_v11, 16  ;;  %v912_v58 = vor.u32 %v910_v6, %v909_v13  ;;  %v914_v25 = vrot.slane %v909_v13, 4  ;;  %v1183_v29 = vshll.u32 %v5329_v11, 16 }
 0x110   : > { %v6562_v1 = vpop.eup %6009  ;;  %v892_v31 = vrot.slane %v890_v19, 7  ;;  %v1172_v33 = vmul.f32 %v6492_v36, %v1169_v22  ;;  %v933_v34 = vshrl.u32 %v5319_v54, 16  ;;  %v5317_v41 = vpack.c.bf16 %v819_v14, %v819_v14  ;;  %v1203_v19 = vld [vmem:[#allocation2 + $0x8] sm:$0x1] }
 0x111   : > { %v6012_v30 = vpop.eup %6011  ;;  %v1182_v37 = vrot.slane %v1180_v23, 7  ;;  %v913_v35 = vsel %vm6557_vm11, %v905_v57, %v912_v58  ;;  %v1056_v44 = vsel %vm6243_vm4, %v914_v25, %v1055_v17  ;;  %v936_v45 = vshll.u32 %v5319_v54, 16  ;;  %v1058_v54 = vld [vmem:[#allocation2 + $0x24] sm:$0xf] }
 0x112   : > { %v6014_v27 = vpop.eup %6013  ;;  %1054 = vst [vmem:[#allocation2 + $0x1c] sm:$0xf] %v913_v35  ;;  %1057 = vst [vmem:[#allocation2 + $0x20] sm:$0x1] %v1056_v44  ;;  %v895_v12 = vor.u32 %v893_v28, %v892_v31  ;;  %v897_v47 = vrot.slane %v892_v31, 4  ;;  %v5330_v49 = vpack.c.bf16 %v1172_v33, %v1172_v33  ;;  %v6569_v36 = vrot.slane %v933_v34, 7 }
 0x113   : > { %v6016_v51 = vpop.eup %6015  ;;  %v1185_v52 = vor.u32 %v1183_v29, %v1182_v37  ;;  %v916_v59 = vshrl.u32 %v5317_v41, 16  ;;  %v6572_v57 = vadd.f32 %v6415_v26, %v656_v63  ;;  %v919_v38 = vshll.u32 %v5317_v41, 16  ;;  %v1069_v35 = vld [vmem:[#allocation2 + $0x38] sm:$0x1] }
 0x114   : > { %v6018_v61 = vpop.eup %6017  ;;  %v896_v62 = vsel %vm6557_vm11, %v888_v15, %v895_v12  ;;  %v1049_v0 = vsel %vm6243_vm4, %v897_v47, %v1048_v5  ;;  %v1188_v2 = vshrl.u32 %v5330_v49, 16  ;;  %v1191_v8 = vshll.u32 %v5330_v49, 16  ;;  %v1062_v12 = vld [vmem:[#allocation2 + $0x2c] sm:$0x1] }
 0x115   : > { %v1200_v6 = vsel %vm6540_vm10, %v1185_v52, %v1199_v40  ;;  %1047 = vst [vmem:[#allocation2 + $0x10] sm:$0xf] %v896_v62  ;;  %1050 = vst [vmem:[#allocation2 + $0x14] sm:$0x1] %v1049_v0  ;;  %v938_v10 = vor.u32 %v936_v45, %v6569_v36  ;;  %v6581_v11 = vrot.slane %v916_v59, 7  ;;  %v822_v14 = vmul.f32 %v6012_v30, %v6526_v56 }
 0x116   : > { %1201 = vst [vmem:[#allocation2] sm:$0xf] %v1200_v6  ;;  %v1190_v13 = vrot.slane %v1188_v2, 7  ;;  %v820_v15 = vmul.f32 %v6014_v27, %v6529_v16  ;;  %v825_v50 = vmul.f32 %v6016_v51, %v6533_v21  ;;  %v1186_v17 = vrot.slane %v1182_v37, 4  ;;  %v1079_v0 = vld [vmem:[#allocation2 + $0x48] sm:$0xf] }
 0x117   : > { %v1066_v22 = vsel %vm6540_vm10, %v938_v10, %v1065_v3  ;;  %v921_v23 = vor.u32 %v919_v38, %v6581_v11  ;;  %v823_v58 = vmul.f32 %v6018_v61, %v6536_v39  ;;  %v5320_v29 = vpack.c.bf16 %v822_v14, %v822_v14  ;;  %v1072_v10 = vld [vmem:[#allocation2 + $0x3c] sm:$0xf] }
 0x118   : > { %v1193_v25 = vor.u32 %v1191_v8, %v1190_v13  ;;  %v1195_v28 = vrot.slane %v1190_v13, 4  ;;  %1067 = vst [vmem:[#allocation2 + $0x30] sm:$0xf] %v1066_v22  ;;  %v5318_v31 = vpack.c.bf16 %v820_v15, %v820_v15  ;;  %v939_v56 = vrot.slane %v6569_v36, 4  ;;  %v5507_v36 = vpop.f32.mrf.mxu0 }
 0x119   : > { %v1059_v16 = vsel %vm6540_vm10, %v921_v23, %v1058_v54  ;;  %v5323_v21 = vpack.c.bf16 %v825_v50, %v825_v50  ;;  %v5321_v33 = vpack.c.bf16 %v823_v58, %v823_v58  ;;  %v922_v39 = vrot.slane %v6581_v11, 4 }
 0x11a   : > { %v1194_v34 = vsel %vm6557_vm11, %v1186_v17, %v1193_v25  ;;  %v1204_v63 = vsel %vm6243_vm4, %v1195_v28, %v1203_v19  ;;  %1060 = vst [vmem:[#allocation2 + $0x24] sm:$0xf] %v1059_v16  ;;  %v941_v30 = vshrl.u32 %v5320_v29, 16  ;;  %v944_v37 = vshll.u32 %v5320_v29, 16  ;;  %v659_v15 = vpop.f32.mrf.mxu0 }
 0x11b   : > { %1202 = vst [vmem:[#allocation2 + $0x4] sm:$0xf] %v1194_v34  ;;  %1205 = vst [vmem:[#allocation2 + $0x8] sm:$0x1] %v1204_v63  ;;  %v924_v44 = vshrl.u32 %v5318_v31, 16  ;;  %v967_v5 = vshrl.u32 %v5323_v21, 16 }
 0x11c   : > { %v4965_v41 = vadd.f32 -1.0, %v6545_v48  ;;  %v943_v27 = vrot.slane %v941_v30, 7  ;;  %v927_v40 = vshll.u32 %v5318_v31, 16  ;;  %v970_v47 = vshll.u32 %v5323_v21, 16  ;;  %v5883_v16 = vld [vmem:[#allocation2 + $0xc] sm:$0xff]  }
 0x11d   : > { %v950_v49 = vshrl.u32 %v5321_v33, 16  ;;  %v926_v51 = vrot.slane %v924_v44, 7  ;;  %v6599_v52 = vrot.slane %v967_v5, 7  ;;  %v953_v45 = vshll.u32 %v5321_v33, 16  ;;  %v1554_v19 = vld [vmem:[#allocation2] sm:$0xf] }
 0x11e   : > { %v794_v59 = vadd.f32 1.0, %v6545_v48  ;;  %v946_v61 = vor.u32 %v944_v37, %v943_v27  ;;  %v948_v62 = vrot.slane %v943_v27, 4  ;;  %v792_v3 = vadd.f32 1.0, %v6547_v18  ;;  %v5888_v44 = vld [vmem:[%s7553_s5 + $0xa8] sm:$0xff]  }
 0x11f   : > { %v6602_v2 = vrot.slane %v950_v49, 7  ;;  %v929_v38 = vor.u32 %v927_v40, %v926_v51  ;;  %v931_v6 = vrot.slane %v926_v51, 4  ;;  %v972_v8 = vor.u32 %v970_v47, %v6599_v52  ;;  %v1557_v5 = vld [vmem:[#allocation2 + $0xc] sm:$0xf] }
 0x120   : > { %v4963_v11 = vadd.f32 -1.0, %v6547_v18  ;;  %v947_v13 = vsel %vm6557_vm11, %v939_v56, %v946_v61  ;;  %v1070_v48 = vsel %vm6243_vm4, %v948_v62, %v1069_v35  ;;  %v973_v54 = vrot.slane %v6599_v52, 4  ;;  %v1559_v62 = vld [vmem:[#allocation2 + $0x14] sm:$0x1] }
 0x121   : > { %v955_v14 = vor.u32 %v953_v45, %v6602_v2  ;;  %1068 = vst [vmem:[#allocation2 + $0x34] sm:$0xf] %v947_v13  ;;  %1071 = vst [vmem:[#allocation2 + $0x38] sm:$0x1] %v1070_v48  ;;  %v930_v50 = vsel %vm6557_vm11, %v922_v39, %v929_v38  ;;  %v1063_v18 = vsel %vm6243_vm4, %v931_v6, %v1062_v12  ;;  %6019 = vrcp.f32 %v794_v59  ;;  %v1558_v12 = vld [vmem:[#allocation2 + $0x10] sm:$0xf] }
 0x122   : > { %v1080_v17 = vsel %vm6540_vm10, %v972_v8, %v1079_v0  ;;  %1061 = vst [vmem:[#allocation2 + $0x28] sm:$0xf] %v930_v50  ;;  %1064 = vst [vmem:[#allocation2 + $0x2c] sm:$0x1] %v1063_v18  ;;  %v6622_v23 = vmul.f32 %v4965_v41, %v6489_v32  ;;  %6021 = vrcp.f32 %v792_v3  ;;  %v733_v58 = vadd.f32 1.0, %v6562_v1  ;;  %v5881_v25 = vld [vmem:[#allocation2] sm:$0xff]  }
 0x123   : > { %1081 = vst [vmem:[#allocation2 + $0x48] sm:$0xf] %v1080_v17  ;;  %v1073_v22 = vsel %vm6540_vm10, %v955_v14, %v1072_v10  ;;  %v1555_v28 = vld [vmem:[#allocation2 + $0x4] sm:$0xf]  ;;  %v683_v29 = vmin.f32 %v6572_v57, 20.0  ;;  %v6627_v31 = vadd.f32 %v5507_v36, %v6415_v26  ;;  %v6630_v56 = vadd.f32 %v6415_v26, %v659_v15  ;;  %v5886_v32 = vld [vmem:[%s7553_s5 + $0xb0] sm:$0xff]   ;;  %5536 = vmatprep.mubr.bf16.mxu0 %v5881_v25 }
 0x124   : > { %1074 = vst [vmem:[#allocation2 + $0x3c] sm:$0xf] %v1073_v22  ;;  %v1262_v21 = vadd.f32 1.0, %v6515_v53  ;;  %v749_v33 = vmul.f32 %v733_v58, %v733_v58  ;;  %v5884_v1 = vld [vmem:[#allocation2 + $0x18] sm:$0xff]   ;;  %v1582_v34 = vshrl.u32 %v1554_v19, 16  ;;  %v1585_v63 = vshll.u32 %v1554_v19, 16  ;;  %5537 = vmatmul.mubr.bf16.vlgmr.msra.gmra.mxu0 %v5883_v16 }
 0x125   : > { %v1591_v39 = vshll.u32 %v1555_v28, 16  ;;  %v711_v30 = vmul.f32 1.442695, %v683_v29  ;;  %v686_v37 = vmin.f32 %v6627_v31, 20.0  ;;  %v684_v35 = vmin.f32 %v6630_v56, 20.0  ;;  %5585 = vmatpush3.bf16.msra.mxu0 %v6398_v20  ;;  %5540 = vmatprep.mubr.bf16.mxu0 %v5884_v1  ;;  %v5892_v10 = vld [vmem:[%s7553_s5 + $0xa0] sm:$0xff]  }
 0x126   : > { %v1264_v26 = vmul.f32 %v1262_v21, %v1262_v21  ;;  %v956_v53 = vrot.slane %v6602_v2, 4  ;;  %v797_v41 = vadd.f32 1.0, %v749_v33  ;;  %v1584_v27 = vrot.slane %v1582_v34, 4  ;;  %5586 = vmatprep.subr.bf16.mxu0 %v5886_v32  ;;  %v1556_v51 = vld [vmem:[#allocation2 + $0x8] sm:$0x1]  ;;  %v5903_v2 = vld [vmem:[%s7553_s5 + $0x80] sm:$0xff]  }
 0x127   : > { %v1587_v40 = vrot.slane %v1585_v63, 5  ;;  %v776_v47 = vmul.f32 %v4963_v11, %v6496_v43  ;;  %6023 = vpow2.f32 %v711_v30  ;;  %v717_v49 = vmul.f32 1.442695, %v686_v37  ;;  %v1560_v38 = vld [vmem:[#allocation2 + $0x18] sm:$0xf] }
 0x128   : > { %v713_v36 = vmul.f32 1.442695, %v684_v35  ;;  %v6644_v45 = vadd.f32 -1.0, %v749_v33  ;;  %6025 = vrcp.f32 %v797_v41  ;;  %v1270_v59 = vadd.f32 1.0, %v1264_v26  ;;  %v5890_v17 = vld [vmem:[#allocation2 + $0x30] sm:$0xff]   ;;  %v5894_v35 = vld [vmem:[%s7553_s5 + $0x98] sm:$0xff]  }
 0x129   : > { %v1588_v61 = vor.u32 %v1587_v40, %v1584_v27  ;;  %6027 = vpow2.f32 %v717_v49  ;;  %v4992_v0 = vadd.f32 -1.0, %v1264_v26  ;;  %v1593_v20 = vrot.slane %v1591_v39, 5  ;;  %5587 = vmatpush3.bf16.msra.mxu0 %v5886_v32  ;;  %v5889_v11 = vld [vmem:[#allocation2 + $0x24] sm:$0xff]   ;;  %v6658_v21 = vld [vmem:[#allocation2 + $0x1c] sm:$0xf] }
 0x12a   : > { %v1595_v3 = vshrl.u32 %v1555_v28, 16  ;;  %6029 = vpow2.f32 %v713_v36  ;;  %v1601_v43 = vshll.u32 %v1556_v51, 16  ;;  %v1606_v8 = vshrl.u32 %v1557_v5, 16  ;;  %5588 = vmatprep.subr.bf16.mxu0 %v5888_v44 }
 0x12b   : > { %v1589_v6 = vrot.slane %v1588_v61, 4  ;;  %6031 = vrcp.f32 %v1270_v59  ;;  %v1609_v14 = vshll.u32 %v1557_v5, 16  ;;  %v1615_v15 = vshll.u32 %v1558_v12, 16  ;;  %v4184_v13 = vld [vmem:[#allocation2 + $0x3c] sm:$0xe] }
 0x12c   : > { %v1597_v48 = vrot.slane %v1595_v3, 4  ;;  %v1603_v18 = vrot.slane %v1601_v43, 5  ;;  %v1608_v19 = vrot.slane %v1606_v8, 4  ;;  %v1619_v22 = vshrl.u32 %v1558_v12, 16  ;;  %5541 = vmatmul.mubr.bf16.gmra.mxu0 %v5889_v11 }
 0x12d   : > { %v1594_v50 = vsel %vm6651_vm14, %v1589_v6, %v1593_v20  ;;  %v1611_v25 = vrot.slane %v1609_v14, 5  ;;  %v1617_v28 = vrot.slane %v1615_v15, 5  ;;  %v1625_v29 = vshll.u32 %v1559_v62, 16  ;;  %5589 = vmatpush3.bf16.msra.mxu0 %v5888_v44  ;;  %5544 = vmatprep.mubr.bf16.mxu0 %v5890_v17  ;;  %v5893_v14 = vld [vmem:[%s7553_s5 + $0xf0] sm:$0xff]  }
 0x12e   : > { %v1598_v58 = vor.u32 %v1597_v48, %v1593_v20  ;;  %v6020_v16 = vpop.eup %6019  ;;  %v1621_v32 = vrot.slane %v1619_v22, 4  ;;  %6033 = vpow2.f32 %v6501_v55  ;;  %v1630_v33 = vshrl.u32 %v1560_v38, 16  ;;  %5590 = vmatprep.subr.bf16.mxu0 %v5892_v10  ;;  %v5898_v20 = vld [vmem:[%s7553_s5 + $0x90] sm:$0xff]  }
 0x12f   : > { %v1633_v1 = vshll.u32 %v1560_v38, 16  ;;  %v6022_v34 = vpop.eup %6021  ;;  %v826_v63 = vmul.f32 %v6020_v16, %v6622_v23  ;;  %v1612_v30 = vor.u32 %v1611_v25, %v1608_v19  ;;  %v1627_v37 = vrot.slane %v1625_v29, 5  ;;  %v1083_v38 = vld [vmem:[#allocation2 + $0x50] sm:$0x1]  ;;  %v5900_v16 = vld [vmem:[%s7553_s5 + $0x88] sm:$0xff]  }
 0x130   : > { %v1599_v39 = vrot.slane %v1598_v58, 4  ;;  %v824_v26 = vmul.f32 %v6022_v34, %v776_v47  ;;  %v1622_v44 = vor.u32 %v1621_v32, %v1617_v28  ;;  %v1632_v5 = vrot.slane %v1630_v33, 4 }
 0x131   : > { %v1635_v41 = vrot.slane %v1633_v1, 5  ;;  %v5324_v55 = vpack.c.bf16 %v826_v63, %v826_v63  ;;  %v1613_v40 = vrot.slane %v1612_v30, 4  ;;  %v1639_v12 = vshll.u32 %v6658_v21, 16  ;;  %5591 = vmatpush3.bf16.msra.mxu0 %v5892_v10 }
 0x132   : > { %v1604_v27 = vsel %vm6651_vm14, %v1599_v39, %v1603_v18  ;;  %v5322_v23 = vpack.c.bf16 %v824_v26, %v824_v26  ;;  %v1623_v36 = vrot.slane %v1622_v44, 4  ;;  %v781_v47 = vmul.f32 %v6644_v45, %v6504_v7  ;;  %5592 = vmatprep.subr.bf16.mxu0 %v5894_v35  ;;  %v1076_v45 = vld [vmem:[#allocation2 + $0x44] sm:$0x1]  ;;  %v5897_v26 = vld [vmem:[%s7553_s5 + $0xe8] sm:$0xff]  }
 0x133   : > { %v5028_v49 = vcombine.low %v1594_v50, %v1604_v27  ;;  %v1636_v51 = vor.u32 %v1635_v41, %v1632_v5  ;;  %v975_v59 = vshrl.u32 %v5324_v55, 16  ;;  %v978_v61 = vshll.u32 %v5324_v55, 16  ;;  %v1562_v41 = vld [vmem:[#allocation2 + $0x20] sm:$0x1] }
 0x134   : > { %v6670_v62 = vmul.f32 %v4992_v0, %v6471_v9  ;;  %v6024_v3 = vpop.eup %6023  ;;  %v958_v6 = vshrl.u32 %v5322_v23, 16  ;;  %v1618_v43 = vsel %vm6651_vm14, %v1613_v40, %v1617_v28  ;;  %v1628_v8 = vsel %vm6651_vm14, %v1623_v36, %v1627_v37 }
 0x135   : > { %5568 = vmatprep.mubr.bf16.mxu1 %v5028_v49  ;;  %v6679_v10 = vrot.slane %v1639_v12, 5  ;;  %v6026_v7 = vpop.eup %6025  ;;  %v977_v9 = vrot.slane %v975_v59, 7  ;;  %v731_v0 = vadd.f32 1.0, %v6024_v3  ;;  %v5029_v11 = vcombine.low %v1618_v43, %v1628_v8  ;;  %5593 = vmatpush3.bf16.msra.mxu0 %v5894_v35  ;;  %v5899_v3 = vld [vmem:[%s7553_s5 + $0xe0] sm:$0xff]  }
 0x136   : > { %v6681_v48 = vrot.slane %v1636_v51, 4  ;;  %v6028_v15 = vpop.eup %6027  ;;  %v960_v50 = vrot.slane %v958_v6, 7  ;;  %v961_v18 = vshll.u32 %v5322_v23, 16  ;;  %v829_v17 = vmul.f32 %v6026_v7, %v781_v47  ;;  %5594 = vmatprep.subr.bf16.mxu0 %v5898_v20  ;;  %v1093_v23 = vld [vmem:[#allocation2 + $0x60] sm:$0xf] }
 0x137   : > { %v1643_v19 = vshrl.u32 %v6658_v21, 16  ;;  %v6030_v22 = vpop.eup %6029  ;;  %v980_v58 = vor.u32 %v978_v61, %v977_v9  ;;  %v982_v25 = vrot.slane %v977_v9, 4  ;;  %v747_v28 = vmul.f32 %v731_v0, %v731_v0  ;;  %5569 = vmatmul.mubr.bf16.vlgmr.msra.gmra.mxu1 %v5029_v11  ;;  %v6107_v21 = vld [vmem:[%s7553_s5 + $0xf8] sm:$0xff]  }
 0x138   : > { %v734_v29 = vadd.f32 1.0, %v6028_v15  ;;  %v6032_v32 = vpop.eup %6031  ;;  %v963_v33 = vor.u32 %v961_v18, %v960_v50  ;;  %v965_v1 = vrot.slane %v960_v50, 4  ;;  %v5327_v34 = vpack.c.bf16 %v829_v17, %v829_v17  ;;  %5617 = vmatpush3.bf16.msra.mxu1 %v6107_v21  ;;  %v5902_v0 = vld [vmem:[%s7553_s5 + $0xd8] sm:$0xff]   ;;  %v1564_v50 = vld [vmem:[#allocation2 + $0x28] sm:$0xf] }
 0x139   : > { %v732_v63 = vadd.f32 1.0, %v6030_v22  ;;  %v981_v39 = vsel %vm6557_vm11, %v973_v54, %v980_v58  ;;  %v1084_v30 = vsel %vm6243_vm4, %v982_v25, %v1083_v38  ;;  %v795_v37 = vadd.f32 1.0, %v747_v28  ;;  %5618 = vmatprep.subr.bf16.mxu1 %v5893_v14  ;;  %5595 = vmatpush3.bf16.msra.mxu0 %v5898_v20  ;;  %v6734_v11 = vld [vmem:[%s7553_s5 + $0x138] sm:$0xff]   ;;  %v1565_v18 = vld [vmem:[#allocation2 + $0x2c] sm:$0x1] }
 0x13a   : > { %v1642_v35 = vsel %vm6651_vm14, %v6681_v48, %v6679_v10  ;;  %1082 = vst [vmem:[#allocation2 + $0x4c] sm:$0xf] %v981_v39  ;;  %1085 = vst [vmem:[#allocation2 + $0x50] sm:$0x1] %v1084_v30  ;;  %v964_v52 = vsel %vm6557_vm11, %v956_v53, %v963_v33  ;;  %v1077_v54 = vsel %vm6243_vm4, %v965_v1, %v1076_v45  ;;  %v1001_v44 = vshrl.u32 %v5327_v34, 16 }
 0x13b   : > { %v4966_v5 = vadd.f32 -1.0, %v747_v28  ;;  %v6034_v55 = vpop.eup %6033  ;;  %1075 = vst [vmem:[#allocation2 + $0x40] sm:$0xf] %v964_v52  ;;  %1078 = vst [vmem:[#allocation2 + $0x44] sm:$0x1] %v1077_v54  ;;  %v1004_v27 = vshll.u32 %v5327_v34, 16  ;;  %6035 = vrcp.f32 %v795_v37  ;;  %v750_v40 = vmul.f32 %v734_v29, %v734_v29  ;;  %5596 = vmatprep.subr.bf16.mxu0 %v5900_v16 }
 0x13c   : > { %v748_v12 = vmul.f32 %v732_v63, %v732_v63  ;;  %v6715_v53 = vrot.slane %v1001_v44, 7  ;;  %v1274_v49 = vmul.f32 %v6032_v32, %v6670_v62  ;;  %v1263_v36 = vadd.f32 1.0, %v6034_v55  ;;  %5619 = vmatpush3.bf16.msra.mxu1 %v5893_v14  ;;  %v1563_v45 = vld [vmem:[#allocation2 + $0x24] sm:$0xf]  ;;  %v1566_v17 = vld [vmem:[#allocation2 + $0x30] sm:$0xf] }
 0x13d   : > { %v1645_v51 = vrot.slane %v1643_v19, 4  ;;  %v4969_v59 = vadd.f32 -1.0, %v750_v40  ;;  %v798_v61 = vadd.f32 1.0, %v750_v40  ;;  %v1649_v20 = vshll.u32 %v1562_v41, 16  ;;  %5620 = vmatprep.subr.bf16.mxu1 %v5897_v26  ;;  %5597 = vmatpush3.bf16.msra.mxu0 %v5900_v16  ;;  %v1306_v33 = vld [vmem:[#allocation2 + $0x6c] sm:$0xf] }
 0x13e   : > { %v796_v47 = vadd.f32 1.0, %v748_v12  ;;  %v1006_v38 = vor.u32 %v1004_v27, %v6715_v53  ;;  %v4967_v6 = vadd.f32 -1.0, %v748_v12  ;;  %v1277_v43 = vmul.f32 %v6498_v46, %v1274_v49  ;;  %5598 = vmatprep.subr.bf16.mxu0 %v5903_v2  ;;  %v5904_v41 = vld [vmem:[%s7553_s5 + $0xd0] sm:$0xff]   ;;  %v1569_v49 = vld [vmem:[#allocation2 + $0x3c] sm:$0xf] }
 0x13f   : > { %v1265_v8 = vmul.f32 %v1263_v36, %v1263_v36  ;;  %v1007_v62 = vrot.slane %v6715_v53, 4  ;;  %v6725_v7 = vmul.f32 %v4966_v5, %v6572_v57  ;;  %6037 = vrcp.f32 %v798_v61  ;;  %v1310_v53 = vld [vmem:[#allocation2 + $0x74] sm:$0x1] }
 0x140   : > { %v1646_v9 = vor.u32 %v1645_v51, %v6679_v10  ;;  %v1094_v14 = vsel %vm6540_vm10, %v1006_v38, %v1093_v23  ;;  %v6739_v57 = vmul.f32 %v4969_v59, %v6627_v31  ;;  %6039 = vrcp.f32 %v796_v47  ;;  %5621 = vmatpush3.bf16.msra.mxu1 %v5897_v26  ;;  %v1567_v26 = vld [vmem:[#allocation2 + $0x34] sm:$0xf] }
 0x141   : > { %v5331_v15 = vpack.c.bf16 %v1277_v43, %v1277_v43  ;;  %1095 = vst [vmem:[#allocation2 + $0x60] sm:$0xf] %v1094_v14  ;;  %v4993_v19 = vadd.f32 -1.0, %v1265_v8  ;;  %v1271_v22 = vadd.f32 1.0, %v1265_v8  ;;  %v1651_v25 = vrot.slane %v1649_v20, 5  ;;  %5622 = vmatprep.subr.bf16.mxu1 %v5899_v3  ;;  %5599 = vmatpush3.bf16.msra.mxu0 %v5903_v2  ;;  %v5896_v34 = vld [vmem:[#allocation2 + $0x48] sm:$0xff]  }
 0x142   : > { %v1647_v58 = vrot.slane %v1646_v9, 4  ;;  %v6742_v28 = vmul.f32 %v4967_v6, %v6630_v56  ;;  %v5895_v32 = vld [vmem:[#allocation2 + $0x3c] sm:$0xff]   ;;  %v1654_v31 = vshrl.u32 %v1563_v45, 16  ;;  %v1657_v63 = vshll.u32 %v1563_v45, 16  ;;  %5648 = vmatprep.subr.bf16.mxu0 %v6734_v11  ;;  %v5906_v6 = vld [vmem:[%s7553_s5 + $0xc8] sm:$0xff]  }
 0x143   : > { %v1286_v29 = vshrl.u32 %v5331_v15, 16  ;;  %v1289_v16 = vshll.u32 %v5331_v15, 16  ;;  %6041 = vrcp.f32 %v1271_v22  ;;  %v1663_v21 = vshll.u32 %v1564_v50, 16  ;;  %5545 = vmatmul.mubr.bf16.gmra.mxu0 %v5895_v32  ;;  %v1570_v22 = vld [vmem:[#allocation2 + $0x40] sm:$0xf] }
 0x144   : > { %v1652_v1 = vsel %vm6651_vm14, %v1647_v58, %v1651_v25  ;;  %v1656_v30 = vrot.slane %v1654_v31, 4  ;;  %v1667_v37 = vshrl.u32 %v1564_v50, 16  ;;  %5623 = vmatpush3.bf16.msra.mxu1 %v5899_v3  ;;  %5548 = vmatprep.mubr.bf16.mxu0 %v5896_v34  ;;  %v1659_v52 = vrot.slane %v1657_v63, 5 }
 0x145   : > { %v6747_v39 = vrot.slane %v1286_v29, 7  ;;  %v5030_v56 = vcombine.low %v1642_v35, %v1652_v1  ;;  %v1665_v54 = vrot.slane %v1663_v21, 5  ;;  %v1673_v44 = vshll.u32 %v1565_v18, 16  ;;  %5624 = vmatprep.subr.bf16.mxu1 %v5902_v0  ;;  %v1568_v35 = vld [vmem:[#allocation2 + $0x38] sm:$0x1] }
 0x146   : > { %v1678_v5 = vshrl.u32 %v1566_v17, 16  ;;  %v6759_v10 = vmul.f32 %v4993_v19, %v6485_v24  ;;  %v1669_v48 = vrot.slane %v1667_v37, 4  ;;  %v1681_v27 = vshll.u32 %v1566_v17, 16  ;;  %v1571_v21 = vld [vmem:[#allocation2 + $0x44] sm:$0x1] }
 0x147   : > { %v1291_v55 = vor.u32 %v1289_v16, %v6747_v39  ;;  %5572 = vmatprep.mubr.bf16.mxu1 %v5030_v56  ;;  %v1660_v40 = vor.u32 %v1659_v52, %v1656_v30  ;;  %v1675_v12 = vrot.slane %v1673_v44, 5  ;;  %v1687_v23 = vshll.u32 %v1567_v26, 16 }
 0x148   : > { %v1680_v2 = vrot.slane %v1678_v5, 4  ;;  %v6036_v36 = vpop.eup %6035  ;;  %v1670_v59 = vor.u32 %v1669_v48, %v1665_v54  ;;  %v1683_v61 = vrot.slane %v1681_v27, 5  ;;  %v1691_v47 = vshrl.u32 %v1567_v26, 16  ;;  %5625 = vmatpush3.bf16.msra.mxu1 %v5902_v0 }
 0x149   : > { %v1307_v51 = vsel %vm6540_vm10, %v1291_v55, %v1306_v33  ;;  %v827_v24 = vmul.f32 %v6036_v36, %v6725_v7  ;;  %v1661_v20 = vrot.slane %v1660_v40, 4  ;;  %v1689_v3 = vrot.slane %v1687_v23, 5  ;;  %5626 = vmatprep.subr.bf16.mxu1 %v5904_v41  ;;  %v5909_v33 = vld [vmem:[%s7553_s5 + $0xc0] sm:$0xff]   ;;  %v6784_v40 = vld [vmem:[%s7553_s5 + $0x178] sm:$0xff]  }
 0x14a   : > { %1308 = vst [vmem:[#allocation2 + $0x6c] sm:$0xf] %v1307_v51  ;;  %v1697_v38 = vshll.u32 %v1568_v35, 16  ;;  %v1671_v43 = vrot.slane %v1670_v59, 4  ;;  %v1684_v8 = vor.u32 %v1683_v61, %v1680_v2  ;;  %v1693_v9 = vrot.slane %v1691_v47, 4 }
 0x14b   : > { %v1702_v45 = vshrl.u32 %v1569_v49, 16  ;;  %v5325_v14 = vpack.c.bf16 %v827_v24, %v827_v24  ;;  %v1292_v15 = vrot.slane %v6747_v39, 4  ;;  %v1666_v0 = vsel %vm6651_vm14, %v1661_v20, %v1665_v54  ;;  %v1086_v54 = vld [vmem:[#allocation2 + $0x54] sm:$0xf]  ;;  %v1097_v2 = vld [vmem:[#allocation2 + $0x68] sm:$0x1] }
 0x14c   : > { %v1705_v7 = vshll.u32 %v1569_v49, 16  ;;  %v6038_v50 = vpop.eup %6037  ;;  %v1676_v18 = vsel %vm6651_vm14, %v1671_v43, %v1675_v12  ;;  %v1685_v17 = vrot.slane %v1684_v8, 4  ;;  %v1694_v19 = vor.u32 %v1693_v9, %v1689_v3  ;;  %5627 = vmatpush3.bf16.msra.mxu1 %v5904_v41  ;;  %v2015_v24 = vld [vmem:[#allocation2] sm:$0xe]  ;;  %v2016_v43 = vld [vmem:[#allocation2 + $0x4] sm:$0xf] }
 0x14d   : > { %v1704_v58 = vrot.slane %v1702_v45, 4  ;;  %v6040_v25 = vpop.eup %6039  ;;  %v984_v29 = vshrl.u32 %v5325_v14, 16  ;;  %v830_v16 = vmul.f32 %v6038_v50, %v6739_v57  ;;  %v5031_v32 = vcombine.low %v1666_v0, %v1676_v18  ;;  %5628 = vmatprep.subr.bf16.mxu1 %v5906_v6  ;;  %v2021_v39 = vld [vmem:[#allocation2 + $0x18] sm:$0xe] }
 0x14e   : > { %v1699_v31 = vrot.slane %v1697_v38, 5  ;;  %v987_v1 = vshll.u32 %v5325_v14, 16  ;;  %v828_v34 = vmul.f32 %v6040_v25, %v6742_v28  ;;  %v1695_v63 = vrot.slane %v1694_v19, 4  ;;  %v2017_v14 = vld [vmem:[#allocation2 + $0x8] sm:$0x1] }
 0x14f   : > { %v1707_v56 = vrot.slane %v1705_v7, 5  ;;  %v986_v30 = vrot.slane %v984_v29, 7  ;;  %v5328_v37 = vpack.c.bf16 %v830_v16, %v830_v16  ;;  %5573 = vmatmul.mubr.bf16.gmra.mxu1 %v5031_v32  ;;  %v1690_v26 = vsel %vm6651_vm14, %v1685_v17, %v1689_v3  ;;  %v1572_v17 = vld [vmem:[#allocation2 + $0x48] sm:$0xf]  ;;  %v1574_v29 = vld [vmem:[#allocation2 + $0x50] sm:$0x1] }
 0x150   : > { %v1711_v57 = vshll.u32 %v1570_v22, 16  ;;  %v6042_v52 = vpop.eup %6041  ;;  %v5326_v44 = vpack.c.bf16 %v828_v34, %v828_v34  ;;  %v1700_v5 = vsel %vm6651_vm14, %v1695_v63, %v1699_v31  ;;  %v1715_v28 = vshrl.u32 %v1570_v22, 16  ;;  %5629 = vmatpush3.bf16.msra.mxu1 %v5906_v6 }
 0x151   : > { %v1708_v41 = vor.u32 %v1707_v56, %v1704_v58  ;;  %v989_v55 = vor.u32 %v987_v1, %v986_v30  ;;  %v990_v48 = vrot.slane %v986_v30, 4  ;;  %v1009_v35 = vshrl.u32 %v5328_v37, 16  ;;  %5630 = vmatprep.subr.bf16.mxu1 %v5909_v33 }
 0x152   : > { %v1721_v27 = vshll.u32 %v1571_v21, 16  ;;  %v1012_v12 = vshll.u32 %v5328_v37, 16  ;;  %v992_v23 = vshrl.u32 %v5326_v44, 16  ;;  %v1275_v49 = vmul.f32 %v6042_v52, %v6759_v10  ;;  %v1090_v10 = vld [vmem:[#allocation2 + $0x5c] sm:$0x1] }
 0x153   : > { %v5032_v36 = vcombine.low %v1690_v26, %v1700_v5  ;;  %v1087_v51 = vsel %vm6540_vm10, %v989_v55, %v1086_v54  ;;  %v1011_v59 = vrot.slane %v1009_v35, 7  ;;  %v1709_v61 = vrot.slane %v1708_v41, 4  ;;  %v2018_v21 = vld [vmem:[#allocation2 + $0xc] sm:$0xe]  ;;  %v2019_v52 = vld [vmem:[#allocation2 + $0x10] sm:$0xf] }
 0x154   : > { %v1713_v47 = vrot.slane %v1711_v57, 5  ;;  %1088 = vst [vmem:[#allocation2 + $0x54] sm:$0xf] %v1087_v51  ;;  %v994_v20 = vrot.slane %v992_v23, 7  ;;  %v995_v3 = vshll.u32 %v5326_v44, 16  ;;  %v1278_v38 = vmul.f32 %v6498_v46, %v1275_v49  ;;  %5631 = vmatpush3.bf16.msra.mxu1 %v5909_v33 }
 0x155   : > { %5576 = vmatprep.mubr.bf16.mxu1 %v5032_v36  ;;  %v1717_v6 = vrot.slane %v1715_v28, 4  ;;  %v1014_v8 = vor.u32 %v1012_v12, %v1011_v59  ;;  %v1016_v9 = vrot.slane %v1011_v59, 4  ;;  %v1723_v45 = vrot.slane %v1721_v27, 5  ;;  %5680 = vmatprep.subr.bf16.mxu1 %v6784_v40  ;;  %v1573_v46 = vld [vmem:[#allocation2 + $0x4c] sm:$0xf] }
 0x156   : > { %v1714_v42 = vsel %vm6651_vm14, %v1709_v61, %v1713_v47  ;;  %v997_v0 = vor.u32 %v995_v3, %v994_v20  ;;  %v999_v7 = vrot.slane %v994_v20, 4  ;;  %v5332_v50 = vpack.c.bf16 %v1278_v38, %v1278_v38  ;;  %v2020_v28 = vld [vmem:[#allocation2 + $0x14] sm:$0x1] }
 0x157   : > { %v1718_v18 = vor.u32 %v1717_v6, %v1713_v47  ;;  %v1015_v19 = vsel %vm6557_vm11, %v1007_v62, %v1014_v8  ;;  %v1098_v22 = vsel %vm6243_vm4, %v1016_v9, %v1097_v2  ;;  %v5044_v58 = vrot.slane %v2015_v24, 9 }
 0x158   : > { %v2068_v25 = vrot.slane %v2016_v43, 5  ;;  %1096 = vst [vmem:[#allocation2 + $0x64] sm:$0xf] %v1015_v19  ;;  %1099 = vst [vmem:[#allocation2 + $0x68] sm:$0x1] %v1098_v22  ;;  %v998_v16 = vsel %vm6557_vm11, %v990_v48, %v997_v0  ;;  %v1091_v32 = vsel %vm6243_vm4, %v999_v7, %v1090_v10  ;;  %v1294_v31 = vshrl.u32 %v5332_v50, 16 }
 0x159   : > { %v1297_v33 = vshll.u32 %v5332_v50, 16  ;;  %1089 = vst [vmem:[#allocation2 + $0x58] sm:$0xf] %v998_v16  ;;  %1092 = vst [vmem:[#allocation2 + $0x5c] sm:$0x1] %v1091_v32  ;;  %v1719_v62 = vrot.slane %v1718_v18, 4 }
 0x15a   : > { %v2070_v1 = vrot.slane %v2068_v25, 4  ;;  %v2071_v34 = vrot.slane %v2017_v14, 5  ;;  %v1726_v63 = vshrl.u32 %v1572_v17, 16  ;;  %v1296_v56 = vrot.slane %v1294_v31, 7  ;;  %v2022_v10 = vld [vmem:[#allocation2 + $0x1c] sm:$0xf] }
 0x15b   : > { %v1729_v37 = vshll.u32 %v1572_v17, 16  ;;  %v1735_v26 = vshll.u32 %v1573_v46, 16  ;;  %v1739_v57 = vshrl.u32 %v1573_v46, 16  ;;  %v1724_v54 = vsel %vm6651_vm14, %v1719_v62, %v1723_v45  ;;  %v1575_v12 = vld [vmem:[#allocation2 + $0x54] sm:$0xf] }
 0x15c   : > { %v2069_v44 = vsel %vm6805_vm1, %v5044_v58, %v2068_v25  ;;  %v1728_v5 = vrot.slane %v1726_v63, 4  ;;  %v1745_v41 = vshll.u32 %v1574_v29, 16  ;;  %v1299_v55 = vor.u32 %v1297_v33, %v1296_v56  ;;  %v2023_v14 = vld [vmem:[#allocation2 + $0x20] sm:$0x1]  ;;  %v2024_v0 = vld [vmem:[#allocation2 + $0x24] sm:$0xe] }
 0x15d   : > { %v1301_v48 = vrot.slane %v1296_v56, 4  ;;  %v5033_v35 = vcombine.low %v1714_v42, %v1724_v54  ;;  %v2072_v27 = vsel %vm6805_vm1, %v2070_v1, %v2071_v34  ;;  %v1731_v2 = vrot.slane %v1729_v37, 5  ;;  %v2025_v46 = vld [vmem:[#allocation2 + $0x28] sm:$0xf]  ;;  %v2026_v29 = vld [vmem:[#allocation2 + $0x2c] sm:$0x1] }
 0x15e   : > { %v1737_v23 = vrot.slane %v1735_v26, 5  ;;  %v1741_v49 = vrot.slane %v1739_v57, 4  ;;  %v1747_v36 = vrot.slane %v1745_v41, 5  ;;  %v1300_v51 = vsel %vm6557_vm11, %v1292_v15, %v1299_v55  ;;  %v2028_v62 = vld [vmem:[#allocation2 + $0x34] sm:$0xf] }
 0x15f   : > { %v1311_v59 = vsel %vm6243_vm4, %v1301_v48, %v1310_v53  ;;  %5577 = vmatmul.mubr.bf16.gmra.mxu1 %v5033_v35  ;;  %v5045_v61 = vrot.slane %v2018_v21, 9  ;;  %v2075_v47 = vrot.slane %v2019_v52, 5  ;;  %1309 = vst [vmem:[#allocation2 + $0x70] sm:$0xf] %v1300_v51  ;;  %v1732_v24 = vor.u32 %v1731_v2, %v1728_v5  ;;  %v2027_v53 = vld [vmem:[#allocation2 + $0x30] sm:$0xe] }
 0x160   : > { %1312 = vst [vmem:[#allocation2 + $0x74] sm:$0x1] %v1311_v59  ;;  %v1742_v20 = vor.u32 %v1741_v49, %v1737_v23  ;;  %v2078_v3 = vrot.slane %v2020_v28, 5  ;;  %v1750_v38 = vshrl.u32 %v1575_v12, 16  ;;  %v5901_v6 = vld [vmem:[#allocation2 + $0x54] sm:$0xff]   ;;  %v5068_v43 = vcombine.low %v2069_v44, %v2072_v27 }
 0x161   : > { %v2077_v8 = vrot.slane %v2075_v47, 4  ;;  %v1576_v9 = vld [vmem:[#allocation2 + $0x58] sm:$0xf]  ;;  %v1733_v60 = vrot.slane %v1732_v24, 4  ;;  %v1577_v42 = vld [vmem:[#allocation2 + $0x5c] sm:$0x1]  ;;  %5549 = vmatmul.mubr.bf16.gmra.mxu0 %v5901_v6  ;;  %v2076_v58 = vsel %vm6805_vm1, %v5045_v61, %v2075_v47 }
 0x162   : > { %v1743_v15 = vrot.slane %v1742_v20, 4  ;;  %v1752_v4 = vrot.slane %v1750_v38, 4  ;;  %v1753_v45 = vshll.u32 %v1575_v12, 16  ;;  %v1759_v50 = vshll.u32 %v1576_v9, 16  ;;  %5600 = vmatprep.mubr.bf16.mxu0 %v5068_v43  ;;  %v2029_v56 = vld [vmem:[#allocation2 + $0x38] sm:$0x1] }
 0x163   : > { %v2079_v7 = vsel %vm6805_vm1, %v2077_v8, %v2078_v3  ;;  %v1763_v18 = vshrl.u32 %v1576_v9, 16  ;;  %v1769_v17 = vshll.u32 %v1577_v42, 16  ;;  %v1738_v19 = vsel %vm6651_vm14, %v1733_v60, %v1737_v23  ;;  %v2030_v54 = vld [vmem:[#allocation2 + $0x3c] sm:$0xe]  ;;  %v5908_v28 = vld [vmem:[%s7553_s5 + $0x130] sm:$0xff]   ;;  %v5910_v38 = vld [vmem:[%s7553_s5 + $0x128] sm:$0xff]  }
 0x164   : > { %v1748_v22 = vsel %vm6651_vm14, %v1743_v15, %v1747_v36  ;;  %v1755_v25 = vrot.slane %v1753_v45, 5  ;;  %v5069_v32 = vcombine.low %v2076_v58, %v2079_v7  ;;  %v1761_v31 = vrot.slane %v1759_v50, 5  ;;  %v2031_v48 = vld [vmem:[#allocation2 + $0x40] sm:$0xf]  ;;  %v2033_v35 = vld [vmem:[#allocation2 + $0x48] sm:$0xe] }
 0x165   : > { %v5034_v16 = vcombine.low %v1738_v19, %v1748_v22  ;;  %v1765_v33 = vrot.slane %v1763_v18, 4  ;;  %v1771_v34 = vrot.slane %v1769_v17, 5  ;;  %v5046_v63 = vrot.slane %v2021_v39, 9  ;;  %v2032_v49 = vld [vmem:[#allocation2 + $0x44] sm:$0x1]  ;;  %v5907_v45 = vld [vmem:[#allocation2 + $0xc] sm:$0xff]  }
 0x166   : > { %v1756_v1 = vor.u32 %v1755_v25, %v1752_v4  ;;  %v2082_v21 = vrot.slane %v2022_v10, 5  ;;  %v2085_v26 = vrot.slane %v2023_v14, 5  ;;  %v5047_v57 = vrot.slane %v2024_v0, 9  ;;  %v2034_v47 = vld [vmem:[#allocation2 + $0x4c] sm:$0xf] }
 0x167   : > { %5580 = vmatprep.mubr.bf16.mxu1 %v5034_v16  ;;  %v1766_v37 = vor.u32 %v1765_v33, %v1761_v31  ;;  %v2089_v52 = vrot.slane %v2025_v46, 5  ;;  %v2092_v55 = vrot.slane %v2026_v29, 5  ;;  %v5048_v2 = vrot.slane %v2027_v53, 9  ;;  %v2035_v24 = vld [vmem:[#allocation2 + $0x50] sm:$0x1] }
 0x168   : > { %v1757_v44 = vrot.slane %v1756_v1, 4  ;;  %v2083_v5 = vsel %vm6805_vm1, %v5046_v63, %v2082_v21  ;;  %v2084_v41 = vrot.slane %v2082_v21, 4  ;;  %v2096_v23 = vrot.slane %v2028_v62, 5  ;;  %v2036_v8 = vld [vmem:[#allocation2 + $0x54] sm:$0xe]  ;;  %v5914_v1 = vld [vmem:[%s7553_s5 + $0x120] sm:$0xff]  }
 0x169   : > { %v1767_v27 = vrot.slane %v1766_v37, 4  ;;  %v2091_v12 = vrot.slane %v2089_v52, 4  ;;  %v2090_v59 = vsel %vm6805_vm1, %v5047_v57, %v2089_v52  ;;  %v2099_v61 = vrot.slane %v2029_v56, 5  ;;  %5601 = vmatmul.mubr.bf16.vlgmr.msra.gmra.mxu0 %v5069_v32  ;;  %v2638_v9 = vld [vmem:[#allocation2 + $0xc] sm:$0xf] }
 0x16a   : > { %v1762_v36 = vsel %vm6651_vm14, %v1757_v44, %v1761_v31  ;;  %v2086_v51 = vsel %vm6805_vm1, %v2084_v41, %v2085_v26  ;;  %v5049_v43 = vrot.slane %v2030_v54, 9  ;;  %5649 = vmatpush3.bf16.msra.mxu0 %v6734_v11  ;;  %v2097_v10 = vsel %vm6805_vm1, %v5048_v2, %v2096_v23  ;;  %v2037_v42 = vld [vmem:[#allocation2 + $0x58] sm:$0xf]  ;;  %v2038_v4 = vld [vmem:[#allocation2 + $0x5c] sm:$0x1]  ;;  %v5915_v26 = vld [vmem:[%s7553_s5 + $0x170] sm:$0xff]  }
 0x16b   : > { %v1772_v20 = vsel %vm6651_vm14, %v1767_v27, %v1771_v34  ;;  %v5070_v3 = vcombine.low %v2083_v5, %v2086_v51  ;;  %v2093_v6 = vsel %vm6805_vm1, %v2091_v12, %v2092_v55  ;;  %v2098_v60 = vrot.slane %v2096_v23, 4  ;;  %5650 = vmatprep.subr.bf16.mxu0 %v5908_v28  ;;  %v2639_v18 = vld [vmem:[#allocation2 + $0x10] sm:$0xf]  ;;  %v2640_v31 = vld [vmem:[#allocation2 + $0x14] sm:$0x1]  ;;  %v5911_v41 = vld [vmem:[#allocation2 + $0x18] sm:$0xff]  }
 0x16c   : > { %v5035_v39 = vcombine.low %v1762_v36, %v1772_v20  ;;  %v2103_v15 = vrot.slane %v2031_v48, 5  ;;  %v5071_v14 = vcombine.low %v2090_v59, %v2093_v6  ;;  %v2106_v0 = vrot.slane %v2032_v49, 5  ;;  %v2641_v62 = vld [vmem:[#allocation2 + $0x18] sm:$0xf]  ;;  %v2642_v37 = vld [vmem:[#allocation2 + $0x1c] sm:$0xf] }
 0x16d   : > { %5604 = vmatprep.mubr.bf16.mxu0 %v5070_v3  ;;  %v5050_v7 = vrot.slane %v2033_v35, 9  ;;  %v2110_v50 = vrot.slane %v2034_v47, 5  ;;  %v2100_v11 = vsel %vm6805_vm1, %v2098_v60, %v2099_v61  ;;  %v2113_v19 = vrot.slane %v2035_v24, 5  ;;  %v2643_v5 = vld [vmem:[#allocation2 + $0x20] sm:$0x1]  ;;  %v5913_v59 = vld [vmem:[#allocation2 + $0x24] sm:$0xff]  }
 0x16e   : > { %5581 = vmatmul.mubr.bf16.gmra.mxu1 %v5035_v39  ;;  %v6854_v17 = vsel %vm6805_vm1, %v5049_v43, %v2103_v15  ;;  %v2105_v46 = vrot.slane %v2103_v15, 4  ;;  %v5072_v22 = vcombine.low %v2097_v10, %v2100_v11  ;;  %v5051_v25 = vrot.slane %v2036_v8, 9  ;;  %5651 = vmatpush3.bf16.msra.mxu0 %v5908_v28  ;;  %v5916_v28 = vld [vmem:[%s7553_s5 + $0x118] sm:$0xff]   ;;  %v2644_v12 = vld [vmem:[#allocation2 + $0x24] sm:$0xf]  ;;  %v5918_v15 = vld [vmem:[%s7553_s5 + $0x168] sm:$0xff]  }
 0x16f   : > { %5632 = vmatprep.mubr.bf16.mxu1 %v5907_v45  ;;  %v2112_v58 = vrot.slane %v2110_v50, 4  ;;  %v2117_v29 = vrot.slane %v2037_v42, 5  ;;  %v6862_v32 = vsel %vm6805_vm1, %v5050_v7, %v2110_v50  ;;  %v2663_v33 = vshrl.u32 %v2638_v9, 16  ;;  %5652 = vmatprep.subr.bf16.mxu0 %v5910_v38  ;;  %v2645_v51 = vld [vmem:[#allocation2 + $0x28] sm:$0xf]  ;;  %v5920_v42 = vld [vmem:[%s7553_s5 + $0x110] sm:$0xff]  }
 0x170   : > { %v6858_v16 = vsel %vm6805_vm1, %v2105_v46, %v2106_v0  ;;  %v2666_v53 = vshll.u32 %v2638_v9, 16  ;;  %v2120_v56 = vrot.slane %v2038_v4, 5  ;;  %v2672_v44 = vshll.u32 %v2639_v18, 16  ;;  %v2646_v39 = vld [vmem:[#allocation2 + $0x2c] sm:$0x1] }
 0x171   : > { %v5073_v34 = vcombine.low %v6854_v17, %v6858_v16  ;;  %v6871_v63 = vsel %vm6805_vm1, %v2112_v58, %v2113_v19  ;;  %v2119_v21 = vrot.slane %v2117_v29, 4  ;;  %v6878_v57 = vsel %vm6805_vm1, %v5051_v25, %v2117_v29  ;;  %5605 = vmatmul.mubr.bf16.gmra.mxu0 %v5071_v14  ;;  %v6900_v0 = vld [vmem:[#allocation2 + $0xc] sm:$0xe]  ;;  %v3097_v46 = vld [vmem:[#allocation2 + $0x10] sm:$0xf]  ;;  %v6905_v19 = vld [vmem:[%s7553_s5 + $0x160] sm:$0xff]  }
 0x172   : > { %v2665_v52 = vrot.slane %v2663_v33, 4  ;;  %v2668_v54 = vrot.slane %v2666_v53, 5  ;;  %v2676_v48 = vshrl.u32 %v2639_v18, 16  ;;  %v2682_v35 = vshll.u32 %v2640_v31, 16  ;;  %5653 = vmatpush3.bf16.msra.mxu0 %v5910_v38  ;;  %5608 = vmatprep.mubr.bf16.mxu0 %v5072_v22  ;;  %v6913_v31 = vld [vmem:[%s7553_s5 + $0x108] sm:$0xff]   ;;  %v5919_v16 = vld [vmem:[#allocation2 + $0x3c] sm:$0xff]  }
 0x173   : > { %v6885_v55 = vsel %vm6805_vm1, %v2119_v21, %v2120_v56  ;;  %v2687_v27 = vshrl.u32 %v2641_v62, 16  ;;  %v5074_v2 = vcombine.low %v6862_v32, %v6871_v63  ;;  %v2674_v49 = vrot.slane %v2672_v44, 5  ;;  %5654 = vmatprep.subr.bf16.mxu0 %v5914_v1  ;;  %v3098_v32 = vld [vmem:[#allocation2 + $0x14] sm:$0x1]  ;;  %v2647_v63 = vld [vmem:[#allocation2 + $0x30] sm:$0xf] }
 0x174   : > { %v2669_v23 = vor.u32 %v2668_v54, %v2665_v52  ;;  %v2690_v36 = vshll.u32 %v2641_v62, 16  ;;  %v5075_v61 = vcombine.low %v6878_v57, %v6885_v55  ;;  %v2678_v47 = vrot.slane %v2676_v48, 4  ;;  %v5917_v21 = vld [vmem:[#allocation2 + $0x30] sm:$0xff]   ;;  %v2649_v48 = vld [vmem:[#allocation2 + $0x38] sm:$0x1] }
 0x175   : > { %v2689_v24 = vrot.slane %v2687_v27, 4  ;;  %v2696_v20 = vshll.u32 %v2642_v37, 16  ;;  %v2700_v38 = vshrl.u32 %v2642_v37, 16  ;;  %v2706_v43 = vshll.u32 %v2643_v5, 16  ;;  %v2648_v5 = vld [vmem:[#allocation2 + $0x34] sm:$0xf] }
 0x176   : > { %5633 = vmatmul.mubr.bf16.vlgmr.msra.gmra.mxu1 %v5911_v41  ;;  %v2670_v3 = vrot.slane %v2669_v23, 4  ;;  %v2692_v6 = vrot.slane %v2690_v36, 5  ;;  %v2679_v8 = vor.u32 %v2678_v47, %v2674_v49  ;;  %v2711_v10 = vshrl.u32 %v2644_v12, 16  ;;  %5655 = vmatpush3.bf16.msra.mxu0 %v5914_v1  ;;  %v3102_v55 = vld [vmem:[#allocation2 + $0x24] sm:$0xe] }
 0x177   : > { %5636 = vmatprep.mubr.bf16.mxu1 %v5913_v59  ;;  %5681 = vmatpush3.bf16.msra.mxu1 %v6784_v40  ;;  %v2698_v9 = vrot.slane %v2696_v20, 5  ;;  %v2714_v60 = vshll.u32 %v2644_v12, 16  ;;  %v2684_v45 = vrot.slane %v2682_v35, 5  ;;  %v2702_v14 = vrot.slane %v2700_v38, 4  ;;  %v2650_v12 = vld [vmem:[#allocation2 + $0x3c] sm:$0xf] }
 0x178   : > { %5682 = vmatprep.subr.bf16.mxu1 %v5915_v26  ;;  %v2675_v4 = vsel %vm6651_vm14, %v2670_v3, %v2674_v49  ;;  %v2693_v40 = vor.u32 %v2692_v6, %v2689_v24  ;;  %5656 = vmatprep.subr.bf16.mxu0 %v5916_v28  ;;  %v2680_v7 = vrot.slane %v2679_v8, 4  ;;  %v2713_v50 = vrot.slane %v2711_v10, 4  ;;  %v5926_v3 = vld [vmem:[%s7553_s5 + $0x100] sm:$0xff]   ;;  %v5927_v10 = vld [vmem:[%s7553_s5 + $0x150] sm:$0xff]  }
 0x179   : > { %v2716_v18 = vrot.slane %v2714_v60, 5  ;;  %v2720_v11 = vshll.u32 %v2645_v51, 16  ;;  %v2703_v58 = vor.u32 %v2702_v14, %v2698_v9  ;;  %v2724_v25 = vshrl.u32 %v2645_v51, 16  ;;  %5609 = vmatmul.mubr.bf16.gmra.mxu0 %v5073_v34  ;;  %v5924_v51 = vld [vmem:[%s7553_s5 + $0x158] sm:$0xff]   ;;  %v2651_v8 = vld [vmem:[#allocation2 + $0x40] sm:$0xf] }
 0x17a   : > { %v2694_v22 = vrot.slane %v2693_v40, 4  ;;  %v2730_v29 = vshll.u32 %v2646_v39, 16  ;;  %v2685_v33 = vsel %vm6651_vm14, %v2680_v7, %v2684_v45  ;;  %v2708_v53 = vrot.slane %v2706_v43, 5  ;;  %5657 = vmatpush3.bf16.msra.mxu0 %v5916_v28  ;;  %5612 = vmatprep.mubr.bf16.mxu0 %v5074_v2  ;;  %v3099_v39 = vld [vmem:[#allocation2 + $0x18] sm:$0xe]  ;;  %v5923_v14 = vld [vmem:[#allocation2 + $0x48] sm:$0xff]  }
 0x17b   : > { %5683 = vmatpush3.bf16.msra.mxu1 %v5915_v26  ;;  %v2717_v62 = vor.u32 %v2716_v18, %v2713_v50  ;;  %v2722_v1 = vrot.slane %v2720_v11, 5  ;;  %v5132_v56 = vcombine.low %v2675_v4, %v2685_v33  ;;  %v2704_v37 = vrot.slane %v2703_v58, 4  ;;  %5658 = vmatprep.subr.bf16.mxu0 %v5920_v42  ;;  %v2652_v45 = vld [vmem:[#allocation2 + $0x44] sm:$0x1]  ;;  %v3100_v40 = vld [vmem:[#allocation2 + $0x1c] sm:$0xf] }
 0x17c   : > { %v2726_v26 = vrot.slane %v2724_v25, 4  ;;  %v5148_v17 = vrot.slane %v6900_v0, 9  ;;  %5684 = vmatprep.subr.bf16.mxu1 %v5918_v15  ;;  %v2699_v34 = vsel %vm6651_vm14, %v2694_v22, %v2698_v9  ;;  %v2732_v54 = vrot.slane %v2730_v29, 5  ;;  %v5928_v0 = vld [vmem:[%s7553_s5 + $0x1b8] sm:$0xff]  }
 0x17d   : > { %v2718_v52 = vrot.slane %v2717_v62, 4  ;;  %v3146_v44 = vrot.slane %v3097_v46, 5  ;;  %v2709_v41 = vsel %vm6651_vm14, %v2704_v37, %v2708_v53  ;;  %v2735_v35 = vshrl.u32 %v2647_v63, 16  ;;  %v3101_v46 = vld [vmem:[#allocation2 + $0x20] sm:$0x1] }
 0x17e   : > { %5637 = vmatmul.mubr.bf16.gmra.mxu1 %v5917_v21  ;;  %v2727_v28 = vor.u32 %v2726_v26, %v2722_v1  ;;  %v2738_v27 = vshll.u32 %v2647_v63, 16  ;;  %v6922_v2 = vcombine.low %v2699_v34, %v2709_v41  ;;  %v3149_v36 = vrot.slane %v3098_v32, 5  ;;  %5659 = vmatpush3.bf16.msra.mxu0 %v5920_v42  ;;  %v3103_v53 = vld [vmem:[#allocation2 + $0x28] sm:$0xf]  ;;  %v5931_v41 = vld [vmem:[%s7553_s5 + $0x1b0] sm:$0xff]  }
 0x17f   : > { %5640 = vmatprep.mubr.bf16.mxu1 %v5919_v16  ;;  %5685 = vmatpush3.bf16.msra.mxu1 %v5918_v15  ;;  %v2723_v23 = vsel %vm6651_vm14, %v2718_v52, %v2722_v1  ;;  %v3148_v49 = vrot.slane %v3146_v44, 4  ;;  %v2737_v47 = vrot.slane %v2735_v35, 4  ;;  %v2744_v20 = vshll.u32 %v2648_v5, 16  ;;  %v2653_v21 = vld [vmem:[#allocation2 + $0x48] sm:$0xf] }
 0x180   : > { %5686 = vmatprep.subr.bf16.mxu1 %v6905_v19  ;;  %v2728_v59 = vrot.slane %v2727_v28, 4  ;;  %v2740_v24 = vrot.slane %v2738_v27, 5  ;;  %5660 = vmatprep.subr.bf16.mxu0 %v6913_v31  ;;  %v2748_v38 = vshrl.u32 %v2648_v5, 16  ;;  %v2754_v43 = vshll.u32 %v2649_v48, 16  ;;  %v3104_v16 = vld [vmem:[#allocation2 + $0x2c] sm:$0x1] }
 0x181   : > { %v6936_v6 = vsel %vm6805_vm1, %v3148_v49, %v3149_v36  ;;  %v2759_v9 = vshrl.u32 %v2650_v12, 16  ;;  %v6945_v15 = vsel %vm6805_vm1, %v5148_v17, %v3146_v44  ;;  %v6947_v4 = vrot.slane %v2744_v20, 5  ;;  %5613 = vmatmul.mubr.bf16.gmra.mxu0 %v5075_v61  ;;  %v5925_v61 = vld [vmem:[#allocation2 + $0x54] sm:$0xff]   ;;  %v5930_v34 = vld [vmem:[%s7553_s5 + $0x148] sm:$0xff]  }
 0x182   : > { %v2733_v60 = vsel %vm6651_vm14, %v2728_v59, %v2732_v54  ;;  %v2741_v42 = vor.u32 %v2740_v24, %v2737_v47  ;;  %v5172_v50 = vcombine.low %v6945_v15, %v6936_v6  ;;  %v2750_v18 = vrot.slane %v2748_v38, 4  ;;  %5661 = vmatpush3.bf16.msra.mxu0 %v6913_v31  ;;  %5664 = vmatprep.mubr.bf16.mxu0 %v5132_v56  ;;  %v2654_v27 = vld [vmem:[#allocation2 + $0x4c] sm:$0xf]  ;;  %v2655_v59 = vld [vmem:[#allocation2 + $0x50] sm:$0x1]  ;;  %v5932_v47 = vld [vmem:[%s7553_s5 + $0x140] sm:$0xff]  }
 0x183   : > { %5687 = vmatpush3.bf16.msra.mxu1 %v6905_v19  ;;  %v5134_v7 = vcombine.low %v2723_v23, %v2733_v60  ;;  %v2761_v11 = vrot.slane %v2759_v9, 4  ;;  %v2762_v22 = vshll.u32 %v2650_v12, 16  ;;  %v2768_v58 = vshll.u32 %v2651_v8, 16  ;;  %5662 = vmatprep.subr.bf16.mxu0 %v5926_v3  ;;  %v5933_v24 = vld [vmem:[%s7553_s5 + $0x1a8] sm:$0xff]   ;;  %v5935_v6 = vld [vmem:[%s7553_s5 + $0x1a0] sm:$0xff]  }
 0x184   : > { %v2742_v19 = vrot.slane %v2741_v42, 4  ;;  %v2772_v57 = vshrl.u32 %v2651_v8, 16  ;;  %5688 = vmatprep.subr.bf16.mxu1 %v5924_v51  ;;  %v2751_v25 = vor.u32 %v2750_v18, %v6947_v4  ;;  %v2756_v29 = vrot.slane %v2754_v43, 5  ;;  %v2656_v8 = vld [vmem:[#allocation2 + $0x54] sm:$0xf] }
 0x185   : > { %v2778_v32 = vshll.u32 %v2652_v45, 16  ;;  %v3153_v33 = vrot.slane %v3100_v40, 5  ;;  %v2764_v62 = vrot.slane %v2762_v22, 5  ;;  %v2770_v1 = vrot.slane %v2768_v58, 5  ;;  %v2657_v42 = vld [vmem:[#allocation2 + $0x58] sm:$0xf] }
 0x186   : > { %5641 = vmatmul.mubr.bf16.gmra.mxu1 %v5923_v14  ;;  %v2774_v63 = vrot.slane %v2772_v57, 4  ;;  %v5149_v31 = vrot.slane %v3099_v39, 9  ;;  %v2747_v56 = vsel %vm6651_vm14, %v2742_v19, %v6947_v4  ;;  %v2752_v37 = vrot.slane %v2751_v25, 4  ;;  %5663 = vmatpush3.bf16.msra.mxu0 %v5926_v3  ;;  %v3106_v22 = vld [vmem:[#allocation2 + $0x34] sm:$0xf] }
 0x187   : > { %5644 = vmatprep.mubr.bf16.mxu1 %v5925_v61  ;;  %5689 = vmatpush3.bf16.msra.mxu1 %v5924_v51  ;;  %v2780_v26 = vrot.slane %v2778_v32, 5  ;;  %v3155_v17 = vrot.slane %v3153_v33, 4  ;;  %v2765_v52 = vor.u32 %v2764_v62, %v2761_v11  ;;  %v3156_v5 = vrot.slane %v3101_v46, 5  ;;  %v3107_v25 = vld [vmem:[#allocation2 + $0x38] sm:$0x1] }
 0x188   : > { %5690 = vmatprep.subr.bf16.mxu1 %v5927_v10  ;;  %v2775_v54 = vor.u32 %v2774_v63, %v2770_v1  ;;  %v6968_v44 = vsel %vm6805_vm1, %v5149_v31, %v3153_v33  ;;  %5712 = vmatprep.subr.bf16.mxu0 %v5928_v0  ;;  %v2757_v28 = vsel %vm6651_vm14, %v2752_v37, %v2756_v29  ;;  %v5150_v48 = vrot.slane %v3102_v55, 9  ;;  %v5934_v29 = vld [vmem:[%s7553_s5 + $0x1f8] sm:$0xff]  }
 0x189   : > { %v3160_v35 = vrot.slane %v3103_v53, 5  ;;  %v2783_v12 = vshrl.u32 %v2653_v21, 16  ;;  %v2766_v23 = vrot.slane %v2765_v52, 4  ;;  %v6977_v36 = vsel %vm6805_vm1, %v3155_v17, %v3156_v5  ;;  %5665 = vmatmul.mubr.bf16.vlgmr.msra.gmra.mxu0 %v6922_v2  ;;  %v5929_v2 = vld [vmem:[#allocation2 + $0x60] sm:$0xff]  }
 0x18a   : > { %v2776_v49 = vrot.slane %v2775_v54, 4  ;;  %v3163_v51 = vrot.slane %v3104_v16, 5  ;;  %v5135_v20 = vcombine.low %v2747_v56, %v2757_v28  ;;  %v5173_v3 = vcombine.low %v6968_v44, %v6977_v36  ;;  %5713 = vmatpush3.bf16.msra.mxu0 %v5928_v0  ;;  %5668 = vmatprep.mubr.bf16.mxu0 %v5134_v7  ;;  %v2658_v0 = vld [vmem:[#allocation2 + $0x5c] sm:$0x1]  ;;  %v3105_v7 = vld [vmem:[#allocation2 + $0x30] sm:$0xe] }
 0x18b   : > { %5691 = vmatpush3.bf16.msra.mxu1 %v5927_v10  ;;  %v6990_v38 = vsel %vm6805_vm1, %v5150_v48, %v3160_v35  ;;  %v3162_v43 = vrot.slane %v3160_v35, 4  ;;  %v2785_v39 = vrot.slane %v2783_v12, 4  ;;  %v2786_v10 = vshll.u32 %v2653_v21, 16  ;;  %5714 = vmatprep.subr.bf16.mxu0 %v5931_v41  ;;  %v3109_v21 = vld [vmem:[#allocation2 + $0x40] sm:$0xf]  ;;  %v5936_v28 = vld [vmem:[%s7553_s5 + $0x1f0] sm:$0xff]  }
 0x18c   : > { %v2781_v9 = vsel %vm6651_vm14, %v2776_v49, %v2780_v26  ;;  %v2792_v60 = vshll.u32 %v2654_v27, 16  ;;  %5692 = vmatprep.subr.bf16.mxu1 %v5930_v34  ;;  %v2771_v4 = vsel %vm6651_vm14, %v2766_v23, %v2770_v1  ;;  %v2796_v40 = vshrl.u32 %v2654_v27, 16  ;;  %v3108_v1 = vld [vmem:[#allocation2 + $0x3c] sm:$0xe]  ;;  %v3110_v16 = vld [vmem:[#allocation2 + $0x44] sm:$0x1] }
 0x18d   : > { %v6998_v45 = vsel %vm6805_vm1, %v3162_v43, %v3163_v51  ;;  %v2802_v14 = vshll.u32 %v2655_v59, 16  ;;  %v5136_v18 = vcombine.low %v2771_v4, %v2781_v9  ;;  %v2788_v11 = vrot.slane %v2786_v10, 5  ;;  %v5937_v23 = vld [vmem:[%s7553_s5 + $0x198] sm:$0xff]   ;;  %v3111_v36 = vld [vmem:[#allocation2 + $0x48] sm:$0xe]  ;;  %v5939_v4 = vld [vmem:[%s7553_s5 + $0x190] sm:$0xff]  }
 0x18e   : > { %5645 = vmatmul.mubr.bf16.gmra.mxu1 %v5929_v2  ;;  %v2794_v46 = vrot.slane %v2792_v60, 5  ;;  %v2807_v19 = vshrl.u32 %v2656_v8, 16  ;;  %v5174_v58 = vcombine.low %v6990_v38, %v6998_v45  ;;  %v2798_v57 = vrot.slane %v2796_v40, 4  ;;  %5715 = vmatpush3.bf16.msra.mxu0 %v5931_v41  ;;  %v2659_v41 = vld [vmem:[#allocation2 + $0x60] sm:$0xf]  ;;  %v5938_v60 = vld [vmem:[%s7553_s5 + $0x1e8] sm:$0xff]  }
 0x18f   : > { %5693 = vmatpush3.bf16.msra.mxu1 %v5930_v34  ;;  %5696 = vmatprep.mubr.bf16.mxu1 %v5172_v50  ;;  %v2810_v55 = vshll.u32 %v2656_v8, 16  ;;  %v2816_v61 = vshll.u32 %v2657_v42, 16  ;;  %v2789_v32 = vor.u32 %v2788_v11, %v2785_v39  ;;  %v2820_v53 = vshrl.u32 %v2657_v42, 16  ;;  %v2661_v8 = vld [vmem:[#allocation2 + $0x68] sm:$0x1] }
 0x190   : > { %5694 = vmatprep.subr.bf16.mxu1 %v5932_v47  ;;  %v2809_v33 = vrot.slane %v2807_v19, 4  ;;  %v2826_v62 = vshll.u32 %v2658_v0, 16  ;;  %5716 = vmatprep.subr.bf16.mxu0 %v5933_v24  ;;  %v2799_v15 = vor.u32 %v2798_v57, %v2794_v46  ;;  %v2804_v50 = vrot.slane %v2802_v14, 5  ;;  %v3113_v0 = vld [vmem:[#allocation2 + $0x50] sm:$0x1] }
 0x191   : > { %v2812_v63 = vrot.slane %v2810_v55, 5  ;;  %v2818_v31 = vrot.slane %v2816_v61, 5  ;;  %v2790_v56 = vrot.slane %v2789_v32, 4  ;;  %v2822_v37 = vrot.slane %v2820_v53, 4  ;;  %5669 = vmatmul.mubr.bf16.gmra.mxu0 %v5135_v20  ;;  %v3114_v19 = vld [vmem:[#allocation2 + $0x54] sm:$0xe] }
 0x192   : > { %v5151_v26 = vrot.slane %v3105_v7, 9  ;;  %v3167_v17 = vrot.slane %v3106_v22, 5  ;;  %v2800_v34 = vrot.slane %v2799_v15, 4  ;;  %v2828_v54 = vrot.slane %v2826_v62, 5  ;;  %5717 = vmatpush3.bf16.msra.mxu0 %v5933_v24  ;;  %5672 = vmatprep.mubr.bf16.mxu0 %v5136_v18  ;;  %v2660_v24 = vld [vmem:[#allocation2 + $0x64] sm:$0xf] }
 0x193   : > { %5695 = vmatpush3.bf16.msra.mxu1 %v5932_v47  ;;  %v2813_v52 = vor.u32 %v2812_v63, %v2809_v33  ;;  %v3170_v5 = vrot.slane %v3107_v25, 5  ;;  %v2795_v48 = vsel %vm6651_vm14, %v2790_v56, %v2794_v46  ;;  %v2823_v35 = vor.u32 %v2822_v37, %v2818_v31  ;;  %5718 = vmatprep.subr.bf16.mxu0 %v5935_v6  ;;  %v3115_v22 = vld [vmem:[#allocation2 + $0x58] sm:$0xf]  ;;  %v3116_v25 = vld [vmem:[#allocation2 + $0x5c] sm:$0x1]  ;;  %v5941_v56 = vld [vmem:[%s7553_s5 + $0x188] sm:$0xff]  }
 0x194   : > { %v3169_v27 = vrot.slane %v3167_v17, 4  ;;  %v5152_v12 = vrot.slane %v3108_v1, 9  ;;  %5744 = vmatprep.subr.bf16.mxu1 %v5934_v29  ;;  %v2805_v49 = vsel %vm6651_vm14, %v2800_v34, %v2804_v50  ;;  %v3168_v59 = vsel %vm6805_vm1, %v5151_v26, %v3167_v17  ;;  %v3118_v1 = vld [vmem:[#allocation2 + $0x64] sm:$0xf]  ;;  %v3119_v34 = vld [vmem:[#allocation2 + $0x68] sm:$0x1] }
 0x195   : > { %v2814_v51 = vrot.slane %v2813_v52, 4  ;;  %v3174_v47 = vrot.slane %v3109_v21, 5  ;;  %v2824_v20 = vrot.slane %v2823_v35, 4  ;;  %v3177_v43 = vrot.slane %v3110_v16, 5  ;;  %v3717_v21 = vld [vmem:[#allocation2 + $0x18] sm:$0xf] }
 0x196   : > { %5697 = vmatmul.mubr.bf16.vlgmr.msra.gmra.mxu1 %v5173_v3  ;;  %v3171_v38 = vsel %vm6805_vm1, %v3169_v27, %v3170_v5  ;;  %v2831_v2 = vshrl.u32 %v2659_v41, 16  ;;  %v5137_v9 = vcombine.low %v2795_v48, %v2805_v49  ;;  %v3112_v3 = vld [vmem:[#allocation2 + $0x4c] sm:$0xf]  ;;  %5719 = vmatpush3.bf16.msra.mxu0 %v5935_v6  ;;  %v2834_v40 = vshll.u32 %v2659_v41, 16  ;;  %v5940_v6 = vld [vmem:[%s7553_s5 + $0x1e0] sm:$0xff]   ;;  %v5943_v35 = vld [vmem:[%s7553_s5 + $0x1d8] sm:$0xff]  }
 0x197   : > { %5700 = vmatprep.mubr.bf16.mxu1 %v5174_v58  ;;  %5745 = vmatpush3.bf16.msra.mxu1 %v5934_v29  ;;  %v2819_v39 = vsel %vm6651_vm14, %v2814_v51, %v2818_v31  ;;  %v5175_v10 = vcombine.low %v3168_v59, %v3171_v38  ;;  %v3176_v44 = vrot.slane %v3174_v47, 4  ;;  %v2829_v42 = vsel %vm6651_vm14, %v2824_v20, %v2828_v54  ;;  %v3117_v29 = vld [vmem:[#allocation2 + $0x60] sm:$0xe]  ;;  %v3720_v20 = vld [vmem:[#allocation2 + $0x24] sm:$0xf] }
 0x198   : > { %5746 = vmatprep.subr.bf16.mxu1 %v5936_v28  ;;  %v2833_v45 = vrot.slane %v2831_v2, 4  ;;  %v2840_v14 = vshll.u32 %v2660_v24, 16  ;;  %5720 = vmatprep.subr.bf16.mxu0 %v5937_v23  ;;  %v3175_v7 = vsel %vm6805_vm1, %v5152_v12, %v3174_v47  ;;  %v2844_v11 = vshrl.u32 %v2660_v24, 16  ;;  %v3718_v12 = vld [vmem:[#allocation2 + $0x1c] sm:$0xf] }
 0x199   : > { %v3178_v18 = vsel %vm6805_vm1, %v3176_v44, %v3177_v43  ;;  %v2850_v46 = vshll.u32 %v2661_v8, 16  ;;  %v5138_v58 = vcombine.low %v2819_v39, %v2829_v42  ;;  %v2836_v55 = vrot.slane %v2834_v40, 5  ;;  %5673 = vmatmul.mubr.bf16.gmra.mxu0 %v5137_v9  ;;  %v3719_v24 = vld [vmem:[#allocation2 + $0x20] sm:$0x1]  ;;  %v3721_v9 = vld [vmem:[#allocation2 + $0x28] sm:$0xf] }
 0x19a   : > { %v5176_v57 = vcombine.low %v3175_v7, %v3178_v18  ;;  %v2842_v61 = vrot.slane %v2840_v14, 5  ;;  %v2846_v32 = vrot.slane %v2844_v11, 4  ;;  %v5153_v53 = vrot.slane %v3111_v36, 9  ;;  %5721 = vmatpush3.bf16.msra.mxu0 %v5937_v23  ;;  %v5945_v42 = vld [vmem:[%s7553_s5 + $0x1d0] sm:$0xff]   ;;  %v3722_v14 = vld [vmem:[#allocation2 + $0x2c] sm:$0x1] }
 0x19b   : > { %5747 = vmatpush3.bf16.msra.mxu1 %v5936_v28  ;;  %v2852_v33 = vrot.slane %v2850_v46, 5  ;;  %v3181_v62 = vrot.slane %v3112_v3, 5  ;;  %5676 = vmatprep.mubr.bf16.mxu0 %v5138_v58  ;;  %v2837_v15 = vor.u32 %v2836_v55, %v2833_v45  ;;  %v3184_v50 = vrot.slane %v3113_v0, 5 }
 0x19c   : > { %v5154_v63 = vrot.slane %v3114_v19, 9  ;;  %v3188_v31 = vrot.slane %v3115_v22, 5  ;;  %5748 = vmatprep.subr.bf16.mxu1 %v5938_v60  ;;  %5722 = vmatprep.subr.bf16.mxu0 %v5939_v4  ;;  %v2847_v37 = vor.u32 %v2846_v32, %v2842_v61  ;;  %v3191_v16 = vrot.slane %v3116_v25, 5  ;;  %v3723_v19 = vld [vmem:[#allocation2 + $0x30] sm:$0xf]  ;;  %v7080_v25 = vld [vmem:[%s7553_s5 + $0x238] sm:$0xff]  }
 0x19d   : > { %v3182_v26 = vsel %vm6805_vm1, %v5153_v53, %v3181_v62  ;;  %v3183_v17 = vrot.slane %v3181_v62, 4  ;;  %v2838_v52 = vrot.slane %v2837_v15, 4  ;;  %v5155_v5 = vrot.slane %v3117_v29, 9 }
 0x19e   : > { %5701 = vmatmul.mubr.bf16.gmra.mxu1 %v5175_v10  ;;  %v3190_v54 = vrot.slane %v3188_v31, 4  ;;  %v3195_v41 = vrot.slane %v3118_v1, 5  ;;  %v2848_v28 = vrot.slane %v2847_v37, 4  ;;  %v3189_v27 = vsel %vm6805_vm1, %v5154_v63, %v3188_v31  ;;  %5723 = vmatpush3.bf16.msra.mxu0 %v5939_v4  ;;  %v5942_v10 = vld [vmem:[#allocation2 + $0x18] sm:$0xff]  }
 0x19f   : > { %5704 = vmatprep.mubr.bf16.mxu1 %v5176_v57  ;;  %5749 = vmatpush3.bf16.msra.mxu1 %v5938_v60  ;;  %v3185_v48 = vsel %vm6805_vm1, %v3183_v17, %v3184_v50  ;;  %v3742_v23 = vshrl.u32 %v3717_v21, 16  ;;  %v2843_v49 = vsel %vm6651_vm14, %v2838_v52, %v2842_v61  ;;  %v3198_v47 = vrot.slane %v3119_v34, 5  ;;  %v5944_v60 = vld [vmem:[%s7553_s5 + $0x180] sm:$0xff]   ;;  %v3724_v61 = vld [vmem:[#allocation2 + $0x34] sm:$0xf]  ;;  %v5949_v50 = vld [vmem:[%s7553_s5 + $0x1c8] sm:$0xff]  }
 0x1a0   : > { %5750 = vmatprep.subr.bf16.mxu1 %v5940_v6  ;;  %v3192_v51 = vsel %vm6805_vm1, %v3190_v54, %v3191_v16  ;;  %v3197_v59 = vrot.slane %v3195_v41, 4  ;;  %5724 = vmatprep.subr.bf16.mxu0 %v5941_v56  ;;  %v2853_v38 = vsel %vm6651_vm14, %v2848_v28, %v2852_v33  ;;  %v5177_v43 = vcombine.low %v3182_v26, %v3185_v48  ;;  %v3726_v52 = vld [vmem:[#allocation2 + $0x3c] sm:$0xf]  ;;  %v5947_v54 = vld [vmem:[#allocation2 + $0x24] sm:$0xff]  }
 0x1a1   : > { %v5178_v8 = vcombine.low %v3189_v27, %v3192_v51  ;;  %v7065_v2 = vsel %vm6805_vm1, %v5155_v5, %v3195_v41  ;;  %v5139_v39 = vcombine.low %v2843_v49, %v2853_v38  ;;  %v3744_v44 = vrot.slane %v3742_v23, 4  ;;  %v7091_v41 = vld [vmem:[%s7553_s5 + $0x230] sm:$0xff]  }
 0x1a2   : > { %v3745_v36 = vshll.u32 %v3717_v21, 16  ;;  %v3751_v3 = vshll.u32 %v3718_v12, 16  ;;  %v7075_v4 = vsel %vm6805_vm1, %v3197_v59, %v3198_v47  ;;  %v3755_v45 = vshrl.u32 %v3718_v12, 16  ;;  %5725 = vmatpush3.bf16.msra.mxu0 %v5941_v56  ;;  %v3725_v56 = vld [vmem:[#allocation2 + $0x38] sm:$0x1]  ;;  %v5948_v27 = vld [vmem:[#allocation2 + $0x30] sm:$0xff]  }
 0x1a3   : > { %5751 = vmatpush3.bf16.msra.mxu1 %v5940_v6  ;;  %v3761_v40 = vshll.u32 %v3719_v24, 16  ;;  %v3766_v0 = vshrl.u32 %v3720_v20, 16  ;;  %5677 = vmatmul.mubr.bf16.gmra.mxu0 %v5139_v39  ;;  %v3769_v11 = vshll.u32 %v3720_v20, 16  ;;  %v3775_v46 = vshll.u32 %v3721_v9, 16  ;;  %v3727_v59 = vld [vmem:[#allocation2 + $0x40] sm:$0xf] }
 0x1a4   : > { %5752 = vmatprep.subr.bf16.mxu1 %v5943_v35  ;;  %v3747_v7 = vrot.slane %v3745_v36, 5  ;;  %v3753_v18 = vrot.slane %v3751_v3, 5  ;;  %5728 = vmatprep.mubr.bf16.mxu0 %v5942_v10  ;;  %v3757_v22 = vrot.slane %v3755_v45, 4  ;;  %v3779_v55 = vshrl.u32 %v3721_v9, 16  ;;  %v5951_v20 = vld [vmem:[%s7553_s5 + $0x1c0] sm:$0xff]  }
 0x1a5   : > { %v3763_v58 = vrot.slane %v3761_v40, 5  ;;  %v3768_v57 = vrot.slane %v3766_v0, 4  ;;  %5726 = vmatprep.subr.bf16.mxu0 %v5944_v60  ;;  %v3771_v32 = vrot.slane %v3769_v11, 5  ;;  %v3777_v33 = vrot.slane %v3775_v46, 5  ;;  %v3730_v45 = vld [vmem:[#allocation2 + $0x4c] sm:$0xf] }
 0x1a6   : > { %5705 = vmatmul.mubr.bf16.gmra.mxu1 %v5177_v43  ;;  %v3748_v29 = vor.u32 %v3747_v7, %v3744_v44  ;;  %v3785_v53 = vshll.u32 %v3722_v14, 16  ;;  %v3758_v62 = vor.u32 %v3757_v22, %v3753_v18  ;;  %v3781_v1 = vrot.slane %v3779_v55, 4  ;;  %5727 = vmatpush3.bf16.msra.mxu0 %v5944_v60  ;;  %v3728_v43 = vld [vmem:[#allocation2 + $0x44] sm:$0x1]  ;;  %v3729_v60 = vld [vmem:[#allocation2 + $0x48] sm:$0xf] }
 0x1a7   : > { %5708 = vmatprep.mubr.bf16.mxu1 %v5178_v8  ;;  %5753 = vmatpush3.bf16.msra.mxu1 %v5943_v35  ;;  %v3790_v6 = vshrl.u32 %v3723_v19, 16  ;;  %v3793_v15 = vshll.u32 %v3723_v19, 16  ;;  %v3772_v31 = vor.u32 %v3771_v32, %v3768_v57  ;;  %v3799_v37 = vshll.u32 %v3724_v61, 16  ;;  %v7111_v44 = vld [vmem:[%s7553_s5 + $0x228] sm:$0xff]   ;;  %v3732_v32 = vld [vmem:[#allocation2 + $0x54] sm:$0xf] }
 0x1a8   : > { %5754 = vmatprep.subr.bf16.mxu1 %v5945_v42  ;;  %v3749_v63 = vrot.slane %v3748_v29, 4  ;;  %v3787_v21 = vrot.slane %v3785_v53, 5  ;;  %v3759_v26 = vrot.slane %v3758_v62, 4  ;;  %v3782_v17 = vor.u32 %v3781_v1, %v3777_v33  ;;  %5776 = vmatprep.subr.bf16.mxu0 %v7080_v25  ;;  %v7124_v53 = vld [vmem:[%s7553_s5 + $0x220] sm:$0xff]  }
 0x1a9   : > { %v3792_v16 = vrot.slane %v3790_v6, 4  ;;  %v3795_v34 = vrot.slane %v3793_v15, 5  ;;  %v3773_v28 = vrot.slane %v3772_v31, 4  ;;  %v7093_v48 = vrot.slane %v3799_v37, 5  ;;  %v3733_v15 = vld [vmem:[#allocation2 + $0x58] sm:$0xf] }
 0x1aa   : > { %v3754_v5 = vsel %vm6651_vm14, %v3749_v63, %v3753_v18  ;;  %v3803_v35 = vshrl.u32 %v3724_v61, 16  ;;  %v3764_v12 = vsel %vm6651_vm14, %v3759_v26, %v3763_v58  ;;  %v3783_v23 = vrot.slane %v3782_v17, 4  ;;  %v5953_v18 = vld [vmem:[#allocation2 + $0x3c] sm:$0xff]   ;;  %v3731_v61 = vld [vmem:[#allocation2 + $0x50] sm:$0x1] }
 0x1ab   : > { %5755 = vmatpush3.bf16.msra.mxu1 %v5945_v42  ;;  %v3796_v49 = vor.u32 %v3795_v34, %v3792_v16  ;;  %v3809_v51 = vshll.u32 %v3725_v56, 16  ;;  %5729 = vmatmul.mubr.bf16.vlgmr.msra.gmra.mxu0 %v5947_v54  ;;  %v5179_v47 = vcombine.low %v7065_v2, %v7075_v4  ;;  %v5236_v24 = vcombine.low %v3754_v5, %v3764_v12  ;;  %v3734_v5 = vld [vmem:[#allocation2 + $0x5c] sm:$0x1] }
 0x1ac   : > { %5756 = vmatprep.subr.bf16.mxu1 %v5949_v50  ;;  %v3805_v38 = vrot.slane %v3803_v35, 4  ;;  %v3814_v8 = vshrl.u32 %v3726_v52, 16  ;;  %5777 = vmatpush3.bf16.msra.mxu0 %v7080_v25  ;;  %v3778_v9 = vsel %vm6651_vm14, %v3773_v28, %v3777_v33  ;;  %v3788_v39 = vsel %vm6651_vm14, %v3783_v23, %v3787_v21 }
 0x1ad   : > { %5732 = vmatprep.mubr.bf16.mxu0 %v5948_v27  ;;  %v3797_v10 = vrot.slane %v3796_v49, 4  ;;  %v3817_v2 = vshll.u32 %v3726_v52, 16  ;;  %5778 = vmatprep.subr.bf16.mxu0 %v7091_v41  ;;  %v3811_v3 = vrot.slane %v3809_v51, 5  ;;  %v3823_v4 = vshll.u32 %v3727_v59, 16  ;;  %v7131_v52 = vld [vmem:[%s7553_s5 + $0x218] sm:$0xff]  }
 0x1ae   : > { %5709 = vmatmul.mubr.bf16.gmra.mxu1 %v5179_v47  ;;  %v3806_v36 = vor.u32 %v3805_v38, %v7093_v48  ;;  %v3816_v42 = vrot.slane %v3814_v8, 4  ;;  %v5237_v40 = vcombine.low %v3778_v9, %v3788_v39  ;;  %v3827_v0 = vshrl.u32 %v3727_v59, 16  ;;  %v4175_v49 = vld [vmem:[#allocation2 + $0x18] sm:$0xe]  ;;  %v4176_v51 = vld [vmem:[#allocation2 + $0x1c] sm:$0xf] }
 0x1af   : > { %5757 = vmatpush3.bf16.msra.mxu1 %v5949_v50  ;;  %5760 = vmatprep.mubr.bf16.mxu1 %v5236_v24  ;;  %v3819_v14 = vrot.slane %v3817_v2, 5  ;;  %v3833_v7 = vshll.u32 %v3728_v43, 16  ;;  %v3825_v46 = vrot.slane %v3823_v4, 5  ;;  %v3838_v19 = vshrl.u32 %v3729_v60, 16  ;;  %v5954_v50 = vld [vmem:[#allocation2 + $0x48] sm:$0xff]   ;;  %v5957_v4 = vld [vmem:[#allocation2 + $0x54] sm:$0xff]  }
 0x1b0   : > { %5758 = vmatprep.subr.bf16.mxu1 %v5951_v20  ;;  %v3807_v11 = vrot.slane %v3806_v36, 4  ;;  %v3841_v22 = vshll.u32 %v3729_v60, 16  ;;  %5779 = vmatpush3.bf16.msra.mxu0 %v7091_v41  ;;  %v3802_v58 = vsel %vm6651_vm14, %v3797_v10, %v7093_v48  ;;  %v3829_v55 = vrot.slane %v3827_v0, 4  ;;  %v3735_v38 = vld [vmem:[#allocation2 + $0x60] sm:$0xf] }
 0x1b1   : > { %v3820_v57 = vor.u32 %v3819_v14, %v3816_v42  ;;  %v3847_v29 = vshll.u32 %v3730_v45, 16  ;;  %5780 = vmatprep.subr.bf16.mxu0 %v7111_v44  ;;  %v3840_v62 = vrot.slane %v3838_v19, 4  ;;  %v3851_v6 = vshrl.u32 %v3730_v45, 16  ;;  %v4177_v10 = vld [vmem:[#allocation2 + $0x20] sm:$0x1] }
 0x1b2   : > { %v3812_v33 = vsel %vm6651_vm14, %v3807_v11, %v3811_v3  ;;  %v3843_v1 = vrot.slane %v3841_v22, 5  ;;  %v3830_v31 = vor.u32 %v3829_v55, %v3825_v46  ;;  %v3835_v21 = vrot.slane %v3833_v7, 5  ;;  %v3736_v42 = vld [vmem:[#allocation2 + $0x64] sm:$0xf]  ;;  %v3737_v0 = vld [vmem:[#allocation2 + $0x68] sm:$0x1] }
 0x1b3   : > { %5759 = vmatpush3.bf16.msra.mxu1 %v5951_v20  ;;  %v3821_v63 = vrot.slane %v3820_v57, 4  ;;  %v3849_v56 = vrot.slane %v3847_v29, 5  ;;  %5733 = vmatmul.mubr.bf16.gmra.mxu0 %v5953_v18  ;;  %v3853_v26 = vrot.slane %v3851_v6, 4  ;;  %v3857_v17 = vshll.u32 %v3731_v61, 16  ;;  %v5958_v18 = vld [vmem:[#allocation2 + $0x60] sm:$0xff]  }
 0x1b4   : > { %5808 = vmatprep.subr.bf16.mxu1 %v7080_v25  ;;  %v3844_v37 = vor.u32 %v3843_v1, %v3840_v62  ;;  %v3862_v16 = vshrl.u32 %v3732_v32, 16  ;;  %5781 = vmatpush3.bf16.msra.mxu0 %v7111_v44  ;;  %v5238_v34 = vcombine.low %v3802_v58, %v3812_v33  ;;  %v3831_v54 = vrot.slane %v3830_v31, 4  ;;  %v4178_v29 = vld [vmem:[#allocation2 + $0x24] sm:$0xe]  ;;  %v4179_v6 = vld [vmem:[#allocation2 + $0x28] sm:$0xf] }
 0x1b5   : > { %5736 = vmatprep.mubr.bf16.mxu0 %v5954_v50  ;;  %v3865_v28 = vshll.u32 %v3732_v32, 16  ;;  %v3871_v48 = vshll.u32 %v3733_v15, 16  ;;  %5782 = vmatprep.subr.bf16.mxu0 %v7124_v53  ;;  %v3826_v35 = vsel %vm6651_vm14, %v3821_v63, %v3825_v46  ;;  %v3854_v12 = vor.u32 %v3853_v26, %v3849_v56 }
 0x1b6   : > { %5761 = vmatmul.mubr.bf16.vlgmr.msra.gmra.mxu1 %v5237_v40  ;;  %v3845_v27 = vrot.slane %v3844_v37, 4  ;;  %v3864_v23 = vrot.slane %v3862_v16, 4  ;;  %v3836_v59 = vsel %vm6651_vm14, %v3831_v54, %v3835_v21  ;;  %v3875_v20 = vshrl.u32 %v3733_v15, 16  ;;  %v3738_v21 = vld [vmem:[#allocation2 + $0x6c] sm:$0xf] }
 0x1b7   : > { %5764 = vmatprep.mubr.bf16.mxu1 %v5238_v34  ;;  %5816 = vmatpush3.bf16.msra.mxu1 %v7080_v25  ;;  %v3867_v47 = vrot.slane %v3865_v28, 5  ;;  %v3873_v24 = vrot.slane %v3871_v48, 5  ;;  %v5239_v43 = vcombine.low %v3826_v35, %v3836_v59  ;;  %v3855_v8 = vrot.slane %v3854_v12, 4  ;;  %v7146_v25 = vld [vmem:[%s7553_s5 + $0x210] sm:$0xff]   ;;  %v4180_v16 = vld [vmem:[#allocation2 + $0x2c] sm:$0x1] }
 0x1b8   : > { %5809 = vmatprep.subr.bf16.mxu1 %v7091_v41  ;;  %v3859_v9 = vrot.slane %v3857_v17, 5  ;;  %v3881_v39 = vshll.u32 %v3734_v5, 16  ;;  %5783 = vmatpush3.bf16.msra.mxu0 %v7124_v53  ;;  %v3850_v2 = vsel %vm6651_vm14, %v3845_v27, %v3849_v56  ;;  %v3877_v36 = vrot.slane %v3875_v20, 4  ;;  %v3739_v56 = vld [vmem:[#allocation2 + $0x70] sm:$0xf]  ;;  %v7175_v59 = vld [vmem:[%s7553_s5 + $0x200] sm:$0xff]  }
 0x1b9   : > { %v3868_v60 = vor.u32 %v3867_v47, %v3864_v23  ;;  %v4225_v3 = vrot.slane %v4176_v51, 5  ;;  %5784 = vmatprep.subr.bf16.mxu0 %v7131_v52  ;;  %v5252_v14 = vrot.slane %v4175_v49, 9  ;;  %v3886_v7 = vshrl.u32 %v3735_v38, 16  ;;  %v3740_v27 = vld [vmem:[#allocation2 + $0x74] sm:$0x1]  ;;  %v5961_v49 = vld [vmem:[#allocation2 + $0x6c] sm:$0xff]  }
 0x1ba   : > { %v3860_v45 = vsel %vm6651_vm14, %v3855_v8, %v3859_v9  ;;  %v3883_v40 = vrot.slane %v3881_v39, 5  ;;  %v3878_v19 = vor.u32 %v3877_v36, %v3873_v24  ;;  %v4228_v22 = vrot.slane %v4177_v10, 5  ;;  %v4182_v39 = vld [vmem:[#allocation2 + $0x34] sm:$0xf] }
 0x1bb   : > { %5817 = vmatpush3.bf16.msra.mxu1 %v7091_v41  ;;  %v5240_v11 = vcombine.low %v3850_v2, %v3860_v45  ;;  %v3869_v46 = vrot.slane %v3868_v60, 4  ;;  %5737 = vmatmul.mubr.bf16.gmra.mxu0 %v5957_v4  ;;  %v4227_v58 = vrot.slane %v4225_v3, 4  ;;  %v3888_v57 = vrot.slane %v3886_v7, 4  ;;  %v7157_v41 = vld [vmem:[%s7553_s5 + $0x208] sm:$0xff]   ;;  %v4181_v45 = vld [vmem:[#allocation2 + $0x30] sm:$0xe] }
 0x1bc   : > { %5810 = vmatprep.subr.bf16.mxu1 %v7111_v44  ;;  %v3889_v55 = vshll.u32 %v3735_v38, 16  ;;  %v3895_v61 = vshll.u32 %v3736_v42, 16  ;;  %5785 = vmatpush3.bf16.msra.mxu0 %v7131_v52  ;;  %v3879_v32 = vrot.slane %v3878_v19, 4  ;;  %v4226_v33 = vsel %vm6805_vm1, %v5252_v14, %v4225_v3  ;;  %v4194_v3 = vld [vmem:[#allocation2 + $0x64] sm:$0xf] }
 0x1bd   : > { %5740 = vmatprep.mubr.bf16.mxu0 %v5958_v18  ;;  %v3899_v62 = vshrl.u32 %v3736_v42, 16  ;;  %v3905_v1 = vshll.u32 %v3737_v0, 16  ;;  %5786 = vmatprep.subr.bf16.mxu0 %v7146_v25  ;;  %v3874_v15 = vsel %vm6651_vm14, %v3869_v46, %v3873_v24  ;;  %v4229_v50 = vsel %vm6805_vm1, %v4227_v58, %v4228_v22  ;;  %v4195_v46 = vld [vmem:[#allocation2 + $0x68] sm:$0x1] }
 0x1be   : > { %5765 = vmatmul.mubr.bf16.gmra.mxu1 %v5239_v43  ;;  %v3891_v63 = vrot.slane %v3889_v55, 5  ;;  %v3897_v31 = vrot.slane %v3895_v61, 5  ;;  %v3884_v37 = vsel %vm6651_vm14, %v3879_v32, %v3883_v40  ;;  %v5276_v26 = vcombine.low %v4226_v33, %v4229_v50  ;;  %v4183_v40 = vld [vmem:[#allocation2 + $0x38] sm:$0x1]  ;;  %v4186_v55 = vld [vmem:[#allocation2 + $0x44] sm:$0x1] }
 0x1bf   : > { %5768 = vmatprep.mubr.bf16.mxu1 %v5240_v11  ;;  %5818 = vmatpush3.bf16.msra.mxu1 %v7111_v44  ;;  %v3901_v17 = vrot.slane %v3899_v62, 4  ;;  %v5253_v34 = vrot.slane %v4178_v29, 9  ;;  %v5241_v54 = vcombine.low %v3874_v15, %v3884_v37  ;;  %v3907_v28 = vrot.slane %v3905_v1, 5  ;;  %v4193_v11 = vld [vmem:[#allocation2 + $0x60] sm:$0xe] }
 0x1c0   : > { %5811 = vmatprep.subr.bf16.mxu1 %v7124_v53  ;;  %v3892_v5 = vor.u32 %v3891_v63, %v3888_v57  ;;  %v4232_v48 = vrot.slane %v4179_v6, 5  ;;  %5787 = vmatpush3.bf16.msra.mxu0 %v7146_v25  ;;  %v3910_v12 = vshrl.u32 %v3738_v21, 16  ;;  %v3913_v23 = vshll.u32 %v3738_v21, 16  ;;  %v4185_v57 = vld [vmem:[#allocation2 + $0x40] sm:$0xf] }
 0x1c1   : > { %v3902_v35 = vor.u32 %v3901_v17, %v3897_v31  ;;  %v3919_v44 = vshll.u32 %v3739_v56, 16  ;;  %5788 = vmatprep.subr.bf16.mxu0 %v7157_v41  ;;  %v4235_v24 = vrot.slane %v4180_v16, 5  ;;  %v3923_v20 = vshrl.u32 %v3739_v56, 16  ;;  %v4188_v62 = vld [vmem:[#allocation2 + $0x4c] sm:$0xf] }
 0x1c2   : > { %v3893_v51 = vrot.slane %v3892_v5, 4  ;;  %v4234_v47 = vrot.slane %v4232_v48, 4  ;;  %v3912_v43 = vrot.slane %v3910_v12, 4  ;;  %v3915_v8 = vrot.slane %v3913_v23, 5  ;;  %v4196_v50 = vld [vmem:[#allocation2 + $0x6c] sm:$0xe] }
 0x1c3   : > { %5819 = vmatpush3.bf16.msra.mxu1 %v7124_v53  ;;  %v3903_v38 = vrot.slane %v3902_v35, 4  ;;  %v3921_v9 = vrot.slane %v3919_v44, 5  ;;  %5741 = vmatmul.mubr.bf16.gmra.mxu0 %v5961_v49  ;;  %v4233_v10 = vsel %vm6805_vm1, %v5253_v34, %v4232_v48  ;;  %v3925_v60 = vrot.slane %v3923_v20, 4  ;;  %v4197_v37 = vld [vmem:[#allocation2 + $0x70] sm:$0xf] }
 0x1c4   : > { %5812 = vmatprep.subr.bf16.mxu1 %v7131_v52  ;;  %v4236_v2 = vsel %vm6805_vm1, %v4234_v47, %v4235_v24  ;;  %v3929_v36 = vshll.u32 %v3740_v27, 16  ;;  %5789 = vmatpush3.bf16.msra.mxu0 %v7157_v41  ;;  %v3898_v53 = vsel %vm6651_vm14, %v3893_v51, %v3897_v31  ;;  %v3916_v4 = vor.u32 %v3915_v8, %v3912_v43  ;;  %v4191_v27 = vld [vmem:[#allocation2 + $0x58] sm:$0xf] }
 0x1c5   : > { %5792 = vmatprep.mubr.bf16.mxu0 %v5276_v26  ;;  %v3908_v42 = vsel %vm6651_vm14, %v3903_v38, %v3907_v28  ;;  %5790 = vmatprep.subr.bf16.mxu0 %v7175_v59  ;;  %v3926_v0 = vor.u32 %v3925_v60, %v3921_v9  ;;  %v4239_v18 = vrot.slane %v4182_v39, 5  ;;  %v5277_v19 = vcombine.low %v4233_v10, %v4236_v2  ;;  %v4198_v26 = vld [vmem:[#allocation2 + $0x74] sm:$0x1] }
 0x1c6   : > { %5769 = vmatmul.mubr.bf16.gmra.mxu1 %v5241_v54  ;;  %v5242_v14 = vcombine.low %v3898_v53, %v3908_v42  ;;  %v3931_v7 = vrot.slane %v3929_v36, 5  ;;  %v3917_v22 = vrot.slane %v3916_v4, 4  ;;  %v4267_v58 = vrot.slane %v4194_v3, 5  ;;  %v4189_v54 = vld [vmem:[#allocation2 + $0x50] sm:$0x1] }
 0x1c7   : > { %5820 = vmatpush3.bf16.msra.mxu1 %v7131_v52  ;;  %v3927_v61 = vrot.slane %v3926_v0, 4  ;;  %v5254_v29 = vrot.slane %v4181_v45, 9  ;;  %v4241_v32 = vrot.slane %v4239_v18, 4  ;;  %v4242_v33 = vrot.slane %v4183_v40, 5  ;;  %v4192_v36 = vld [vmem:[#allocation2 + $0x5c] sm:$0x1] }
 0x1c8   : > { %5772 = vmatprep.mubr.bf16.mxu1 %v5242_v14  ;;  %5813 = vmatprep.subr.bf16.mxu1 %v7146_v25  ;;  %v3922_v1 = vsel %vm6651_vm14, %v3917_v22, %v3921_v9  ;;  %v5258_v6 = vrot.slane %v4193_v11, 9  ;;  %v4269_v52 = vrot.slane %v4267_v58, 4  ;;  %v4270_v15 = vrot.slane %v4195_v46, 5  ;;  %v4190_v4 = vld [vmem:[#allocation2 + $0x54] sm:$0xe] }
 0x1c9   : > { %5791 = vmatpush3.bf16.msra.mxu0 %v7175_v59  ;;  %v3932_v63 = vsel %vm6651_vm14, %v3927_v61, %v3931_v7  ;;  %v4240_v31 = vsel %vm6805_vm1, %v5254_v29, %v4239_v18  ;;  %v4243_v21 = vsel %vm6805_vm1, %v4241_v32, %v4242_v33  ;;  %v4246_v56 = vrot.slane %v4185_v57, 5 }
 0x1ca   : > { %v5278_v17 = vcombine.low %v4240_v31, %v4243_v21  ;;  %v4268_v16 = vsel %vm6805_vm1, %v5258_v6, %v4267_v58  ;;  %v4271_v34 = vsel %vm6805_vm1, %v4269_v52, %v4270_v15  ;;  %v5243_v5 = vcombine.low %v3922_v1, %v3932_v63 }
 0x1cb   : > { %5821 = vmatpush3.bf16.msra.mxu1 %v7146_v25  ;;  %v4248_v28 = vrot.slane %v4246_v56, 4  ;;  %v4249_v48 = vrot.slane %v4186_v55, 5  ;;  %v4253_v35 = vrot.slane %v4188_v62, 5  ;;  %v5282_v12 = vcombine.low %v4268_v16, %v4271_v34  ;;  %v4187_v25 = vld [vmem:[#allocation2 + $0x48] sm:$0xe] }
 0x1cc   : > { %5793 = vmatmul.mubr.bf16.vlgmr.msra.gmra.mxu0 %v5277_v19  ;;  %5814 = vmatprep.subr.bf16.mxu1 %v7157_v41  ;;  %v5259_v23 = vrot.slane %v4196_v50, 9  ;;  %v4274_v44 = vrot.slane %v4197_v37, 5  ;;  %v4277_v49 = vrot.slane %v4198_v26, 5  ;;  %v4256_v47 = vrot.slane %v4189_v54, 5 }
 0x1cd   : > { %5796 = vmatprep.mubr.bf16.mxu0 %v5278_v17  ;;  %v4255_v51 = vrot.slane %v4253_v35, 4  ;;  %v5255_v24 = vrot.slane %v4184_v13, 9  ;;  %v4250_v20 = vsel %vm6805_vm1, %v4248_v28, %v4249_v48  ;;  %v4260_v43 = vrot.slane %v4191_v27, 5 }
 0x1ce   : > { %5773 = vmatmul.mubr.bf16.gmra.mxu1 %v5243_v5  ;;  %v4276_v38 = vrot.slane %v4274_v44, 4  ;;  %v5256_v8 = vrot.slane %v4187_v25, 9  ;;  %v4275_v10 = vsel %vm6805_vm1, %v5259_v23, %v4274_v44  ;;  %v4263_v45 = vrot.slane %v4192_v36, 5 }
 0x1cf   : > { %5822 = vmatpush3.bf16.msra.mxu1 %v7157_v41  ;;  %5804 = vmatprep.mubr.bf16.mxu1 %v5282_v12  ;;  %v4257_v9 = vsel %vm6805_vm1, %v4255_v51, %v4256_v47  ;;  %v4247_v39 = vsel %vm6805_vm1, %v5255_v24, %v4246_v56  ;;  %v4262_v53 = vrot.slane %v4260_v43, 4  ;;  %v5257_v40 = vrot.slane %v4190_v4, 9 }
 0x1d0   : > { %5815 = vmatprep.subr.bf16.mxu1 %v7175_v59  ;;  %v4278_v41 = vsel %vm6805_vm1, %v4276_v38, %v4277_v49  ;;  %v5279_v2 = vcombine.low %v4247_v39, %v4250_v20  ;;  %v4254_v60 = vsel %vm6805_vm1, %v5256_v8, %v4253_v35 }
 0x1d1   : > { %v5280_v3 = vcombine.low %v4254_v60, %v4257_v9  ;;  %v5283_v42 = vcombine.low %v4275_v10, %v4278_v41  ;;  %v4264_v14 = vsel %vm6805_vm1, %v4262_v53, %v4263_v45  ;;  %v4261_v0 = vsel %vm6805_vm1, %v5257_v40, %v4260_v43 }
 0x1d2   : > { %v5281_v7 = vcombine.low %v4261_v0, %v4264_v14 }
 0x1d3   : > { %5823 = vmatpush3.bf16.msra.mxu1 %v7175_v59 }
 0x1d4   : > { %5797 = vmatmul.mubr.bf16.gmra.mxu0 %v5279_v2 }
 0x1d5   : > { %5800 = vmatprep.mubr.bf16.mxu0 %v5280_v3 }
 0x1d6   : > { %5805 = vmatmul.mubr.bf16.vlgmr.msra.gmra.mxu1 %v5283_v42 }
 0x1dc   : > { %5801 = vmatmul.mubr.bf16.gmra.mxu0 %v5281_v7 }
 0x1e4   : > { %v5538_v18 = vpop.f32.mrf.mxu0 }
 0x1e5   : > { %1540 = vst.msk [vmem:[#allocation3 + $0x10] sm:$0xff] %vm545_vm5, %v5538_v18 }
 0x1e6   : > { %v1475_v59 = vpop.f32.mrf.mxu0 }
 0x1e7   : > { %1538 = vst.msk [vmem:[#allocation3] sm:$0xff] %vm545_vm5, %v1475_v59 }
 0x1e8   : > { %v5539_v11 = vpop.f32.mrf.mxu0 }
 0x1e9   : > { %1541 = vst.msk [vmem:[#allocation3 + $0x18] sm:$0xff] %vm545_vm5, %v5539_v11 }
 0x1ea   : > { %v1478_v46 = vpop.f32.mrf.mxu0 }
 0x1eb   : > { %1539 = vst.msk [vmem:[#allocation3 + $0x8] sm:$0xff] %vm545_vm5, %v1478_v46 }
 0x1ec   : > { %v5542_v19 = vpop.f32.mrf.mxu0  ;;  %v1969_v55 = vld [vmem:[#allocation3 + $0x10] sm:$0xff] }
 0x1ed   : > { %1544 = vst.msk [vmem:[#allocation3 + $0x30] sm:$0xff] %vm545_vm5, %v5542_v19 }
 0x1ee   : > { %v1491_v22 = vpop.f32.mrf.mxu0  ;;  %v1967_v32 = vld [vmem:[#allocation3] sm:$0xff] }
 0x1ef   : > { %1542 = vst.msk [vmem:[#allocation3 + $0x20] sm:$0xff] %vm545_vm5, %v1491_v22 }
 0x1f0   : > { %v5543_v30 = vpop.f32.mrf.mxu0  ;;  %v1970_v1 = vld [vmem:[#allocation3 + $0x18] sm:$0xff] }
 0x1f1   : > { %1545 = vst.msk [vmem:[#allocation3 + $0x38] sm:$0xff] %vm545_vm5, %v5543_v30 }
 0x1f2   : > { %v1494_v58 = vpop.f32.mrf.mxu0  ;;  %v1968_v15 = vld [vmem:[#allocation3 + $0x8] sm:$0xff] }
 0x1f3   : > { %1543 = vst.msk [vmem:[#allocation3 + $0x28] sm:$0xff] %vm545_vm5, %v1494_v58 }
 0x1f4   : > { %v1973_v26 = vld [vmem:[#allocation3 + $0x30] sm:$0xff] }
 0x1f6   : > { %v1971_v34 = vld [vmem:[#allocation3 + $0x20] sm:$0xff] }
 0x1f7   : > { %v5570_v57 = vpop.f32.mrf.mxu1 }
 0x1f8   : > { %v1985_v61 = vadd.f32 %v5570_v57, %v1969_v55  ;;  %v1974_v5 = vld [vmem:[#allocation3 + $0x38] sm:$0xff] }
 0x1f9   : > { %v1904_v29 = vpop.f32.mrf.mxu1 }
 0x1fa   : > { %2001 = vst.msk [vmem:[#allocation3 + $0x10] sm:$0xff] %vm545_vm5, %v1985_v61  ;;  %v1983_v33 = vadd.f32 %v1967_v32, %v1904_v29  ;;  %v1972_v35 = vld [vmem:[#allocation3 + $0x28] sm:$0xff] }
 0x1fb   : > { %v5571_v62 = vpop.f32.mrf.mxu1 }
 0x1fc   : > { %1999 = vst.msk [vmem:[#allocation3] sm:$0xff] %vm545_vm5, %v1983_v33  ;;  %v1986_v6 = vadd.f32 %v5571_v62, %v1970_v1 }
 0x1fd   : > { %v1907_v52 = vpop.f32.mrf.mxu1 }
 0x1fe   : > { %2002 = vst.msk [vmem:[#allocation3 + $0x18] sm:$0xff] %vm545_vm5, %v1986_v6  ;;  %v1984_v50 = vadd.f32 %v1968_v15, %v1907_v52 }
 0x200   : > { %2000 = vst.msk [vmem:[#allocation3 + $0x8] sm:$0xff] %vm545_vm5, %v1984_v50 }
 0x201   : > { %v2318_v60 = vld [vmem:[#allocation3 + $0x10] sm:$0xff] }
 0x203   : > { %v5546_v63 = vpop.f32.mrf.mxu0  ;;  %v2316_v53 = vld [vmem:[#allocation3] sm:$0xff] }
 0x204   : > { %1548 = vst.msk [vmem:[#allocation3 + $0x50] sm:$0xff] %vm545_vm5, %v5546_v63 }
 0x205   : > { %v1507_v31 = vpop.f32.mrf.mxu0  ;;  %v2319_v0 = vld [vmem:[#allocation3 + $0x18] sm:$0xff] }
 0x206   : > { %1546 = vst.msk [vmem:[#allocation3 + $0x40] sm:$0xff] %vm545_vm5, %v1507_v31 }
 0x207   : > { %v5547_v21 = vpop.f32.mrf.mxu0  ;;  %v2317_v19 = vld [vmem:[#allocation3 + $0x8] sm:$0xff] }
 0x208   : > { %1549 = vst.msk [vmem:[#allocation3 + $0x58] sm:$0xff] %vm545_vm5, %v5547_v21 }
 0x209   : > { %v1510_v56 = vpop.f32.mrf.mxu0 }
 0x20a   : > { %1547 = vst.msk [vmem:[#allocation3 + $0x48] sm:$0xff] %vm545_vm5, %v1510_v56 }
 0x20b   : > { %v1977_v25 = vld [vmem:[#allocation3 + $0x50] sm:$0xff] }
 0x20d   : > { %v1975_v49 = vld [vmem:[#allocation3 + $0x40] sm:$0xff] }
 0x20f   : > { %v5574_v37 = vpop.f32.mrf.mxu1  ;;  %v1978_v20 = vld [vmem:[#allocation3 + $0x58] sm:$0xff] }
 0x210   : > { %v1989_v17 = vadd.f32 %v5574_v37, %v1973_v26 }
 0x211   : > { %v1920_v16 = vpop.f32.mrf.mxu1  ;;  %v1976_v9 = vld [vmem:[#allocation3 + $0x48] sm:$0xff] }
 0x212   : > { %2005 = vst.msk [vmem:[#allocation3 + $0x30] sm:$0xff] %vm545_vm5, %v1989_v17  ;;  %v1987_v13 = vadd.f32 %v1971_v34, %v1920_v16 }
 0x213   : > { %v5575_v54 = vpop.f32.mrf.mxu1 }
 0x214   : > { %2003 = vst.msk [vmem:[#allocation3 + $0x20] sm:$0xff] %vm545_vm5, %v1987_v13  ;;  %v1990_v28 = vadd.f32 %v5575_v54, %v1974_v5 }
 0x215   : > { %v1923_v48 = vpop.f32.mrf.mxu1 }
 0x216   : > { %2006 = vst.msk [vmem:[#allocation3 + $0x38] sm:$0xff] %vm545_vm5, %v1990_v28  ;;  %v1988_v27 = vadd.f32 %v1972_v35, %v1923_v48 }
 0x218   : > { %2004 = vst.msk [vmem:[#allocation3 + $0x28] sm:$0xff] %vm545_vm5, %v1988_v27 }
 0x219   : > { %v2322_v61 = vld [vmem:[#allocation3 + $0x30] sm:$0xff] }
 0x21b   : > { %v2320_v52 = vld [vmem:[#allocation3 + $0x20] sm:$0xff] }
 0x21d   : > { %v2323_v56 = vld [vmem:[#allocation3 + $0x38] sm:$0xff] }
 0x21f   : > { %v5578_v12 = vpop.f32.mrf.mxu1  ;;  %v2321_v13 = vld [vmem:[#allocation3 + $0x28] sm:$0xff] }
 0x220   : > { %v1993_v23 = vadd.f32 %v5578_v12, %v1977_v25 }
 0x221   : > { %v1936_v44 = vpop.f32.mrf.mxu1  ;;  %v5550_v47 = vpop.f32.mrf.mxu0 }
 0x222   : > { %2009 = vst.msk [vmem:[#allocation3 + $0x50] sm:$0xff] %vm545_vm5, %v1993_v23  ;;  %v1991_v51 = vadd.f32 %v1975_v49, %v1936_v44  ;;  %1552 = vst.msk [vmem:[#allocation3 + $0x70] sm:$0xff] %vm545_vm5, %v5550_v47 }
 0x223   : > { %v5579_v24 = vpop.f32.mrf.mxu1  ;;  %v1523_v43 = vpop.f32.mrf.mxu0 }
 0x224   : > { %2007 = vst.msk [vmem:[#allocation3 + $0x40] sm:$0xff] %vm545_vm5, %v1991_v51  ;;  %v1994_v38 = vadd.f32 %v5579_v24, %v1978_v20  ;;  %1550 = vst.msk [vmem:[#allocation3 + $0x60] sm:$0xff] %vm545_vm5, %v1523_v43 }
 0x225   : > { %v1939_v8 = vpop.f32.mrf.mxu1  ;;  %v5551_v10 = vpop.f32.mrf.mxu0 }
 0x226   : > { %2010 = vst.msk [vmem:[#allocation3 + $0x58] sm:$0xff] %vm545_vm5, %v1994_v38  ;;  %v1992_v39 = vadd.f32 %v1976_v9, %v1939_v8  ;;  %1553 = vst.msk [vmem:[#allocation3 + $0x78] sm:$0xff] %vm545_vm5, %v5551_v10 }
 0x227   : > { %v1526_v41 = vpop.f32.mrf.mxu0 }
 0x228   : > { %2008 = vst.msk [vmem:[#allocation3 + $0x48] sm:$0xff] %vm545_vm5, %v1992_v39  ;;  %1551 = vst.msk [vmem:[#allocation3 + $0x68] sm:$0xff] %vm545_vm5, %v1526_v41 }
 0x229   : > { %v5602_v2 = vpop.f32.mrf.mxu0  ;;  %v1981_v4 = vld [vmem:[#allocation3 + $0x70] sm:$0xff] }
 0x22a   : > { %v2334_v36 = vadd.f32 %v5602_v2, %v2318_v60  ;;  %v2326_v27 = vld [vmem:[#allocation3 + $0x50] sm:$0xff] }
 0x22b   : > { %v2253_v3 = vpop.f32.mrf.mxu0  ;;  %v1979_v18 = vld [vmem:[#allocation3 + $0x60] sm:$0xff] }
 0x22c   : > { %2350 = vst.msk [vmem:[#allocation3 + $0x10] sm:$0xff] %vm545_vm5, %v2334_v36  ;;  %v2332_v45 = vadd.f32 %v2316_v53, %v2253_v3  ;;  %v2324_v51 = vld [vmem:[#allocation3 + $0x40] sm:$0xff] }
 0x22d   : > { %v5603_v14 = vpop.f32.mrf.mxu0  ;;  %v1982_v30 = vld [vmem:[#allocation3 + $0x78] sm:$0xff] }
 0x22e   : > { %v5582_v42 = vpop.f32.mrf.mxu1  ;;  %2348 = vst.msk [vmem:[#allocation3] sm:$0xff] %vm545_vm5, %v2332_v45  ;;  %v2335_v59 = vadd.f32 %v5603_v14, %v2319_v0  ;;  %v2327_v8 = vld [vmem:[#allocation3 + $0x58] sm:$0xff] }
 0x22f   : > { %v1997_v40 = vadd.f32 %v5582_v42, %v1981_v4  ;;  %v2256_v46 = vpop.f32.mrf.mxu0  ;;  %v1980_v32 = vld [vmem:[#allocation3 + $0x68] sm:$0xff] }
 0x230   : > { %v1952_v7 = vpop.f32.mrf.mxu1  ;;  %2351 = vst.msk [vmem:[#allocation3 + $0x18] sm:$0xff] %vm545_vm5, %v2335_v59  ;;  %v2333_v58 = vadd.f32 %v2317_v19, %v2256_v46  ;;  %v2325_v60 = vld [vmem:[#allocation3 + $0x48] sm:$0xff] }
 0x231   : > { %2013 = vst.msk [vmem:[#allocation3 + $0x70] sm:$0xff] %vm545_vm5, %v1997_v40  ;;  %v1995_v11 = vadd.f32 %v1979_v18, %v1952_v7  ;;  %v5606_v55 = vpop.f32.mrf.mxu0 }
 0x232   : > { %v5583_v22 = vpop.f32.mrf.mxu1  ;;  %2349 = vst.msk [vmem:[#allocation3 + $0x8] sm:$0xff] %vm545_vm5, %v2333_v58  ;;  %v2338_v33 = vadd.f32 %v5606_v55, %v2322_v61 }
 0x233   : > { %2011 = vst.msk [vmem:[#allocation3 + $0x60] sm:$0xff] %vm545_vm5, %v1995_v11  ;;  %v1998_v57 = vadd.f32 %v5583_v22, %v1982_v30  ;;  %v2592_v1 = vld [vmem:[#allocation3 + $0x10] sm:$0xff]  ;;  %v2269_v6 = vpop.f32.mrf.mxu0 }
 0x234   : > { %v1955_v29 = vpop.f32.mrf.mxu1  ;;  %2354 = vst.msk [vmem:[#allocation3 + $0x30] sm:$0xff] %vm545_vm5, %v2338_v33  ;;  %v2336_v50 = vadd.f32 %v2320_v52, %v2269_v6 }
 0x235   : > { %2014 = vst.msk [vmem:[#allocation3 + $0x78] sm:$0xff] %vm545_vm5, %v1998_v57  ;;  %v1996_v62 = vadd.f32 %v1980_v32, %v1955_v29  ;;  %v2590_v31 = vld [vmem:[#allocation3] sm:$0xff]  ;;  %v5607_v21 = vpop.f32.mrf.mxu0 }
 0x236   : > { %v5634_v15 = vpop.f32.mrf.mxu1  ;;  %2352 = vst.msk [vmem:[#allocation3 + $0x20] sm:$0xff] %vm545_vm5, %v2336_v50  ;;  %v2339_v26 = vadd.f32 %v5607_v21, %v2323_v56 }
 0x237   : > { %2012 = vst.msk [vmem:[#allocation3 + $0x68] sm:$0xff] %vm545_vm5, %v1996_v62  ;;  %v2608_v63 = vadd.f32 %v5634_v15, %v2592_v1  ;;  %v2593_v16 = vld [vmem:[#allocation3 + $0x18] sm:$0xff]  ;;  %v2272_v34 = vpop.f32.mrf.mxu0 }
 0x238   : > { %v2527_v37 = vpop.f32.mrf.mxu1  ;;  %2355 = vst.msk [vmem:[#allocation3 + $0x38] sm:$0xff] %vm545_vm5, %v2339_v26  ;;  %v2337_v5 = vadd.f32 %v2321_v13, %v2272_v34  ;;  %v2330_v45 = vld [vmem:[#allocation3 + $0x70] sm:$0xff] }
 0x239   : > { %2624 = vst.msk [vmem:[#allocation3 + $0x10] sm:$0xff] %vm545_vm5, %v2608_v63  ;;  %v2606_v17 = vadd.f32 %v2590_v31, %v2527_v37  ;;  %v2591_v48 = vld [vmem:[#allocation3 + $0x8] sm:$0xff]  ;;  %v5610_v35 = vpop.f32.mrf.mxu0 }
 0x23a   : > { %v5635_v54 = vpop.f32.mrf.mxu1  ;;  %2353 = vst.msk [vmem:[#allocation3 + $0x28] sm:$0xff] %vm545_vm5, %v2337_v5  ;;  %v2342_v25 = vadd.f32 %v5610_v35, %v2326_v27  ;;  %v2328_v59 = vld [vmem:[#allocation3 + $0x60] sm:$0xff] }
 0x23b   : > { %2622 = vst.msk [vmem:[#allocation3] sm:$0xff] %vm545_vm5, %v2606_v17  ;;  %v2609_v28 = vadd.f32 %v5635_v54, %v2593_v16  ;;  %v2596_v44 = vld [vmem:[#allocation3 + $0x30] sm:$0xff]  ;;  %v2285_v49 = vpop.f32.mrf.mxu0 }
 0x23c   : > { %v2530_v12 = vpop.f32.mrf.mxu1  ;;  %2358 = vst.msk [vmem:[#allocation3 + $0x50] sm:$0xff] %vm545_vm5, %v2342_v25  ;;  %v2340_v24 = vadd.f32 %v2324_v51, %v2285_v49  ;;  %v2331_v58 = vld [vmem:[#allocation3 + $0x78] sm:$0xff] }
 0x23d   : > { %2625 = vst.msk [vmem:[#allocation3 + $0x18] sm:$0xff] %vm545_vm5, %v2609_v28  ;;  %v2607_v23 = vadd.f32 %v2591_v48, %v2530_v12  ;;  %v2594_v38 = vld [vmem:[#allocation3 + $0x20] sm:$0xff]  ;;  %v5611_v43 = vpop.f32.mrf.mxu0 }
 0x23e   : > { %v5638_v47 = vpop.f32.mrf.mxu1  ;;  %2356 = vst.msk [vmem:[#allocation3 + $0x40] sm:$0xff] %vm545_vm5, %v2340_v24  ;;  %v2343_v39 = vadd.f32 %v5611_v43, %v2327_v8  ;;  %v2329_v33 = vld [vmem:[#allocation3 + $0x68] sm:$0xff] }
 0x23f   : > { %2623 = vst.msk [vmem:[#allocation3 + $0x8] sm:$0xff] %vm545_vm5, %v2607_v23  ;;  %v2612_v20 = vadd.f32 %v5638_v47, %v2596_v44  ;;  %v2597_v41 = vld [vmem:[#allocation3 + $0x38] sm:$0xff]  ;;  %v2288_v2 = vpop.f32.mrf.mxu0 }
 0x240   : > { %v2543_v9 = vpop.f32.mrf.mxu1  ;;  %2359 = vst.msk [vmem:[#allocation3 + $0x58] sm:$0xff] %vm545_vm5, %v2343_v39  ;;  %v2341_v3 = vadd.f32 %v2325_v60, %v2288_v2  ;;  %v3050_v50 = vld [vmem:[#allocation3 + $0x10] sm:$0xff] }
 0x241   : > { %2628 = vst.msk [vmem:[#allocation3 + $0x30] sm:$0xff] %vm545_vm5, %v2612_v20  ;;  %v2610_v10 = vadd.f32 %v2594_v38, %v2543_v9  ;;  %v2595_v42 = vld [vmem:[#allocation3 + $0x28] sm:$0xff]  ;;  %v5614_v4 = vpop.f32.mrf.mxu0 }
 0x242   : > { %v5639_v36 = vpop.f32.mrf.mxu1  ;;  %2357 = vst.msk [vmem:[#allocation3 + $0x48] sm:$0xff] %vm545_vm5, %v2341_v3  ;;  %v2346_v14 = vadd.f32 %v5614_v4, %v2330_v45  ;;  %v3048_v26 = vld [vmem:[#allocation3] sm:$0xff] }
 0x243   : > { %2626 = vst.msk [vmem:[#allocation3 + $0x20] sm:$0xff] %vm545_vm5, %v2610_v10  ;;  %v2613_v53 = vadd.f32 %v5639_v36, %v2597_v41  ;;  %v2600_v7 = vld [vmem:[#allocation3 + $0x50] sm:$0xff]  ;;  %v2301_v18 = vpop.f32.mrf.mxu0 }
 0x244   : > { %v2546_v40 = vpop.f32.mrf.mxu1  ;;  %2362 = vst.msk [vmem:[#allocation3 + $0x70] sm:$0xff] %vm545_vm5, %v2346_v14  ;;  %v2344_v46 = vadd.f32 %v2328_v59, %v2301_v18  ;;  %v3051_v5 = vld [vmem:[#allocation3 + $0x18] sm:$0xff] }
 0x245   : > { %2629 = vst.msk [vmem:[#allocation3 + $0x38] sm:$0xff] %vm545_vm5, %v2613_v53  ;;  %v2611_v0 = vadd.f32 %v2595_v42, %v2546_v40  ;;  %v2598_v22 = vld [vmem:[#allocation3 + $0x40] sm:$0xff]  ;;  %v5615_v30 = vpop.f32.mrf.mxu0 }
 0x246   : > { %v5642_v11 = vpop.f32.mrf.mxu1  ;;  %2360 = vst.msk [vmem:[#allocation3 + $0x60] sm:$0xff] %vm545_vm5, %v2344_v46  ;;  %v2347_v55 = vadd.f32 %v5615_v30, %v2331_v58  ;;  %v3049_v25 = vld [vmem:[#allocation3 + $0x8] sm:$0xff] }
 0x247   : > { %2627 = vst.msk [vmem:[#allocation3 + $0x28] sm:$0xff] %vm545_vm5, %v2611_v0  ;;  %v2616_v19 = vadd.f32 %v5642_v11, %v2600_v7  ;;  %v2601_v29 = vld [vmem:[#allocation3 + $0x58] sm:$0xff]  ;;  %v2304_v32 = vpop.f32.mrf.mxu0 }
 0x248   : > { %v2559_v57 = vpop.f32.mrf.mxu1  ;;  %2363 = vst.msk [vmem:[#allocation3 + $0x78] sm:$0xff] %vm545_vm5, %v2347_v55  ;;  %v2345_v1 = vadd.f32 %v2329_v33, %v2304_v32  ;;  %v3054_v24 = vld [vmem:[#allocation3 + $0x30] sm:$0xff] }
 0x249   : > { %2632 = vst.msk [vmem:[#allocation3 + $0x50] sm:$0xff] %vm545_vm5, %v2616_v19  ;;  %v2614_v61 = vadd.f32 %v2598_v22, %v2559_v57  ;;  %v2599_v52 = vld [vmem:[#allocation3 + $0x48] sm:$0xff]  ;;  %v5666_v15 = vpop.f32.mrf.mxu0 }
 0x24a   : > { %v5643_v62 = vpop.f32.mrf.mxu1  ;;  %2361 = vst.msk [vmem:[#allocation3 + $0x68] sm:$0xff] %vm545_vm5, %v2345_v1  ;;  %v3066_v31 = vadd.f32 %v5666_v15, %v3050_v50  ;;  %v3052_v39 = vld [vmem:[#allocation3 + $0x20] sm:$0xff] }
 0x24b   : > { %2630 = vst.msk [vmem:[#allocation3 + $0x40] sm:$0xff] %vm545_vm5, %v2614_v61  ;;  %v2617_v6 = vadd.f32 %v5643_v62, %v2601_v29  ;;  %v2604_v56 = vld [vmem:[#allocation3 + $0x70] sm:$0xff]  ;;  %v2985_v37 = vpop.f32.mrf.mxu0 }
 0x24c   : > { %v2562_v63 = vpop.f32.mrf.mxu1  ;;  %3082 = vst.msk [vmem:[#allocation3 + $0x10] sm:$0xff] %vm545_vm5, %v3066_v31  ;;  %v3064_v16 = vadd.f32 %v3048_v26, %v2985_v37  ;;  %v3055_v3 = vld [vmem:[#allocation3 + $0x38] sm:$0xff] }
 0x24d   : > { %2633 = vst.msk [vmem:[#allocation3 + $0x58] sm:$0xff] %vm545_vm5, %v2617_v6  ;;  %v2615_v21 = vadd.f32 %v2599_v52, %v2562_v63  ;;  %v2602_v13 = vld [vmem:[#allocation3 + $0x60] sm:$0xff]  ;;  %v5667_v54 = vpop.f32.mrf.mxu0 }
 0x24e   : > { %v5646_v17 = vpop.f32.mrf.mxu1  ;;  %3080 = vst.msk [vmem:[#allocation3] sm:$0xff] %vm545_vm5, %v3064_v16  ;;  %v3067_v48 = vadd.f32 %v5667_v54, %v3051_v5  ;;  %v3053_v14 = vld [vmem:[#allocation3 + $0x28] sm:$0xff] }
 0x24f   : > { %2631 = vst.msk [vmem:[#allocation3 + $0x48] sm:$0xff] %vm545_vm5, %v2615_v21  ;;  %v2620_v34 = vadd.f32 %v5646_v17, %v2604_v56  ;;  %v2605_v27 = vld [vmem:[#allocation3 + $0x78] sm:$0xff]  ;;  %v2988_v12 = vpop.f32.mrf.mxu0 }
 0x250   : > { %v2575_v28 = vpop.f32.mrf.mxu1  ;;  %3083 = vst.msk [vmem:[#allocation3 + $0x18] sm:$0xff] %vm545_vm5, %v3067_v48  ;;  %v3065_v44 = vadd.f32 %v3049_v25, %v2988_v12  ;;  %v3058_v46 = vld [vmem:[#allocation3 + $0x50] sm:$0xff] }
 0x251   : > { %2636 = vst.msk [vmem:[#allocation3 + $0x70] sm:$0xff] %vm545_vm5, %v2620_v34  ;;  %v2618_v35 = vadd.f32 %v2602_v13, %v2575_v28  ;;  %v2603_v51 = vld [vmem:[#allocation3 + $0x68] sm:$0xff]  ;;  %v5670_v47 = vpop.f32.mrf.mxu0 }
 0x252   : > { %v5647_v23 = vpop.f32.mrf.mxu1  ;;  %3081 = vst.msk [vmem:[#allocation3 + $0x8] sm:$0xff] %vm545_vm5, %v3065_v44  ;;  %v3070_v38 = vadd.f32 %v5670_v47, %v3054_v24  ;;  %v3056_v55 = vld [vmem:[#allocation3 + $0x40] sm:$0xff] }
 0x253   : > { %2634 = vst.msk [vmem:[#allocation3 + $0x60] sm:$0xff] %vm545_vm5, %v2618_v35  ;;  %v2621_v49 = vadd.f32 %v5647_v23, %v2605_v27  ;;  %v3396_v8 = vld [vmem:[#allocation3 + $0x10] sm:$0xff]  ;;  %v3001_v9 = vpop.f32.mrf.mxu0 }
 0x254   : > { %v2578_v20 = vpop.f32.mrf.mxu1  ;;  %3086 = vst.msk [vmem:[#allocation3 + $0x30] sm:$0xff] %vm545_vm5, %v3070_v38  ;;  %v3068_v41 = vadd.f32 %v3052_v39, %v3001_v9  ;;  %v3059_v1 = vld [vmem:[#allocation3 + $0x58] sm:$0xff] }
 0x255   : > { %2637 = vst.msk [vmem:[#allocation3 + $0x78] sm:$0xff] %vm545_vm5, %v2621_v49  ;;  %v2619_v43 = vadd.f32 %v2603_v51, %v2578_v20  ;;  %v3394_v60 = vld [vmem:[#allocation3] sm:$0xff]  ;;  %v5671_v36 = vpop.f32.mrf.mxu0 }
 0x256   : > { %v5698_v10 = vpop.f32.mrf.mxu1  ;;  %3084 = vst.msk [vmem:[#allocation3 + $0x20] sm:$0xff] %vm545_vm5, %v3068_v41  ;;  %v3071_v42 = vadd.f32 %v5671_v36, %v3055_v3  ;;  %v3057_v31 = vld [vmem:[#allocation3 + $0x48] sm:$0xff] }
 0x257   : > { %2635 = vst.msk [vmem:[#allocation3 + $0x68] sm:$0xff] %vm545_vm5, %v2619_v43  ;;  %v3412_v2 = vadd.f32 %v5698_v10, %v3396_v8  ;;  %v3397_v45 = vld [vmem:[#allocation3 + $0x18] sm:$0xff]  ;;  %v3004_v40 = vpop.f32.mrf.mxu0 }
 0x258   : > { %v3331_v53 = vpop.f32.mrf.mxu1  ;;  %3087 = vst.msk [vmem:[#allocation3 + $0x38] sm:$0xff] %vm545_vm5, %v3071_v42  ;;  %v3069_v7 = vadd.f32 %v3053_v14, %v3004_v40  ;;  %v3062_v34 = vld [vmem:[#allocation3 + $0x70] sm:$0xff] }
 0x259   : > { %3428 = vst.msk [vmem:[#allocation3 + $0x10] sm:$0xff] %vm545_vm5, %v3412_v2  ;;  %v3410_v4 = vadd.f32 %v3394_v60, %v3331_v53  ;;  %v3395_v59 = vld [vmem:[#allocation3 + $0x8] sm:$0xff]  ;;  %v5674_v11 = vpop.f32.mrf.mxu0 }
 0x25a   : > { %v5699_v0 = vpop.f32.mrf.mxu1  ;;  %3085 = vst.msk [vmem:[#allocation3 + $0x28] sm:$0xff] %vm545_vm5, %v3069_v7  ;;  %v3074_v22 = vadd.f32 %v5674_v11, %v3058_v46  ;;  %v3060_v35 = vld [vmem:[#allocation3 + $0x60] sm:$0xff] }
 0x25b   : > { %3426 = vst.msk [vmem:[#allocation3] sm:$0xff] %vm545_vm5, %v3410_v4  ;;  %v3413_v18 = vadd.f32 %v5699_v0, %v3397_v45  ;;  %v3400_v58 = vld [vmem:[#allocation3 + $0x30] sm:$0xff]  ;;  %v3017_v57 = vpop.f32.mrf.mxu0 }
 0x25c   : > { %v3334_v19 = vpop.f32.mrf.mxu1  ;;  %3090 = vst.msk [vmem:[#allocation3 + $0x50] sm:$0xff] %vm545_vm5, %v3074_v22  ;;  %v3072_v29 = vadd.f32 %v3056_v55, %v3017_v57  ;;  %v3063_v49 = vld [vmem:[#allocation3 + $0x78] sm:$0xff] }
 0x25d   : > { %3429 = vst.msk [vmem:[#allocation3 + $0x18] sm:$0xff] %vm545_vm5, %v3413_v18  ;;  %v3411_v30 = vadd.f32 %v3395_v59, %v3334_v19  ;;  %v3398_v33 = vld [vmem:[#allocation3 + $0x20] sm:$0xff]  ;;  %v5675_v62 = vpop.f32.mrf.mxu0 }
 0x25e   : > { %v5702_v61 = vpop.f32.mrf.mxu1  ;;  %3088 = vst.msk [vmem:[#allocation3 + $0x40] sm:$0xff] %vm545_vm5, %v3072_v29  ;;  %v3075_v52 = vadd.f32 %v5675_v62, %v3059_v1  ;;  %v3061_v43 = vld [vmem:[#allocation3 + $0x68] sm:$0xff] }
 0x25f   : > { %3427 = vst.msk [vmem:[#allocation3 + $0x8] sm:$0xff] %vm545_vm5, %v3411_v30  ;;  %v3416_v32 = vadd.f32 %v5702_v61, %v3400_v58  ;;  %v3401_v50 = vld [vmem:[#allocation3 + $0x38] sm:$0xff]  ;;  %v3020_v63 = vpop.f32.mrf.mxu0 }
 0x260   : > { %v3347_v6 = vpop.f32.mrf.mxu1  ;;  %3091 = vst.msk [vmem:[#allocation3 + $0x58] sm:$0xff] %vm545_vm5, %v3075_v52  ;;  %v3073_v56 = vadd.f32 %v3057_v31, %v3020_v63  ;;  %v3671_v2 = vld [vmem:[#allocation3 + $0x10] sm:$0xff] }
 0x261   : > { %3432 = vst.msk [vmem:[#allocation3 + $0x30] sm:$0xff] %vm545_vm5, %v3416_v32  ;;  %v3414_v15 = vadd.f32 %v3398_v33, %v3347_v6  ;;  %v3399_v26 = vld [vmem:[#allocation3 + $0x28] sm:$0xff] }
 0x262   : > { %v5703_v21 = vpop.f32.mrf.mxu1  ;;  %3089 = vst.msk [vmem:[#allocation3 + $0x48] sm:$0xff] %vm545_vm5, %v3073_v56  ;;  %v3669_v4 = vld [vmem:[#allocation3] sm:$0xff] }
 0x263   : > { %3430 = vst.msk [vmem:[#allocation3 + $0x20] sm:$0xff] %vm545_vm5, %v3414_v15  ;;  %v3417_v37 = vadd.f32 %v5703_v21, %v3401_v50  ;;  %v5678_v16 = vpop.f32.mrf.mxu0  ;;  %v3404_v5 = vld [vmem:[#allocation3 + $0x50] sm:$0xff] }
 0x264   : > { %v3350_v17 = vpop.f32.mrf.mxu1  ;;  %v3078_v54 = vadd.f32 %v5678_v16, %v3062_v34  ;;  %v3672_v18 = vld [vmem:[#allocation3 + $0x18] sm:$0xff] }
 0x265   : > { %3433 = vst.msk [vmem:[#allocation3 + $0x38] sm:$0xff] %vm545_vm5, %v3417_v37  ;;  %v3415_v13 = vadd.f32 %v3399_v26, %v3350_v17  ;;  %v3033_v48 = vpop.f32.mrf.mxu0  ;;  %v3402_v25 = vld [vmem:[#allocation3 + $0x40] sm:$0xff] }
 0x266   : > { %v5706_v28 = vpop.f32.mrf.mxu1  ;;  %3094 = vst.msk [vmem:[#allocation3 + $0x70] sm:$0xff] %vm545_vm5, %v3078_v54  ;;  %v3076_v12 = vadd.f32 %v3060_v35, %v3033_v48  ;;  %v3670_v30 = vld [vmem:[#allocation3 + $0x8] sm:$0xff] }
 0x267   : > { %3431 = vst.msk [vmem:[#allocation3 + $0x28] sm:$0xff] %vm545_vm5, %v3415_v13  ;;  %v3420_v27 = vadd.f32 %v5706_v28, %v3404_v5  ;;  %v5679_v44 = vpop.f32.mrf.mxu0  ;;  %v3405_v24 = vld [vmem:[#allocation3 + $0x58] sm:$0xff] }
 0x268   : > { %v3363_v23 = vpop.f32.mrf.mxu1  ;;  %3092 = vst.msk [vmem:[#allocation3 + $0x60] sm:$0xff] %vm545_vm5, %v3076_v12  ;;  %v3079_v47 = vadd.f32 %v5679_v44, %v3063_v49  ;;  %v3675_v32 = vld [vmem:[#allocation3 + $0x30] sm:$0xff] }
 0x269   : > { %3436 = vst.msk [vmem:[#allocation3 + $0x50] sm:$0xff] %vm545_vm5, %v3420_v27  ;;  %v3418_v51 = vadd.f32 %v3402_v25, %v3363_v23  ;;  %v3036_v38 = vpop.f32.mrf.mxu0  ;;  %v3403_v39 = vld [vmem:[#allocation3 + $0x48] sm:$0xff] }
 0x26a   : > { %v5707_v20 = vpop.f32.mrf.mxu1  ;;  %3095 = vst.msk [vmem:[#allocation3 + $0x78] sm:$0xff] %vm545_vm5, %v3079_v47  ;;  %v3077_v9 = vadd.f32 %v3061_v43, %v3036_v38  ;;  %v3673_v15 = vld [vmem:[#allocation3 + $0x20] sm:$0xff] }
 0x26b   : > { %3434 = vst.msk [vmem:[#allocation3 + $0x40] sm:$0xff] %vm545_vm5, %v3418_v51  ;;  %v3421_v8 = vadd.f32 %v5707_v20, %v3405_v24  ;;  %v5730_v41 = vpop.f32.mrf.mxu0 }
 0x26c   : > { %v3366_v10 = vpop.f32.mrf.mxu1  ;;  %3093 = vst.msk [vmem:[#allocation3 + $0x68] sm:$0xff] %vm545_vm5, %v3077_v9  ;;  %v3687_v36 = vadd.f32 %v5730_v41, %v3671_v2  ;;  %v3676_v37 = vld [vmem:[#allocation3 + $0x38] sm:$0xff] }
 0x26d   : > { %3437 = vst.msk [vmem:[#allocation3 + $0x58] sm:$0xff] %vm545_vm5, %v3421_v8  ;;  %v3419_v60 = vadd.f32 %v3403_v39, %v3366_v10  ;;  %v3408_v53 = vld [vmem:[#allocation3 + $0x70] sm:$0xff]  ;;  %v3606_v42 = vpop.f32.mrf.mxu0 }
 0x26e   : > { %v5710_v3 = vpop.f32.mrf.mxu1  ;;  %3703 = vst.msk [vmem:[#allocation3 + $0x10] sm:$0xff] %vm545_vm5, %v3687_v36  ;;  %v3685_v40 = vadd.f32 %v3669_v4, %v3606_v42  ;;  %v3674_v54 = vld [vmem:[#allocation3 + $0x28] sm:$0xff] }
 0x26f   : > { %3435 = vst.msk [vmem:[#allocation3 + $0x48] sm:$0xff] %vm545_vm5, %v3419_v60  ;;  %v3424_v45 = vadd.f32 %v5710_v3, %v3408_v53  ;;  %v3406_v0 = vld [vmem:[#allocation3 + $0x60] sm:$0xff]  ;;  %v5731_v7 = vpop.f32.mrf.mxu0 }
 0x270   : > { %v3379_v14 = vpop.f32.mrf.mxu1  ;;  %3701 = vst.msk [vmem:[#allocation3] sm:$0xff] %vm545_vm5, %v3685_v40  ;;  %v3688_v11 = vadd.f32 %v5731_v7, %v3672_v18  ;;  %v3679_v12 = vld [vmem:[#allocation3 + $0x50] sm:$0xff] }
 0x271   : > { %3440 = vst.msk [vmem:[#allocation3 + $0x70] sm:$0xff] %vm545_vm5, %v3424_v45  ;;  %v3422_v59 = vadd.f32 %v3406_v0, %v3379_v14  ;;  %v3409_v19 = vld [vmem:[#allocation3 + $0x78] sm:$0xff]  ;;  %v3609_v22 = vpop.f32.mrf.mxu0 }
 0x272   : > { %v5711_v46 = vpop.f32.mrf.mxu1  ;;  %3704 = vst.msk [vmem:[#allocation3 + $0x18] sm:$0xff] %vm545_vm5, %v3688_v11  ;;  %v3686_v57 = vadd.f32 %v3670_v30, %v3609_v22  ;;  %v3677_v47 = vld [vmem:[#allocation3 + $0x40] sm:$0xff] }
 0x273   : > { %3438 = vst.msk [vmem:[#allocation3 + $0x60] sm:$0xff] %vm545_vm5, %v3422_v59  ;;  %v3425_v58 = vadd.f32 %v5711_v46, %v3409_v19  ;;  %v3407_v61 = vld [vmem:[#allocation3 + $0x68] sm:$0xff]  ;;  %v5734_v29 = vpop.f32.mrf.mxu0 }
 0x274   : > { %v3382_v55 = vpop.f32.mrf.mxu1  ;;  %3702 = vst.msk [vmem:[#allocation3 + $0x8] sm:$0xff] %vm545_vm5, %v3686_v57  ;;  %v3691_v62 = vadd.f32 %v5734_v29, %v3675_v32  ;;  %v3680_v9 = vld [vmem:[#allocation3 + $0x58] sm:$0xff] }
 0x275   : > { %3441 = vst.msk [vmem:[#allocation3 + $0x78] sm:$0xff] %vm545_vm5, %v3425_v58  ;;  %v3423_v33 = vadd.f32 %v3407_v61, %v3382_v55  ;;  %v4129_v6 = vld [vmem:[#allocation3 + $0x10] sm:$0xff]  ;;  %v3622_v52 = vpop.f32.mrf.mxu0 }
 0x276   : > { %v5762_v1 = vpop.f32.mrf.mxu1  ;;  %3707 = vst.msk [vmem:[#allocation3 + $0x30] sm:$0xff] %vm545_vm5, %v3691_v62  ;;  %v3689_v63 = vadd.f32 %v3673_v15, %v3622_v52  ;;  %v3678_v36 = vld [vmem:[#allocation3 + $0x48] sm:$0xff] }
 0x277   : > { %3439 = vst.msk [vmem:[#allocation3 + $0x68] sm:$0xff] %vm545_vm5, %v3423_v33  ;;  %v4145_v50 = vadd.f32 %v5762_v1, %v4129_v6  ;;  %v4127_v21 = vld [vmem:[#allocation3] sm:$0xff]  ;;  %v5735_v56 = vpop.f32.mrf.mxu0 }
 0x278   : > { %v4064_v31 = vpop.f32.mrf.mxu1  ;;  %3705 = vst.msk [vmem:[#allocation3 + $0x20] sm:$0xff] %vm545_vm5, %v3689_v63  ;;  %v3692_v17 = vadd.f32 %v5735_v56, %v3676_v37  ;;  %v3683_v40 = vld [vmem:[#allocation3 + $0x70] sm:$0xff] }
 0x279   : > { %4161 = vst.msk [vmem:[#allocation3 + $0x10] sm:$0xff] %vm545_vm5, %v4145_v50  ;;  %v4143_v26 = vadd.f32 %v4127_v21, %v4064_v31  ;;  %v4130_v34 = vld [vmem:[#allocation3 + $0x18] sm:$0xff]  ;;  %v3625_v13 = vpop.f32.mrf.mxu0 }
 0x27a   : > { %v5763_v16 = vpop.f32.mrf.mxu1  ;;  %3708 = vst.msk [vmem:[#allocation3 + $0x38] sm:$0xff] %vm545_vm5, %v3692_v17  ;;  %v3690_v28 = vadd.f32 %v3674_v54, %v3625_v13  ;;  %v3681_v11 = vld [vmem:[#allocation3 + $0x60] sm:$0xff] }
 0x27b   : > { %4159 = vst.msk [vmem:[#allocation3] sm:$0xff] %vm545_vm5, %v4143_v26  ;;  %v4146_v5 = vadd.f32 %v5763_v16, %v4130_v34  ;;  %v4128_v35 = vld [vmem:[#allocation3 + $0x8] sm:$0xff]  ;;  %v5738_v27 = vpop.f32.mrf.mxu0 }
 0x27c   : > { %v4067_v48 = vpop.f32.mrf.mxu1  ;;  %3706 = vst.msk [vmem:[#allocation3 + $0x28] sm:$0xff] %vm545_vm5, %v3690_v28  ;;  %v3695_v23 = vadd.f32 %v5738_v27, %v3679_v12  ;;  %v3684_v57 = vld [vmem:[#allocation3 + $0x78] sm:$0xff] }
 0x27d   : > { %4162 = vst.msk [vmem:[#allocation3 + $0x18] sm:$0xff] %vm545_vm5, %v4146_v5  ;;  %v4144_v25 = vadd.f32 %v4128_v35, %v4067_v48  ;;  %v4133_v49 = vld [vmem:[#allocation3 + $0x30] sm:$0xff]  ;;  %v3638_v51 = vpop.f32.mrf.mxu0 }
 0x27e   : > { %v5766_v44 = vpop.f32.mrf.mxu1  ;;  %3711 = vst.msk [vmem:[#allocation3 + $0x50] sm:$0xff] %vm545_vm5, %v3695_v23  ;;  %v3693_v20 = vadd.f32 %v3677_v47, %v3638_v51  ;;  %v3682_v62 = vld [vmem:[#allocation3 + $0x68] sm:$0xff] }
 0x27f   : > { %4160 = vst.msk [vmem:[#allocation3 + $0x8] sm:$0xff] %vm545_vm5, %v4144_v25  ;;  %v4149_v24 = vadd.f32 %v5766_v44, %v4133_v49  ;;  %v4131_v43 = vld [vmem:[#allocation3 + $0x20] sm:$0xff]  ;;  %v5739_v8 = vpop.f32.mrf.mxu0  ;;  %v7357_v51 = vld [vmem:[%s7554_s6] ss:$0 sm:$0xff] }
 0x280   : > { %v4080_v38 = vpop.f32.mrf.mxu1  ;;  %3709 = vst.msk [vmem:[#allocation3 + $0x40] sm:$0xff] %vm545_vm5, %v3693_v20  ;;  %v3696_v10 = vadd.f32 %v5739_v8, %v3680_v9  ;;  %v4475_v63 = vld [vmem:[#allocation3 + $0x10] sm:$0xff] }
 0x281   : > { %4165 = vst.msk [vmem:[#allocation3 + $0x30] sm:$0xff] %vm545_vm5, %v4149_v24  ;;  %v4147_v39 = vadd.f32 %v4131_v43, %v4080_v38  ;;  %v4134_v2 = vld [vmem:[#allocation3 + $0x38] sm:$0xff]  ;;  %v3641_v60 = vpop.f32.mrf.mxu0 }
 0x282   : > { %v5767_v41 = vpop.f32.mrf.mxu1  ;;  %3712 = vst.msk [vmem:[#allocation3 + $0x58] sm:$0xff] %vm545_vm5, %v3696_v10  ;;  %v3694_v53 = vadd.f32 %v3678_v36, %v3641_v60  ;;  %v4473_v17 = vld [vmem:[#allocation3] sm:$0xff] }
 0x283   : > { %4163 = vst.msk [vmem:[#allocation3 + $0x20] sm:$0xff] %vm545_vm5, %v4147_v39  ;;  %v4150_v3 = vadd.f32 %v5767_v41, %v4134_v2  ;;  %v4132_v4 = vld [vmem:[#allocation3 + $0x28] sm:$0xff]  ;;  %v5742_v45 = vpop.f32.mrf.mxu0 }
 0x284   : > { %v4083_v42 = vpop.f32.mrf.mxu1  ;;  %3710 = vst.msk [vmem:[#allocation3 + $0x48] sm:$0xff] %vm545_vm5, %v3694_v53  ;;  %v3699_v0 = vadd.f32 %v5742_v45, %v3683_v40  ;;  %v4476_v28 = vld [vmem:[#allocation3 + $0x18] sm:$0xff] }
 0x285   : > { %4166 = vst.msk [vmem:[#allocation3 + $0x38] sm:$0xff] %vm545_vm5, %v4150_v3  ;;  %v4148_v14 = vadd.f32 %v4132_v4, %v4083_v42  ;;  %v4137_v18 = vld [vmem:[#allocation3 + $0x50] sm:$0xff]  ;;  %v3654_v59 = vpop.f32.mrf.mxu0 }
 0x286   : > { %v5770_v7 = vpop.f32.mrf.mxu1  ;;  %3715 = vst.msk [vmem:[#allocation3 + $0x70] sm:$0xff] %vm545_vm5, %v3699_v0  ;;  %v3697_v19 = vadd.f32 %v3681_v11, %v3654_v59  ;;  %v4474_v23 = vld [vmem:[#allocation3 + $0x8] sm:$0xff] }
 0x287   : > { %4164 = vst.msk [vmem:[#allocation3 + $0x28] sm:$0xff] %vm545_vm5, %v4148_v14  ;;  %v4153_v46 = vadd.f32 %v5770_v7, %v4137_v18  ;;  %v4135_v30 = vld [vmem:[#allocation3 + $0x40] sm:$0xff]  ;;  %v5743_v58 = vpop.f32.mrf.mxu0 }
 0x288   : > { %v4096_v22 = vpop.f32.mrf.mxu1  ;;  %3713 = vst.msk [vmem:[#allocation3 + $0x60] sm:$0xff] %vm545_vm5, %v3697_v19  ;;  %v3700_v61 = vadd.f32 %v5743_v58, %v3684_v57  ;;  %v4479_v38 = vld [vmem:[#allocation3 + $0x30] sm:$0xff] }
 0x289   : > { %4169 = vst.msk [vmem:[#allocation3 + $0x50] sm:$0xff] %vm545_vm5, %v4153_v46  ;;  %v4151_v55 = vadd.f32 %v4135_v30, %v4096_v22  ;;  %v4138_v32 = vld [vmem:[#allocation3 + $0x58] sm:$0xff]  ;;  %v3657_v33 = vpop.f32.mrf.mxu0 }
 0x28a   : > { %v5771_v29 = vpop.f32.mrf.mxu1  ;;  %3716 = vst.msk [vmem:[#allocation3 + $0x78] sm:$0xff] %vm545_vm5, %v3700_v61  ;;  %v3698_v6 = vadd.f32 %v3682_v62, %v3657_v33  ;;  %v4477_v41 = vld [vmem:[#allocation3 + $0x20] sm:$0xff] }
 0x28b   : > { %4167 = vst.msk [vmem:[#allocation3 + $0x40] sm:$0xff] %vm545_vm5, %v4151_v55  ;;  %v4154_v1 = vadd.f32 %v5771_v29, %v4138_v32  ;;  %v4136_v15 = vld [vmem:[#allocation3 + $0x48] sm:$0xff] }
 0x28c   : > { %v4099_v52 = vpop.f32.mrf.mxu1  ;;  %v5794_v50 = vpop.f32.mrf.mxu0  ;;  %3714 = vst.msk [vmem:[#allocation3 + $0x68] sm:$0xff] %vm545_vm5, %v3698_v6  ;;  %v4480_v4 = vld [vmem:[#allocation3 + $0x38] sm:$0xff] }
 0x28d   : > { %4170 = vst.msk [vmem:[#allocation3 + $0x58] sm:$0xff] %vm545_vm5, %v4154_v1  ;;  %v4152_v31 = vadd.f32 %v4136_v15, %v4099_v52  ;;  %v4491_v21 = vadd.f32 %v5794_v50, %v4475_v63  ;;  %v4141_v37 = vld [vmem:[#allocation3 + $0x70] sm:$0xff] }
 0x28e   : > { %v5774_v56 = vpop.f32.mrf.mxu1  ;;  %v4410_v26 = vpop.f32.mrf.mxu0  ;;  %v4478_v58 = vld [vmem:[#allocation3 + $0x28] sm:$0xff] }
 0x28f   : > { %4168 = vst.msk [vmem:[#allocation3 + $0x48] sm:$0xff] %vm545_vm5, %v4152_v31  ;;  %4507 = vst.msk [vmem:[#allocation3 + $0x10] sm:$0xff] %vm545_vm5, %v4491_v21  ;;  %v4157_v16 = vadd.f32 %v5774_v56, %v4141_v37  ;;  %v4489_v34 = vadd.f32 %v4473_v17, %v4410_v26  ;;  %v4139_v54 = vld [vmem:[#allocation3 + $0x60] sm:$0xff] }
 0x290   : > { %v4112_v13 = vpop.f32.mrf.mxu1  ;;  %v5795_v5 = vpop.f32.mrf.mxu0  ;;  %v4483_v1 = vld [vmem:[#allocation3 + $0x50] sm:$0xff] }
 0x291   : > { %4173 = vst.msk [vmem:[#allocation3 + $0x70] sm:$0xff] %vm545_vm5, %v4157_v16  ;;  %4505 = vst.msk [vmem:[#allocation3] sm:$0xff] %vm545_vm5, %v4489_v34  ;;  %v4155_v48 = vadd.f32 %v4139_v54, %v4112_v13  ;;  %v4492_v35 = vadd.f32 %v5795_v5, %v4476_v28  ;;  %v4142_v12 = vld [vmem:[#allocation3 + $0x78] sm:$0xff] }
 0x292   : > { %v5775_v27 = vpop.f32.mrf.mxu1  ;;  %v4413_v25 = vpop.f32.mrf.mxu0  ;;  %v4481_v26 = vld [vmem:[#allocation3 + $0x40] sm:$0xff] }
 0x293   : > { %4171 = vst.msk [vmem:[#allocation3 + $0x60] sm:$0xff] %vm545_vm5, %v4155_v48  ;;  %4508 = vst.msk [vmem:[#allocation3 + $0x18] sm:$0xff] %vm545_vm5, %v4492_v35  ;;  %v4158_v44 = vadd.f32 %v5775_v27, %v4142_v12  ;;  %v4490_v49 = vadd.f32 %v4474_v23, %v4413_v25  ;;  %v4140_v24 = vld [vmem:[#allocation3 + $0x68] sm:$0xff] }
 0x294   : > { %v4115_v47 = vpop.f32.mrf.mxu1  ;;  %v5798_v20 = vpop.f32.mrf.mxu0  ;;  %v4484_v48 = vld [vmem:[#allocation3 + $0x58] sm:$0xff] }
 0x295   : > { %4174 = vst.msk [vmem:[#allocation3 + $0x78] sm:$0xff] %vm545_vm5, %v4158_v44  ;;  %4506 = vst.msk [vmem:[#allocation3 + $0x8] sm:$0xff] %vm545_vm5, %v4490_v49  ;;  %v4156_v43 = vadd.f32 %v4140_v24, %v4115_v47  ;;  %v4495_v8 = vadd.f32 %v5798_v20, %v4479_v38 }
 0x296   : > { %v4523_v9 = vld [vmem:[#allocation3 + $0x10] sm:$0xff]  ;;  %v5806_v39 = vpop.f32.mrf.mxu1  ;;  %v4426_v10 = vpop.f32.mrf.mxu0  ;;  %v4482_v47 = vld [vmem:[#allocation3 + $0x48] sm:$0xff] }
 0x297   : > { %v7362_v2 = vadd.f32 %v7357_v51, %v4523_v9  ;;  %4172 = vst.msk [vmem:[#allocation3 + $0x68] sm:$0xff] %vm545_vm5, %v4156_v43  ;;  %4511 = vst.msk [vmem:[#allocation3 + $0x30] sm:$0xff] %vm545_vm5, %v4495_v8  ;;  %v4493_v60 = vadd.f32 %v4477_v41, %v4426_v10 }
 0x298   : > { %v4521_v36 = vld [vmem:[#allocation3] sm:$0xff]  ;;  %v4487_v3 = vld [vmem:[#allocation3 + $0x70] sm:$0xff]  ;;  %v4458_v53 = vpop.f32.mrf.mxu1  ;;  %v5799_v42 = vpop.f32.mrf.mxu0 }
 0x299   : > { %v4562_v45 = vmin.f32 %v7362_v2, 20.0  ;;  %v7368_v40 = vadd.f32 %v7357_v51, %v4521_v36  ;;  %v4503_v14 = vadd.f32 %v5806_v39, %v4487_v3  ;;  %4509 = vst.msk [vmem:[#allocation3 + $0x20] sm:$0xff] %vm545_vm5, %v4493_v60  ;;  %v4496_v0 = vadd.f32 %v5799_v42, %v4480_v4 }
 0x29a   : > { %v4524_v7 = vld [vmem:[#allocation3 + $0x18] sm:$0xff]  ;;  %v4485_v18 = vld [vmem:[#allocation3 + $0x60] sm:$0xff]  ;;  %v4429_v59 = vpop.f32.mrf.mxu0  ;;  %v5807_v30 = vpop.f32.mrf.mxu1 }
 0x29b   : > { %v4580_v11 = vmul.f32 1.442695, %v4562_v45  ;;  %v4560_v46 = vmin.f32 %v7368_v40, 20.0  ;;  %v7373_v19 = vadd.f32 %v7357_v51, %v4524_v7  ;;  %4519 = vst.msk [vmem:[#allocation3 + $0x70] sm:$0xff] %vm545_vm5, %v4503_v14  ;;  %v4501_v22 = vadd.f32 %v4485_v18, %v4458_v53  ;;  %4512 = vst.msk [vmem:[#allocation3 + $0x38] sm:$0xff] %vm545_vm5, %v4496_v0 }
 0x29c   : > { %v4522_v57 = vld [vmem:[#allocation3 + $0x8] sm:$0xff]  ;;  %v4488_v55 = vld [vmem:[#allocation3 + $0x78] sm:$0xff]  ;;  %v4494_v61 = vadd.f32 %v4478_v58, %v4429_v59  ;;  %v5802_v29 = vpop.f32.mrf.mxu0  ;;  %v4461_v37 = vpop.f32.mrf.mxu1 }
 0x29d   : > { %6043 = vpow2.f32 %v4580_v11  ;;  %v4576_v32 = vmul.f32 1.442695, %v4560_v46  ;;  %v4563_v33 = vmin.f32 %v7373_v19, 20.0  ;;  %v7379_v62 = vadd.f32 %v7357_v51, %v4522_v57  ;;  %4517 = vst.msk [vmem:[#allocation3 + $0x60] sm:$0xff] %vm545_vm5, %v4501_v22 }
 0x29e   : > { %v4527_v6 = vld [vmem:[#allocation3 + $0x30] sm:$0xff]  ;;  %v4504_v52 = vadd.f32 %v5807_v30, %v4488_v55  ;;  %4510 = vst.msk [vmem:[#allocation3 + $0x28] sm:$0xff] %vm545_vm5, %v4494_v61  ;;  %v4486_v15 = vld [vmem:[#allocation3 + $0x68] sm:$0xff]  ;;  %v4499_v50 = vadd.f32 %v5802_v29, %v4483_v1  ;;  %v4442_v63 = vpop.f32.mrf.mxu0 }
 0x29f   : > { %6045 = vpow2.f32 %v4576_v32  ;;  %v4582_v31 = vmul.f32 1.442695, %v4563_v33  ;;  %v4561_v21 = vmin.f32 %v7379_v62, 20.0  ;;  %v7385_v56 = vadd.f32 %v7357_v51, %v4527_v6 }
 0x2a0   : > { %v4525_v17 = vld [vmem:[#allocation3 + $0x20] sm:$0xff]  ;;  %4520 = vst.msk [vmem:[#allocation3 + $0x78] sm:$0xff] %vm545_vm5, %v4504_v52  ;;  %v4502_v16 = vadd.f32 %v4486_v15, %v4461_v37  ;;  %4515 = vst.msk [vmem:[#allocation3 + $0x50] sm:$0xff] %vm545_vm5, %v4499_v50  ;;  %v4497_v34 = vadd.f32 %v4481_v26, %v4442_v63  ;;  %v5803_v13 = vpop.f32.mrf.mxu0 }
 0x2a1   : > { %6047 = vpow2.f32 %v4582_v31  ;;  %v4578_v54 = vmul.f32 1.442695, %v4561_v21  ;;  %v4566_v5 = vmin.f32 %v7385_v56, 20.0  ;;  %v7391_v28 = vadd.f32 %v7357_v51, %v4525_v17 }
 0x2a2   : > { %v4535_v35 = vld [vmem:[#allocation3 + $0x70] sm:$0xff]  ;;  %v4528_v27 = vld [vmem:[#allocation3 + $0x38] sm:$0xff]  ;;  %4518 = vst.msk [vmem:[#allocation3 + $0x68] sm:$0xff] %vm545_vm5, %v4502_v16  ;;  %4513 = vst.msk [vmem:[#allocation3 + $0x40] sm:$0xff] %vm545_vm5, %v4497_v34  ;;  %v4500_v12 = vadd.f32 %v5803_v13, %v4484_v48  ;;  %v4445_v25 = vpop.f32.mrf.mxu0 }
 0x2a3   : > { %6049 = vpow2.f32 %v4578_v54  ;;  %v4588_v23 = vmul.f32 1.442695, %v4566_v5  ;;  %v7396_v44 = vadd.f32 %v7357_v51, %v4535_v35  ;;  %v4564_v49 = vmin.f32 %v7391_v28, 20.0 }
 0x2a4   : > { %v4533_v24 = vld [vmem:[#allocation3 + $0x60] sm:$0xff]  ;;  %v7400_v20 = vadd.f32 %v7357_v51, %v4528_v27  ;;  %4516 = vst.msk [vmem:[#allocation3 + $0x58] sm:$0xff] %vm545_vm5, %v4500_v12  ;;  %v4498_v38 = vadd.f32 %v4482_v47, %v4445_v25 }
 0x2a5   : > { %6051 = vpow2.f32 %v4588_v23  ;;  %v4574_v43 = vmin.f32 %v7396_v44, 20.0  ;;  %v4584_v8 = vmul.f32 1.442695, %v4564_v49  ;;  %v7405_v9 = vadd.f32 %v7357_v51, %v4533_v24  ;;  %v4526_v39 = vld [vmem:[#allocation3 + $0x28] sm:$0xff] }
 0x2a6   : > { %v4567_v10 = vmin.f32 %v7400_v20, 20.0  ;;  %v7409_v41 = vadd.f32 %v7357_v51, %v4526_v39  ;;  %4514 = vst.msk [vmem:[#allocation3 + $0x48] sm:$0xff] %vm545_vm5, %v4498_v38 }
 0x2a7   : > { %v4604_v60 = vmul.f32 1.442695, %v4574_v43  ;;  %6053 = vpow2.f32 %v4584_v8  ;;  %v4572_v36 = vmin.f32 %v7405_v9, 20.0  ;;  %v4536_v3 = vld [vmem:[#allocation3 + $0x78] sm:$0xff]  ;;  %v4531_v53 = vld [vmem:[#allocation3 + $0x50] sm:$0xff] }
 0x2a8   : > { %v4590_v42 = vmul.f32 1.442695, %v4567_v10  ;;  %v7414_v4 = vadd.f32 %v7357_v51, %v4536_v3  ;;  %v4565_v45 = vmin.f32 %v7409_v41, 20.0  ;;  %v7418_v14 = vadd.f32 %v7357_v51, %v4531_v53 }
 0x2a9   : > { %6055 = vpow2.f32 %v4604_v60  ;;  %v4600_v0 = vmul.f32 1.442695, %v4572_v36  ;;  %v4534_v7 = vld [vmem:[#allocation3 + $0x68] sm:$0xff]  ;;  %v4529_v18 = vld [vmem:[#allocation3 + $0x40] sm:$0xff] }
 0x2aa   : > { %v6044_v59 = vpop.eup %6043  ;;  %6057 = vpow2.f32 %v4590_v42  ;;  %v4575_v11 = vmin.f32 %v7414_v4, 20.0  ;;  %v4586_v46 = vmul.f32 1.442695, %v4565_v45  ;;  %v7422_v22 = vadd.f32 %v7357_v51, %v4534_v7 }
 0x2ab   : > { %v4610_v30 = vadd.f32 1.0, %v6044_v59  ;;  %6059 = vpow2.f32 %v4600_v0  ;;  %v4570_v58 = vmin.f32 %v7418_v14, 20.0  ;;  %v7426_v57 = vadd.f32 %v7357_v51, %v4529_v18  ;;  %v4532_v55 = vld [vmem:[#allocation3 + $0x58] sm:$0xff] }
 0x2ac   : > { %v6046_v61 = vpop.eup %6045  ;;  %v4606_v29 = vmul.f32 1.442695, %v4575_v11  ;;  %6061 = vpow2.f32 %v4586_v46  ;;  %v4573_v32 = vmin.f32 %v7422_v22, 20.0  ;;  %v7430_v33 = vadd.f32 %v7357_v51, %v4532_v55 }
 0x2ad   : > { %v4626_v1 = vmul.f32 %v4610_v30, %v4610_v30  ;;  %v4608_v6 = vadd.f32 1.0, %v6046_v61  ;;  %v4568_v52 = vmin.f32 %v7426_v57, 20.0  ;;  %v4530_v15 = vld [vmem:[#allocation3 + $0x48] sm:$0xff]  ;;  %v4596_v31 = vmul.f32 1.442695, %v4570_v58 }
 0x2ae   : > { %v6048_v50 = vpop.eup %6047  ;;  %6063 = vpow2.f32 %v4606_v29  ;;  %v4602_v63 = vmul.f32 1.442695, %v4573_v32  ;;  %v4571_v21 = vmin.f32 %v7430_v33, 20.0  ;;  %v7435_v16 = vadd.f32 %v7357_v51, %v4530_v15 }
 0x2af   : > { %v4674_v37 = vadd.f32 1.0, %v4626_v1  ;;  %v4624_v26 = vmul.f32 %v4608_v6, %v4608_v6  ;;  %v4611_v17 = vadd.f32 1.0, %v6048_v50  ;;  %v4592_v13 = vmul.f32 1.442695, %v4568_v52  ;;  %v4722_v50 = vld [vmem:[%s6267_s21 + $0x10] sm:$0xff] }
 0x2b0   : > { %v6050_v34 = vpop.eup %6049  ;;  %6065 = vpow2.f32 %v4602_v63  ;;  %v4598_v5 = vmul.f32 1.442695, %v4571_v21  ;;  %v4569_v25 = vmin.f32 %v7435_v16, 20.0  ;;  %v5295_v53 = vadd.f32 -1.0, %v4626_v1 }
 0x2b1   : > { %6067 = vrcp.f32 %v4674_v37  ;;  %v4672_v54 = vadd.f32 1.0, %v4624_v26  ;;  %v4627_v35 = vmul.f32 %v4611_v17, %v4611_v17  ;;  %v4609_v27 = vadd.f32 1.0, %v6050_v34 }
 0x2b2   : > { %v6052_v48 = vpop.eup %6051  ;;  %6069 = vpow2.f32 %v4596_v31  ;;  %v4594_v36 = vmul.f32 1.442695, %v4569_v25  ;;  %v5293_v30 = vadd.f32 -1.0, %v4624_v26  ;;  %v4658_v55 = vmul.f32 %v5295_v53, %v7362_v2  ;;  %v4721_v53 = vld [vmem:[%s6267_s21 + $0x8] sm:$0xff] }
 0x2b3   : > { %6071 = vrcp.f32 %v4672_v54  ;;  %v4614_v12 = vadd.f32 1.0, %v6052_v48  ;;  %v4675_v49 = vadd.f32 1.0, %v4627_v35  ;;  %v4625_v47 = vmul.f32 %v4609_v27, %v4609_v27 }
 0x2b4   : > { %v6054_v23 = vpop.eup %6053  ;;  %6073 = vpow2.f32 %v4592_v13  ;;  %v5296_v1 = vadd.f32 -1.0, %v4627_v35  ;;  %v4656_v37 = vmul.f32 %v5293_v30, %v7368_v40  ;;  %v4720_v13 = vld [vmem:[%s6267_s21] sm:$0xff]  ;;  %v4726_v30 = vld [vmem:[%s6267_s21 + $0x30] sm:$0xff] }
 0x2b5   : > { %v4630_v51 = vmul.f32 %v4614_v12, %v4614_v12  ;;  %v4612_v24 = vadd.f32 1.0, %v6054_v23  ;;  %6075 = vpow2.f32 %v4598_v5  ;;  %v4673_v43 = vadd.f32 1.0, %v4625_v47 }
 0x2b6   : > { %v6056_v38 = vpop.eup %6055  ;;  %6077 = vrcp.f32 %v4675_v49  ;;  %v5294_v63 = vadd.f32 -1.0, %v4625_v47  ;;  %v4659_v12 = vmul.f32 %v5296_v1, %v7373_v19 }
 0x2b7   : > { %v6058_v8 = vpop.eup %6057  ;;  %v4678_v39 = vadd.f32 1.0, %v4630_v51  ;;  %v4622_v10 = vadd.f32 1.0, %v6056_v38  ;;  %v4628_v60 = vmul.f32 %v4612_v24, %v4612_v24  ;;  %6079 = vrcp.f32 %v4673_v43  ;;  %v4723_v43 = vld [vmem:[%s6267_s21 + $0x18] sm:$0xff] }
 0x2b8   : > { %v6060_v3 = vpop.eup %6059  ;;  %v4615_v42 = vadd.f32 1.0, %v6058_v8  ;;  %v5299_v54 = vadd.f32 -1.0, %v4630_v51  ;;  %v4657_v49 = vmul.f32 %v5294_v63, %v7379_v62 }
 0x2b9   : > { %v6062_v45 = vpop.eup %6061  ;;  %6081 = vrcp.f32 %v4678_v39  ;;  %v4638_v0 = vmul.f32 %v4622_v10, %v4622_v10  ;;  %v4676_v7 = vadd.f32 1.0, %v4628_v60  ;;  %v4620_v18 = vadd.f32 1.0, %v6060_v3 }
 0x2ba   : > { %v4631_v59 = vmul.f32 %v4615_v42, %v4615_v42  ;;  %v4613_v11 = vadd.f32 1.0, %v6062_v45  ;;  %6083 = vpow2.f32 %v4594_v36  ;;  %v5297_v8 = vadd.f32 -1.0, %v4628_v60 }
 0x2bb   : > { %v6064_v46 = vpop.eup %6063  ;;  %v4686_v58 = vadd.f32 1.0, %v4638_v0  ;;  %6085 = vrcp.f32 %v4676_v7  ;;  %v7439_v61 = vmul.f32 %v4620_v18, %v4620_v18  ;;  %v4662_v10 = vmul.f32 %v5299_v54, %v7385_v56 }
 0x2bc   : > { %v4679_v29 = vadd.f32 1.0, %v4631_v59  ;;  %v4623_v6 = vadd.f32 1.0, %v6064_v46  ;;  %v7441_v52 = vmul.f32 %v4613_v11, %v4613_v11  ;;  %v5307_v62 = vadd.f32 -1.0, %v4638_v0 }
 0x2bd   : > { %v6066_v32 = vpop.eup %6065  ;;  %6087 = vrcp.f32 %v4686_v58  ;;  %v4684_v31 = vadd.f32 1.0, %v7439_v61  ;;  %v5300_v42 = vadd.f32 -1.0, %v4631_v59  ;;  %v4660_v0 = vmul.f32 %v5297_v8, %v7391_v28 }
 0x2be   : > { %v6068_v15 = vpop.eup %6067  ;;  %6089 = vrcp.f32 %v4679_v29  ;;  %v7446_v26 = vmul.f32 %v4623_v6, %v4623_v6  ;;  %v4677_v17 = vadd.f32 1.0, %v7441_v52  ;;  %v4621_v5 = vadd.f32 1.0, %v6066_v32 }
 0x2bf   : > { %v6070_v21 = vpop.eup %6069  ;;  %v4706_v2 = vmul.f32 %v6068_v15, %v4658_v55  ;;  %6091 = vrcp.f32 %v4684_v31  ;;  %v5305_v55 = vadd.f32 -1.0, %v7439_v61  ;;  %v4670_v15 = vmul.f32 %v5307_v62, %v7396_v44  ;;  %v4727_v44 = vld [vmem:[%s6267_s21 + $0x38] sm:$0xff] }
 0x2c0   : > { %v6072_v34 = vpop.eup %6071  ;;  %v4618_v48 = vadd.f32 1.0, %v6070_v21  ;;  %v4687_v25 = vadd.f32 1.0, %v7446_v26  ;;  %6093 = vrcp.f32 %v4677_v17  ;;  %v7460_v47 = vmul.f32 %v4621_v5, %v4621_v5  ;;  %v4734_v21 = vld [vmem:[%s6267_s21 + $0x70] sm:$0xff] }
 0x2c1   : > { %v6074_v35 = vpop.eup %6073  ;;  %v4738_v40 = vadd.f32 %v4722_v50, %v4706_v2  ;;  %v4704_v27 = vmul.f32 %v6072_v34, %v4656_v37  ;;  %v4724_v50 = vld [vmem:[%s6267_s21 + $0x20] sm:$0xff]  ;;  %v4663_v28 = vmul.f32 %v5300_v42, %v7400_v20  ;;  %v5298_v61 = vadd.f32 -1.0, %v7441_v52 }
 0x2c2   : > { %v6076_v23 = vpop.eup %6075  ;;  %v7462_v51 = vmul.f32 %v4618_v48, %v4618_v48  ;;  %6095 = vrcp.f32 %v4687_v25  ;;  %v4616_v19 = vadd.f32 1.0, %v6074_v35  ;;  %v4685_v36 = vadd.f32 1.0, %v7460_v47 }
 0x2c3   : > { %v6078_v24 = vpop.eup %6077  ;;  %4754 = vst.msk [vmem:[%s7454_s12 + $0x10] sm:$0xff] %vm545_vm5, %v4738_v40  ;;  %v4736_v38 = vadd.f32 %v4720_v13, %v4704_v27  ;;  %v4619_v60 = vadd.f32 1.0, %v6076_v23  ;;  %v5308_v13 = vadd.f32 -1.0, %v7446_v26  ;;  %v4668_v5 = vmul.f32 %v5305_v55, %v7405_v9  ;;  %v4732_v40 = vld [vmem:[%s6267_s21 + $0x60] sm:$0xff] }
 0x2c4   : > { %v4707_v39 = vmul.f32 %v6078_v24, %v4659_v12  ;;  %v6080_v3 = vpop.eup %6079  ;;  %v4682_v45 = vadd.f32 1.0, %v7462_v51  ;;  %v7473_v7 = vmul.f32 %v4616_v19, %v4616_v19  ;;  %6097 = vrcp.f32 %v4685_v36  ;;  %v4725_v24 = vld [vmem:[%s6267_s21 + $0x28] sm:$0xff]  ;;  %v4735_v19 = vld [vmem:[%s6267_s21 + $0x78] sm:$0xff] }
 0x2c5   : > { %4752 = vst.msk [vmem:[%s7454_s12] sm:$0xff] %vm545_vm5, %v4736_v38  ;;  %v4705_v46 = vmul.f32 %v6080_v3, %v4657_v49  ;;  %v4635_v32 = vmul.f32 %v4619_v60, %v4619_v60  ;;  %v4661_v26 = vmul.f32 %v5298_v61, %v7409_v41  ;;  %v5306_v23 = vadd.f32 -1.0, %v7460_v47  ;;  %v4733_v36 = vld [vmem:[%s6267_s21 + $0x68] sm:$0xff] }
 0x2c6   : > { %v6082_v18 = vpop.eup %6081  ;;  %v4739_v11 = vadd.f32 %v4723_v43, %v4707_v39  ;;  %6099 = vrcp.f32 %v4682_v45  ;;  %v4680_v29 = vadd.f32 1.0, %v7473_v7  ;;  %v4671_v9 = vmul.f32 %v5308_v13, %v7414_v4  ;;  %v4730_v45 = vld [vmem:[%s6267_s21 + $0x50] sm:$0xff] }
 0x2c7   : > { %v4710_v56 = vmul.f32 %v6082_v18, %v4662_v10  ;;  %v6084_v58 = vpop.eup %6083  ;;  %v4737_v59 = vadd.f32 %v4721_v53, %v4705_v46  ;;  %v4683_v37 = vadd.f32 1.0, %v4635_v32  ;;  %v5303_v38 = vadd.f32 -1.0, %v7462_v51 }
 0x2c8   : > { %4755 = vst.msk [vmem:[%s7454_s12 + $0x18] sm:$0xff] %vm545_vm5, %v4739_v11  ;;  %v6086_v1 = vpop.eup %6085  ;;  %v4617_v63 = vadd.f32 1.0, %v6084_v58  ;;  %6101 = vrcp.f32 %v4680_v29  ;;  %v4669_v4 = vmul.f32 %v5306_v23, %v7422_v22  ;;  %v5301_v10 = vadd.f32 -1.0, %v7473_v7 }
 0x2c9   : > { %v4742_v6 = vadd.f32 %v4726_v30, %v4710_v56  ;;  %4753 = vst.msk [vmem:[%s7454_s12 + $0x8] sm:$0xff] %vm545_vm5, %v4737_v59  ;;  %v4708_v2 = vmul.f32 %v6086_v1, %v4660_v0  ;;  %6103 = vrcp.f32 %v4683_v37  ;;  %v4666_v3 = vmul.f32 %v5303_v38, %v7418_v14  ;;  %v4728_v30 = vld [vmem:[%s6267_s21 + $0x40] sm:$0xff]  ;;  %v4731_v59 = vld [vmem:[%s6267_s21 + $0x58] sm:$0xff] }
 0x2ca   : > { %v6088_v31 = vpop.eup %6087  ;;  %v4633_v20 = vmul.f32 %v4617_v63, %v4617_v63  ;;  %v5304_v60 = vadd.f32 -1.0, %v4635_v32  ;;  %v4664_v7 = vmul.f32 %v5301_v10, %v7426_v57 }
 0x2cb   : > { %v6090_v17 = vpop.eup %6089  ;;  %4758 = vst.msk [vmem:[%s7454_s12 + $0x30] sm:$0xff] %vm545_vm5, %v4742_v6  ;;  %v4718_v34 = vmul.f32 %v6088_v31, %v4670_v15  ;;  %v4740_v54 = vadd.f32 %v4724_v50, %v4708_v2  ;;  %v4729_v6 = vld [vmem:[%s6267_s21 + $0x48] sm:$0xff] }
 0x2cc   : > { %v4711_v48 = vmul.f32 %v6090_v17, %v4663_v28  ;;  %v6092_v35 = vpop.eup %6091  ;;  %v4681_v27 = vadd.f32 1.0, %v4633_v20  ;;  %v5302_v14 = vadd.f32 -1.0, %v4633_v20  ;;  %v4667_v0 = vmul.f32 %v5304_v60, %v7430_v33 }
 0x2cd   : > { %v4750_v52 = vadd.f32 %v4734_v21, %v4718_v34  ;;  %4756 = vst.msk [vmem:[%s7454_s12 + $0x20] sm:$0xff] %vm545_vm5, %v4740_v54  ;;  %v4716_v12 = vmul.f32 %v6092_v35, %v4668_v5  ;;  %v6094_v49 = vpop.eup %6093 }
 0x2ce   : > { %v4743_v25 = vadd.f32 %v4727_v44, %v4711_v48  ;;  %6105 = vrcp.f32 %v4681_v27  ;;  %v4709_v41 = vmul.f32 %v6094_v49, %v4661_v26  ;;  %v4665_v57 = vmul.f32 %v5302_v14, %v7435_v16 }
 0x2cf   : > { %4766 = vst.msk [vmem:[%s7454_s12 + $0x70] sm:$0xff] %vm545_vm5, %v4750_v52  ;;  %v6096_v43 = vpop.eup %6095  ;;  %v4748_v8 = vadd.f32 %v4732_v40, %v4716_v12 }
 0x2d0   : > { %4759 = vst.msk [vmem:[%s7454_s12 + $0x38] sm:$0xff] %vm545_vm5, %v4743_v25  ;;  %v4719_v47 = vmul.f32 %v6096_v43, %v4671_v9  ;;  %v4741_v39 = vadd.f32 %v4725_v24, %v4709_v41 }
 0x2d1   : > { %4764 = vst.msk [vmem:[%s7454_s12 + $0x60] sm:$0xff] %vm545_vm5, %v4748_v8  ;;  %v6098_v51 = vpop.eup %6097 }
 0x2d2   : > { %v4751_v62 = vadd.f32 %v4735_v19, %v4719_v47  ;;  %4757 = vst.msk [vmem:[%s7454_s12 + $0x28] sm:$0xff] %vm545_vm5, %v4741_v39  ;;  %v4717_v42 = vmul.f32 %v6098_v51, %v4669_v4 }
 0x2d3   : > { %v6100_v53 = vpop.eup %6099 }
 0x2d4   : > { %4767 = vst.msk [vmem:[%s7454_s12 + $0x78] sm:$0xff] %vm545_vm5, %v4751_v62  ;;  %v4714_v22 = vmul.f32 %v6100_v53, %v4666_v3  ;;  %v4749_v18 = vadd.f32 %v4733_v36, %v4717_v42 }
 0x2d5   : > { %v6102_v11 = vpop.eup %6101 }
 0x2d6   : > { %v4746_v46 = vadd.f32 %v4730_v45, %v4714_v22  ;;  %4765 = vst.msk [vmem:[%s7454_s12 + $0x68] sm:$0xff] %vm545_vm5, %v4749_v18  ;;  %v4712_v56 = vmul.f32 %v6102_v11, %v4664_v7  ;;  %v6104_v58 = vpop.eup %6103 }
 0x2d7   : > { %v4715_v29 = vmul.f32 %v6104_v58, %v4667_v0 }
 0x2d8   : > { %4762 = vst.msk [vmem:[%s7454_s12 + $0x50] sm:$0xff] %vm545_vm5, %v4746_v46  ;;  %v4744_v55 = vadd.f32 %v4728_v30, %v4712_v56 }
 0x2d9   : > { %v4747_v1 = vadd.f32 %v4731_v59, %v4715_v29 }
 0x2da   : > { %4760 = vst.msk [vmem:[%s7454_s12 + $0x40] sm:$0xff] %vm545_vm5, %v4744_v55 }
 0x2db   : > { %v6106_v32 = vpop.eup %6105  ;;  %4763 = vst.msk [vmem:[%s7454_s12 + $0x58] sm:$0xff] %vm545_vm5, %v4747_v1 }
 0x2dc   : > { %v4713_v15 = vmul.f32 %v6106_v32, %v4665_v57 }
 0x2de   : > { %v4745_v50 = vadd.f32 %v4729_v6, %v4713_v15 }
 0x2e0   : > { %4761 = vst.msk [vmem:[%s7454_s12 + $0x48] sm:$0xff] %vm545_vm5, %v4745_v50 }
 0x2e1 PF: > { %s17_s28 = sadd.s32 1, %s6146_s28   ;;  %s7569_s24 = smov %s6138_s26 }
 0x2e2   : > { %p14_p12 = scmp.ge.s32.totalorder %s17_s28, 6   ;;  %s7570_s25 = smov %s6142_s27 }
 0x2e3   : > { %s7571_s26 = smov %s7574_s29  ;;  %s7572_s27 = smov %s7578_s30 }
 0x2e4   :  { %16 = sbr.rel (!%p14_p12) target bundleno = 3 (0x3), region = 95 }

// kernel: tpu_custom_call.1
= control target key start
LH: loop header
LB: loop body
LE: loop exit
PB: predicated region body
PF: predicated region fallthrough
CT: control target
= control target key end

     0   :  { %s6190_s24 = smov 0   ;;  %s6192_s25 = smov 0   ;;  %s7548_s0 = inlined_call_operand.vmem [shape: f32[2,16,16,4], index: 0, kind: input, shape index: {}]   ;;  %s7549_s1 = inlined_call_operand.vmem [shape: f32[2,16,16,4], index: 1, kind: input, shape index: {}]   ;;  %s7550_s2 = inlined_call_operand.vmem [shape: f32[2,16,16,4], index: 2, kind: input, shape index: {}]   ;;  %s7551_s3 = inlined_call_operand.vmem [shape: bf16[4,128], index: 3, kind: input, shape index: {}]   ;;  %s7552_s4 = inlined_call_operand.vmem [shape: f32[1,128], index: 4, kind: input, shape index: {}]   ;;  %s7553_s5 = inlined_call_operand.vmem [shape: bf16[9,128,4], index: 5, kind: input, shape index: {}]   ;;  %s7554_s6 = inlined_call_operand.vmem [shape: f32[1,4], index: 6, kind: input, shape index: {}]   ;;  %s7555_s7 = inlined_call_operand.vmem [shape: f32[2,16,16,4], index: 7, kind: output, shape index: {}]  }
   0x1   :  { %s6194_s26 = smov 0   ;;  %s6196_s27 = smov 0  }
   0x2   :  { %s6198_s28 = smov 0  }
   0x3 LB: > { %s26_s29 = sadd.s32 1, %s6138_s26  ;;  %s29_s30 = sadd.s32 1, %s6142_s27  ;;  %s6146_s28 = sphi %s6198_s28, %s17_s28   ;;  %s6142_s27 = sphi %s6196_s27, %s7572_s27   ;;  %s6138_s26 = sphi %s6194_s26, %s7571_s26   ;;  %s6134_s25 = sphi %s6192_s25, %s7570_s25   ;;  %s6130_s24 = sphi %s6190_s24, %s7569_s24  }
   0x4   : > { %p27_p0 = scmp.ge.s32.totalorder %s26_s29, 2  ;;  %p4919_p1 = scmp.ge.s32.totalorder %s6146_s28, 1 }
   0x5   : > { %p323_p2 = scmp.lt.s32.totalorder %s6146_s28, 5 }
   0x6   : > { %s7574_s29 = smov (%p27_p0, %s26_s29), 0  ;;  %s7576_s30 = smov (!%p27_p0, %s29_s30), %s6142_s27 }
   0x7   : > { %p324_p3 = pnand %p4919_p1, %p323_p2  ;;  %p31_p4 = scmp.ge.s32.totalorder %s7576_s30, 2 }
   0x8   : > { %s6226_s10 = sshll.u32 (!%p324_p3), %s6130_s24, 3  ;;  %p392_p5 = scmp.lt.s32.totalorder (!%p324_p3), %s6134_s25, 1 }
   0x9   : > { %s7578_s30 = smov (%p31_p4, %s7576_s30), 0  ;;  %327 = sbr.rel (%p324_p3) target bundleno = 737 (0x2e1), region = 48 }
   0xa   : > { %p394_p6 = scmp.lt.s32.totalorder (!%p324_p3), %s6226_s10, 15  ;;  %s6233_s11 = sadd.s32 (!%p324_p3), 4294967295, %s6226_s10 }
   0xb   : > { %p404_p7 = scmp.gt.s32.totalorder (!%p324_p3), %s6233_s11, 0  ;;  %p4926_p8 = scmp.lt.s32.totalorder (!%p324_p3), %s6233_s11, 15 }
   0xc   : > { %s420_s16 = sadd.s32 (!%p324_p3), 8, %s6226_s10  ;;  %p1100_p10 = scmp.gt.s32.totalorder (!%p324_p3), %s6130_s24, 0 }
   0xd   : > { %p6258_p9 = scmp.lt.s32.totalorder (!%p324_p3), %s420_s16, 15  ;;  %p1206_p11 = scmp.lt.s32.totalorder (!%p324_p3), %s6130_s24, 1 }
   0xe   : > { %v448_v0 = vld [vmem:[%s7551_s3] sm:$0x3]  ;;  %vm570_vm0 = vcmask 1041408   ;;  %v6148_v2 = vmov 0.0   ;;  %vm450_vm1 = vcmask 1040384   ;;  %s7580_s25 = smov (!%p392_p5, %s6134_s25), 1 }
   0xf   : > { %v6228_v1 = vsel %vm570_vm0, %v448_v0, 0  ;;  %5824 = vmatprep.subr.msk.bf16.mxu0 %vm570_vm0, %v448_v0  ;;  %5508 = vmatprep.subr.bf16.mxu1 %v6148_v2  ;;  %vm451_vm2 = vsmask.f32 256  ;;  %v459_v3 = vld [vmem:[#allocation2 + $0x18] sm:$0x1]  ;;  %s395_s12 = scalar_select %p394_p6, %s6226_s10, 15 }
  0x10   : > { %5491 = vmatpush3.bf16.msra.mxu0 %v6228_v1  ;;  %5509 = vmatpush3.bf16.msra.mxu1 %v6228_v1  ;;  %vm6149_vm3 = vmmov 0   ;;  %vm6243_vm4 = vmand %vm450_vm1, %vm451_vm2  ;;  %s6247_s13 = sshll.u32 %s7580_s25, 5  ;;  %vm545_vm5 = vcmask 31744   ;;  %s7582_s16 = smov (!%p6258_p9, %s420_s16), 15  ;;  %vm483_vm6 = vsmask.f32 7938 }
  0x11   : > { %5510 = vmatprep.mubr.msk.bf16.mxu1 %vm6149_vm3, %v6148_v2  ;;  %5514 = vmatprep.subr.bf16.mxu1 %v6148_v2  ;;  %v460_v5 = vsel %vm6243_vm4, 0, %v459_v3  ;;  %s4921_s14 = sshll.u32 %s395_s12, 1  ;;  %s7586_s16 = smov (!%p6258_p9, %s7582_s16), 15  ;;  %vm6317_vm7 = vmand %vm450_vm1, %vm483_vm6  ;;  %v456_v37 = vld [vmem:[#allocation2 + $0xc] sm:$0x1]  ;;  %v5867_v61 = vld [vmem:[%s7553_s5 + $0x38] sm:$0xff]  }
  0x12   : > { %461 = vst [vmem:[#allocation2 + $0x18] sm:$0x1] %v460_v5  ;;  %s6254_s15 = sadd.s32 %s6247_s13, %s4921_s14  ;;  %s4938_s8 = sshll.u32 %s7586_s16, 1  ;;  %v457_v38 = vsel %vm6243_vm4, 0, %v456_v37  ;;  %v453_v39 = vld [vmem:[#allocation2] sm:$0x1]  ;;  %5520 = vmatprep.subr.bf16.mxu0 %v5867_v61 }
  0x13   : > { %s4923_s17 = sshll.u32 %s6254_s15, 3  ;;  %s429_s10 = sadd.s32 %s4938_s8, %s6247_s13  ;;  %458 = vst [vmem:[#allocation2 + $0xc] sm:$0x1] %v457_v38  ;;  %v491_v40 = vld [vmem:[#allocation2 + $0x20] sm:$0x1]  ;;  %v454_v41 = vsel %vm6243_vm4, 0, %v453_v39 }
  0x14   : > { %s6267_s21 = scalar_lea.vmem %s7548_s0, %s4923_s17  ;;  %s4940_s18 = sshll.u32 %s429_s10, 3  ;;  %v492_v42 = vsel %vm6317_vm7, 0, %v491_v40  ;;  %455 = vst [vmem:[#allocation2] sm:$0x1] %v454_v41  ;;  %v488_v43 = vld [vmem:[#allocation2 + $0x14] sm:$0x1] }
  0x15   : > { %v515_v6 = vld [vmem:[%s6267_s21] sm:$0xff]  ;;  %v516_v7 = vld [vmem:[%s6267_s21 + $0x8] sm:$0xff]  ;;  %v517_v8 = vld [vmem:[%s6267_s21 + $0x10] sm:$0xff]  ;;  %s405_s22 = scalar_select %p404_p7, %s6233_s11, 0  ;;  %493 = vst [vmem:[#allocation2 + $0x20] sm:$0x1] %v492_v42 }
  0x16   : > { %v531_v9 = vpack.c.bf16 %v516_v7, %v515_v6  ;;  %v518_v10 = vld [vmem:[%s6267_s21 + $0x18] sm:$0xff]  ;;  %v519_v11 = vld [vmem:[%s6267_s21 + $0x20] sm:$0xff]  ;;  %v520_v12 = vld [vmem:[%s6267_s21 + $0x28] sm:$0xff]  ;;  %v489_v44 = vsel %vm6317_vm7, 0, %v488_v43  ;;  %s6468_s19 = scalar_select %p1206_p11, 1, 0 }
  0x17   : > { %v532_v13 = vpack.c.bf16 %v518_v10, %v517_v8  ;;  %s7584_s22 = smov (!%p4926_p8, %s405_s22), 15  ;;  %v533_v14 = vpack.c.bf16 %v520_v12, %v519_v11  ;;  %v521_v15 = vld [vmem:[%s6267_s21 + $0x30] sm:$0xff]  ;;  %v522_v16 = vld [vmem:[%s6267_s21 + $0x38] sm:$0xff]  ;;  %v523_v17 = vld [vmem:[%s6267_s21 + $0x40] sm:$0xff]  ;;  %490 = vst [vmem:[#allocation2 + $0x14] sm:$0x1] %v489_v44  ;;  %s7454_s12 = scalar_lea.vmem %s7555_s7, %s4923_s17 }
  0x18   : > { %5492 = vmatprep.mubr.msk.bf16.mxu0 %vm545_vm5, %v531_v9  ;;  %s4931_s23 = sshll.u32 %s7584_s22, 1  ;;  %v524_v18 = vld [vmem:[%s6267_s21 + $0x48] sm:$0xff]  ;;  %v534_v21 = vpack.c.bf16 %v522_v16, %v521_v15  ;;  %s431_s22 = scalar_lea.vmem %s7550_s2, %s4940_s18  ;;  %v525_v26 = vld [vmem:[%s6267_s21 + $0x50] sm:$0xff]  ;;  %v526_v27 = vld [vmem:[%s6267_s21 + $0x58] sm:$0xff]  ;;  %vm1042_vm8 = vcmask 1043456   ;;  %vm2063_vm15 = vcmask 1042432  }
  0x19   : > { %5493 = vmatmul.mubr.msk.bf16.vlgmr.msra.gmra.mxu0 %vm545_vm5, %v532_v13  ;;  %s412_s25 = sadd.s32 %s4931_s23, %s6247_s13  ;;  %v535_v23 = vpack.c.bf16 %v524_v18, %v523_v17  ;;  %v1209_v24 = vld [vmem:[%s431_s22] sm:$0xff]  ;;  %v1210_v25 = vld [vmem:[%s431_s22 + $0x8] sm:$0xff]  ;;  %v536_v31 = vpack.c.bf16 %v526_v27, %v525_v26  ;;  %v529_v33 = vld [vmem:[%s6267_s21 + $0x70] sm:$0xff]  ;;  %s1208_s20 = scvt.s32.f32 %s6468_s19  ;;  %vm879_vm9 = vsmask.f32 4368  ;;  %vm2064_vm0 = vcmask 1046532  }
  0x1a   : > { %5496 = vmatprep.mubr.msk.bf16.mxu0 %vm545_vm5, %v533_v14  ;;  %s4933_s9 = sshll.u32 %s412_s25, 3  ;;  %v527_v28 = vld [vmem:[%s6267_s21 + $0x60] sm:$0xff]  ;;  %v528_v29 = vld [vmem:[%s6267_s21 + $0x68] sm:$0xff]  ;;  %v1211_v30 = vpack.c.bf16 %v1210_v25, %v1209_v24  ;;  %v530_v34 = vld [vmem:[%s6267_s21 + $0x78] sm:$0xff]  ;;  %5521 = vmatpush3.bf16.msra.mxu0 %v5867_v61  ;;  %vm1578_vm12 = vsmask.f32 3328 }
  0x1b   : > { %s414_s14 = scalar_lea.vmem %s7549_s1, %s4933_s9  ;;  %v537_v32 = vpack.c.bf16 %v528_v29, %v527_v28  ;;  %v538_v35 = vpack.c.bf16 %v530_v34, %v529_v33  ;;  %v485_v45 = vld [vmem:[#allocation2 + $0x8] sm:$0x1]  ;;  %v465_v47 = vld [vmem:[#allocation2 + $0x30] sm:$0x1]  ;;  %v462_v49 = vld [vmem:[#allocation2 + $0x24] sm:$0x1] }
  0x1c   : > { %v1103_v19 = vld [vmem:[%s414_s14] sm:$0xff]  ;;  %v1104_v20 = vld [vmem:[%s414_s14 + $0x8] sm:$0xff]  ;;  %v486_v46 = vsel %vm6317_vm7, 0, %v485_v45  ;;  %v466_v48 = vsel %vm6243_vm4, 0, %v465_v47  ;;  %v463_v50 = vsel %vm6243_vm4, 0, %v462_v49  ;;  %v5868_v62 = vld [vmem:[%s7553_s5 + $0x30] sm:$0xff]  }
  0x1d   : > { %v1105_v22 = vpack.c.bf16 %v1104_v20, %v1103_v19  ;;  %487 = vst [vmem:[#allocation2 + $0x8] sm:$0x1] %v486_v46  ;;  %467 = vst [vmem:[#allocation2 + $0x30] sm:$0x1] %v466_v48  ;;  %v497_v51 = vld [vmem:[#allocation2 + $0x38] sm:$0x1]  ;;  %5522 = vmatprep.subr.bf16.mxu0 %v5868_v62 }
  0x1e   : > { %464 = vst [vmem:[#allocation2 + $0x24] sm:$0x1] %v463_v50  ;;  %v498_v52 = vsel %vm6317_vm7, 0, %v497_v51  ;;  %v494_v53 = vld [vmem:[#allocation2 + $0x2c] sm:$0x1]  ;;  %5523 = vmatpush3.bf16.msra.mxu0 %v5868_v62  ;;  %v5870_v5 = vld [vmem:[%s7553_s5 + $0x78] sm:$0xff]   ;;  %vm6540_vm10 = vmand %vm1042_vm8, %vm483_vm6 }
  0x1f   : > { %5511 = vmatmul.mubr.msk.bf16.vlgmr.msra.gmra.mxu1 %vm545_vm5, %v1105_v22  ;;  %499 = vst [vmem:[#allocation2 + $0x38] sm:$0x1] %v498_v52  ;;  %v495_v54 = vsel %vm6317_vm7, 0, %v494_v53  ;;  %v471_v55 = vld [vmem:[#allocation2 + $0x48] sm:$0x1]  ;;  %v5871_v7 = vld [vmem:[%s7553_s5 + $0x20] sm:$0xff]   ;;  %vm6557_vm11 = vmor %vm451_vm2, %vm879_vm9 }
  0x20   : > { %5515 = vmatpush3.bf16.msra.mxu1 %v6228_v1  ;;  %5516 = vmatprep.mubr.msk.bf16.mxu1 %vm6149_vm3, %v6148_v2  ;;  %496 = vst [vmem:[#allocation2 + $0x2c] sm:$0x1] %v495_v54  ;;  %v472_v56 = vsel %vm6243_vm4, 0, %v471_v55  ;;  %v468_v57 = vld [vmem:[#allocation2 + $0x3c] sm:$0x1]  ;;  %v5869_v3 = vld [vmem:[%s7553_s5 + $0x28] sm:$0xff]   ;;  %vm6805_vm1 = vmor %vm2063_vm15, %vm2064_vm0 }
  0x21   : > { %5497 = vmatmul.mubr.msk.bf16.gmra.mxu0 %vm545_vm5, %v534_v21  ;;  %473 = vst [vmem:[#allocation2 + $0x48] sm:$0x1] %v472_v56  ;;  %v469_v58 = vsel %vm6243_vm4, 0, %v468_v57  ;;  %v503_v59 = vld [vmem:[#allocation2 + $0x50] sm:$0x1]  ;;  %5524 = vmatprep.subr.bf16.mxu0 %v5869_v3  ;;  %v5873_v10 = vld [vmem:[%s7553_s5 + $0x18] sm:$0xff]  }
  0x22   : > { %5500 = vmatprep.mubr.msk.bf16.mxu0 %vm545_vm5, %v535_v23  ;;  %470 = vst [vmem:[#allocation2 + $0x3c] sm:$0x1] %v469_v58  ;;  %v504_v60 = vsel %vm6317_vm7, 0, %v503_v59  ;;  %v500_v63 = vld [vmem:[#allocation2 + $0x44] sm:$0x1]  ;;  %5525 = vmatpush3.bf16.msra.mxu0 %v5869_v3  ;;  %v5872_v9 = vld [vmem:[%s7553_s5 + $0x70] sm:$0xff]  }
  0x23   : > { %505 = vst [vmem:[#allocation2 + $0x50] sm:$0x1] %v504_v60  ;;  %v501_v0 = vsel %vm6317_vm7, 0, %v500_v63  ;;  %v477_v1 = vld [vmem:[#allocation2 + $0x60] sm:$0x1]  ;;  %5552 = vmatprep.subr.bf16.mxu1 %v5870_v5  ;;  %5526 = vmatprep.subr.bf16.mxu0 %v5871_v7  ;;  %v5874_v11 = vld [vmem:[%s7553_s5 + $0x68] sm:$0xff]  }
  0x24   : > { %502 = vst [vmem:[#allocation2 + $0x44] sm:$0x1] %v501_v0  ;;  %v478_v2 = vsel %vm6243_vm4, 0, %v477_v1  ;;  %v474_v6 = vld [vmem:[#allocation2 + $0x54] sm:$0x1]  ;;  %v5876_v13 = vld [vmem:[%s7553_s5 + $0x60] sm:$0xff]  }
  0x25   : > { %479 = vst [vmem:[#allocation2 + $0x60] sm:$0x1] %v478_v2  ;;  %v475_v8 = vsel %vm6243_vm4, 0, %v474_v6  ;;  %v5875_v12 = vld [vmem:[%s7553_s5 + $0x10] sm:$0xff]   ;;  %v5877_v14 = vld [vmem:[%s7553_s5 + $0x8] sm:$0xff]   ;;  %v5878_v15 = vld [vmem:[%s7553_s5 + $0x58] sm:$0xff]  }
  0x26   : > { %476 = vst [vmem:[#allocation2 + $0x54] sm:$0x1] %v475_v8  ;;  %5527 = vmatpush3.bf16.msra.mxu0 %v5871_v7  ;;  %v5879_v16 = vld [vmem:[%s7553_s5] sm:$0xff]   ;;  %v5880_v17 = vld [vmem:[%s7553_s5 + $0x50] sm:$0xff]   ;;  %v509_v18 = vld [vmem:[#allocation2 + $0x68] sm:$0x1] }
  0x27   : > { %5517 = vmatmul.mubr.msk.bf16.vlgmr.msra.gmra.mxu1 %vm545_vm5, %v1211_v30  ;;  %5528 = vmatprep.subr.bf16.mxu0 %v5873_v10  ;;  %v510_v19 = vsel %vm6317_vm7, 0, %v509_v18  ;;  %v6398_v20 = vld [vmem:[%s7553_s5 + $0xb8] sm:$0xff]   ;;  %v5885_v21 = vld [vmem:[%s7553_s5 + $0x48] sm:$0xff]   ;;  %v5887_v24 = vld [vmem:[%s7553_s5 + $0x40] sm:$0xff]   ;;  %s6460_s18 = scalar_select %p1100_p10, 1, 0 }
  0x28   : > { %5553 = vmatpush3.bf16.msra.mxu1 %v5870_v5  ;;  %511 = vst [vmem:[#allocation2 + $0x68] sm:$0x1] %v510_v19  ;;  %v506_v22 = vld [vmem:[#allocation2 + $0x5c] sm:$0x1]  ;;  %v6415_v26 = vld [vmem:[%s7552_s4] ss:$0 sm:$0xff] }
  0x29   : > { %5501 = vmatmul.mubr.msk.bf16.gmra.mxu0 %vm545_vm5, %v536_v31  ;;  %5554 = vmatprep.subr.bf16.mxu1 %v5872_v9  ;;  %v507_v23 = vsel %vm6317_vm7, 0, %v506_v22  ;;  %v5891_v25 = vld [vmem:[%s7553_s5 + $0xf8] sm:$0xff]   ;;  %v480_v28 = vld [vmem:[#allocation2 + $0x6c] sm:$0x1]  ;;  %v512_v29 = vld [vmem:[#allocation2 + $0x74] sm:$0x1]  ;;  %s1102_s24 = scvt.s32.f32 %s6460_s18 }
  0x2a   : > { %5504 = vmatprep.mubr.msk.bf16.mxu0 %vm545_vm5, %v537_v32  ;;  %5529 = vmatpush3.bf16.msra.mxu0 %v5873_v10  ;;  %508 = vst [vmem:[#allocation2 + $0x5c] sm:$0x1] %v507_v23  ;;  %v481_v31 = vsel %vm6243_vm4, 0, %v480_v28  ;;  %v513_v32 = vsel %vm6317_vm7, 0, %v512_v29  ;;  %vm1579_vm13 = vsmask.f32 7440 }
  0x2b   : > { %5530 = vmatprep.subr.bf16.mxu0 %v5875_v12  ;;  %482 = vst [vmem:[#allocation2 + $0x6c] sm:$0x1] %v481_v31  ;;  %514 = vst [vmem:[#allocation2 + $0x74] sm:$0x1] %v513_v32 }
  0x2c   : > { %5555 = vmatpush3.bf16.msra.mxu1 %v5872_v9  ;;  %vm6651_vm14 = vmor %vm1578_vm12, %vm1579_vm13 }
  0x2d   : > { %5556 = vmatprep.subr.bf16.mxu1 %v5874_v11 }
  0x2e   : > { %5531 = vmatpush3.bf16.msra.mxu0 %v5875_v12 }
  0x2f   : > { %5532 = vmatprep.subr.bf16.mxu0 %v5877_v14 }
  0x30   : > { %5557 = vmatpush3.bf16.msra.mxu1 %v5874_v11 }
  0x31   : > { %5505 = vmatmul.mubr.msk.bf16.gmra.mxu0 %vm545_vm5, %v538_v35  ;;  %5558 = vmatprep.subr.bf16.mxu1 %v5876_v13 }
  0x32   : > { %5533 = vmatpush3.bf16.msra.mxu0 %v5877_v14 }
  0x33   : > { %5534 = vmatprep.subr.bf16.mxu0 %v5879_v16 }
  0x34   : > { %5559 = vmatpush3.bf16.msra.mxu1 %v5876_v13 }
  0x35   : > { %5560 = vmatprep.subr.bf16.mxu1 %v5878_v15 }
  0x36   : > { %5535 = vmatpush3.bf16.msra.mxu0 %v5879_v16 }
  0x37   : > { %5584 = vmatprep.subr.bf16.mxu0 %v6398_v20 }
  0x38   : > { %5561 = vmatpush3.bf16.msra.mxu1 %v5878_v15 }
  0x39   : > { %5562 = vmatprep.subr.bf16.mxu1 %v5880_v17 }
  0x3c   : > { %5563 = vmatpush3.bf16.msra.mxu1 %v5880_v17 }
  0x3d   : > { %5564 = vmatprep.subr.bf16.mxu1 %v5885_v21 }
  0x40   : > { %5565 = vmatpush3.bf16.msra.mxu1 %v5885_v21 }
  0x41   : > { %5566 = vmatprep.subr.bf16.mxu1 %v5887_v24 }
  0x44   : > { %5567 = vmatpush3.bf16.msra.mxu1 %v5887_v24 }
  0x45   : > { %5616 = vmatprep.subr.bf16.mxu1 %v5891_v25 }
  0xd9   : > { %v5494_v27 = vpop.f32.mrf.mxu0 }
  0xda   : > { %v6418_v30 = vadd.f32 %v5494_v27, %v6415_v26 }
  0xdb   : > { %v608_v33 = vpop.f32.mrf.mxu0 }
  0xdc   : > { %v673_v34 = vmin.f32 %v6418_v30, 20.0  ;;  %v6426_v35 = vadd.f32 %v6415_v26, %v608_v33 }
  0xdd   : > { %v5495_v37 = vpop.f32.mrf.mxu0 }
  0xde   : > { %v691_v38 = vmul.f32 1.442695, %v673_v34  ;;  %v671_v39 = vmin.f32 %v6426_v35, 20.0  ;;  %v6430_v40 = vadd.f32 %v5495_v37, %v6415_v26 }
  0xdf   : > { %v611_v41 = vpop.f32.mrf.mxu0  ;;  %v1143_v42 = vpop.f32.mrf.mxu1 }
  0xe0   : > { %5963 = vpow2.f32 %v691_v38  ;;  %v687_v36 = vmul.f32 1.442695, %v671_v39  ;;  %v674_v43 = vmin.f32 %v6430_v40, 20.0  ;;  %v6434_v44 = vadd.f32 %v6415_v26, %v611_v41 }
  0xe1   : > { %v6437_v45 = vadd.f32 %v6415_v26, %v1143_v42  ;;  %v5498_v46 = vpop.f32.mrf.mxu0  ;;  %v5512_v48 = vpop.f32.mrf.mxu1 }
  0xe2   : > { %5965 = vpow2.f32 %v687_v36  ;;  %v693_v47 = vmul.f32 1.442695, %v674_v43  ;;  %v672_v49 = vmin.f32 %v6434_v44, 20.0  ;;  %v6441_v50 = vadd.f32 %v5498_v46, %v6415_v26 }
  0xe3   : > { %v1150_v51 = vmin.f32 %v6437_v45, 20.0  ;;  %v624_v52 = vpop.f32.mrf.mxu0  ;;  %v1146_v54 = vpop.f32.mrf.mxu1  ;;  %v6492_v36 = vstv %s1102_s24  ;;  %v6498_v46 = vstv %s1208_s20 }
  0xe4   : > { %5967 = vpow2.f32 %v693_v47  ;;  %v689_v53 = vmul.f32 1.442695, %v672_v49  ;;  %v677_v55 = vmin.f32 %v6441_v50, 20.0  ;;  %v6447_v56 = vadd.f32 %v6415_v26, %v624_v52 }
  0xe5   : > { %v1152_v57 = vmul.f32 1.442695, %v1150_v51  ;;  %v6450_v58 = vadd.f32 %v6415_v26, %v1146_v54  ;;  %v5499_v59 = vpop.f32.mrf.mxu0  ;;  %v5513_v61 = vpop.f32.mrf.mxu1 }
  0xe6   : > { %5969 = vpow2.f32 %v689_v53  ;;  %v699_v60 = vmul.f32 1.442695, %v677_v55  ;;  %v675_v62 = vmin.f32 %v6447_v56, 20.0  ;;  %v6455_v63 = vadd.f32 %v5499_v59, %v6415_v26 }
  0xe7   : > { %5971 = vpow2.f32 %v1152_v57  ;;  %v1151_v0 = vmin.f32 %v6450_v58, 20.0  ;;  %v627_v1 = vpop.f32.mrf.mxu0  ;;  %v1249_v6 = vpop.f32.mrf.mxu1 }
  0xe8   : > { %5973 = vpow2.f32 %v699_v60  ;;  %v695_v2 = vmul.f32 1.442695, %v675_v62  ;;  %v678_v3 = vmin.f32 %v6455_v63, 20.0  ;;  %v6464_v5 = vadd.f32 %v6415_v26, %v627_v1 }
  0xe9   : > { %v1154_v7 = vmul.f32 1.442695, %v1151_v0  ;;  %v5502_v8 = vpop.f32.mrf.mxu0  ;;  %v6471_v9 = vadd.f32 %v6415_v26, %v1249_v6  ;;  %v5518_v13 = vpop.f32.mrf.mxu1 }
  0xea   : > { %5975 = vpow2.f32 %v695_v2  ;;  %v701_v10 = vmul.f32 1.442695, %v678_v3  ;;  %v676_v11 = vmin.f32 %v6464_v5, 20.0  ;;  %v6475_v12 = vadd.f32 %v5502_v8, %v6415_v26 }
  0xeb   : > { %5977 = vpow2.f32 %v1154_v7  ;;  %v640_v14 = vpop.f32.mrf.mxu0  ;;  %v1256_v15 = vmin.f32 %v6471_v9, 20.0  ;;  %v1252_v19 = vpop.f32.mrf.mxu1 }
  0xec   : > { %v697_v16 = vmul.f32 1.442695, %v676_v11  ;;  %v681_v17 = vmin.f32 %v6475_v12, 20.0  ;;  %v6480_v18 = vadd.f32 %v6415_v26, %v640_v14  ;;  %5979 = vpow2.f32 %v701_v10 }
  0xed   : > { %v5964_v21 = vpop.eup %5963  ;;  %v5503_v22 = vpop.f32.mrf.mxu0  ;;  %v1258_v23 = vmul.f32 1.442695, %v1256_v15  ;;  %v6485_v24 = vadd.f32 %v6415_v26, %v1252_v19 }
  0xee   : > { %v721_v25 = vadd.f32 1.0, %v5964_v21  ;;  %5981 = vpow2.f32 %v697_v16  ;;  %v707_v27 = vmul.f32 1.442695, %v681_v17  ;;  %v679_v28 = vmin.f32 %v6480_v18, 20.0  ;;  %v5519_v29 = vpop.f32.mrf.mxu1 }
  0xef   : > { %v5966_v31 = vpop.eup %5965  ;;  %v6489_v32 = vadd.f32 %v5503_v22, %v6415_v26  ;;  %v643_v33 = vpop.f32.mrf.mxu0  ;;  %v1257_v34 = vmin.f32 %v6485_v24, 20.0 }
  0xf0   : > { %v737_v37 = vmul.f32 %v721_v25, %v721_v25  ;;  %v719_v38 = vadd.f32 1.0, %v5966_v31  ;;  %5983 = vpow2.f32 %v707_v27  ;;  %v703_v39 = vmul.f32 1.442695, %v679_v28 }
  0xf1   : > { %v5968_v41 = vpop.eup %5967  ;;  %v682_v42 = vmin.f32 %v6489_v32, 20.0  ;;  %v6496_v43 = vadd.f32 %v6415_v26, %v643_v33  ;;  %5985 = vpow2.f32 %v1258_v23  ;;  %v5506_v54 = vpop.f32.mrf.mxu0  ;;  %v6501_v55 = vmul.f32 1.442695, %v1257_v34 }
  0xf2   : > { %v785_v47 = vadd.f32 1.0, %v737_v37  ;;  %v735_v48 = vmul.f32 %v719_v38, %v719_v38  ;;  %v722_v49 = vadd.f32 1.0, %v5968_v41  ;;  %5987 = vpow2.f32 %v703_v39 }
  0xf3   : > { %v5970_v51 = vpop.eup %5969  ;;  %v709_v52 = vmul.f32 1.442695, %v682_v42  ;;  %v680_v53 = vmin.f32 %v6496_v43, 20.0  ;;  %v4956_v59 = vadd.f32 -1.0, %v737_v37  ;;  %v6504_v7 = vadd.f32 %v5506_v54, %v6415_v26 }
  0xf4   : > { %v5972_v57 = vpop.eup %5971  ;;  %5989 = vrcp.f32 %v785_v47  ;;  %v4954_v60 = vadd.f32 -1.0, %v735_v48  ;;  %v783_v61 = vadd.f32 1.0, %v735_v48  ;;  %v738_v1 = vmul.f32 %v722_v49, %v722_v49 }
  0xf5   : > { %v5974_v62 = vpop.eup %5973  ;;  %v1156_v0 = vadd.f32 1.0, %v5972_v57  ;;  %v720_v2 = vadd.f32 1.0, %v5970_v51  ;;  %5991 = vpow2.f32 %v709_v52  ;;  %v705_v6 = vmul.f32 1.442695, %v680_v53 }
  0xf6   : > { %5993 = vrcp.f32 %v783_v61  ;;  %v725_v3 = vadd.f32 1.0, %v5974_v62  ;;  %v4957_v11 = vadd.f32 -1.0, %v738_v1  ;;  %v786_v13 = vadd.f32 1.0, %v738_v1 }
  0xf7   : > { %v5976_v8 = vpop.eup %5975  ;;  %v1158_v10 = vmul.f32 %v1156_v0, %v1156_v0  ;;  %v736_v14 = vmul.f32 %v720_v2, %v720_v2  ;;  %v769_v16 = vmul.f32 %v4956_v59, %v6418_v30  ;;  %5995 = vpow2.f32 %v705_v6 }
  0xf8   : > { %v5978_v15 = vpop.eup %5977  ;;  %v741_v17 = vmul.f32 %v725_v3, %v725_v3  ;;  %v723_v19 = vadd.f32 1.0, %v5976_v8  ;;  %v767_v21 = vmul.f32 %v4954_v60, %v6426_v35  ;;  %5997 = vrcp.f32 %v786_v13 }
  0xf9   : > { %v4987_v22 = vadd.f32 -1.0, %v1158_v10  ;;  %v1164_v23 = vadd.f32 1.0, %v1158_v10  ;;  %v5980_v25 = vpop.eup %5979  ;;  %v6509_v27 = vmul.f32 %v4957_v11, %v6430_v40  ;;  %v784_v28 = vadd.f32 1.0, %v736_v14 }
  0xfa   : > { %v1157_v29 = vadd.f32 1.0, %v5978_v15  ;;  %v685_v31 = vmin.f32 %v6504_v7, 20.0  ;;  %v4955_v34 = vadd.f32 -1.0, %v736_v14  ;;  %v789_v30 = vadd.f32 1.0, %v741_v17 }
  0xfb   : > { %v5982_v33 = vpop.eup %5981  ;;  %5999 = vrcp.f32 %v1164_v23  ;;  %v739_v37 = vmul.f32 %v723_v19, %v723_v19  ;;  %v6513_v38 = vmul.f32 %v4987_v22, %v6437_v45  ;;  %v4960_v39 = vadd.f32 -1.0, %v741_v17 }
  0xfc   : > { %6001 = vrcp.f32 %v784_v28  ;;  %v1159_v35 = vmul.f32 %v1157_v29, %v1157_v29  ;;  %v726_v47 = vadd.f32 1.0, %v5980_v25  ;;  %v724_v51 = vadd.f32 1.0, %v5982_v33 }
  0xfd   : > { %v5984_v41 = vpop.eup %5983  ;;  %6003 = vrcp.f32 %v789_v30  ;;  %v4958_v42 = vadd.f32 -1.0, %v739_v37  ;;  %v787_v40 = vadd.f32 1.0, %v739_v37  ;;  %v768_v54 = vmul.f32 %v4955_v34, %v6434_v44 }
  0xfe   : > { %v4988_v48 = vadd.f32 -1.0, %v1159_v35  ;;  %v1165_v49 = vadd.f32 1.0, %v1159_v35  ;;  %v729_v52 = vadd.f32 1.0, %v5984_v41  ;;  %v6515_v53 = vpop.eup %5985  ;;  %v742_v45 = vmul.f32 %v726_v47, %v726_v47 }
  0xff   : > { %6005 = vrcp.f32 %v787_v40  ;;  %v715_v57 = vmul.f32 1.442695, %v685_v31  ;;  %v5988_v59 = vpop.eup %5987  ;;  %v773_v60 = vmul.f32 %v4960_v39, %v6441_v50  ;;  %v740_v61 = vmul.f32 %v724_v51, %v724_v51 }
 0x100   : > { %6007 = vrcp.f32 %v1165_v49  ;;  %v745_v62 = vmul.f32 %v729_v52, %v729_v52  ;;  %v6520_v1 = vmul.f32 %v4958_v42, %v6447_v56  ;;  %v4961_v2 = vadd.f32 -1.0, %v742_v45 }
 0x101   : > { %v5990_v0 = vpop.eup %5989  ;;  %v790_v3 = vadd.f32 1.0, %v742_v45  ;;  %v727_v6 = vadd.f32 1.0, %v5988_v59  ;;  %v6523_v44 = vmul.f32 %v4988_v48, %v6450_v58  ;;  %v4959_v11 = vadd.f32 -1.0, %v740_v61  ;;  %v1044_v59 = vld [vmem:[#allocation2 + $0xc] sm:$0xf] }
 0x102   : > { %v5992_v8 = vpop.eup %5991  ;;  %v817_v10 = vmul.f32 %v5990_v0, %v769_v16  ;;  %v788_v13 = vadd.f32 1.0, %v740_v61  ;;  %v4964_v15 = vadd.f32 -1.0, %v745_v62  ;;  %v793_v50 = vadd.f32 1.0, %v745_v62 }
 0x103   : > { %v5994_v14 = vpop.eup %5993  ;;  %v743_v17 = vmul.f32 %v727_v6, %v727_v6  ;;  %6009 = vpow2.f32 %v715_v57  ;;  %v6526_v56 = vmul.f32 %v4961_v2, %v6455_v63  ;;  %v6529_v16 = vmul.f32 %v4959_v11, %v6464_v5 }
 0x104   : > { %v5315_v19 = vpack.c.bf16 %v817_v10, %v817_v10  ;;  %v815_v22 = vmul.f32 %v5994_v14, %v767_v21  ;;  %6011 = vrcp.f32 %v790_v3  ;;  %v5996_v23 = vpop.eup %5995  ;;  %v730_v33 = vadd.f32 1.0, %v5992_v8 }
 0x105   : > { %6013 = vrcp.f32 %v788_v13  ;;  %v4962_v58 = vadd.f32 -1.0, %v743_v17  ;;  %v791_v25 = vadd.f32 1.0, %v743_v17  ;;  %v5998_v28 = vpop.eup %5997  ;;  %v6533_v21 = vmul.f32 %v4964_v15, %v6475_v12  ;;  %v1055_v17 = vld [vmem:[#allocation2 + $0x20] sm:$0x1] }
 0x106   : > { %v899_v29 = vshrl.u32 %v5315_v19, 16  ;;  %v5313_v31 = vpack.c.bf16 %v815_v22, %v815_v22  ;;  %6015 = vrcp.f32 %v793_v50  ;;  %v818_v34 = vmul.f32 %v5998_v28, %v6509_v27  ;;  %v1051_v27 = vld [vmem:[#allocation2 + $0x18] sm:$0xf] }
 0x107   : > { %6017 = vrcp.f32 %v791_v25  ;;  %v728_v63 = vadd.f32 1.0, %v5996_v23  ;;  %v902_v35 = vshll.u32 %v5315_v19, 16  ;;  %v6536_v39 = vmul.f32 %v4962_v58, %v6480_v18 }
 0x108   : > { %v6000_v30 = vpop.eup %5999  ;;  %v901_v37 = vrot.slane %v899_v29, 7  ;;  %v882_v5 = vshrl.u32 %v5313_v31, 16  ;;  %v885_v40 = vshll.u32 %v5313_v31, 16  ;;  %v5316_v47 = vpack.c.bf16 %v818_v34, %v818_v34 }
 0x109   : > { %v6002_v41 = vpop.eup %6001  ;;  %v1168_v12 = vmul.f32 %v6000_v30, %v6513_v38  ;;  %v6545_v48 = vmul.f32 %v730_v33, %v730_v33  ;;  %v6547_v18 = vmul.f32 %v728_v63, %v728_v63  ;;  %v656_v63 = vpop.f32.mrf.mxu0 }
 0x10a   : > { %v6004_v49 = vpop.eup %6003  ;;  %v904_v51 = vor.u32 %v902_v35, %v901_v37  ;;  %v884_v52 = vrot.slane %v882_v5, 7  ;;  %v816_v45 = vmul.f32 %v6002_v41, %v768_v54  ;;  %v905_v57 = vrot.slane %v901_v37, 4  ;;  %v1048_v5 = vld [vmem:[#allocation2 + $0x14] sm:$0x1] }
 0x10b   : > { %v1171_v61 = vmul.f32 %v6492_v36, %v1168_v12  ;;  %v907_v62 = vshrl.u32 %v5316_v47, 16  ;;  %v821_v0 = vmul.f32 %v6004_v49, %v773_v60  ;;  %v910_v6 = vshll.u32 %v5316_v47, 16 }
 0x10c   : > { %v6006_v2 = vpop.eup %6005  ;;  %v1052_v3 = vsel %vm6540_vm10, %v904_v51, %v1051_v27  ;;  %v887_v38 = vor.u32 %v885_v40, %v884_v52  ;;  %v5314_v8 = vpack.c.bf16 %v816_v45, %v816_v45  ;;  %v888_v15 = vrot.slane %v884_v52, 4  ;;  %v1199_v40 = vld [vmem:[#allocation2] sm:$0xf] }
 0x10d   : > { %v6008_v10 = vpop.eup %6007  ;;  %1053 = vst [vmem:[#allocation2 + $0x18] sm:$0xf] %v1052_v3  ;;  %v5329_v11 = vpack.c.bf16 %v1171_v61, %v1171_v61  ;;  %v909_v13 = vrot.slane %v907_v62, 7  ;;  %v5319_v54 = vpack.c.bf16 %v821_v0, %v821_v0  ;;  %v819_v14 = vmul.f32 %v6006_v2, %v6520_v1  ;;  %v1065_v3 = vld [vmem:[#allocation2 + $0x30] sm:$0xf] }
 0x10e   : > { %v1045_v50 = vsel %vm6540_vm10, %v887_v38, %v1044_v59  ;;  %v890_v19 = vshrl.u32 %v5314_v8, 16  ;;  %v1169_v22 = vmul.f32 %v6008_v10, %v6523_v44  ;;  %v893_v28 = vshll.u32 %v5314_v8, 16 }
 0x10f   : > { %1046 = vst [vmem:[#allocation2 + $0xc] sm:$0xf] %v1045_v50  ;;  %v1180_v23 = vshrl.u32 %v5329_v11, 16  ;;  %v912_v58 = vor.u32 %v910_v6, %v909_v13  ;;  %v914_v25 = vrot.slane %v909_v13, 4  ;;  %v1183_v29 = vshll.u32 %v5329_v11, 16 }
 0x110   : > { %v6562_v1 = vpop.eup %6009  ;;  %v892_v31 = vrot.slane %v890_v19, 7  ;;  %v1172_v33 = vmul.f32 %v6492_v36, %v1169_v22  ;;  %v933_v34 = vshrl.u32 %v5319_v54, 16  ;;  %v5317_v41 = vpack.c.bf16 %v819_v14, %v819_v14  ;;  %v1203_v19 = vld [vmem:[#allocation2 + $0x8] sm:$0x1] }
 0x111   : > { %v6012_v30 = vpop.eup %6011  ;;  %v1182_v37 = vrot.slane %v1180_v23, 7  ;;  %v913_v35 = vsel %vm6557_vm11, %v905_v57, %v912_v58  ;;  %v1056_v44 = vsel %vm6243_vm4, %v914_v25, %v1055_v17  ;;  %v936_v45 = vshll.u32 %v5319_v54, 16  ;;  %v1058_v54 = vld [vmem:[#allocation2 + $0x24] sm:$0xf] }
 0x112   : > { %v6014_v27 = vpop.eup %6013  ;;  %1054 = vst [vmem:[#allocation2 + $0x1c] sm:$0xf] %v913_v35  ;;  %1057 = vst [vmem:[#allocation2 + $0x20] sm:$0x1] %v1056_v44  ;;  %v895_v12 = vor.u32 %v893_v28, %v892_v31  ;;  %v897_v47 = vrot.slane %v892_v31, 4  ;;  %v5330_v49 = vpack.c.bf16 %v1172_v33, %v1172_v33  ;;  %v6569_v36 = vrot.slane %v933_v34, 7 }
 0x113   : > { %v6016_v51 = vpop.eup %6015  ;;  %v1185_v52 = vor.u32 %v1183_v29, %v1182_v37  ;;  %v916_v59 = vshrl.u32 %v5317_v41, 16  ;;  %v6572_v57 = vadd.f32 %v6415_v26, %v656_v63  ;;  %v919_v38 = vshll.u32 %v5317_v41, 16  ;;  %v1069_v35 = vld [vmem:[#allocation2 + $0x38] sm:$0x1] }
 0x114   : > { %v6018_v61 = vpop.eup %6017  ;;  %v896_v62 = vsel %vm6557_vm11, %v888_v15, %v895_v12  ;;  %v1049_v0 = vsel %vm6243_vm4, %v897_v47, %v1048_v5  ;;  %v1188_v2 = vshrl.u32 %v5330_v49, 16  ;;  %v1191_v8 = vshll.u32 %v5330_v49, 16  ;;  %v1062_v12 = vld [vmem:[#allocation2 + $0x2c] sm:$0x1] }
 0x115   : > { %v1200_v6 = vsel %vm6540_vm10, %v1185_v52, %v1199_v40  ;;  %1047 = vst [vmem:[#allocation2 + $0x10] sm:$0xf] %v896_v62  ;;  %1050 = vst [vmem:[#allocation2 + $0x14] sm:$0x1] %v1049_v0  ;;  %v938_v10 = vor.u32 %v936_v45, %v6569_v36  ;;  %v6581_v11 = vrot.slane %v916_v59, 7  ;;  %v822_v14 = vmul.f32 %v6012_v30, %v6526_v56 }
 0x116   : > { %1201 = vst [vmem:[#allocation2] sm:$0xf] %v1200_v6  ;;  %v1190_v13 = vrot.slane %v1188_v2, 7  ;;  %v820_v15 = vmul.f32 %v6014_v27, %v6529_v16  ;;  %v825_v50 = vmul.f32 %v6016_v51, %v6533_v21  ;;  %v1186_v17 = vrot.slane %v1182_v37, 4  ;;  %v1079_v0 = vld [vmem:[#allocation2 + $0x48] sm:$0xf] }
 0x117   : > { %v1066_v22 = vsel %vm6540_vm10, %v938_v10, %v1065_v3  ;;  %v921_v23 = vor.u32 %v919_v38, %v6581_v11  ;;  %v823_v58 = vmul.f32 %v6018_v61, %v6536_v39  ;;  %v5320_v29 = vpack.c.bf16 %v822_v14, %v822_v14  ;;  %v1072_v10 = vld [vmem:[#allocation2 + $0x3c] sm:$0xf] }
 0x118   : > { %v1193_v25 = vor.u32 %v1191_v8, %v1190_v13  ;;  %v1195_v28 = vrot.slane %v1190_v13, 4  ;;  %1067 = vst [vmem:[#allocation2 + $0x30] sm:$0xf] %v1066_v22  ;;  %v5318_v31 = vpack.c.bf16 %v820_v15, %v820_v15  ;;  %v939_v56 = vrot.slane %v6569_v36, 4  ;;  %v5507_v36 = vpop.f32.mrf.mxu0 }
 0x119   : > { %v1059_v16 = vsel %vm6540_vm10, %v921_v23, %v1058_v54  ;;  %v5323_v21 = vpack.c.bf16 %v825_v50, %v825_v50  ;;  %v5321_v33 = vpack.c.bf16 %v823_v58, %v823_v58  ;;  %v922_v39 = vrot.slane %v6581_v11, 4 }
 0x11a   : > { %v1194_v34 = vsel %vm6557_vm11, %v1186_v17, %v1193_v25  ;;  %v1204_v63 = vsel %vm6243_vm4, %v1195_v28, %v1203_v19  ;;  %1060 = vst [vmem:[#allocation2 + $0x24] sm:$0xf] %v1059_v16  ;;  %v941_v30 = vshrl.u32 %v5320_v29, 16  ;;  %v944_v37 = vshll.u32 %v5320_v29, 16  ;;  %v659_v15 = vpop.f32.mrf.mxu0 }
 0x11b   : > { %1202 = vst [vmem:[#allocation2 + $0x4] sm:$0xf] %v1194_v34  ;;  %1205 = vst [vmem:[#allocation2 + $0x8] sm:$0x1] %v1204_v63  ;;  %v924_v44 = vshrl.u32 %v5318_v31, 16  ;;  %v967_v5 = vshrl.u32 %v5323_v21, 16 }
 0x11c   : > { %v4965_v41 = vadd.f32 -1.0, %v6545_v48  ;;  %v943_v27 = vrot.slane %v941_v30, 7  ;;  %v927_v40 = vshll.u32 %v5318_v31, 16  ;;  %v970_v47 = vshll.u32 %v5323_v21, 16  ;;  %v5883_v16 = vld [vmem:[#allocation2 + $0xc] sm:$0xff]  }
 0x11d   : > { %v950_v49 = vshrl.u32 %v5321_v33, 16  ;;  %v926_v51 = vrot.slane %v924_v44, 7  ;;  %v6599_v52 = vrot.slane %v967_v5, 7  ;;  %v953_v45 = vshll.u32 %v5321_v33, 16  ;;  %v1554_v19 = vld [vmem:[#allocation2] sm:$0xf] }
 0x11e   : > { %v794_v59 = vadd.f32 1.0, %v6545_v48  ;;  %v946_v61 = vor.u32 %v944_v37, %v943_v27  ;;  %v948_v62 = vrot.slane %v943_v27, 4  ;;  %v792_v3 = vadd.f32 1.0, %v6547_v18  ;;  %v5888_v44 = vld [vmem:[%s7553_s5 + $0xa8] sm:$0xff]  }
 0x11f   : > { %v6602_v2 = vrot.slane %v950_v49, 7  ;;  %v929_v38 = vor.u32 %v927_v40, %v926_v51  ;;  %v931_v6 = vrot.slane %v926_v51, 4  ;;  %v972_v8 = vor.u32 %v970_v47, %v6599_v52  ;;  %v1557_v5 = vld [vmem:[#allocation2 + $0xc] sm:$0xf] }
 0x120   : > { %v4963_v11 = vadd.f32 -1.0, %v6547_v18  ;;  %v947_v13 = vsel %vm6557_vm11, %v939_v56, %v946_v61  ;;  %v1070_v48 = vsel %vm6243_vm4, %v948_v62, %v1069_v35  ;;  %v973_v54 = vrot.slane %v6599_v52, 4  ;;  %v1559_v62 = vld [vmem:[#allocation2 + $0x14] sm:$0x1] }
 0x121   : > { %v955_v14 = vor.u32 %v953_v45, %v6602_v2  ;;  %1068 = vst [vmem:[#allocation2 + $0x34] sm:$0xf] %v947_v13  ;;  %1071 = vst [vmem:[#allocation2 + $0x38] sm:$0x1] %v1070_v48  ;;  %v930_v50 = vsel %vm6557_vm11, %v922_v39, %v929_v38  ;;  %v1063_v18 = vsel %vm6243_vm4, %v931_v6, %v1062_v12  ;;  %6019 = vrcp.f32 %v794_v59  ;;  %v1558_v12 = vld [vmem:[#allocation2 + $0x10] sm:$0xf] }
 0x122   : > { %v1080_v17 = vsel %vm6540_vm10, %v972_v8, %v1079_v0  ;;  %1061 = vst [vmem:[#allocation2 + $0x28] sm:$0xf] %v930_v50  ;;  %1064 = vst [vmem:[#allocation2 + $0x2c] sm:$0x1] %v1063_v18  ;;  %v6622_v23 = vmul.f32 %v4965_v41, %v6489_v32  ;;  %6021 = vrcp.f32 %v792_v3  ;;  %v733_v58 = vadd.f32 1.0, %v6562_v1  ;;  %v5881_v25 = vld [vmem:[#allocation2] sm:$0xff]  }
 0x123   : > { %1081 = vst [vmem:[#allocation2 + $0x48] sm:$0xf] %v1080_v17  ;;  %v1073_v22 = vsel %vm6540_vm10, %v955_v14, %v1072_v10  ;;  %v1555_v28 = vld [vmem:[#allocation2 + $0x4] sm:$0xf]  ;;  %v683_v29 = vmin.f32 %v6572_v57, 20.0  ;;  %v6627_v31 = vadd.f32 %v5507_v36, %v6415_v26  ;;  %v6630_v56 = vadd.f32 %v6415_v26, %v659_v15  ;;  %v5886_v32 = vld [vmem:[%s7553_s5 + $0xb0] sm:$0xff]   ;;  %5536 = vmatprep.mubr.bf16.mxu0 %v5881_v25 }
 0x124   : > { %1074 = vst [vmem:[#allocation2 + $0x3c] sm:$0xf] %v1073_v22  ;;  %v1262_v21 = vadd.f32 1.0, %v6515_v53  ;;  %v749_v33 = vmul.f32 %v733_v58, %v733_v58  ;;  %v5884_v1 = vld [vmem:[#allocation2 + $0x18] sm:$0xff]   ;;  %v1582_v34 = vshrl.u32 %v1554_v19, 16  ;;  %v1585_v63 = vshll.u32 %v1554_v19, 16  ;;  %5537 = vmatmul.mubr.bf16.vlgmr.msra.gmra.mxu0 %v5883_v16 }
 0x125   : > { %v1591_v39 = vshll.u32 %v1555_v28, 16  ;;  %v711_v30 = vmul.f32 1.442695, %v683_v29  ;;  %v686_v37 = vmin.f32 %v6627_v31, 20.0  ;;  %v684_v35 = vmin.f32 %v6630_v56, 20.0  ;;  %5585 = vmatpush3.bf16.msra.mxu0 %v6398_v20  ;;  %5540 = vmatprep.mubr.bf16.mxu0 %v5884_v1  ;;  %v5892_v10 = vld [vmem:[%s7553_s5 + $0xa0] sm:$0xff]  }
 0x126   : > { %v1264_v26 = vmul.f32 %v1262_v21, %v1262_v21  ;;  %v956_v53 = vrot.slane %v6602_v2, 4  ;;  %v797_v41 = vadd.f32 1.0, %v749_v33  ;;  %v1584_v27 = vrot.slane %v1582_v34, 4  ;;  %5586 = vmatprep.subr.bf16.mxu0 %v5886_v32  ;;  %v1556_v51 = vld [vmem:[#allocation2 + $0x8] sm:$0x1]  ;;  %v5903_v2 = vld [vmem:[%s7553_s5 + $0x80] sm:$0xff]  }
 0x127   : > { %v1587_v40 = vrot.slane %v1585_v63, 5  ;;  %v776_v47 = vmul.f32 %v4963_v11, %v6496_v43  ;;  %6023 = vpow2.f32 %v711_v30  ;;  %v717_v49 = vmul.f32 1.442695, %v686_v37  ;;  %v1560_v38 = vld [vmem:[#allocation2 + $0x18] sm:$0xf] }
 0x128   : > { %v713_v36 = vmul.f32 1.442695, %v684_v35  ;;  %v6644_v45 = vadd.f32 -1.0, %v749_v33  ;;  %6025 = vrcp.f32 %v797_v41  ;;  %v1270_v59 = vadd.f32 1.0, %v1264_v26  ;;  %v5890_v17 = vld [vmem:[#allocation2 + $0x30] sm:$0xff]   ;;  %v5894_v35 = vld [vmem:[%s7553_s5 + $0x98] sm:$0xff]  }
 0x129   : > { %v1588_v61 = vor.u32 %v1587_v40, %v1584_v27  ;;  %6027 = vpow2.f32 %v717_v49  ;;  %v4992_v0 = vadd.f32 -1.0, %v1264_v26  ;;  %v1593_v20 = vrot.slane %v1591_v39, 5  ;;  %5587 = vmatpush3.bf16.msra.mxu0 %v5886_v32  ;;  %v5889_v11 = vld [vmem:[#allocation2 + $0x24] sm:$0xff]   ;;  %v6658_v21 = vld [vmem:[#allocation2 + $0x1c] sm:$0xf] }
 0x12a   : > { %v1595_v3 = vshrl.u32 %v1555_v28, 16  ;;  %6029 = vpow2.f32 %v713_v36  ;;  %v1601_v43 = vshll.u32 %v1556_v51, 16  ;;  %v1606_v8 = vshrl.u32 %v1557_v5, 16  ;;  %5588 = vmatprep.subr.bf16.mxu0 %v5888_v44 }
 0x12b   : > { %v1589_v6 = vrot.slane %v1588_v61, 4  ;;  %6031 = vrcp.f32 %v1270_v59  ;;  %v1609_v14 = vshll.u32 %v1557_v5, 16  ;;  %v1615_v15 = vshll.u32 %v1558_v12, 16  ;;  %v4184_v13 = vld [vmem:[#allocation2 + $0x3c] sm:$0xe] }
 0x12c   : > { %v1597_v48 = vrot.slane %v1595_v3, 4  ;;  %v1603_v18 = vrot.slane %v1601_v43, 5  ;;  %v1608_v19 = vrot.slane %v1606_v8, 4  ;;  %v1619_v22 = vshrl.u32 %v1558_v12, 16  ;;  %5541 = vmatmul.mubr.bf16.gmra.mxu0 %v5889_v11 }
 0x12d   : > { %v1594_v50 = vsel %vm6651_vm14, %v1589_v6, %v1593_v20  ;;  %v1611_v25 = vrot.slane %v1609_v14, 5  ;;  %v1617_v28 = vrot.slane %v1615_v15, 5  ;;  %v1625_v29 = vshll.u32 %v1559_v62, 16  ;;  %5589 = vmatpush3.bf16.msra.mxu0 %v5888_v44  ;;  %5544 = vmatprep.mubr.bf16.mxu0 %v5890_v17  ;;  %v5893_v14 = vld [vmem:[%s7553_s5 + $0xf0] sm:$0xff]  }
 0x12e   : > { %v1598_v58 = vor.u32 %v1597_v48, %v1593_v20  ;;  %v6020_v16 = vpop.eup %6019  ;;  %v1621_v32 = vrot.slane %v1619_v22, 4  ;;  %6033 = vpow2.f32 %v6501_v55  ;;  %v1630_v33 = vshrl.u32 %v1560_v38, 16  ;;  %5590 = vmatprep.subr.bf16.mxu0 %v5892_v10  ;;  %v5898_v20 = vld [vmem:[%s7553_s5 + $0x90] sm:$0xff]  }
 0x12f   : > { %v1633_v1 = vshll.u32 %v1560_v38, 16  ;;  %v6022_v34 = vpop.eup %6021  ;;  %v826_v63 = vmul.f32 %v6020_v16, %v6622_v23  ;;  %v1612_v30 = vor.u32 %v1611_v25, %v1608_v19  ;;  %v1627_v37 = vrot.slane %v1625_v29, 5  ;;  %v1083_v38 = vld [vmem:[#allocation2 + $0x50] sm:$0x1]  ;;  %v5900_v16 = vld [vmem:[%s7553_s5 + $0x88] sm:$0xff]  }
 0x130   : > { %v1599_v39 = vrot.slane %v1598_v58, 4  ;;  %v824_v26 = vmul.f32 %v6022_v34, %v776_v47  ;;  %v1622_v44 = vor.u32 %v1621_v32, %v1617_v28  ;;  %v1632_v5 = vrot.slane %v1630_v33, 4 }
 0x131   : > { %v1635_v41 = vrot.slane %v1633_v1, 5  ;;  %v5324_v55 = vpack.c.bf16 %v826_v63, %v826_v63  ;;  %v1613_v40 = vrot.slane %v1612_v30, 4  ;;  %v1639_v12 = vshll.u32 %v6658_v21, 16  ;;  %5591 = vmatpush3.bf16.msra.mxu0 %v5892_v10 }
 0x132   : > { %v1604_v27 = vsel %vm6651_vm14, %v1599_v39, %v1603_v18  ;;  %v5322_v23 = vpack.c.bf16 %v824_v26, %v824_v26  ;;  %v1623_v36 = vrot.slane %v1622_v44, 4  ;;  %v781_v47 = vmul.f32 %v6644_v45, %v6504_v7  ;;  %5592 = vmatprep.subr.bf16.mxu0 %v5894_v35  ;;  %v1076_v45 = vld [vmem:[#allocation2 + $0x44] sm:$0x1]  ;;  %v5897_v26 = vld [vmem:[%s7553_s5 + $0xe8] sm:$0xff]  }
 0x133   : > { %v5028_v49 = vcombine.low %v1594_v50, %v1604_v27  ;;  %v1636_v51 = vor.u32 %v1635_v41, %v1632_v5  ;;  %v975_v59 = vshrl.u32 %v5324_v55, 16  ;;  %v978_v61 = vshll.u32 %v5324_v55, 16  ;;  %v1562_v41 = vld [vmem:[#allocation2 + $0x20] sm:$0x1] }
 0x134   : > { %v6670_v62 = vmul.f32 %v4992_v0, %v6471_v9  ;;  %v6024_v3 = vpop.eup %6023  ;;  %v958_v6 = vshrl.u32 %v5322_v23, 16  ;;  %v1618_v43 = vsel %vm6651_vm14, %v1613_v40, %v1617_v28  ;;  %v1628_v8 = vsel %vm6651_vm14, %v1623_v36, %v1627_v37 }
 0x135   : > { %5568 = vmatprep.mubr.bf16.mxu1 %v5028_v49  ;;  %v6679_v10 = vrot.slane %v1639_v12, 5  ;;  %v6026_v7 = vpop.eup %6025  ;;  %v977_v9 = vrot.slane %v975_v59, 7  ;;  %v731_v0 = vadd.f32 1.0, %v6024_v3  ;;  %v5029_v11 = vcombine.low %v1618_v43, %v1628_v8  ;;  %5593 = vmatpush3.bf16.msra.mxu0 %v5894_v35  ;;  %v5899_v3 = vld [vmem:[%s7553_s5 + $0xe0] sm:$0xff]  }
 0x136   : > { %v6681_v48 = vrot.slane %v1636_v51, 4  ;;  %v6028_v15 = vpop.eup %6027  ;;  %v960_v50 = vrot.slane %v958_v6, 7  ;;  %v961_v18 = vshll.u32 %v5322_v23, 16  ;;  %v829_v17 = vmul.f32 %v6026_v7, %v781_v47  ;;  %5594 = vmatprep.subr.bf16.mxu0 %v5898_v20  ;;  %v1093_v23 = vld [vmem:[#allocation2 + $0x60] sm:$0xf] }
 0x137   : > { %v1643_v19 = vshrl.u32 %v6658_v21, 16  ;;  %v6030_v22 = vpop.eup %6029  ;;  %v980_v58 = vor.u32 %v978_v61, %v977_v9  ;;  %v982_v25 = vrot.slane %v977_v9, 4  ;;  %v747_v28 = vmul.f32 %v731_v0, %v731_v0  ;;  %5569 = vmatmul.mubr.bf16.vlgmr.msra.gmra.mxu1 %v5029_v11  ;;  %v6107_v21 = vld [vmem:[%s7553_s5 + $0xf8] sm:$0xff]  }
 0x138   : > { %v734_v29 = vadd.f32 1.0, %v6028_v15  ;;  %v6032_v32 = vpop.eup %6031  ;;  %v963_v33 = vor.u32 %v961_v18, %v960_v50  ;;  %v965_v1 = vrot.slane %v960_v50, 4  ;;  %v5327_v34 = vpack.c.bf16 %v829_v17, %v829_v17  ;;  %5617 = vmatpush3.bf16.msra.mxu1 %v6107_v21  ;;  %v5902_v0 = vld [vmem:[%s7553_s5 + $0xd8] sm:$0xff]   ;;  %v1564_v50 = vld [vmem:[#allocation2 + $0x28] sm:$0xf] }
 0x139   : > { %v732_v63 = vadd.f32 1.0, %v6030_v22  ;;  %v981_v39 = vsel %vm6557_vm11, %v973_v54, %v980_v58  ;;  %v1084_v30 = vsel %vm6243_vm4, %v982_v25, %v1083_v38  ;;  %v795_v37 = vadd.f32 1.0, %v747_v28  ;;  %5618 = vmatprep.subr.bf16.mxu1 %v5893_v14  ;;  %5595 = vmatpush3.bf16.msra.mxu0 %v5898_v20  ;;  %v6734_v11 = vld [vmem:[%s7553_s5 + $0x138] sm:$0xff]   ;;  %v1565_v18 = vld [vmem:[#allocation2 + $0x2c] sm:$0x1] }
 0x13a   : > { %v1642_v35 = vsel %vm6651_vm14, %v6681_v48, %v6679_v10  ;;  %1082 = vst [vmem:[#allocation2 + $0x4c] sm:$0xf] %v981_v39  ;;  %1085 = vst [vmem:[#allocation2 + $0x50] sm:$0x1] %v1084_v30  ;;  %v964_v52 = vsel %vm6557_vm11, %v956_v53, %v963_v33  ;;  %v1077_v54 = vsel %vm6243_vm4, %v965_v1, %v1076_v45  ;;  %v1001_v44 = vshrl.u32 %v5327_v34, 16 }
 0x13b   : > { %v4966_v5 = vadd.f32 -1.0, %v747_v28  ;;  %v6034_v55 = vpop.eup %6033  ;;  %1075 = vst [vmem:[#allocation2 + $0x40] sm:$0xf] %v964_v52  ;;  %1078 = vst [vmem:[#allocation2 + $0x44] sm:$0x1] %v1077_v54  ;;  %v1004_v27 = vshll.u32 %v5327_v34, 16  ;;  %6035 = vrcp.f32 %v795_v37  ;;  %v750_v40 = vmul.f32 %v734_v29, %v734_v29  ;;  %5596 = vmatprep.subr.bf16.mxu0 %v5900_v16 }
 0x13c   : > { %v748_v12 = vmul.f32 %v732_v63, %v732_v63  ;;  %v6715_v53 = vrot.slane %v1001_v44, 7  ;;  %v1274_v49 = vmul.f32 %v6032_v32, %v6670_v62  ;;  %v1263_v36 = vadd.f32 1.0, %v6034_v55  ;;  %5619 = vmatpush3.bf16.msra.mxu1 %v5893_v14  ;;  %v1563_v45 = vld [vmem:[#allocation2 + $0x24] sm:$0xf]  ;;  %v1566_v17 = vld [vmem:[#allocation2 + $0x30] sm:$0xf] }
 0x13d   : > { %v1645_v51 = vrot.slane %v1643_v19, 4  ;;  %v4969_v59 = vadd.f32 -1.0, %v750_v40  ;;  %v798_v61 = vadd.f32 1.0, %v750_v40  ;;  %v1649_v20 = vshll.u32 %v1562_v41, 16  ;;  %5620 = vmatprep.subr.bf16.mxu1 %v5897_v26  ;;  %5597 = vmatpush3.bf16.msra.mxu0 %v5900_v16  ;;  %v1306_v33 = vld [vmem:[#allocation2 + $0x6c] sm:$0xf] }
 0x13e   : > { %v796_v47 = vadd.f32 1.0, %v748_v12  ;;  %v1006_v38 = vor.u32 %v1004_v27, %v6715_v53  ;;  %v4967_v6 = vadd.f32 -1.0, %v748_v12  ;;  %v1277_v43 = vmul.f32 %v6498_v46, %v1274_v49  ;;  %5598 = vmatprep.subr.bf16.mxu0 %v5903_v2  ;;  %v5904_v41 = vld [vmem:[%s7553_s5 + $0xd0] sm:$0xff]   ;;  %v1569_v49 = vld [vmem:[#allocation2 + $0x3c] sm:$0xf] }
 0x13f   : > { %v1265_v8 = vmul.f32 %v1263_v36, %v1263_v36  ;;  %v1007_v62 = vrot.slane %v6715_v53, 4  ;;  %v6725_v7 = vmul.f32 %v4966_v5, %v6572_v57  ;;  %6037 = vrcp.f32 %v798_v61  ;;  %v1310_v53 = vld [vmem:[#allocation2 + $0x74] sm:$0x1] }
 0x140   : > { %v1646_v9 = vor.u32 %v1645_v51, %v6679_v10  ;;  %v1094_v14 = vsel %vm6540_vm10, %v1006_v38, %v1093_v23  ;;  %v6739_v57 = vmul.f32 %v4969_v59, %v6627_v31  ;;  %6039 = vrcp.f32 %v796_v47  ;;  %5621 = vmatpush3.bf16.msra.mxu1 %v5897_v26  ;;  %v1567_v26 = vld [vmem:[#allocation2 + $0x34] sm:$0xf] }
 0x141   : > { %v5331_v15 = vpack.c.bf16 %v1277_v43, %v1277_v43  ;;  %1095 = vst [vmem:[#allocation2 + $0x60] sm:$0xf] %v1094_v14  ;;  %v4993_v19 = vadd.f32 -1.0, %v1265_v8  ;;  %v1271_v22 = vadd.f32 1.0, %v1265_v8  ;;  %v1651_v25 = vrot.slane %v1649_v20, 5  ;;  %5622 = vmatprep.subr.bf16.mxu1 %v5899_v3  ;;  %5599 = vmatpush3.bf16.msra.mxu0 %v5903_v2  ;;  %v5896_v34 = vld [vmem:[#allocation2 + $0x48] sm:$0xff]  }
 0x142   : > { %v1647_v58 = vrot.slane %v1646_v9, 4  ;;  %v6742_v28 = vmul.f32 %v4967_v6, %v6630_v56  ;;  %v5895_v32 = vld [vmem:[#allocation2 + $0x3c] sm:$0xff]   ;;  %v1654_v31 = vshrl.u32 %v1563_v45, 16  ;;  %v1657_v63 = vshll.u32 %v1563_v45, 16  ;;  %5648 = vmatprep.subr.bf16.mxu0 %v6734_v11  ;;  %v5906_v6 = vld [vmem:[%s7553_s5 + $0xc8] sm:$0xff]  }
 0x143   : > { %v1286_v29 = vshrl.u32 %v5331_v15, 16  ;;  %v1289_v16 = vshll.u32 %v5331_v15, 16  ;;  %6041 = vrcp.f32 %v1271_v22  ;;  %v1663_v21 = vshll.u32 %v1564_v50, 16  ;;  %5545 = vmatmul.mubr.bf16.gmra.mxu0 %v5895_v32  ;;  %v1570_v22 = vld [vmem:[#allocation2 + $0x40] sm:$0xf] }
 0x144   : > { %v1652_v1 = vsel %vm6651_vm14, %v1647_v58, %v1651_v25  ;;  %v1656_v30 = vrot.slane %v1654_v31, 4  ;;  %v1667_v37 = vshrl.u32 %v1564_v50, 16  ;;  %5623 = vmatpush3.bf16.msra.mxu1 %v5899_v3  ;;  %5548 = vmatprep.mubr.bf16.mxu0 %v5896_v34  ;;  %v1659_v52 = vrot.slane %v1657_v63, 5 }
 0x145   : > { %v6747_v39 = vrot.slane %v1286_v29, 7  ;;  %v5030_v56 = vcombine.low %v1642_v35, %v1652_v1  ;;  %v1665_v54 = vrot.slane %v1663_v21, 5  ;;  %v1673_v44 = vshll.u32 %v1565_v18, 16  ;;  %5624 = vmatprep.subr.bf16.mxu1 %v5902_v0  ;;  %v1568_v35 = vld [vmem:[#allocation2 + $0x38] sm:$0x1] }
 0x146   : > { %v1678_v5 = vshrl.u32 %v1566_v17, 16  ;;  %v6759_v10 = vmul.f32 %v4993_v19, %v6485_v24  ;;  %v1669_v48 = vrot.slane %v1667_v37, 4  ;;  %v1681_v27 = vshll.u32 %v1566_v17, 16  ;;  %v1571_v21 = vld [vmem:[#allocation2 + $0x44] sm:$0x1] }
 0x147   : > { %v1291_v55 = vor.u32 %v1289_v16, %v6747_v39  ;;  %5572 = vmatprep.mubr.bf16.mxu1 %v5030_v56  ;;  %v1660_v40 = vor.u32 %v1659_v52, %v1656_v30  ;;  %v1675_v12 = vrot.slane %v1673_v44, 5  ;;  %v1687_v23 = vshll.u32 %v1567_v26, 16 }
 0x148   : > { %v1680_v2 = vrot.slane %v1678_v5, 4  ;;  %v6036_v36 = vpop.eup %6035  ;;  %v1670_v59 = vor.u32 %v1669_v48, %v1665_v54  ;;  %v1683_v61 = vrot.slane %v1681_v27, 5  ;;  %v1691_v47 = vshrl.u32 %v1567_v26, 16  ;;  %5625 = vmatpush3.bf16.msra.mxu1 %v5902_v0 }
 0x149   : > { %v1307_v51 = vsel %vm6540_vm10, %v1291_v55, %v1306_v33  ;;  %v827_v24 = vmul.f32 %v6036_v36, %v6725_v7  ;;  %v1661_v20 = vrot.slane %v1660_v40, 4  ;;  %v1689_v3 = vrot.slane %v1687_v23, 5  ;;  %5626 = vmatprep.subr.bf16.mxu1 %v5904_v41  ;;  %v5909_v33 = vld [vmem:[%s7553_s5 + $0xc0] sm:$0xff]   ;;  %v6784_v40 = vld [vmem:[%s7553_s5 + $0x178] sm:$0xff]  }
 0x14a   : > { %1308 = vst [vmem:[#allocation2 + $0x6c] sm:$0xf] %v1307_v51  ;;  %v1697_v38 = vshll.u32 %v1568_v35, 16  ;;  %v1671_v43 = vrot.slane %v1670_v59, 4  ;;  %v1684_v8 = vor.u32 %v1683_v61, %v1680_v2  ;;  %v1693_v9 = vrot.slane %v1691_v47, 4 }
 0x14b   : > { %v1702_v45 = vshrl.u32 %v1569_v49, 16  ;;  %v5325_v14 = vpack.c.bf16 %v827_v24, %v827_v24  ;;  %v1292_v15 = vrot.slane %v6747_v39, 4  ;;  %v1666_v0 = vsel %vm6651_vm14, %v1661_v20, %v1665_v54  ;;  %v1086_v54 = vld [vmem:[#allocation2 + $0x54] sm:$0xf]  ;;  %v1097_v2 = vld [vmem:[#allocation2 + $0x68] sm:$0x1] }
 0x14c   : > { %v1705_v7 = vshll.u32 %v1569_v49, 16  ;;  %v6038_v50 = vpop.eup %6037  ;;  %v1676_v18 = vsel %vm6651_vm14, %v1671_v43, %v1675_v12  ;;  %v1685_v17 = vrot.slane %v1684_v8, 4  ;;  %v1694_v19 = vor.u32 %v1693_v9, %v1689_v3  ;;  %5627 = vmatpush3.bf16.msra.mxu1 %v5904_v41  ;;  %v2015_v24 = vld [vmem:[#allocation2] sm:$0xe]  ;;  %v2016_v43 = vld [vmem:[#allocation2 + $0x4] sm:$0xf] }
 0x14d   : > { %v1704_v58 = vrot.slane %v1702_v45, 4  ;;  %v6040_v25 = vpop.eup %6039  ;;  %v984_v29 = vshrl.u32 %v5325_v14, 16  ;;  %v830_v16 = vmul.f32 %v6038_v50, %v6739_v57  ;;  %v5031_v32 = vcombine.low %v1666_v0, %v1676_v18  ;;  %5628 = vmatprep.subr.bf16.mxu1 %v5906_v6  ;;  %v2021_v39 = vld [vmem:[#allocation2 + $0x18] sm:$0xe] }
 0x14e   : > { %v1699_v31 = vrot.slane %v1697_v38, 5  ;;  %v987_v1 = vshll.u32 %v5325_v14, 16  ;;  %v828_v34 = vmul.f32 %v6040_v25, %v6742_v28  ;;  %v1695_v63 = vrot.slane %v1694_v19, 4  ;;  %v2017_v14 = vld [vmem:[#allocation2 + $0x8] sm:$0x1] }
 0x14f   : > { %v1707_v56 = vrot.slane %v1705_v7, 5  ;;  %v986_v30 = vrot.slane %v984_v29, 7  ;;  %v5328_v37 = vpack.c.bf16 %v830_v16, %v830_v16  ;;  %5573 = vmatmul.mubr.bf16.gmra.mxu1 %v5031_v32  ;;  %v1690_v26 = vsel %vm6651_vm14, %v1685_v17, %v1689_v3  ;;  %v1572_v17 = vld [vmem:[#allocation2 + $0x48] sm:$0xf]  ;;  %v1574_v29 = vld [vmem:[#allocation2 + $0x50] sm:$0x1] }
 0x150   : > { %v1711_v57 = vshll.u32 %v1570_v22, 16  ;;  %v6042_v52 = vpop.eup %6041  ;;  %v5326_v44 = vpack.c.bf16 %v828_v34, %v828_v34  ;;  %v1700_v5 = vsel %vm6651_vm14, %v1695_v63, %v1699_v31  ;;  %v1715_v28 = vshrl.u32 %v1570_v22, 16  ;;  %5629 = vmatpush3.bf16.msra.mxu1 %v5906_v6 }
 0x151   : > { %v1708_v41 = vor.u32 %v1707_v56, %v1704_v58  ;;  %v989_v55 = vor.u32 %v987_v1, %v986_v30  ;;  %v990_v48 = vrot.slane %v986_v30, 4  ;;  %v1009_v35 = vshrl.u32 %v5328_v37, 16  ;;  %5630 = vmatprep.subr.bf16.mxu1 %v5909_v33 }
 0x152   : > { %v1721_v27 = vshll.u32 %v1571_v21, 16  ;;  %v1012_v12 = vshll.u32 %v5328_v37, 16  ;;  %v992_v23 = vshrl.u32 %v5326_v44, 16  ;;  %v1275_v49 = vmul.f32 %v6042_v52, %v6759_v10  ;;  %v1090_v10 = vld [vmem:[#allocation2 + $0x5c] sm:$0x1] }
 0x153   : > { %v5032_v36 = vcombine.low %v1690_v26, %v1700_v5  ;;  %v1087_v51 = vsel %vm6540_vm10, %v989_v55, %v1086_v54  ;;  %v1011_v59 = vrot.slane %v1009_v35, 7  ;;  %v1709_v61 = vrot.slane %v1708_v41, 4  ;;  %v2018_v21 = vld [vmem:[#allocation2 + $0xc] sm:$0xe]  ;;  %v2019_v52 = vld [vmem:[#allocation2 + $0x10] sm:$0xf] }
 0x154   : > { %v1713_v47 = vrot.slane %v1711_v57, 5  ;;  %1088 = vst [vmem:[#allocation2 + $0x54] sm:$0xf] %v1087_v51  ;;  %v994_v20 = vrot.slane %v992_v23, 7  ;;  %v995_v3 = vshll.u32 %v5326_v44, 16  ;;  %v1278_v38 = vmul.f32 %v6498_v46, %v1275_v49  ;;  %5631 = vmatpush3.bf16.msra.mxu1 %v5909_v33 }
 0x155   : > { %5576 = vmatprep.mubr.bf16.mxu1 %v5032_v36  ;;  %v1717_v6 = vrot.slane %v1715_v28, 4  ;;  %v1014_v8 = vor.u32 %v1012_v12, %v1011_v59  ;;  %v1016_v9 = vrot.slane %v1011_v59, 4  ;;  %v1723_v45 = vrot.slane %v1721_v27, 5  ;;  %5680 = vmatprep.subr.bf16.mxu1 %v6784_v40  ;;  %v1573_v46 = vld [vmem:[#allocation2 + $0x4c] sm:$0xf] }
 0x156   : > { %v1714_v42 = vsel %vm6651_vm14, %v1709_v61, %v1713_v47  ;;  %v997_v0 = vor.u32 %v995_v3, %v994_v20  ;;  %v999_v7 = vrot.slane %v994_v20, 4  ;;  %v5332_v50 = vpack.c.bf16 %v1278_v38, %v1278_v38  ;;  %v2020_v28 = vld [vmem:[#allocation2 + $0x14] sm:$0x1] }
 0x157   : > { %v1718_v18 = vor.u32 %v1717_v6, %v1713_v47  ;;  %v1015_v19 = vsel %vm6557_vm11, %v1007_v62, %v1014_v8  ;;  %v1098_v22 = vsel %vm6243_vm4, %v1016_v9, %v1097_v2  ;;  %v5044_v58 = vrot.slane %v2015_v24, 9 }
 0x158   : > { %v2068_v25 = vrot.slane %v2016_v43, 5  ;;  %1096 = vst [vmem:[#allocation2 + $0x64] sm:$0xf] %v1015_v19  ;;  %1099 = vst [vmem:[#allocation2 + $0x68] sm:$0x1] %v1098_v22  ;;  %v998_v16 = vsel %vm6557_vm11, %v990_v48, %v997_v0  ;;  %v1091_v32 = vsel %vm6243_vm4, %v999_v7, %v1090_v10  ;;  %v1294_v31 = vshrl.u32 %v5332_v50, 16 }
 0x159   : > { %v1297_v33 = vshll.u32 %v5332_v50, 16  ;;  %1089 = vst [vmem:[#allocation2 + $0x58] sm:$0xf] %v998_v16  ;;  %1092 = vst [vmem:[#allocation2 + $0x5c] sm:$0x1] %v1091_v32  ;;  %v1719_v62 = vrot.slane %v1718_v18, 4 }
 0x15a   : > { %v2070_v1 = vrot.slane %v2068_v25, 4  ;;  %v2071_v34 = vrot.slane %v2017_v14, 5  ;;  %v1726_v63 = vshrl.u32 %v1572_v17, 16  ;;  %v1296_v56 = vrot.slane %v1294_v31, 7  ;;  %v2022_v10 = vld [vmem:[#allocation2 + $0x1c] sm:$0xf] }
 0x15b   : > { %v1729_v37 = vshll.u32 %v1572_v17, 16  ;;  %v1735_v26 = vshll.u32 %v1573_v46, 16  ;;  %v1739_v57 = vshrl.u32 %v1573_v46, 16  ;;  %v1724_v54 = vsel %vm6651_vm14, %v1719_v62, %v1723_v45  ;;  %v1575_v12 = vld [vmem:[#allocation2 + $0x54] sm:$0xf] }
 0x15c   : > { %v2069_v44 = vsel %vm6805_vm1, %v5044_v58, %v2068_v25  ;;  %v1728_v5 = vrot.slane %v1726_v63, 4  ;;  %v1745_v41 = vshll.u32 %v1574_v29, 16  ;;  %v1299_v55 = vor.u32 %v1297_v33, %v1296_v56  ;;  %v2023_v14 = vld [vmem:[#allocation2 + $0x20] sm:$0x1]  ;;  %v2024_v0 = vld [vmem:[#allocation2 + $0x24] sm:$0xe] }
 0x15d   : > { %v1301_v48 = vrot.slane %v1296_v56, 4  ;;  %v5033_v35 = vcombine.low %v1714_v42, %v1724_v54  ;;  %v2072_v27 = vsel %vm6805_vm1, %v2070_v1, %v2071_v34  ;;  %v1731_v2 = vrot.slane %v1729_v37, 5  ;;  %v2025_v46 = vld [vmem:[#allocation2 + $0x28] sm:$0xf]  ;;  %v2026_v29 = vld [vmem:[#allocation2 + $0x2c] sm:$0x1] }
 0x15e   : > { %v1737_v23 = vrot.slane %v1735_v26, 5  ;;  %v1741_v49 = vrot.slane %v1739_v57, 4  ;;  %v1747_v36 = vrot.slane %v1745_v41, 5  ;;  %v1300_v51 = vsel %vm6557_vm11, %v1292_v15, %v1299_v55  ;;  %v2028_v62 = vld [vmem:[#allocation2 + $0x34] sm:$0xf] }
 0x15f   : > { %v1311_v59 = vsel %vm6243_vm4, %v1301_v48, %v1310_v53  ;;  %5577 = vmatmul.mubr.bf16.gmra.mxu1 %v5033_v35  ;;  %v5045_v61 = vrot.slane %v2018_v21, 9  ;;  %v2075_v47 = vrot.slane %v2019_v52, 5  ;;  %1309 = vst [vmem:[#allocation2 + $0x70] sm:$0xf] %v1300_v51  ;;  %v1732_v24 = vor.u32 %v1731_v2, %v1728_v5  ;;  %v2027_v53 = vld [vmem:[#allocation2 + $0x30] sm:$0xe] }
 0x160   : > { %1312 = vst [vmem:[#allocation2 + $0x74] sm:$0x1] %v1311_v59  ;;  %v1742_v20 = vor.u32 %v1741_v49, %v1737_v23  ;;  %v2078_v3 = vrot.slane %v2020_v28, 5  ;;  %v1750_v38 = vshrl.u32 %v1575_v12, 16  ;;  %v5901_v6 = vld [vmem:[#allocation2 + $0x54] sm:$0xff]   ;;  %v5068_v43 = vcombine.low %v2069_v44, %v2072_v27 }
 0x161   : > { %v2077_v8 = vrot.slane %v2075_v47, 4  ;;  %v1576_v9 = vld [vmem:[#allocation2 + $0x58] sm:$0xf]  ;;  %v1733_v60 = vrot.slane %v1732_v24, 4  ;;  %v1577_v42 = vld [vmem:[#allocation2 + $0x5c] sm:$0x1]  ;;  %5549 = vmatmul.mubr.bf16.gmra.mxu0 %v5901_v6  ;;  %v2076_v58 = vsel %vm6805_vm1, %v5045_v61, %v2075_v47 }
 0x162   : > { %v1743_v15 = vrot.slane %v1742_v20, 4  ;;  %v1752_v4 = vrot.slane %v1750_v38, 4  ;;  %v1753_v45 = vshll.u32 %v1575_v12, 16  ;;  %v1759_v50 = vshll.u32 %v1576_v9, 16  ;;  %5600 = vmatprep.mubr.bf16.mxu0 %v5068_v43  ;;  %v2029_v56 = vld [vmem:[#allocation2 + $0x38] sm:$0x1] }
 0x163   : > { %v2079_v7 = vsel %vm6805_vm1, %v2077_v8, %v2078_v3  ;;  %v1763_v18 = vshrl.u32 %v1576_v9, 16  ;;  %v1769_v17 = vshll.u32 %v1577_v42, 16  ;;  %v1738_v19 = vsel %vm6651_vm14, %v1733_v60, %v1737_v23  ;;  %v2030_v54 = vld [vmem:[#allocation2 + $0x3c] sm:$0xe]  ;;  %v5908_v28 = vld [vmem:[%s7553_s5 + $0x130] sm:$0xff]   ;;  %v5910_v38 = vld [vmem:[%s7553_s5 + $0x128] sm:$0xff]  }
 0x164   : > { %v1748_v22 = vsel %vm6651_vm14, %v1743_v15, %v1747_v36  ;;  %v1755_v25 = vrot.slane %v1753_v45, 5  ;;  %v5069_v32 = vcombine.low %v2076_v58, %v2079_v7  ;;  %v1761_v31 = vrot.slane %v1759_v50, 5  ;;  %v2031_v48 = vld [vmem:[#allocation2 + $0x40] sm:$0xf]  ;;  %v2033_v35 = vld [vmem:[#allocation2 + $0x48] sm:$0xe] }
 0x165   : > { %v5034_v16 = vcombine.low %v1738_v19, %v1748_v22  ;;  %v1765_v33 = vrot.slane %v1763_v18, 4  ;;  %v1771_v34 = vrot.slane %v1769_v17, 5  ;;  %v5046_v63 = vrot.slane %v2021_v39, 9  ;;  %v2032_v49 = vld [vmem:[#allocation2 + $0x44] sm:$0x1]  ;;  %v5907_v45 = vld [vmem:[#allocation2 + $0xc] sm:$0xff]  }
 0x166   : > { %v1756_v1 = vor.u32 %v1755_v25, %v1752_v4  ;;  %v2082_v21 = vrot.slane %v2022_v10, 5  ;;  %v2085_v26 = vrot.slane %v2023_v14, 5  ;;  %v5047_v57 = vrot.slane %v2024_v0, 9  ;;  %v2034_v47 = vld [vmem:[#allocation2 + $0x4c] sm:$0xf] }
 0x167   : > { %5580 = vmatprep.mubr.bf16.mxu1 %v5034_v16  ;;  %v1766_v37 = vor.u32 %v1765_v33, %v1761_v31  ;;  %v2089_v52 = vrot.slane %v2025_v46, 5  ;;  %v2092_v55 = vrot.slane %v2026_v29, 5  ;;  %v5048_v2 = vrot.slane %v2027_v53, 9  ;;  %v2035_v24 = vld [vmem:[#allocation2 + $0x50] sm:$0x1] }
 0x168   : > { %v1757_v44 = vrot.slane %v1756_v1, 4  ;;  %v2083_v5 = vsel %vm6805_vm1, %v5046_v63, %v2082_v21  ;;  %v2084_v41 = vrot.slane %v2082_v21, 4  ;;  %v2096_v23 = vrot.slane %v2028_v62, 5  ;;  %v2036_v8 = vld [vmem:[#allocation2 + $0x54] sm:$0xe]  ;;  %v5914_v1 = vld [vmem:[%s7553_s5 + $0x120] sm:$0xff]  }
 0x169   : > { %v1767_v27 = vrot.slane %v1766_v37, 4  ;;  %v2091_v12 = vrot.slane %v2089_v52, 4  ;;  %v2090_v59 = vsel %vm6805_vm1, %v5047_v57, %v2089_v52  ;;  %v2099_v61 = vrot.slane %v2029_v56, 5  ;;  %5601 = vmatmul.mubr.bf16.vlgmr.msra.gmra.mxu0 %v5069_v32  ;;  %v2638_v9 = vld [vmem:[#allocation2 + $0xc] sm:$0xf] }
 0x16a   : > { %v1762_v36 = vsel %vm6651_vm14, %v1757_v44, %v1761_v31  ;;  %v2086_v51 = vsel %vm6805_vm1, %v2084_v41, %v2085_v26  ;;  %v5049_v43 = vrot.slane %v2030_v54, 9  ;;  %5649 = vmatpush3.bf16.msra.mxu0 %v6734_v11  ;;  %v2097_v10 = vsel %vm6805_vm1, %v5048_v2, %v2096_v23  ;;  %v2037_v42 = vld [vmem:[#allocation2 + $0x58] sm:$0xf]  ;;  %v2038_v4 = vld [vmem:[#allocation2 + $0x5c] sm:$0x1]  ;;  %v5915_v26 = vld [vmem:[%s7553_s5 + $0x170] sm:$0xff]  }
 0x16b   : > { %v1772_v20 = vsel %vm6651_vm14, %v1767_v27, %v1771_v34  ;;  %v5070_v3 = vcombine.low %v2083_v5, %v2086_v51  ;;  %v2093_v6 = vsel %vm6805_vm1, %v2091_v12, %v2092_v55  ;;  %v2098_v60 = vrot.slane %v2096_v23, 4  ;;  %5650 = vmatprep.subr.bf16.mxu0 %v5908_v28  ;;  %v2639_v18 = vld [vmem:[#allocation2 + $0x10] sm:$0xf]  ;;  %v2640_v31 = vld [vmem:[#allocation2 + $0x14] sm:$0x1]  ;;  %v5911_v41 = vld [vmem:[#allocation2 + $0x18] sm:$0xff]  }
 0x16c   : > { %v5035_v39 = vcombine.low %v1762_v36, %v1772_v20  ;;  %v2103_v15 = vrot.slane %v2031_v48, 5  ;;  %v5071_v14 = vcombine.low %v2090_v59, %v2093_v6  ;;  %v2106_v0 = vrot.slane %v2032_v49, 5  ;;  %v2641_v62 = vld [vmem:[#allocation2 + $0x18] sm:$0xf]  ;;  %v2642_v37 = vld [vmem:[#allocation2 + $0x1c] sm:$0xf] }
 0x16d   : > { %5604 = vmatprep.mubr.bf16.mxu0 %v5070_v3  ;;  %v5050_v7 = vrot.slane %v2033_v35, 9  ;;  %v2110_v50 = vrot.slane %v2034_v47, 5  ;;  %v2100_v11 = vsel %vm6805_vm1, %v2098_v60, %v2099_v61  ;;  %v2113_v19 = vrot.slane %v2035_v24, 5  ;;  %v2643_v5 = vld [vmem:[#allocation2 + $0x20] sm:$0x1]  ;;  %v5913_v59 = vld [vmem:[#allocation2 + $0x24] sm:$0xff]  }
 0x16e   : > { %5581 = vmatmul.mubr.bf16.gmra.mxu1 %v5035_v39  ;;  %v6854_v17 = vsel %vm6805_vm1, %v5049_v43, %v2103_v15  ;;  %v2105_v46 = vrot.slane %v2103_v15, 4  ;;  %v5072_v22 = vcombine.low %v2097_v10, %v2100_v11  ;;  %v5051_v25 = vrot.slane %v2036_v8, 9  ;;  %5651 = vmatpush3.bf16.msra.mxu0 %v5908_v28  ;;  %v5916_v28 = vld [vmem:[%s7553_s5 + $0x118] sm:$0xff]   ;;  %v2644_v12 = vld [vmem:[#allocation2 + $0x24] sm:$0xf]  ;;  %v5918_v15 = vld [vmem:[%s7553_s5 + $0x168] sm:$0xff]  }
 0x16f   : > { %5632 = vmatprep.mubr.bf16.mxu1 %v5907_v45  ;;  %v2112_v58 = vrot.slane %v2110_v50, 4  ;;  %v2117_v29 = vrot.slane %v2037_v42, 5  ;;  %v6862_v32 = vsel %vm6805_vm1, %v5050_v7, %v2110_v50  ;;  %v2663_v33 = vshrl.u32 %v2638_v9, 16  ;;  %5652 = vmatprep.subr.bf16.mxu0 %v5910_v38  ;;  %v2645_v51 = vld [vmem:[#allocation2 + $0x28] sm:$0xf]  ;;  %v5920_v42 = vld [vmem:[%s7553_s5 + $0x110] sm:$0xff]  }
 0x170   : > { %v6858_v16 = vsel %vm6805_vm1, %v2105_v46, %v2106_v0  ;;  %v2666_v53 = vshll.u32 %v2638_v9, 16  ;;  %v2120_v56 = vrot.slane %v2038_v4, 5  ;;  %v2672_v44 = vshll.u32 %v2639_v18, 16  ;;  %v2646_v39 = vld [vmem:[#allocation2 + $0x2c] sm:$0x1] }
 0x171   : > { %v5073_v34 = vcombine.low %v6854_v17, %v6858_v16  ;;  %v6871_v63 = vsel %vm6805_vm1, %v2112_v58, %v2113_v19  ;;  %v2119_v21 = vrot.slane %v2117_v29, 4  ;;  %v6878_v57 = vsel %vm6805_vm1, %v5051_v25, %v2117_v29  ;;  %5605 = vmatmul.mubr.bf16.gmra.mxu0 %v5071_v14  ;;  %v6900_v0 = vld [vmem:[#allocation2 + $0xc] sm:$0xe]  ;;  %v3097_v46 = vld [vmem:[#allocation2 + $0x10] sm:$0xf]  ;;  %v6905_v19 = vld [vmem:[%s7553_s5 + $0x160] sm:$0xff]  }
 0x172   : > { %v2665_v52 = vrot.slane %v2663_v33, 4  ;;  %v2668_v54 = vrot.slane %v2666_v53, 5  ;;  %v2676_v48 = vshrl.u32 %v2639_v18, 16  ;;  %v2682_v35 = vshll.u32 %v2640_v31, 16  ;;  %5653 = vmatpush3.bf16.msra.mxu0 %v5910_v38  ;;  %5608 = vmatprep.mubr.bf16.mxu0 %v5072_v22  ;;  %v6913_v31 = vld [vmem:[%s7553_s5 + $0x108] sm:$0xff]   ;;  %v5919_v16 = vld [vmem:[#allocation2 + $0x3c] sm:$0xff]  }
 0x173   : > { %v6885_v55 = vsel %vm6805_vm1, %v2119_v21, %v2120_v56  ;;  %v2687_v27 = vshrl.u32 %v2641_v62, 16  ;;  %v5074_v2 = vcombine.low %v6862_v32, %v6871_v63  ;;  %v2674_v49 = vrot.slane %v2672_v44, 5  ;;  %5654 = vmatprep.subr.bf16.mxu0 %v5914_v1  ;;  %v3098_v32 = vld [vmem:[#allocation2 + $0x14] sm:$0x1]  ;;  %v2647_v63 = vld [vmem:[#allocation2 + $0x30] sm:$0xf] }
 0x174   : > { %v2669_v23 = vor.u32 %v2668_v54, %v2665_v52  ;;  %v2690_v36 = vshll.u32 %v2641_v62, 16  ;;  %v5075_v61 = vcombine.low %v6878_v57, %v6885_v55  ;;  %v2678_v47 = vrot.slane %v2676_v48, 4  ;;  %v5917_v21 = vld [vmem:[#allocation2 + $0x30] sm:$0xff]   ;;  %v2649_v48 = vld [vmem:[#allocation2 + $0x38] sm:$0x1] }
 0x175   : > { %v2689_v24 = vrot.slane %v2687_v27, 4  ;;  %v2696_v20 = vshll.u32 %v2642_v37, 16  ;;  %v2700_v38 = vshrl.u32 %v2642_v37, 16  ;;  %v2706_v43 = vshll.u32 %v2643_v5, 16  ;;  %v2648_v5 = vld [vmem:[#allocation2 + $0x34] sm:$0xf] }
 0x176   : > { %5633 = vmatmul.mubr.bf16.vlgmr.msra.gmra.mxu1 %v5911_v41  ;;  %v2670_v3 = vrot.slane %v2669_v23, 4  ;;  %v2692_v6 = vrot.slane %v2690_v36, 5  ;;  %v2679_v8 = vor.u32 %v2678_v47, %v2674_v49  ;;  %v2711_v10 = vshrl.u32 %v2644_v12, 16  ;;  %5655 = vmatpush3.bf16.msra.mxu0 %v5914_v1  ;;  %v3102_v55 = vld [vmem:[#allocation2 + $0x24] sm:$0xe] }
 0x177   : > { %5636 = vmatprep.mubr.bf16.mxu1 %v5913_v59  ;;  %5681 = vmatpush3.bf16.msra.mxu1 %v6784_v40  ;;  %v2698_v9 = vrot.slane %v2696_v20, 5  ;;  %v2714_v60 = vshll.u32 %v2644_v12, 16  ;;  %v2684_v45 = vrot.slane %v2682_v35, 5  ;;  %v2702_v14 = vrot.slane %v2700_v38, 4  ;;  %v2650_v12 = vld [vmem:[#allocation2 + $0x3c] sm:$0xf] }
 0x178   : > { %5682 = vmatprep.subr.bf16.mxu1 %v5915_v26  ;;  %v2675_v4 = vsel %vm6651_vm14, %v2670_v3, %v2674_v49  ;;  %v2693_v40 = vor.u32 %v2692_v6, %v2689_v24  ;;  %5656 = vmatprep.subr.bf16.mxu0 %v5916_v28  ;;  %v2680_v7 = vrot.slane %v2679_v8, 4  ;;  %v2713_v50 = vrot.slane %v2711_v10, 4  ;;  %v5926_v3 = vld [vmem:[%s7553_s5 + $0x100] sm:$0xff]   ;;  %v5927_v10 = vld [vmem:[%s7553_s5 + $0x150] sm:$0xff]  }
 0x179   : > { %v2716_v18 = vrot.slane %v2714_v60, 5  ;;  %v2720_v11 = vshll.u32 %v2645_v51, 16  ;;  %v2703_v58 = vor.u32 %v2702_v14, %v2698_v9  ;;  %v2724_v25 = vshrl.u32 %v2645_v51, 16  ;;  %5609 = vmatmul.mubr.bf16.gmra.mxu0 %v5073_v34  ;;  %v5924_v51 = vld [vmem:[%s7553_s5 + $0x158] sm:$0xff]   ;;  %v2651_v8 = vld [vmem:[#allocation2 + $0x40] sm:$0xf] }
 0x17a   : > { %v2694_v22 = vrot.slane %v2693_v40, 4  ;;  %v2730_v29 = vshll.u32 %v2646_v39, 16  ;;  %v2685_v33 = vsel %vm6651_vm14, %v2680_v7, %v2684_v45  ;;  %v2708_v53 = vrot.slane %v2706_v43, 5  ;;  %5657 = vmatpush3.bf16.msra.mxu0 %v5916_v28  ;;  %5612 = vmatprep.mubr.bf16.mxu0 %v5074_v2  ;;  %v3099_v39 = vld [vmem:[#allocation2 + $0x18] sm:$0xe]  ;;  %v5923_v14 = vld [vmem:[#allocation2 + $0x48] sm:$0xff]  }
 0x17b   : > { %5683 = vmatpush3.bf16.msra.mxu1 %v5915_v26  ;;  %v2717_v62 = vor.u32 %v2716_v18, %v2713_v50  ;;  %v2722_v1 = vrot.slane %v2720_v11, 5  ;;  %v5132_v56 = vcombine.low %v2675_v4, %v2685_v33  ;;  %v2704_v37 = vrot.slane %v2703_v58, 4  ;;  %5658 = vmatprep.subr.bf16.mxu0 %v5920_v42  ;;  %v2652_v45 = vld [vmem:[#allocation2 + $0x44] sm:$0x1]  ;;  %v3100_v40 = vld [vmem:[#allocation2 + $0x1c] sm:$0xf] }
 0x17c   : > { %v2726_v26 = vrot.slane %v2724_v25, 4  ;;  %v5148_v17 = vrot.slane %v6900_v0, 9  ;;  %5684 = vmatprep.subr.bf16.mxu1 %v5918_v15  ;;  %v2699_v34 = vsel %vm6651_vm14, %v2694_v22, %v2698_v9  ;;  %v2732_v54 = vrot.slane %v2730_v29, 5  ;;  %v5928_v0 = vld [vmem:[%s7553_s5 + $0x1b8] sm:$0xff]  }
 0x17d   : > { %v2718_v52 = vrot.slane %v2717_v62, 4  ;;  %v3146_v44 = vrot.slane %v3097_v46, 5  ;;  %v2709_v41 = vsel %vm6651_vm14, %v2704_v37, %v2708_v53  ;;  %v2735_v35 = vshrl.u32 %v2647_v63, 16  ;;  %v3101_v46 = vld [vmem:[#allocation2 + $0x20] sm:$0x1] }
 0x17e   : > { %5637 = vmatmul.mubr.bf16.gmra.mxu1 %v5917_v21  ;;  %v2727_v28 = vor.u32 %v2726_v26, %v2722_v1  ;;  %v2738_v27 = vshll.u32 %v2647_v63, 16  ;;  %v6922_v2 = vcombine.low %v2699_v34, %v2709_v41  ;;  %v3149_v36 = vrot.slane %v3098_v32, 5  ;;  %5659 = vmatpush3.bf16.msra.mxu0 %v5920_v42  ;;  %v3103_v53 = vld [vmem:[#allocation2 + $0x28] sm:$0xf]  ;;  %v5931_v41 = vld [vmem:[%s7553_s5 + $0x1b0] sm:$0xff]  }
 0x17f   : > { %5640 = vmatprep.mubr.bf16.mxu1 %v5919_v16  ;;  %5685 = vmatpush3.bf16.msra.mxu1 %v5918_v15  ;;  %v2723_v23 = vsel %vm6651_vm14, %v2718_v52, %v2722_v1  ;;  %v3148_v49 = vrot.slane %v3146_v44, 4  ;;  %v2737_v47 = vrot.slane %v2735_v35, 4  ;;  %v2744_v20 = vshll.u32 %v2648_v5, 16  ;;  %v2653_v21 = vld [vmem:[#allocation2 + $0x48] sm:$0xf] }
 0x180   : > { %5686 = vmatprep.subr.bf16.mxu1 %v6905_v19  ;;  %v2728_v59 = vrot.slane %v2727_v28, 4  ;;  %v2740_v24 = vrot.slane %v2738_v27, 5  ;;  %5660 = vmatprep.subr.bf16.mxu0 %v6913_v31  ;;  %v2748_v38 = vshrl.u32 %v2648_v5, 16  ;;  %v2754_v43 = vshll.u32 %v2649_v48, 16  ;;  %v3104_v16 = vld [vmem:[#allocation2 + $0x2c] sm:$0x1] }
 0x181   : > { %v6936_v6 = vsel %vm6805_vm1, %v3148_v49, %v3149_v36  ;;  %v2759_v9 = vshrl.u32 %v2650_v12, 16  ;;  %v6945_v15 = vsel %vm6805_vm1, %v5148_v17, %v3146_v44  ;;  %v6947_v4 = vrot.slane %v2744_v20, 5  ;;  %5613 = vmatmul.mubr.bf16.gmra.mxu0 %v5075_v61  ;;  %v5925_v61 = vld [vmem:[#allocation2 + $0x54] sm:$0xff]   ;;  %v5930_v34 = vld [vmem:[%s7553_s5 + $0x148] sm:$0xff]  }
 0x182   : > { %v2733_v60 = vsel %vm6651_vm14, %v2728_v59, %v2732_v54  ;;  %v2741_v42 = vor.u32 %v2740_v24, %v2737_v47  ;;  %v5172_v50 = vcombine.low %v6945_v15, %v6936_v6  ;;  %v2750_v18 = vrot.slane %v2748_v38, 4  ;;  %5661 = vmatpush3.bf16.msra.mxu0 %v6913_v31  ;;  %5664 = vmatprep.mubr.bf16.mxu0 %v5132_v56  ;;  %v2654_v27 = vld [vmem:[#allocation2 + $0x4c] sm:$0xf]  ;;  %v2655_v59 = vld [vmem:[#allocation2 + $0x50] sm:$0x1]  ;;  %v5932_v47 = vld [vmem:[%s7553_s5 + $0x140] sm:$0xff]  }
 0x183   : > { %5687 = vmatpush3.bf16.msra.mxu1 %v6905_v19  ;;  %v5134_v7 = vcombine.low %v2723_v23, %v2733_v60  ;;  %v2761_v11 = vrot.slane %v2759_v9, 4  ;;  %v2762_v22 = vshll.u32 %v2650_v12, 16  ;;  %v2768_v58 = vshll.u32 %v2651_v8, 16  ;;  %5662 = vmatprep.subr.bf16.mxu0 %v5926_v3  ;;  %v5933_v24 = vld [vmem:[%s7553_s5 + $0x1a8] sm:$0xff]   ;;  %v5935_v6 = vld [vmem:[%s7553_s5 + $0x1a0] sm:$0xff]  }
 0x184   : > { %v2742_v19 = vrot.slane %v2741_v42, 4  ;;  %v2772_v57 = vshrl.u32 %v2651_v8, 16  ;;  %5688 = vmatprep.subr.bf16.mxu1 %v5924_v51  ;;  %v2751_v25 = vor.u32 %v2750_v18, %v6947_v4  ;;  %v2756_v29 = vrot.slane %v2754_v43, 5  ;;  %v2656_v8 = vld [vmem:[#allocation2 + $0x54] sm:$0xf] }
 0x185   : > { %v2778_v32 = vshll.u32 %v2652_v45, 16  ;;  %v3153_v33 = vrot.slane %v3100_v40, 5  ;;  %v2764_v62 = vrot.slane %v2762_v22, 5  ;;  %v2770_v1 = vrot.slane %v2768_v58, 5  ;;  %v2657_v42 = vld [vmem:[#allocation2 + $0x58] sm:$0xf] }
 0x186   : > { %5641 = vmatmul.mubr.bf16.gmra.mxu1 %v5923_v14  ;;  %v2774_v63 = vrot.slane %v2772_v57, 4  ;;  %v5149_v31 = vrot.slane %v3099_v39, 9  ;;  %v2747_v56 = vsel %vm6651_vm14, %v2742_v19, %v6947_v4  ;;  %v2752_v37 = vrot.slane %v2751_v25, 4  ;;  %5663 = vmatpush3.bf16.msra.mxu0 %v5926_v3  ;;  %v3106_v22 = vld [vmem:[#allocation2 + $0x34] sm:$0xf] }
 0x187   : > { %5644 = vmatprep.mubr.bf16.mxu1 %v5925_v61  ;;  %5689 = vmatpush3.bf16.msra.mxu1 %v5924_v51  ;;  %v2780_v26 = vrot.slane %v2778_v32, 5  ;;  %v3155_v17 = vrot.slane %v3153_v33, 4  ;;  %v2765_v52 = vor.u32 %v2764_v62, %v2761_v11  ;;  %v3156_v5 = vrot.slane %v3101_v46, 5  ;;  %v3107_v25 = vld [vmem:[#allocation2 + $0x38] sm:$0x1] }
 0x188   : > { %5690 = vmatprep.subr.bf16.mxu1 %v5927_v10  ;;  %v2775_v54 = vor.u32 %v2774_v63, %v2770_v1  ;;  %v6968_v44 = vsel %vm6805_vm1, %v5149_v31, %v3153_v33  ;;  %5712 = vmatprep.subr.bf16.mxu0 %v5928_v0  ;;  %v2757_v28 = vsel %vm6651_vm14, %v2752_v37, %v2756_v29  ;;  %v5150_v48 = vrot.slane %v3102_v55, 9  ;;  %v5934_v29 = vld [vmem:[%s7553_s5 + $0x1f8] sm:$0xff]  }
 0x189   : > { %v3160_v35 = vrot.slane %v3103_v53, 5  ;;  %v2783_v12 = vshrl.u32 %v2653_v21, 16  ;;  %v2766_v23 = vrot.slane %v2765_v52, 4  ;;  %v6977_v36 = vsel %vm6805_vm1, %v3155_v17, %v3156_v5  ;;  %5665 = vmatmul.mubr.bf16.vlgmr.msra.gmra.mxu0 %v6922_v2  ;;  %v5929_v2 = vld [vmem:[#allocation2 + $0x60] sm:$0xff]  }
 0x18a   : > { %v2776_v49 = vrot.slane %v2775_v54, 4  ;;  %v3163_v51 = vrot.slane %v3104_v16, 5  ;;  %v5135_v20 = vcombine.low %v2747_v56, %v2757_v28  ;;  %v5173_v3 = vcombine.low %v6968_v44, %v6977_v36  ;;  %5713 = vmatpush3.bf16.msra.mxu0 %v5928_v0  ;;  %5668 = vmatprep.mubr.bf16.mxu0 %v5134_v7  ;;  %v2658_v0 = vld [vmem:[#allocation2 + $0x5c] sm:$0x1]  ;;  %v3105_v7 = vld [vmem:[#allocation2 + $0x30] sm:$0xe] }
 0x18b   : > { %5691 = vmatpush3.bf16.msra.mxu1 %v5927_v10  ;;  %v6990_v38 = vsel %vm6805_vm1, %v5150_v48, %v3160_v35  ;;  %v3162_v43 = vrot.slane %v3160_v35, 4  ;;  %v2785_v39 = vrot.slane %v2783_v12, 4  ;;  %v2786_v10 = vshll.u32 %v2653_v21, 16  ;;  %5714 = vmatprep.subr.bf16.mxu0 %v5931_v41  ;;  %v3109_v21 = vld [vmem:[#allocation2 + $0x40] sm:$0xf]  ;;  %v5936_v28 = vld [vmem:[%s7553_s5 + $0x1f0] sm:$0xff]  }
 0x18c   : > { %v2781_v9 = vsel %vm6651_vm14, %v2776_v49, %v2780_v26  ;;  %v2792_v60 = vshll.u32 %v2654_v27, 16  ;;  %5692 = vmatprep.subr.bf16.mxu1 %v5930_v34  ;;  %v2771_v4 = vsel %vm6651_vm14, %v2766_v23, %v2770_v1  ;;  %v2796_v40 = vshrl.u32 %v2654_v27, 16  ;;  %v3108_v1 = vld [vmem:[#allocation2 + $0x3c] sm:$0xe]  ;;  %v3110_v16 = vld [vmem:[#allocation2 + $0x44] sm:$0x1] }
 0x18d   : > { %v6998_v45 = vsel %vm6805_vm1, %v3162_v43, %v3163_v51  ;;  %v2802_v14 = vshll.u32 %v2655_v59, 16  ;;  %v5136_v18 = vcombine.low %v2771_v4, %v2781_v9  ;;  %v2788_v11 = vrot.slane %v2786_v10, 5  ;;  %v5937_v23 = vld [vmem:[%s7553_s5 + $0x198] sm:$0xff]   ;;  %v3111_v36 = vld [vmem:[#allocation2 + $0x48] sm:$0xe]  ;;  %v5939_v4 = vld [vmem:[%s7553_s5 + $0x190] sm:$0xff]  }
 0x18e   : > { %5645 = vmatmul.mubr.bf16.gmra.mxu1 %v5929_v2  ;;  %v2794_v46 = vrot.slane %v2792_v60, 5  ;;  %v2807_v19 = vshrl.u32 %v2656_v8, 16  ;;  %v5174_v58 = vcombine.low %v6990_v38, %v6998_v45  ;;  %v2798_v57 = vrot.slane %v2796_v40, 4  ;;  %5715 = vmatpush3.bf16.msra.mxu0 %v5931_v41  ;;  %v2659_v41 = vld [vmem:[#allocation2 + $0x60] sm:$0xf]  ;;  %v5938_v60 = vld [vmem:[%s7553_s5 + $0x1e8] sm:$0xff]  }
 0x18f   : > { %5693 = vmatpush3.bf16.msra.mxu1 %v5930_v34  ;;  %5696 = vmatprep.mubr.bf16.mxu1 %v5172_v50  ;;  %v2810_v55 = vshll.u32 %v2656_v8, 16  ;;  %v2816_v61 = vshll.u32 %v2657_v42, 16  ;;  %v2789_v32 = vor.u32 %v2788_v11, %v2785_v39  ;;  %v2820_v53 = vshrl.u32 %v2657_v42, 16  ;;  %v2661_v8 = vld [vmem:[#allocation2 + $0x68] sm:$0x1] }
 0x190   : > { %5694 = vmatprep.subr.bf16.mxu1 %v5932_v47  ;;  %v2809_v33 = vrot.slane %v2807_v19, 4  ;;  %v2826_v62 = vshll.u32 %v2658_v0, 16  ;;  %5716 = vmatprep.subr.bf16.mxu0 %v5933_v24  ;;  %v2799_v15 = vor.u32 %v2798_v57, %v2794_v46  ;;  %v2804_v50 = vrot.slane %v2802_v14, 5  ;;  %v3113_v0 = vld [vmem:[#allocation2 + $0x50] sm:$0x1] }
 0x191   : > { %v2812_v63 = vrot.slane %v2810_v55, 5  ;;  %v2818_v31 = vrot.slane %v2816_v61, 5  ;;  %v2790_v56 = vrot.slane %v2789_v32, 4  ;;  %v2822_v37 = vrot.slane %v2820_v53, 4  ;;  %5669 = vmatmul.mubr.bf16.gmra.mxu0 %v5135_v20  ;;  %v3114_v19 = vld [vmem:[#allocation2 + $0x54] sm:$0xe] }
 0x192   : > { %v5151_v26 = vrot.slane %v3105_v7, 9  ;;  %v3167_v17 = vrot.slane %v3106_v22, 5  ;;  %v2800_v34 = vrot.slane %v2799_v15, 4  ;;  %v2828_v54 = vrot.slane %v2826_v62, 5  ;;  %5717 = vmatpush3.bf16.msra.mxu0 %v5933_v24  ;;  %5672 = vmatprep.mubr.bf16.mxu0 %v5136_v18  ;;  %v2660_v24 = vld [vmem:[#allocation2 + $0x64] sm:$0xf] }
 0x193   : > { %5695 = vmatpush3.bf16.msra.mxu1 %v5932_v47  ;;  %v2813_v52 = vor.u32 %v2812_v63, %v2809_v33  ;;  %v3170_v5 = vrot.slane %v3107_v25, 5  ;;  %v2795_v48 = vsel %vm6651_vm14, %v2790_v56, %v2794_v46  ;;  %v2823_v35 = vor.u32 %v2822_v37, %v2818_v31  ;;  %5718 = vmatprep.subr.bf16.mxu0 %v5935_v6  ;;  %v3115_v22 = vld [vmem:[#allocation2 + $0x58] sm:$0xf]  ;;  %v3116_v25 = vld [vmem:[#allocation2 + $0x5c] sm:$0x1]  ;;  %v5941_v56 = vld [vmem:[%s7553_s5 + $0x188] sm:$0xff]  }
 0x194   : > { %v3169_v27 = vrot.slane %v3167_v17, 4  ;;  %v5152_v12 = vrot.slane %v3108_v1, 9  ;;  %5744 = vmatprep.subr.bf16.mxu1 %v5934_v29  ;;  %v2805_v49 = vsel %vm6651_vm14, %v2800_v34, %v2804_v50  ;;  %v3168_v59 = vsel %vm6805_vm1, %v5151_v26, %v3167_v17  ;;  %v3118_v1 = vld [vmem:[#allocation2 + $0x64] sm:$0xf]  ;;  %v3119_v34 = vld [vmem:[#allocation2 + $0x68] sm:$0x1] }
 0x195   : > { %v2814_v51 = vrot.slane %v2813_v52, 4  ;;  %v3174_v47 = vrot.slane %v3109_v21, 5  ;;  %v2824_v20 = vrot.slane %v2823_v35, 4  ;;  %v3177_v43 = vrot.slane %v3110_v16, 5  ;;  %v3717_v21 = vld [vmem:[#allocation2 + $0x18] sm:$0xf] }
 0x196   : > { %5697 = vmatmul.mubr.bf16.vlgmr.msra.gmra.mxu1 %v5173_v3  ;;  %v3171_v38 = vsel %vm6805_vm1, %v3169_v27, %v3170_v5  ;;  %v2831_v2 = vshrl.u32 %v2659_v41, 16  ;;  %v5137_v9 = vcombine.low %v2795_v48, %v2805_v49  ;;  %v3112_v3 = vld [vmem:[#allocation2 + $0x4c] sm:$0xf]  ;;  %5719 = vmatpush3.bf16.msra.mxu0 %v5935_v6  ;;  %v2834_v40 = vshll.u32 %v2659_v41, 16  ;;  %v5940_v6 = vld [vmem:[%s7553_s5 + $0x1e0] sm:$0xff]   ;;  %v5943_v35 = vld [vmem:[%s7553_s5 + $0x1d8] sm:$0xff]  }
 0x197   : > { %5700 = vmatprep.mubr.bf16.mxu1 %v5174_v58  ;;  %5745 = vmatpush3.bf16.msra.mxu1 %v5934_v29  ;;  %v2819_v39 = vsel %vm6651_vm14, %v2814_v51, %v2818_v31  ;;  %v5175_v10 = vcombine.low %v3168_v59, %v3171_v38  ;;  %v3176_v44 = vrot.slane %v3174_v47, 4  ;;  %v2829_v42 = vsel %vm6651_vm14, %v2824_v20, %v2828_v54  ;;  %v3117_v29 = vld [vmem:[#allocation2 + $0x60] sm:$0xe]  ;;  %v3720_v20 = vld [vmem:[#allocation2 + $0x24] sm:$0xf] }
 0x198   : > { %5746 = vmatprep.subr.bf16.mxu1 %v5936_v28  ;;  %v2833_v45 = vrot.slane %v2831_v2, 4  ;;  %v2840_v14 = vshll.u32 %v2660_v24, 16  ;;  %5720 = vmatprep.subr.bf16.mxu0 %v5937_v23  ;;  %v3175_v7 = vsel %vm6805_vm1, %v5152_v12, %v3174_v47  ;;  %v2844_v11 = vshrl.u32 %v2660_v24, 16  ;;  %v3718_v12 = vld [vmem:[#allocation2 + $0x1c] sm:$0xf] }
 0x199   : > { %v3178_v18 = vsel %vm6805_vm1, %v3176_v44, %v3177_v43  ;;  %v2850_v46 = vshll.u32 %v2661_v8, 16  ;;  %v5138_v58 = vcombine.low %v2819_v39, %v2829_v42  ;;  %v2836_v55 = vrot.slane %v2834_v40, 5  ;;  %5673 = vmatmul.mubr.bf16.gmra.mxu0 %v5137_v9  ;;  %v3719_v24 = vld [vmem:[#allocation2 + $0x20] sm:$0x1]  ;;  %v3721_v9 = vld [vmem:[#allocation2 + $0x28] sm:$0xf] }
 0x19a   : > { %v5176_v57 = vcombine.low %v3175_v7, %v3178_v18  ;;  %v2842_v61 = vrot.slane %v2840_v14, 5  ;;  %v2846_v32 = vrot.slane %v2844_v11, 4  ;;  %v5153_v53 = vrot.slane %v3111_v36, 9  ;;  %5721 = vmatpush3.bf16.msra.mxu0 %v5937_v23  ;;  %v5945_v42 = vld [vmem:[%s7553_s5 + $0x1d0] sm:$0xff]   ;;  %v3722_v14 = vld [vmem:[#allocation2 + $0x2c] sm:$0x1] }
 0x19b   : > { %5747 = vmatpush3.bf16.msra.mxu1 %v5936_v28  ;;  %v2852_v33 = vrot.slane %v2850_v46, 5  ;;  %v3181_v62 = vrot.slane %v3112_v3, 5  ;;  %5676 = vmatprep.mubr.bf16.mxu0 %v5138_v58  ;;  %v2837_v15 = vor.u32 %v2836_v55, %v2833_v45  ;;  %v3184_v50 = vrot.slane %v3113_v0, 5 }
 0x19c   : > { %v5154_v63 = vrot.slane %v3114_v19, 9  ;;  %v3188_v31 = vrot.slane %v3115_v22, 5  ;;  %5748 = vmatprep.subr.bf16.mxu1 %v5938_v60  ;;  %5722 = vmatprep.subr.bf16.mxu0 %v5939_v4  ;;  %v2847_v37 = vor.u32 %v2846_v32, %v2842_v61  ;;  %v3191_v16 = vrot.slane %v3116_v25, 5  ;;  %v3723_v19 = vld [vmem:[#allocation2 + $0x30] sm:$0xf]  ;;  %v7080_v25 = vld [vmem:[%s7553_s5 + $0x238] sm:$0xff]  }
 0x19d   : > { %v3182_v26 = vsel %vm6805_vm1, %v5153_v53, %v3181_v62  ;;  %v3183_v17 = vrot.slane %v3181_v62, 4  ;;  %v2838_v52 = vrot.slane %v2837_v15, 4  ;;  %v5155_v5 = vrot.slane %v3117_v29, 9 }
 0x19e   : > { %5701 = vmatmul.mubr.bf16.gmra.mxu1 %v5175_v10  ;;  %v3190_v54 = vrot.slane %v3188_v31, 4  ;;  %v3195_v41 = vrot.slane %v3118_v1, 5  ;;  %v2848_v28 = vrot.slane %v2847_v37, 4  ;;  %v3189_v27 = vsel %vm6805_vm1, %v5154_v63, %v3188_v31  ;;  %5723 = vmatpush3.bf16.msra.mxu0 %v5939_v4  ;;  %v5942_v10 = vld [vmem:[#allocation2 + $0x18] sm:$0xff]  }
 0x19f   : > { %5704 = vmatprep.mubr.bf16.mxu1 %v5176_v57  ;;  %5749 = vmatpush3.bf16.msra.mxu1 %v5938_v60  ;;  %v3185_v48 = vsel %vm6805_vm1, %v3183_v17, %v3184_v50  ;;  %v3742_v23 = vshrl.u32 %v3717_v21, 16  ;;  %v2843_v49 = vsel %vm6651_vm14, %v2838_v52, %v2842_v61  ;;  %v3198_v47 = vrot.slane %v3119_v34, 5  ;;  %v5944_v60 = vld [vmem:[%s7553_s5 + $0x180] sm:$0xff]   ;;  %v3724_v61 = vld [vmem:[#allocation2 + $0x34] sm:$0xf]  ;;  %v5949_v50 = vld [vmem:[%s7553_s5 + $0x1c8] sm:$0xff]  }
 0x1a0   : > { %5750 = vmatprep.subr.bf16.mxu1 %v5940_v6  ;;  %v3192_v51 = vsel %vm6805_vm1, %v3190_v54, %v3191_v16  ;;  %v3197_v59 = vrot.slane %v3195_v41, 4  ;;  %5724 = vmatprep.subr.bf16.mxu0 %v5941_v56  ;;  %v2853_v38 = vsel %vm6651_vm14, %v2848_v28, %v2852_v33  ;;  %v5177_v43 = vcombine.low %v3182_v26, %v3185_v48  ;;  %v3726_v52 = vld [vmem:[#allocation2 + $0x3c] sm:$0xf]  ;;  %v5947_v54 = vld [vmem:[#allocation2 + $0x24] sm:$0xff]  }
 0x1a1   : > { %v5178_v8 = vcombine.low %v3189_v27, %v3192_v51  ;;  %v7065_v2 = vsel %vm6805_vm1, %v5155_v5, %v3195_v41  ;;  %v5139_v39 = vcombine.low %v2843_v49, %v2853_v38  ;;  %v3744_v44 = vrot.slane %v3742_v23, 4  ;;  %v7091_v41 = vld [vmem:[%s7553_s5 + $0x230] sm:$0xff]  }
 0x1a2   : > { %v3745_v36 = vshll.u32 %v3717_v21, 16  ;;  %v3751_v3 = vshll.u32 %v3718_v12, 16  ;;  %v7075_v4 = vsel %vm6805_vm1, %v3197_v59, %v3198_v47  ;;  %v3755_v45 = vshrl.u32 %v3718_v12, 16  ;;  %5725 = vmatpush3.bf16.msra.mxu0 %v5941_v56  ;;  %v3725_v56 = vld [vmem:[#allocation2 + $0x38] sm:$0x1]  ;;  %v5948_v27 = vld [vmem:[#allocation2 + $0x30] sm:$0xff]  }
 0x1a3   : > { %5751 = vmatpush3.bf16.msra.mxu1 %v5940_v6  ;;  %v3761_v40 = vshll.u32 %v3719_v24, 16  ;;  %v3766_v0 = vshrl.u32 %v3720_v20, 16  ;;  %5677 = vmatmul.mubr.bf16.gmra.mxu0 %v5139_v39  ;;  %v3769_v11 = vshll.u32 %v3720_v20, 16  ;;  %v3775_v46 = vshll.u32 %v3721_v9, 16  ;;  %v3727_v59 = vld [vmem:[#allocation2 + $0x40] sm:$0xf] }
 0x1a4   : > { %5752 = vmatprep.subr.bf16.mxu1 %v5943_v35  ;;  %v3747_v7 = vrot.slane %v3745_v36, 5  ;;  %v3753_v18 = vrot.slane %v3751_v3, 5  ;;  %5728 = vmatprep.mubr.bf16.mxu0 %v5942_v10  ;;  %v3757_v22 = vrot.slane %v3755_v45, 4  ;;  %v3779_v55 = vshrl.u32 %v3721_v9, 16  ;;  %v5951_v20 = vld [vmem:[%s7553_s5 + $0x1c0] sm:$0xff]  }
 0x1a5   : > { %v3763_v58 = vrot.slane %v3761_v40, 5  ;;  %v3768_v57 = vrot.slane %v3766_v0, 4  ;;  %5726 = vmatprep.subr.bf16.mxu0 %v5944_v60  ;;  %v3771_v32 = vrot.slane %v3769_v11, 5  ;;  %v3777_v33 = vrot.slane %v3775_v46, 5  ;;  %v3730_v45 = vld [vmem:[#allocation2 + $0x4c] sm:$0xf] }
 0x1a6   : > { %5705 = vmatmul.mubr.bf16.gmra.mxu1 %v5177_v43  ;;  %v3748_v29 = vor.u32 %v3747_v7, %v3744_v44  ;;  %v3785_v53 = vshll.u32 %v3722_v14, 16  ;;  %v3758_v62 = vor.u32 %v3757_v22, %v3753_v18  ;;  %v3781_v1 = vrot.slane %v3779_v55, 4  ;;  %5727 = vmatpush3.bf16.msra.mxu0 %v5944_v60  ;;  %v3728_v43 = vld [vmem:[#allocation2 + $0x44] sm:$0x1]  ;;  %v3729_v60 = vld [vmem:[#allocation2 + $0x48] sm:$0xf] }
 0x1a7   : > { %5708 = vmatprep.mubr.bf16.mxu1 %v5178_v8  ;;  %5753 = vmatpush3.bf16.msra.mxu1 %v5943_v35  ;;  %v3790_v6 = vshrl.u32 %v3723_v19, 16  ;;  %v3793_v15 = vshll.u32 %v3723_v19, 16  ;;  %v3772_v31 = vor.u32 %v3771_v32, %v3768_v57  ;;  %v3799_v37 = vshll.u32 %v3724_v61, 16  ;;  %v7111_v44 = vld [vmem:[%s7553_s5 + $0x228] sm:$0xff]   ;;  %v3732_v32 = vld [vmem:[#allocation2 + $0x54] sm:$0xf] }
 0x1a8   : > { %5754 = vmatprep.subr.bf16.mxu1 %v5945_v42  ;;  %v3749_v63 = vrot.slane %v3748_v29, 4  ;;  %v3787_v21 = vrot.slane %v3785_v53, 5  ;;  %v3759_v26 = vrot.slane %v3758_v62, 4  ;;  %v3782_v17 = vor.u32 %v3781_v1, %v3777_v33  ;;  %5776 = vmatprep.subr.bf16.mxu0 %v7080_v25  ;;  %v7124_v53 = vld [vmem:[%s7553_s5 + $0x220] sm:$0xff]  }
 0x1a9   : > { %v3792_v16 = vrot.slane %v3790_v6, 4  ;;  %v3795_v34 = vrot.slane %v3793_v15, 5  ;;  %v3773_v28 = vrot.slane %v3772_v31, 4  ;;  %v7093_v48 = vrot.slane %v3799_v37, 5  ;;  %v3733_v15 = vld [vmem:[#allocation2 + $0x58] sm:$0xf] }
 0x1aa   : > { %v3754_v5 = vsel %vm6651_vm14, %v3749_v63, %v3753_v18  ;;  %v3803_v35 = vshrl.u32 %v3724_v61, 16  ;;  %v3764_v12 = vsel %vm6651_vm14, %v3759_v26, %v3763_v58  ;;  %v3783_v23 = vrot.slane %v3782_v17, 4  ;;  %v5953_v18 = vld [vmem:[#allocation2 + $0x3c] sm:$0xff]   ;;  %v3731_v61 = vld [vmem:[#allocation2 + $0x50] sm:$0x1] }
 0x1ab   : > { %5755 = vmatpush3.bf16.msra.mxu1 %v5945_v42  ;;  %v3796_v49 = vor.u32 %v3795_v34, %v3792_v16  ;;  %v3809_v51 = vshll.u32 %v3725_v56, 16  ;;  %5729 = vmatmul.mubr.bf16.vlgmr.msra.gmra.mxu0 %v5947_v54  ;;  %v5179_v47 = vcombine.low %v7065_v2, %v7075_v4  ;;  %v5236_v24 = vcombine.low %v3754_v5, %v3764_v12  ;;  %v3734_v5 = vld [vmem:[#allocation2 + $0x5c] sm:$0x1] }
 0x1ac   : > { %5756 = vmatprep.subr.bf16.mxu1 %v5949_v50  ;;  %v3805_v38 = vrot.slane %v3803_v35, 4  ;;  %v3814_v8 = vshrl.u32 %v3726_v52, 16  ;;  %5777 = vmatpush3.bf16.msra.mxu0 %v7080_v25  ;;  %v3778_v9 = vsel %vm6651_vm14, %v3773_v28, %v3777_v33  ;;  %v3788_v39 = vsel %vm6651_vm14, %v3783_v23, %v3787_v21 }
 0x1ad   : > { %5732 = vmatprep.mubr.bf16.mxu0 %v5948_v27  ;;  %v3797_v10 = vrot.slane %v3796_v49, 4  ;;  %v3817_v2 = vshll.u32 %v3726_v52, 16  ;;  %5778 = vmatprep.subr.bf16.mxu0 %v7091_v41  ;;  %v3811_v3 = vrot.slane %v3809_v51, 5  ;;  %v3823_v4 = vshll.u32 %v3727_v59, 16  ;;  %v7131_v52 = vld [vmem:[%s7553_s5 + $0x218] sm:$0xff]  }
 0x1ae   : > { %5709 = vmatmul.mubr.bf16.gmra.mxu1 %v5179_v47  ;;  %v3806_v36 = vor.u32 %v3805_v38, %v7093_v48  ;;  %v3816_v42 = vrot.slane %v3814_v8, 4  ;;  %v5237_v40 = vcombine.low %v3778_v9, %v3788_v39  ;;  %v3827_v0 = vshrl.u32 %v3727_v59, 16  ;;  %v4175_v49 = vld [vmem:[#allocation2 + $0x18] sm:$0xe]  ;;  %v4176_v51 = vld [vmem:[#allocation2 + $0x1c] sm:$0xf] }
 0x1af   : > { %5757 = vmatpush3.bf16.msra.mxu1 %v5949_v50  ;;  %5760 = vmatprep.mubr.bf16.mxu1 %v5236_v24  ;;  %v3819_v14 = vrot.slane %v3817_v2, 5  ;;  %v3833_v7 = vshll.u32 %v3728_v43, 16  ;;  %v3825_v46 = vrot.slane %v3823_v4, 5  ;;  %v3838_v19 = vshrl.u32 %v3729_v60, 16  ;;  %v5954_v50 = vld [vmem:[#allocation2 + $0x48] sm:$0xff]   ;;  %v5957_v4 = vld [vmem:[#allocation2 + $0x54] sm:$0xff]  }
 0x1b0   : > { %5758 = vmatprep.subr.bf16.mxu1 %v5951_v20  ;;  %v3807_v11 = vrot.slane %v3806_v36, 4  ;;  %v3841_v22 = vshll.u32 %v3729_v60, 16  ;;  %5779 = vmatpush3.bf16.msra.mxu0 %v7091_v41  ;;  %v3802_v58 = vsel %vm6651_vm14, %v3797_v10, %v7093_v48  ;;  %v3829_v55 = vrot.slane %v3827_v0, 4  ;;  %v3735_v38 = vld [vmem:[#allocation2 + $0x60] sm:$0xf] }
 0x1b1   : > { %v3820_v57 = vor.u32 %v3819_v14, %v3816_v42  ;;  %v3847_v29 = vshll.u32 %v3730_v45, 16  ;;  %5780 = vmatprep.subr.bf16.mxu0 %v7111_v44  ;;  %v3840_v62 = vrot.slane %v3838_v19, 4  ;;  %v3851_v6 = vshrl.u32 %v3730_v45, 16  ;;  %v4177_v10 = vld [vmem:[#allocation2 + $0x20] sm:$0x1] }
 0x1b2   : > { %v3812_v33 = vsel %vm6651_vm14, %v3807_v11, %v3811_v3  ;;  %v3843_v1 = vrot.slane %v3841_v22, 5  ;;  %v3830_v31 = vor.u32 %v3829_v55, %v3825_v46  ;;  %v3835_v21 = vrot.slane %v3833_v7, 5  ;;  %v3736_v42 = vld [vmem:[#allocation2 + $0x64] sm:$0xf]  ;;  %v3737_v0 = vld [vmem:[#allocation2 + $0x68] sm:$0x1] }
 0x1b3   : > { %5759 = vmatpush3.bf16.msra.mxu1 %v5951_v20  ;;  %v3821_v63 = vrot.slane %v3820_v57, 4  ;;  %v3849_v56 = vrot.slane %v3847_v29, 5  ;;  %5733 = vmatmul.mubr.bf16.gmra.mxu0 %v5953_v18  ;;  %v3853_v26 = vrot.slane %v3851_v6, 4  ;;  %v3857_v17 = vshll.u32 %v3731_v61, 16  ;;  %v5958_v18 = vld [vmem:[#allocation2 + $0x60] sm:$0xff]  }
 0x1b4   : > { %5808 = vmatprep.subr.bf16.mxu1 %v7080_v25  ;;  %v3844_v37 = vor.u32 %v3843_v1, %v3840_v62  ;;  %v3862_v16 = vshrl.u32 %v3732_v32, 16  ;;  %5781 = vmatpush3.bf16.msra.mxu0 %v7111_v44  ;;  %v5238_v34 = vcombine.low %v3802_v58, %v3812_v33  ;;  %v3831_v54 = vrot.slane %v3830_v31, 4  ;;  %v4178_v29 = vld [vmem:[#allocation2 + $0x24] sm:$0xe]  ;;  %v4179_v6 = vld [vmem:[#allocation2 + $0x28] sm:$0xf] }
 0x1b5   : > { %5736 = vmatprep.mubr.bf16.mxu0 %v5954_v50  ;;  %v3865_v28 = vshll.u32 %v3732_v32, 16  ;;  %v3871_v48 = vshll.u32 %v3733_v15, 16  ;;  %5782 = vmatprep.subr.bf16.mxu0 %v7124_v53  ;;  %v3826_v35 = vsel %vm6651_vm14, %v3821_v63, %v3825_v46  ;;  %v3854_v12 = vor.u32 %v3853_v26, %v3849_v56 }
 0x1b6   : > { %5761 = vmatmul.mubr.bf16.vlgmr.msra.gmra.mxu1 %v5237_v40  ;;  %v3845_v27 = vrot.slane %v3844_v37, 4  ;;  %v3864_v23 = vrot.slane %v3862_v16, 4  ;;  %v3836_v59 = vsel %vm6651_vm14, %v3831_v54, %v3835_v21  ;;  %v3875_v20 = vshrl.u32 %v3733_v15, 16  ;;  %v3738_v21 = vld [vmem:[#allocation2 + $0x6c] sm:$0xf] }
 0x1b7   : > { %5764 = vmatprep.mubr.bf16.mxu1 %v5238_v34  ;;  %5816 = vmatpush3.bf16.msra.mxu1 %v7080_v25  ;;  %v3867_v47 = vrot.slane %v3865_v28, 5  ;;  %v3873_v24 = vrot.slane %v3871_v48, 5  ;;  %v5239_v43 = vcombine.low %v3826_v35, %v3836_v59  ;;  %v3855_v8 = vrot.slane %v3854_v12, 4  ;;  %v7146_v25 = vld [vmem:[%s7553_s5 + $0x210] sm:$0xff]   ;;  %v4180_v16 = vld [vmem:[#allocation2 + $0x2c] sm:$0x1] }
 0x1b8   : > { %5809 = vmatprep.subr.bf16.mxu1 %v7091_v41  ;;  %v3859_v9 = vrot.slane %v3857_v17, 5  ;;  %v3881_v39 = vshll.u32 %v3734_v5, 16  ;;  %5783 = vmatpush3.bf16.msra.mxu0 %v7124_v53  ;;  %v3850_v2 = vsel %vm6651_vm14, %v3845_v27, %v3849_v56  ;;  %v3877_v36 = vrot.slane %v3875_v20, 4  ;;  %v3739_v56 = vld [vmem:[#allocation2 + $0x70] sm:$0xf]  ;;  %v7175_v59 = vld [vmem:[%s7553_s5 + $0x200] sm:$0xff]  }
 0x1b9   : > { %v3868_v60 = vor.u32 %v3867_v47, %v3864_v23  ;;  %v4225_v3 = vrot.slane %v4176_v51, 5  ;;  %5784 = vmatprep.subr.bf16.mxu0 %v7131_v52  ;;  %v5252_v14 = vrot.slane %v4175_v49, 9  ;;  %v3886_v7 = vshrl.u32 %v3735_v38, 16  ;;  %v3740_v27 = vld [vmem:[#allocation2 + $0x74] sm:$0x1]  ;;  %v5961_v49 = vld [vmem:[#allocation2 + $0x6c] sm:$0xff]  }
 0x1ba   : > { %v3860_v45 = vsel %vm6651_vm14, %v3855_v8, %v3859_v9  ;;  %v3883_v40 = vrot.slane %v3881_v39, 5  ;;  %v3878_v19 = vor.u32 %v3877_v36, %v3873_v24  ;;  %v4228_v22 = vrot.slane %v4177_v10, 5  ;;  %v4182_v39 = vld [vmem:[#allocation2 + $0x34] sm:$0xf] }
 0x1bb   : > { %5817 = vmatpush3.bf16.msra.mxu1 %v7091_v41  ;;  %v5240_v11 = vcombine.low %v3850_v2, %v3860_v45  ;;  %v3869_v46 = vrot.slane %v3868_v60, 4  ;;  %5737 = vmatmul.mubr.bf16.gmra.mxu0 %v5957_v4  ;;  %v4227_v58 = vrot.slane %v4225_v3, 4  ;;  %v3888_v57 = vrot.slane %v3886_v7, 4  ;;  %v7157_v41 = vld [vmem:[%s7553_s5 + $0x208] sm:$0xff]   ;;  %v4181_v45 = vld [vmem:[#allocation2 + $0x30] sm:$0xe] }
 0x1bc   : > { %5810 = vmatprep.subr.bf16.mxu1 %v7111_v44  ;;  %v3889_v55 = vshll.u32 %v3735_v38, 16  ;;  %v3895_v61 = vshll.u32 %v3736_v42, 16  ;;  %5785 = vmatpush3.bf16.msra.mxu0 %v7131_v52  ;;  %v3879_v32 = vrot.slane %v3878_v19, 4  ;;  %v4226_v33 = vsel %vm6805_vm1, %v5252_v14, %v4225_v3  ;;  %v4194_v3 = vld [vmem:[#allocation2 + $0x64] sm:$0xf] }
 0x1bd   : > { %5740 = vmatprep.mubr.bf16.mxu0 %v5958_v18  ;;  %v3899_v62 = vshrl.u32 %v3736_v42, 16  ;;  %v3905_v1 = vshll.u32 %v3737_v0, 16  ;;  %5786 = vmatprep.subr.bf16.mxu0 %v7146_v25  ;;  %v3874_v15 = vsel %vm6651_vm14, %v3869_v46, %v3873_v24  ;;  %v4229_v50 = vsel %vm6805_vm1, %v4227_v58, %v4228_v22  ;;  %v4195_v46 = vld [vmem:[#allocation2 + $0x68] sm:$0x1] }
 0x1be   : > { %5765 = vmatmul.mubr.bf16.gmra.mxu1 %v5239_v43  ;;  %v3891_v63 = vrot.slane %v3889_v55, 5  ;;  %v3897_v31 = vrot.slane %v3895_v61, 5  ;;  %v3884_v37 = vsel %vm6651_vm14, %v3879_v32, %v3883_v40  ;;  %v5276_v26 = vcombine.low %v4226_v33, %v4229_v50  ;;  %v4183_v40 = vld [vmem:[#allocation2 + $0x38] sm:$0x1]  ;;  %v4186_v55 = vld [vmem:[#allocation2 + $0x44] sm:$0x1] }
 0x1bf   : > { %5768 = vmatprep.mubr.bf16.mxu1 %v5240_v11  ;;  %5818 = vmatpush3.bf16.msra.mxu1 %v7111_v44  ;;  %v3901_v17 = vrot.slane %v3899_v62, 4  ;;  %v5253_v34 = vrot.slane %v4178_v29, 9  ;;  %v5241_v54 = vcombine.low %v3874_v15, %v3884_v37  ;;  %v3907_v28 = vrot.slane %v3905_v1, 5  ;;  %v4193_v11 = vld [vmem:[#allocation2 + $0x60] sm:$0xe] }
 0x1c0   : > { %5811 = vmatprep.subr.bf16.mxu1 %v7124_v53  ;;  %v3892_v5 = vor.u32 %v3891_v63, %v3888_v57  ;;  %v4232_v48 = vrot.slane %v4179_v6, 5  ;;  %5787 = vmatpush3.bf16.msra.mxu0 %v7146_v25  ;;  %v3910_v12 = vshrl.u32 %v3738_v21, 16  ;;  %v3913_v23 = vshll.u32 %v3738_v21, 16  ;;  %v4185_v57 = vld [vmem:[#allocation2 + $0x40] sm:$0xf] }
 0x1c1   : > { %v3902_v35 = vor.u32 %v3901_v17, %v3897_v31  ;;  %v3919_v44 = vshll.u32 %v3739_v56, 16  ;;  %5788 = vmatprep.subr.bf16.mxu0 %v7157_v41  ;;  %v4235_v24 = vrot.slane %v4180_v16, 5  ;;  %v3923_v20 = vshrl.u32 %v3739_v56, 16  ;;  %v4188_v62 = vld [vmem:[#allocation2 + $0x4c] sm:$0xf] }
 0x1c2   : > { %v3893_v51 = vrot.slane %v3892_v5, 4  ;;  %v4234_v47 = vrot.slane %v4232_v48, 4  ;;  %v3912_v43 = vrot.slane %v3910_v12, 4  ;;  %v3915_v8 = vrot.slane %v3913_v23, 5  ;;  %v4196_v50 = vld [vmem:[#allocation2 + $0x6c] sm:$0xe] }
 0x1c3   : > { %5819 = vmatpush3.bf16.msra.mxu1 %v7124_v53  ;;  %v3903_v38 = vrot.slane %v3902_v35, 4  ;;  %v3921_v9 = vrot.slane %v3919_v44, 5  ;;  %5741 = vmatmul.mubr.bf16.gmra.mxu0 %v5961_v49  ;;  %v4233_v10 = vsel %vm6805_vm1, %v5253_v34, %v4232_v48  ;;  %v3925_v60 = vrot.slane %v3923_v20, 4  ;;  %v4197_v37 = vld [vmem:[#allocation2 + $0x70] sm:$0xf] }
 0x1c4   : > { %5812 = vmatprep.subr.bf16.mxu1 %v7131_v52  ;;  %v4236_v2 = vsel %vm6805_vm1, %v4234_v47, %v4235_v24  ;;  %v3929_v36 = vshll.u32 %v3740_v27, 16  ;;  %5789 = vmatpush3.bf16.msra.mxu0 %v7157_v41  ;;  %v3898_v53 = vsel %vm6651_vm14, %v3893_v51, %v3897_v31  ;;  %v3916_v4 = vor.u32 %v3915_v8, %v3912_v43  ;;  %v4191_v27 = vld [vmem:[#allocation2 + $0x58] sm:$0xf] }
 0x1c5   : > { %5792 = vmatprep.mubr.bf16.mxu0 %v5276_v26  ;;  %v3908_v42 = vsel %vm6651_vm14, %v3903_v38, %v3907_v28  ;;  %5790 = vmatprep.subr.bf16.mxu0 %v7175_v59  ;;  %v3926_v0 = vor.u32 %v3925_v60, %v3921_v9  ;;  %v4239_v18 = vrot.slane %v4182_v39, 5  ;;  %v5277_v19 = vcombine.low %v4233_v10, %v4236_v2  ;;  %v4198_v26 = vld [vmem:[#allocation2 + $0x74] sm:$0x1] }
 0x1c6   : > { %5769 = vmatmul.mubr.bf16.gmra.mxu1 %v5241_v54  ;;  %v5242_v14 = vcombine.low %v3898_v53, %v3908_v42  ;;  %v3931_v7 = vrot.slane %v3929_v36, 5  ;;  %v3917_v22 = vrot.slane %v3916_v4, 4  ;;  %v4267_v58 = vrot.slane %v4194_v3, 5  ;;  %v4189_v54 = vld [vmem:[#allocation2 + $0x50] sm:$0x1] }
 0x1c7   : > { %5820 = vmatpush3.bf16.msra.mxu1 %v7131_v52  ;;  %v3927_v61 = vrot.slane %v3926_v0, 4  ;;  %v5254_v29 = vrot.slane %v4181_v45, 9  ;;  %v4241_v32 = vrot.slane %v4239_v18, 4  ;;  %v4242_v33 = vrot.slane %v4183_v40, 5  ;;  %v4192_v36 = vld [vmem:[#allocation2 + $0x5c] sm:$0x1] }
 0x1c8   : > { %5772 = vmatprep.mubr.bf16.mxu1 %v5242_v14  ;;  %5813 = vmatprep.subr.bf16.mxu1 %v7146_v25  ;;  %v3922_v1 = vsel %vm6651_vm14, %v3917_v22, %v3921_v9  ;;  %v5258_v6 = vrot.slane %v4193_v11, 9  ;;  %v4269_v52 = vrot.slane %v4267_v58, 4  ;;  %v4270_v15 = vrot.slane %v4195_v46, 5  ;;  %v4190_v4 = vld [vmem:[#allocation2 + $0x54] sm:$0xe] }
 0x1c9   : > { %5791 = vmatpush3.bf16.msra.mxu0 %v7175_v59  ;;  %v3932_v63 = vsel %vm6651_vm14, %v3927_v61, %v3931_v7  ;;  %v4240_v31 = vsel %vm6805_vm1, %v5254_v29, %v4239_v18  ;;  %v4243_v21 = vsel %vm6805_vm1, %v4241_v32, %v4242_v33  ;;  %v4246_v56 = vrot.slane %v4185_v57, 5 }
 0x1ca   : > { %v5278_v17 = vcombine.low %v4240_v31, %v4243_v21  ;;  %v4268_v16 = vsel %vm6805_vm1, %v5258_v6, %v4267_v58  ;;  %v4271_v34 = vsel %vm6805_vm1, %v4269_v52, %v4270_v15  ;;  %v5243_v5 = vcombine.low %v3922_v1, %v3932_v63 }
 0x1cb   : > { %5821 = vmatpush3.bf16.msra.mxu1 %v7146_v25  ;;  %v4248_v28 = vrot.slane %v4246_v56, 4  ;;  %v4249_v48 = vrot.slane %v4186_v55, 5  ;;  %v4253_v35 = vrot.slane %v4188_v62, 5  ;;  %v5282_v12 = vcombine.low %v4268_v16, %v4271_v34  ;;  %v4187_v25 = vld [vmem:[#allocation2 + $0x48] sm:$0xe] }
 0x1cc   : > { %5793 = vmatmul.mubr.bf16.vlgmr.msra.gmra.mxu0 %v5277_v19  ;;  %5814 = vmatprep.subr.bf16.mxu1 %v7157_v41  ;;  %v5259_v23 = vrot.slane %v4196_v50, 9  ;;  %v4274_v44 = vrot.slane %v4197_v37, 5  ;;  %v4277_v49 = vrot.slane %v4198_v26, 5  ;;  %v4256_v47 = vrot.slane %v4189_v54, 5 }
 0x1cd   : > { %5796 = vmatprep.mubr.bf16.mxu0 %v5278_v17  ;;  %v4255_v51 = vrot.slane %v4253_v35, 4  ;;  %v5255_v24 = vrot.slane %v4184_v13, 9  ;;  %v4250_v20 = vsel %vm6805_vm1, %v4248_v28, %v4249_v48  ;;  %v4260_v43 = vrot.slane %v4191_v27, 5 }
 0x1ce   : > { %5773 = vmatmul.mubr.bf16.gmra.mxu1 %v5243_v5  ;;  %v4276_v38 = vrot.slane %v4274_v44, 4  ;;  %v5256_v8 = vrot.slane %v4187_v25, 9  ;;  %v4275_v10 = vsel %vm6805_vm1, %v5259_v23, %v4274_v44  ;;  %v4263_v45 = vrot.slane %v4192_v36, 5 }
 0x1cf   : > { %5822 = vmatpush3.bf16.msra.mxu1 %v7157_v41  ;;  %5804 = vmatprep.mubr.bf16.mxu1 %v5282_v12  ;;  %v4257_v9 = vsel %vm6805_vm1, %v4255_v51, %v4256_v47  ;;  %v4247_v39 = vsel %vm6805_vm1, %v5255_v24, %v4246_v56  ;;  %v4262_v53 = vrot.slane %v4260_v43, 4  ;;  %v5257_v40 = vrot.slane %v4190_v4, 9 }
 0x1d0   : > { %5815 = vmatprep.subr.bf16.mxu1 %v7175_v59  ;;  %v4278_v41 = vsel %vm6805_vm1, %v4276_v38, %v4277_v49  ;;  %v5279_v2 = vcombine.low %v4247_v39, %v4250_v20  ;;  %v4254_v60 = vsel %vm6805_vm1, %v5256_v8, %v4253_v35 }
 0x1d1   : > { %v5280_v3 = vcombine.low %v4254_v60, %v4257_v9  ;;  %v5283_v42 = vcombine.low %v4275_v10, %v4278_v41  ;;  %v4264_v14 = vsel %vm6805_vm1, %v4262_v53, %v4263_v45  ;;  %v4261_v0 = vsel %vm6805_vm1, %v5257_v40, %v4260_v43 }
 0x1d2   : > { %v5281_v7 = vcombine.low %v4261_v0, %v4264_v14 }
 0x1d3   : > { %5823 = vmatpush3.bf16.msra.mxu1 %v7175_v59 }
 0x1d4   : > { %5797 = vmatmul.mubr.bf16.gmra.mxu0 %v5279_v2 }
 0x1d5   : > { %5800 = vmatprep.mubr.bf16.mxu0 %v5280_v3 }
 0x1d6   : > { %5805 = vmatmul.mubr.bf16.vlgmr.msra.gmra.mxu1 %v5283_v42 }
 0x1dc   : > { %5801 = vmatmul.mubr.bf16.gmra.mxu0 %v5281_v7 }
 0x1e4   : > { %v5538_v18 = vpop.f32.mrf.mxu0 }
 0x1e5   : > { %1540 = vst.msk [vmem:[#allocation3 + $0x10] sm:$0xff] %vm545_vm5, %v5538_v18 }
 0x1e6   : > { %v1475_v59 = vpop.f32.mrf.mxu0 }
 0x1e7   : > { %1538 = vst.msk [vmem:[#allocation3] sm:$0xff] %vm545_vm5, %v1475_v59 }
 0x1e8   : > { %v5539_v11 = vpop.f32.mrf.mxu0 }
 0x1e9   : > { %1541 = vst.msk [vmem:[#allocation3 + $0x18] sm:$0xff] %vm545_vm5, %v5539_v11 }
 0x1ea   : > { %v1478_v46 = vpop.f32.mrf.mxu0 }
 0x1eb   : > { %1539 = vst.msk [vmem:[#allocation3 + $0x8] sm:$0xff] %vm545_vm5, %v1478_v46 }
 0x1ec   : > { %v5542_v19 = vpop.f32.mrf.mxu0  ;;  %v1969_v55 = vld [vmem:[#allocation3 + $0x10] sm:$0xff] }
 0x1ed   : > { %1544 = vst.msk [vmem:[#allocation3 + $0x30] sm:$0xff] %vm545_vm5, %v5542_v19 }
 0x1ee   : > { %v1491_v22 = vpop.f32.mrf.mxu0  ;;  %v1967_v32 = vld [vmem:[#allocation3] sm:$0xff] }
 0x1ef   : > { %1542 = vst.msk [vmem:[#allocation3 + $0x20] sm:$0xff] %vm545_vm5, %v1491_v22 }
 0x1f0   : > { %v5543_v30 = vpop.f32.mrf.mxu0  ;;  %v1970_v1 = vld [vmem:[#allocation3 + $0x18] sm:$0xff] }
 0x1f1   : > { %1545 = vst.msk [vmem:[#allocation3 + $0x38] sm:$0xff] %vm545_vm5, %v5543_v30 }
 0x1f2   : > { %v1494_v58 = vpop.f32.mrf.mxu0  ;;  %v1968_v15 = vld [vmem:[#allocation3 + $0x8] sm:$0xff] }
 0x1f3   : > { %1543 = vst.msk [vmem:[#allocation3 + $0x28] sm:$0xff] %vm545_vm5, %v1494_v58 }
 0x1f4   : > { %v1973_v26 = vld [vmem:[#allocation3 + $0x30] sm:$0xff] }
 0x1f6   : > { %v1971_v34 = vld [vmem:[#allocation3 + $0x20] sm:$0xff] }
 0x1f7   : > { %v5570_v57 = vpop.f32.mrf.mxu1 }
 0x1f8   : > { %v1985_v61 = vadd.f32 %v5570_v57, %v1969_v55  ;;  %v1974_v5 = vld [vmem:[#allocation3 + $0x38] sm:$0xff] }
 0x1f9   : > { %v1904_v29 = vpop.f32.mrf.mxu1 }
 0x1fa   : > { %2001 = vst.msk [vmem:[#allocation3 + $0x10] sm:$0xff] %vm545_vm5, %v1985_v61  ;;  %v1983_v33 = vadd.f32 %v1967_v32, %v1904_v29  ;;  %v1972_v35 = vld [vmem:[#allocation3 + $0x28] sm:$0xff] }
 0x1fb   : > { %v5571_v62 = vpop.f32.mrf.mxu1 }
 0x1fc   : > { %1999 = vst.msk [vmem:[#allocation3] sm:$0xff] %vm545_vm5, %v1983_v33  ;;  %v1986_v6 = vadd.f32 %v5571_v62, %v1970_v1 }
 0x1fd   : > { %v1907_v52 = vpop.f32.mrf.mxu1 }
 0x1fe   : > { %2002 = vst.msk [vmem:[#allocation3 + $0x18] sm:$0xff] %vm545_vm5, %v1986_v6  ;;  %v1984_v50 = vadd.f32 %v1968_v15, %v1907_v52 }
 0x200   : > { %2000 = vst.msk [vmem:[#allocation3 + $0x8] sm:$0xff] %vm545_vm5, %v1984_v50 }
 0x201   : > { %v2318_v60 = vld [vmem:[#allocation3 + $0x10] sm:$0xff] }
 0x203   : > { %v5546_v63 = vpop.f32.mrf.mxu0  ;;  %v2316_v53 = vld [vmem:[#allocation3] sm:$0xff] }
 0x204   : > { %1548 = vst.msk [vmem:[#allocation3 + $0x50] sm:$0xff] %vm545_vm5, %v5546_v63 }
 0x205   : > { %v1507_v31 = vpop.f32.mrf.mxu0  ;;  %v2319_v0 = vld [vmem:[#allocation3 + $0x18] sm:$0xff] }
 0x206   : > { %1546 = vst.msk [vmem:[#allocation3 + $0x40] sm:$0xff] %vm545_vm5, %v1507_v31 }
 0x207   : > { %v5547_v21 = vpop.f32.mrf.mxu0  ;;  %v2317_v19 = vld [vmem:[#allocation3 + $0x8] sm:$0xff] }
 0x208   : > { %1549 = vst.msk [vmem:[#allocation3 + $0x58] sm:$0xff] %vm545_vm5, %v5547_v21 }
 0x209   : > { %v1510_v56 = vpop.f32.mrf.mxu0 }
 0x20a   : > { %1547 = vst.msk [vmem:[#allocation3 + $0x48] sm:$0xff] %vm545_vm5, %v1510_v56 }
 0x20b   : > { %v1977_v25 = vld [vmem:[#allocation3 + $0x50] sm:$0xff] }
 0x20d   : > { %v1975_v49 = vld [vmem:[#allocation3 + $0x40] sm:$0xff] }
 0x20f   : > { %v5574_v37 = vpop.f32.mrf.mxu1  ;;  %v1978_v20 = vld [vmem:[#allocation3 + $0x58] sm:$0xff] }
 0x210   : > { %v1989_v17 = vadd.f32 %v5574_v37, %v1973_v26 }
 0x211   : > { %v1920_v16 = vpop.f32.mrf.mxu1  ;;  %v1976_v9 = vld [vmem:[#allocation3 + $0x48] sm:$0xff] }
 0x212   : > { %2005 = vst.msk [vmem:[#allocation3 + $0x30] sm:$0xff] %vm545_vm5, %v1989_v17  ;;  %v1987_v13 = vadd.f32 %v1971_v34, %v1920_v16 }
 0x213   : > { %v5575_v54 = vpop.f32.mrf.mxu1 }
 0x214   : > { %2003 = vst.msk [vmem:[#allocation3 + $0x20] sm:$0xff] %vm545_vm5, %v1987_v13  ;;  %v1990_v28 = vadd.f32 %v5575_v54, %v1974_v5 }
 0x215   : > { %v1923_v48 = vpop.f32.mrf.mxu1 }
 0x216   : > { %2006 = vst.msk [vmem:[#allocation3 + $0x38] sm:$0xff] %vm545_vm5, %v1990_v28  ;;  %v1988_v27 = vadd.f32 %v1972_v35, %v1923_v48 }
 0x218   : > { %2004 = vst.msk [vmem:[#allocation3 + $0x28] sm:$0xff] %vm545_vm5, %v1988_v27 }
 0x219   : > { %v2322_v61 = vld [vmem:[#allocation3 + $0x30] sm:$0xff] }
 0x21b   : > { %v2320_v52 = vld [vmem:[#allocation3 + $0x20] sm:$0xff] }
 0x21d   : > { %v2323_v56 = vld [vmem:[#allocation3 + $0x38] sm:$0xff] }
 0x21f   : > { %v5578_v12 = vpop.f32.mrf.mxu1  ;;  %v2321_v13 = vld [vmem:[#allocation3 + $0x28] sm:$0xff] }
 0x220   : > { %v1993_v23 = vadd.f32 %v5578_v12, %v1977_v25 }
 0x221   : > { %v1936_v44 = vpop.f32.mrf.mxu1  ;;  %v5550_v47 = vpop.f32.mrf.mxu0 }
 0x222   : > { %2009 = vst.msk [vmem:[#allocation3 + $0x50] sm:$0xff] %vm545_vm5, %v1993_v23  ;;  %v1991_v51 = vadd.f32 %v1975_v49, %v1936_v44  ;;  %1552 = vst.msk [vmem:[#allocation3 + $0x70] sm:$0xff] %vm545_vm5, %v5550_v47 }
 0x223   : > { %v5579_v24 = vpop.f32.mrf.mxu1  ;;  %v1523_v43 = vpop.f32.mrf.mxu0 }
 0x224   : > { %2007 = vst.msk [vmem:[#allocation3 + $0x40] sm:$0xff] %vm545_vm5, %v1991_v51  ;;  %v1994_v38 = vadd.f32 %v5579_v24, %v1978_v20  ;;  %1550 = vst.msk [vmem:[#allocation3 + $0x60] sm:$0xff] %vm545_vm5, %v1523_v43 }
 0x225   : > { %v1939_v8 = vpop.f32.mrf.mxu1  ;;  %v5551_v10 = vpop.f32.mrf.mxu0 }
 0x226   : > { %2010 = vst.msk [vmem:[#allocation3 + $0x58] sm:$0xff] %vm545_vm5, %v1994_v38  ;;  %v1992_v39 = vadd.f32 %v1976_v9, %v1939_v8  ;;  %1553 = vst.msk [vmem:[#allocation3 + $0x78] sm:$0xff] %vm545_vm5, %v5551_v10 }
 0x227   : > { %v1526_v41 = vpop.f32.mrf.mxu0 }
 0x228   : > { %2008 = vst.msk [vmem:[#allocation3 + $0x48] sm:$0xff] %vm545_vm5, %v1992_v39  ;;  %1551 = vst.msk [vmem:[#allocation3 + $0x68] sm:$0xff] %vm545_vm5, %v1526_v41 }
 0x229   : > { %v5602_v2 = vpop.f32.mrf.mxu0  ;;  %v1981_v4 = vld [vmem:[#allocation3 + $0x70] sm:$0xff] }
 0x22a   : > { %v2334_v36 = vadd.f32 %v5602_v2, %v2318_v60  ;;  %v2326_v27 = vld [vmem:[#allocation3 + $0x50] sm:$0xff] }
 0x22b   : > { %v2253_v3 = vpop.f32.mrf.mxu0  ;;  %v1979_v18 = vld [vmem:[#allocation3 + $0x60] sm:$0xff] }
 0x22c   : > { %2350 = vst.msk [vmem:[#allocation3 + $0x10] sm:$0xff] %vm545_vm5, %v2334_v36  ;;  %v2332_v45 = vadd.f32 %v2316_v53, %v2253_v3  ;;  %v2324_v51 = vld [vmem:[#allocation3 + $0x40] sm:$0xff] }
 0x22d   : > { %v5603_v14 = vpop.f32.mrf.mxu0  ;;  %v1982_v30 = vld [vmem:[#allocation3 + $0x78] sm:$0xff] }
 0x22e   : > { %v5582_v42 = vpop.f32.mrf.mxu1  ;;  %2348 = vst.msk [vmem:[#allocation3] sm:$0xff] %vm545_vm5, %v2332_v45  ;;  %v2335_v59 = vadd.f32 %v5603_v14, %v2319_v0  ;;  %v2327_v8 = vld [vmem:[#allocation3 + $0x58] sm:$0xff] }
 0x22f   : > { %v1997_v40 = vadd.f32 %v5582_v42, %v1981_v4  ;;  %v2256_v46 = vpop.f32.mrf.mxu0  ;;  %v1980_v32 = vld [vmem:[#allocation3 + $0x68] sm:$0xff] }
 0x230   : > { %v1952_v7 = vpop.f32.mrf.mxu1  ;;  %2351 = vst.msk [vmem:[#allocation3 + $0x18] sm:$0xff] %vm545_vm5, %v2335_v59  ;;  %v2333_v58 = vadd.f32 %v2317_v19, %v2256_v46  ;;  %v2325_v60 = vld [vmem:[#allocation3 + $0x48] sm:$0xff] }
 0x231   : > { %2013 = vst.msk [vmem:[#allocation3 + $0x70] sm:$0xff] %vm545_vm5, %v1997_v40  ;;  %v1995_v11 = vadd.f32 %v1979_v18, %v1952_v7  ;;  %v5606_v55 = vpop.f32.mrf.mxu0 }
 0x232   : > { %v5583_v22 = vpop.f32.mrf.mxu1  ;;  %2349 = vst.msk [vmem:[#allocation3 + $0x8] sm:$0xff] %vm545_vm5, %v2333_v58  ;;  %v2338_v33 = vadd.f32 %v5606_v55, %v2322_v61 }
 0x233   : > { %2011 = vst.msk [vmem:[#allocation3 + $0x60] sm:$0xff] %vm545_vm5, %v1995_v11  ;;  %v1998_v57 = vadd.f32 %v5583_v22, %v1982_v30  ;;  %v2592_v1 = vld [vmem:[#allocation3 + $0x10] sm:$0xff]  ;;  %v2269_v6 = vpop.f32.mrf.mxu0 }
 0x234   : > { %v1955_v29 = vpop.f32.mrf.mxu1  ;;  %2354 = vst.msk [vmem:[#allocation3 + $0x30] sm:$0xff] %vm545_vm5, %v2338_v33  ;;  %v2336_v50 = vadd.f32 %v2320_v52, %v2269_v6 }
 0x235   : > { %2014 = vst.msk [vmem:[#allocation3 + $0x78] sm:$0xff] %vm545_vm5, %v1998_v57  ;;  %v1996_v62 = vadd.f32 %v1980_v32, %v1955_v29  ;;  %v2590_v31 = vld [vmem:[#allocation3] sm:$0xff]  ;;  %v5607_v21 = vpop.f32.mrf.mxu0 }
 0x236   : > { %v5634_v15 = vpop.f32.mrf.mxu1  ;;  %2352 = vst.msk [vmem:[#allocation3 + $0x20] sm:$0xff] %vm545_vm5, %v2336_v50  ;;  %v2339_v26 = vadd.f32 %v5607_v21, %v2323_v56 }
 0x237   : > { %2012 = vst.msk [vmem:[#allocation3 + $0x68] sm:$0xff] %vm545_vm5, %v1996_v62  ;;  %v2608_v63 = vadd.f32 %v5634_v15, %v2592_v1  ;;  %v2593_v16 = vld [vmem:[#allocation3 + $0x18] sm:$0xff]  ;;  %v2272_v34 = vpop.f32.mrf.mxu0 }
 0x238   : > { %v2527_v37 = vpop.f32.mrf.mxu1  ;;  %2355 = vst.msk [vmem:[#allocation3 + $0x38] sm:$0xff] %vm545_vm5, %v2339_v26  ;;  %v2337_v5 = vadd.f32 %v2321_v13, %v2272_v34  ;;  %v2330_v45 = vld [vmem:[#allocation3 + $0x70] sm:$0xff] }
 0x239   : > { %2624 = vst.msk [vmem:[#allocation3 + $0x10] sm:$0xff] %vm545_vm5, %v2608_v63  ;;  %v2606_v17 = vadd.f32 %v2590_v31, %v2527_v37  ;;  %v2591_v48 = vld [vmem:[#allocation3 + $0x8] sm:$0xff]  ;;  %v5610_v35 = vpop.f32.mrf.mxu0 }
 0x23a   : > { %v5635_v54 = vpop.f32.mrf.mxu1  ;;  %2353 = vst.msk [vmem:[#allocation3 + $0x28] sm:$0xff] %vm545_vm5, %v2337_v5  ;;  %v2342_v25 = vadd.f32 %v5610_v35, %v2326_v27  ;;  %v2328_v59 = vld [vmem:[#allocation3 + $0x60] sm:$0xff] }
 0x23b   : > { %2622 = vst.msk [vmem:[#allocation3] sm:$0xff] %vm545_vm5, %v2606_v17  ;;  %v2609_v28 = vadd.f32 %v5635_v54, %v2593_v16  ;;  %v2596_v44 = vld [vmem:[#allocation3 + $0x30] sm:$0xff]  ;;  %v2285_v49 = vpop.f32.mrf.mxu0 }
 0x23c   : > { %v2530_v12 = vpop.f32.mrf.mxu1  ;;  %2358 = vst.msk [vmem:[#allocation3 + $0x50] sm:$0xff] %vm545_vm5, %v2342_v25  ;;  %v2340_v24 = vadd.f32 %v2324_v51, %v2285_v49  ;;  %v2331_v58 = vld [vmem:[#allocation3 + $0x78] sm:$0xff] }
 0x23d   : > { %2625 = vst.msk [vmem:[#allocation3 + $0x18] sm:$0xff] %vm545_vm5, %v2609_v28  ;;  %v2607_v23 = vadd.f32 %v2591_v48, %v2530_v12  ;;  %v2594_v38 = vld [vmem:[#allocation3 + $0x20] sm:$0xff]  ;;  %v5611_v43 = vpop.f32.mrf.mxu0 }
 0x23e   : > { %v5638_v47 = vpop.f32.mrf.mxu1  ;;  %2356 = vst.msk [vmem:[#allocation3 + $0x40] sm:$0xff] %vm545_vm5, %v2340_v24  ;;  %v2343_v39 = vadd.f32 %v5611_v43, %v2327_v8  ;;  %v2329_v33 = vld [vmem:[#allocation3 + $0x68] sm:$0xff] }
 0x23f   : > { %2623 = vst.msk [vmem:[#allocation3 + $0x8] sm:$0xff] %vm545_vm5, %v2607_v23  ;;  %v2612_v20 = vadd.f32 %v5638_v47, %v2596_v44  ;;  %v2597_v41 = vld [vmem:[#allocation3 + $0x38] sm:$0xff]  ;;  %v2288_v2 = vpop.f32.mrf.mxu0 }
 0x240   : > { %v2543_v9 = vpop.f32.mrf.mxu1  ;;  %2359 = vst.msk [vmem:[#allocation3 + $0x58] sm:$0xff] %vm545_vm5, %v2343_v39  ;;  %v2341_v3 = vadd.f32 %v2325_v60, %v2288_v2  ;;  %v3050_v50 = vld [vmem:[#allocation3 + $0x10] sm:$0xff] }
 0x241   : > { %2628 = vst.msk [vmem:[#allocation3 + $0x30] sm:$0xff] %vm545_vm5, %v2612_v20  ;;  %v2610_v10 = vadd.f32 %v2594_v38, %v2543_v9  ;;  %v2595_v42 = vld [vmem:[#allocation3 + $0x28] sm:$0xff]  ;;  %v5614_v4 = vpop.f32.mrf.mxu0 }
 0x242   : > { %v5639_v36 = vpop.f32.mrf.mxu1  ;;  %2357 = vst.msk [vmem:[#allocation3 + $0x48] sm:$0xff] %vm545_vm5, %v2341_v3  ;;  %v2346_v14 = vadd.f32 %v5614_v4, %v2330_v45  ;;  %v3048_v26 = vld [vmem:[#allocation3] sm:$0xff] }
 0x243   : > { %2626 = vst.msk [vmem:[#allocation3 + $0x20] sm:$0xff] %vm545_vm5, %v2610_v10  ;;  %v2613_v53 = vadd.f32 %v5639_v36, %v2597_v41  ;;  %v2600_v7 = vld [vmem:[#allocation3 + $0x50] sm:$0xff]  ;;  %v2301_v18 = vpop.f32.mrf.mxu0 }
 0x244   : > { %v2546_v40 = vpop.f32.mrf.mxu1  ;;  %2362 = vst.msk [vmem:[#allocation3 + $0x70] sm:$0xff] %vm545_vm5, %v2346_v14  ;;  %v2344_v46 = vadd.f32 %v2328_v59, %v2301_v18  ;;  %v3051_v5 = vld [vmem:[#allocation3 + $0x18] sm:$0xff] }
 0x245   : > { %2629 = vst.msk [vmem:[#allocation3 + $0x38] sm:$0xff] %vm545_vm5, %v2613_v53  ;;  %v2611_v0 = vadd.f32 %v2595_v42, %v2546_v40  ;;  %v2598_v22 = vld [vmem:[#allocation3 + $0x40] sm:$0xff]  ;;  %v5615_v30 = vpop.f32.mrf.mxu0 }
 0x246   : > { %v5642_v11 = vpop.f32.mrf.mxu1  ;;  %2360 = vst.msk [vmem:[#allocation3 + $0x60] sm:$0xff] %vm545_vm5, %v2344_v46  ;;  %v2347_v55 = vadd.f32 %v5615_v30, %v2331_v58  ;;  %v3049_v25 = vld [vmem:[#allocation3 + $0x8] sm:$0xff] }
 0x247   : > { %2627 = vst.msk [vmem:[#allocation3 + $0x28] sm:$0xff] %vm545_vm5, %v2611_v0  ;;  %v2616_v19 = vadd.f32 %v5642_v11, %v2600_v7  ;;  %v2601_v29 = vld [vmem:[#allocation3 + $0x58] sm:$0xff]  ;;  %v2304_v32 = vpop.f32.mrf.mxu0 }
 0x248   : > { %v2559_v57 = vpop.f32.mrf.mxu1  ;;  %2363 = vst.msk [vmem:[#allocation3 + $0x78] sm:$0xff] %vm545_vm5, %v2347_v55  ;;  %v2345_v1 = vadd.f32 %v2329_v33, %v2304_v32  ;;  %v3054_v24 = vld [vmem:[#allocation3 + $0x30] sm:$0xff] }
 0x249   : > { %2632 = vst.msk [vmem:[#allocation3 + $0x50] sm:$0xff] %vm545_vm5, %v2616_v19  ;;  %v2614_v61 = vadd.f32 %v2598_v22, %v2559_v57  ;;  %v2599_v52 = vld [vmem:[#allocation3 + $0x48] sm:$0xff]  ;;  %v5666_v15 = vpop.f32.mrf.mxu0 }
 0x24a   : > { %v5643_v62 = vpop.f32.mrf.mxu1  ;;  %2361 = vst.msk [vmem:[#allocation3 + $0x68] sm:$0xff] %vm545_vm5, %v2345_v1  ;;  %v3066_v31 = vadd.f32 %v5666_v15, %v3050_v50  ;;  %v3052_v39 = vld [vmem:[#allocation3 + $0x20] sm:$0xff] }
 0x24b   : > { %2630 = vst.msk [vmem:[#allocation3 + $0x40] sm:$0xff] %vm545_vm5, %v2614_v61  ;;  %v2617_v6 = vadd.f32 %v5643_v62, %v2601_v29  ;;  %v2604_v56 = vld [vmem:[#allocation3 + $0x70] sm:$0xff]  ;;  %v2985_v37 = vpop.f32.mrf.mxu0 }
 0x24c   : > { %v2562_v63 = vpop.f32.mrf.mxu1  ;;  %3082 = vst.msk [vmem:[#allocation3 + $0x10] sm:$0xff] %vm545_vm5, %v3066_v31  ;;  %v3064_v16 = vadd.f32 %v3048_v26, %v2985_v37  ;;  %v3055_v3 = vld [vmem:[#allocation3 + $0x38] sm:$0xff] }
 0x24d   : > { %2633 = vst.msk [vmem:[#allocation3 + $0x58] sm:$0xff] %vm545_vm5, %v2617_v6  ;;  %v2615_v21 = vadd.f32 %v2599_v52, %v2562_v63  ;;  %v2602_v13 = vld [vmem:[#allocation3 + $0x60] sm:$0xff]  ;;  %v5667_v54 = vpop.f32.mrf.mxu0 }
 0x24e   : > { %v5646_v17 = vpop.f32.mrf.mxu1  ;;  %3080 = vst.msk [vmem:[#allocation3] sm:$0xff] %vm545_vm5, %v3064_v16  ;;  %v3067_v48 = vadd.f32 %v5667_v54, %v3051_v5  ;;  %v3053_v14 = vld [vmem:[#allocation3 + $0x28] sm:$0xff] }
 0x24f   : > { %2631 = vst.msk [vmem:[#allocation3 + $0x48] sm:$0xff] %vm545_vm5, %v2615_v21  ;;  %v2620_v34 = vadd.f32 %v5646_v17, %v2604_v56  ;;  %v2605_v27 = vld [vmem:[#allocation3 + $0x78] sm:$0xff]  ;;  %v2988_v12 = vpop.f32.mrf.mxu0 }
 0x250   : > { %v2575_v28 = vpop.f32.mrf.mxu1  ;;  %3083 = vst.msk [vmem:[#allocation3 + $0x18] sm:$0xff] %vm545_vm5, %v3067_v48  ;;  %v3065_v44 = vadd.f32 %v3049_v25, %v2988_v12  ;;  %v3058_v46 = vld [vmem:[#allocation3 + $0x50] sm:$0xff] }
 0x251   : > { %2636 = vst.msk [vmem:[#allocation3 + $0x70] sm:$0xff] %vm545_vm5, %v2620_v34  ;;  %v2618_v35 = vadd.f32 %v2602_v13, %v2575_v28  ;;  %v2603_v51 = vld [vmem:[#allocation3 + $0x68] sm:$0xff]  ;;  %v5670_v47 = vpop.f32.mrf.mxu0 }
 0x252   : > { %v5647_v23 = vpop.f32.mrf.mxu1  ;;  %3081 = vst.msk [vmem:[#allocation3 + $0x8] sm:$0xff] %vm545_vm5, %v3065_v44  ;;  %v3070_v38 = vadd.f32 %v5670_v47, %v3054_v24  ;;  %v3056_v55 = vld [vmem:[#allocation3 + $0x40] sm:$0xff] }
 0x253   : > { %2634 = vst.msk [vmem:[#allocation3 + $0x60] sm:$0xff] %vm545_vm5, %v2618_v35  ;;  %v2621_v49 = vadd.f32 %v5647_v23, %v2605_v27  ;;  %v3396_v8 = vld [vmem:[#allocation3 + $0x10] sm:$0xff]  ;;  %v3001_v9 = vpop.f32.mrf.mxu0 }
 0x254   : > { %v2578_v20 = vpop.f32.mrf.mxu1  ;;  %3086 = vst.msk [vmem:[#allocation3 + $0x30] sm:$0xff] %vm545_vm5, %v3070_v38  ;;  %v3068_v41 = vadd.f32 %v3052_v39, %v3001_v9  ;;  %v3059_v1 = vld [vmem:[#allocation3 + $0x58] sm:$0xff] }
 0x255   : > { %2637 = vst.msk [vmem:[#allocation3 + $0x78] sm:$0xff] %vm545_vm5, %v2621_v49  ;;  %v2619_v43 = vadd.f32 %v2603_v51, %v2578_v20  ;;  %v3394_v60 = vld [vmem:[#allocation3] sm:$0xff]  ;;  %v5671_v36 = vpop.f32.mrf.mxu0 }
 0x256   : > { %v5698_v10 = vpop.f32.mrf.mxu1  ;;  %3084 = vst.msk [vmem:[#allocation3 + $0x20] sm:$0xff] %vm545_vm5, %v3068_v41  ;;  %v3071_v42 = vadd.f32 %v5671_v36, %v3055_v3  ;;  %v3057_v31 = vld [vmem:[#allocation3 + $0x48] sm:$0xff] }
 0x257   : > { %2635 = vst.msk [vmem:[#allocation3 + $0x68] sm:$0xff] %vm545_vm5, %v2619_v43  ;;  %v3412_v2 = vadd.f32 %v5698_v10, %v3396_v8  ;;  %v3397_v45 = vld [vmem:[#allocation3 + $0x18] sm:$0xff]  ;;  %v3004_v40 = vpop.f32.mrf.mxu0 }
 0x258   : > { %v3331_v53 = vpop.f32.mrf.mxu1  ;;  %3087 = vst.msk [vmem:[#allocation3 + $0x38] sm:$0xff] %vm545_vm5, %v3071_v42  ;;  %v3069_v7 = vadd.f32 %v3053_v14, %v3004_v40  ;;  %v3062_v34 = vld [vmem:[#allocation3 + $0x70] sm:$0xff] }
 0x259   : > { %3428 = vst.msk [vmem:[#allocation3 + $0x10] sm:$0xff] %vm545_vm5, %v3412_v2  ;;  %v3410_v4 = vadd.f32 %v3394_v60, %v3331_v53  ;;  %v3395_v59 = vld [vmem:[#allocation3 + $0x8] sm:$0xff]  ;;  %v5674_v11 = vpop.f32.mrf.mxu0 }
 0x25a   : > { %v5699_v0 = vpop.f32.mrf.mxu1  ;;  %3085 = vst.msk [vmem:[#allocation3 + $0x28] sm:$0xff] %vm545_vm5, %v3069_v7  ;;  %v3074_v22 = vadd.f32 %v5674_v11, %v3058_v46  ;;  %v3060_v35 = vld [vmem:[#allocation3 + $0x60] sm:$0xff] }
 0x25b   : > { %3426 = vst.msk [vmem:[#allocation3] sm:$0xff] %vm545_vm5, %v3410_v4  ;;  %v3413_v18 = vadd.f32 %v5699_v0, %v3397_v45  ;;  %v3400_v58 = vld [vmem:[#allocation3 + $0x30] sm:$0xff]  ;;  %v3017_v57 = vpop.f32.mrf.mxu0 }
 0x25c   : > { %v3334_v19 = vpop.f32.mrf.mxu1  ;;  %3090 = vst.msk [vmem:[#allocation3 + $0x50] sm:$0xff] %vm545_vm5, %v3074_v22  ;;  %v3072_v29 = vadd.f32 %v3056_v55, %v3017_v57  ;;  %v3063_v49 = vld [vmem:[#allocation3 + $0x78] sm:$0xff] }
 0x25d   : > { %3429 = vst.msk [vmem:[#allocation3 + $0x18] sm:$0xff] %vm545_vm5, %v3413_v18  ;;  %v3411_v30 = vadd.f32 %v3395_v59, %v3334_v19  ;;  %v3398_v33 = vld [vmem:[#allocation3 + $0x20] sm:$0xff]  ;;  %v5675_v62 = vpop.f32.mrf.mxu0 }
 0x25e   : > { %v5702_v61 = vpop.f32.mrf.mxu1  ;;  %3088 = vst.msk [vmem:[#allocation3 + $0x40] sm:$0xff] %vm545_vm5, %v3072_v29  ;;  %v3075_v52 = vadd.f32 %v5675_v62, %v3059_v1  ;;  %v3061_v43 = vld [vmem:[#allocation3 + $0x68] sm:$0xff] }
 0x25f   : > { %3427 = vst.msk [vmem:[#allocation3 + $0x8] sm:$0xff] %vm545_vm5, %v3411_v30  ;;  %v3416_v32 = vadd.f32 %v5702_v61, %v3400_v58  ;;  %v3401_v50 = vld [vmem:[#allocation3 + $0x38] sm:$0xff]  ;;  %v3020_v63 = vpop.f32.mrf.mxu0 }
 0x260   : > { %v3347_v6 = vpop.f32.mrf.mxu1  ;;  %3091 = vst.msk [vmem:[#allocation3 + $0x58] sm:$0xff] %vm545_vm5, %v3075_v52  ;;  %v3073_v56 = vadd.f32 %v3057_v31, %v3020_v63  ;;  %v3671_v2 = vld [vmem:[#allocation3 + $0x10] sm:$0xff] }
 0x261   : > { %3432 = vst.msk [vmem:[#allocation3 + $0x30] sm:$0xff] %vm545_vm5, %v3416_v32  ;;  %v3414_v15 = vadd.f32 %v3398_v33, %v3347_v6  ;;  %v3399_v26 = vld [vmem:[#allocation3 + $0x28] sm:$0xff] }
 0x262   : > { %v5703_v21 = vpop.f32.mrf.mxu1  ;;  %3089 = vst.msk [vmem:[#allocation3 + $0x48] sm:$0xff] %vm545_vm5, %v3073_v56  ;;  %v3669_v4 = vld [vmem:[#allocation3] sm:$0xff] }
 0x263   : > { %3430 = vst.msk [vmem:[#allocation3 + $0x20] sm:$0xff] %vm545_vm5, %v3414_v15  ;;  %v3417_v37 = vadd.f32 %v5703_v21, %v3401_v50  ;;  %v5678_v16 = vpop.f32.mrf.mxu0  ;;  %v3404_v5 = vld [vmem:[#allocation3 + $0x50] sm:$0xff] }
 0x264   : > { %v3350_v17 = vpop.f32.mrf.mxu1  ;;  %v3078_v54 = vadd.f32 %v5678_v16, %v3062_v34  ;;  %v3672_v18 = vld [vmem:[#allocation3 + $0x18] sm:$0xff] }
 0x265   : > { %3433 = vst.msk [vmem:[#allocation3 + $0x38] sm:$0xff] %vm545_vm5, %v3417_v37  ;;  %v3415_v13 = vadd.f32 %v3399_v26, %v3350_v17  ;;  %v3033_v48 = vpop.f32.mrf.mxu0  ;;  %v3402_v25 = vld [vmem:[#allocation3 + $0x40] sm:$0xff] }
 0x266   : > { %v5706_v28 = vpop.f32.mrf.mxu1  ;;  %3094 = vst.msk [vmem:[#allocation3 + $0x70] sm:$0xff] %vm545_vm5, %v3078_v54  ;;  %v3076_v12 = vadd.f32 %v3060_v35, %v3033_v48  ;;  %v3670_v30 = vld [vmem:[#allocation3 + $0x8] sm:$0xff] }
 0x267   : > { %3431 = vst.msk [vmem:[#allocation3 + $0x28] sm:$0xff] %vm545_vm5, %v3415_v13  ;;  %v3420_v27 = vadd.f32 %v5706_v28, %v3404_v5  ;;  %v5679_v44 = vpop.f32.mrf.mxu0  ;;  %v3405_v24 = vld [vmem:[#allocation3 + $0x58] sm:$0xff] }
 0x268   : > { %v3363_v23 = vpop.f32.mrf.mxu1  ;;  %3092 = vst.msk [vmem:[#allocation3 + $0x60] sm:$0xff] %vm545_vm5, %v3076_v12  ;;  %v3079_v47 = vadd.f32 %v5679_v44, %v3063_v49  ;;  %v3675_v32 = vld [vmem:[#allocation3 + $0x30] sm:$0xff] }
 0x269   : > { %3436 = vst.msk [vmem:[#allocation3 + $0x50] sm:$0xff] %vm545_vm5, %v3420_v27  ;;  %v3418_v51 = vadd.f32 %v3402_v25, %v3363_v23  ;;  %v3036_v38 = vpop.f32.mrf.mxu0  ;;  %v3403_v39 = vld [vmem:[#allocation3 + $0x48] sm:$0xff] }
 0x26a   : > { %v5707_v20 = vpop.f32.mrf.mxu1  ;;  %3095 = vst.msk [vmem:[#allocation3 + $0x78] sm:$0xff] %vm545_vm5, %v3079_v47  ;;  %v3077_v9 = vadd.f32 %v3061_v43, %v3036_v38  ;;  %v3673_v15 = vld [vmem:[#allocation3 + $0x20] sm:$0xff] }
 0x26b   : > { %3434 = vst.msk [vmem:[#allocation3 + $0x40] sm:$0xff] %vm545_vm5, %v3418_v51  ;;  %v3421_v8 = vadd.f32 %v5707_v20, %v3405_v24  ;;  %v5730_v41 = vpop.f32.mrf.mxu0 }
 0x26c   : > { %v3366_v10 = vpop.f32.mrf.mxu1  ;;  %3093 = vst.msk [vmem:[#allocation3 + $0x68] sm:$0xff] %vm545_vm5, %v3077_v9  ;;  %v3687_v36 = vadd.f32 %v5730_v41, %v3671_v2  ;;  %v3676_v37 = vld [vmem:[#allocation3 + $0x38] sm:$0xff] }
 0x26d   : > { %3437 = vst.msk [vmem:[#allocation3 + $0x58] sm:$0xff] %vm545_vm5, %v3421_v8  ;;  %v3419_v60 = vadd.f32 %v3403_v39, %v3366_v10  ;;  %v3408_v53 = vld [vmem:[#allocation3 + $0x70] sm:$0xff]  ;;  %v3606_v42 = vpop.f32.mrf.mxu0 }
 0x26e   : > { %v5710_v3 = vpop.f32.mrf.mxu1  ;;  %3703 = vst.msk [vmem:[#allocation3 + $0x10] sm:$0xff] %vm545_vm5, %v3687_v36  ;;  %v3685_v40 = vadd.f32 %v3669_v4, %v3606_v42  ;;  %v3674_v54 = vld [vmem:[#allocation3 + $0x28] sm:$0xff] }
 0x26f   : > { %3435 = vst.msk [vmem:[#allocation3 + $0x48] sm:$0xff] %vm545_vm5, %v3419_v60  ;;  %v3424_v45 = vadd.f32 %v5710_v3, %v3408_v53  ;;  %v3406_v0 = vld [vmem:[#allocation3 + $0x60] sm:$0xff]  ;;  %v5731_v7 = vpop.f32.mrf.mxu0 }
 0x270   : > { %v3379_v14 = vpop.f32.mrf.mxu1  ;;  %3701 = vst.msk [vmem:[#allocation3] sm:$0xff] %vm545_vm5, %v3685_v40  ;;  %v3688_v11 = vadd.f32 %v5731_v7, %v3672_v18  ;;  %v3679_v12 = vld [vmem:[#allocation3 + $0x50] sm:$0xff] }
 0x271   : > { %3440 = vst.msk [vmem:[#allocation3 + $0x70] sm:$0xff] %vm545_vm5, %v3424_v45  ;;  %v3422_v59 = vadd.f32 %v3406_v0, %v3379_v14  ;;  %v3409_v19 = vld [vmem:[#allocation3 + $0x78] sm:$0xff]  ;;  %v3609_v22 = vpop.f32.mrf.mxu0 }
 0x272   : > { %v5711_v46 = vpop.f32.mrf.mxu1  ;;  %3704 = vst.msk [vmem:[#allocation3 + $0x18] sm:$0xff] %vm545_vm5, %v3688_v11  ;;  %v3686_v57 = vadd.f32 %v3670_v30, %v3609_v22  ;;  %v3677_v47 = vld [vmem:[#allocation3 + $0x40] sm:$0xff] }
 0x273   : > { %3438 = vst.msk [vmem:[#allocation3 + $0x60] sm:$0xff] %vm545_vm5, %v3422_v59  ;;  %v3425_v58 = vadd.f32 %v5711_v46, %v3409_v19  ;;  %v3407_v61 = vld [vmem:[#allocation3 + $0x68] sm:$0xff]  ;;  %v5734_v29 = vpop.f32.mrf.mxu0 }
 0x274   : > { %v3382_v55 = vpop.f32.mrf.mxu1  ;;  %3702 = vst.msk [vmem:[#allocation3 + $0x8] sm:$0xff] %vm545_vm5, %v3686_v57  ;;  %v3691_v62 = vadd.f32 %v5734_v29, %v3675_v32  ;;  %v3680_v9 = vld [vmem:[#allocation3 + $0x58] sm:$0xff] }
 0x275   : > { %3441 = vst.msk [vmem:[#allocation3 + $0x78] sm:$0xff] %vm545_vm5, %v3425_v58  ;;  %v3423_v33 = vadd.f32 %v3407_v61, %v3382_v55  ;;  %v4129_v6 = vld [vmem:[#allocation3 + $0x10] sm:$0xff]  ;;  %v3622_v52 = vpop.f32.mrf.mxu0 }
 0x276   : > { %v5762_v1 = vpop.f32.mrf.mxu1  ;;  %3707 = vst.msk [vmem:[#allocation3 + $0x30] sm:$0xff] %vm545_vm5, %v3691_v62  ;;  %v3689_v63 = vadd.f32 %v3673_v15, %v3622_v52  ;;  %v3678_v36 = vld [vmem:[#allocation3 + $0x48] sm:$0xff] }
 0x277   : > { %3439 = vst.msk [vmem:[#allocation3 + $0x68] sm:$0xff] %vm545_vm5, %v3423_v33  ;;  %v4145_v50 = vadd.f32 %v5762_v1, %v4129_v6  ;;  %v4127_v21 = vld [vmem:[#allocation3] sm:$0xff]  ;;  %v5735_v56 = vpop.f32.mrf.mxu0 }
 0x278   : > { %v4064_v31 = vpop.f32.mrf.mxu1  ;;  %3705 = vst.msk [vmem:[#allocation3 + $0x20] sm:$0xff] %vm545_vm5, %v3689_v63  ;;  %v3692_v17 = vadd.f32 %v5735_v56, %v3676_v37  ;;  %v3683_v40 = vld [vmem:[#allocation3 + $0x70] sm:$0xff] }
 0x279   : > { %4161 = vst.msk [vmem:[#allocation3 + $0x10] sm:$0xff] %vm545_vm5, %v4145_v50  ;;  %v4143_v26 = vadd.f32 %v4127_v21, %v4064_v31  ;;  %v4130_v34 = vld [vmem:[#allocation3 + $0x18] sm:$0xff]  ;;  %v3625_v13 = vpop.f32.mrf.mxu0 }
 0x27a   : > { %v5763_v16 = vpop.f32.mrf.mxu1  ;;  %3708 = vst.msk [vmem:[#allocation3 + $0x38] sm:$0xff] %vm545_vm5, %v3692_v17  ;;  %v3690_v28 = vadd.f32 %v3674_v54, %v3625_v13  ;;  %v3681_v11 = vld [vmem:[#allocation3 + $0x60] sm:$0xff] }
 0x27b   : > { %4159 = vst.msk [vmem:[#allocation3] sm:$0xff] %vm545_vm5, %v4143_v26  ;;  %v4146_v5 = vadd.f32 %v5763_v16, %v4130_v34  ;;  %v4128_v35 = vld [vmem:[#allocation3 + $0x8] sm:$0xff]  ;;  %v5738_v27 = vpop.f32.mrf.mxu0 }
 0x27c   : > { %v4067_v48 = vpop.f32.mrf.mxu1  ;;  %3706 = vst.msk [vmem:[#allocation3 + $0x28] sm:$0xff] %vm545_vm5, %v3690_v28  ;;  %v3695_v23 = vadd.f32 %v5738_v27, %v3679_v12  ;;  %v3684_v57 = vld [vmem:[#allocation3 + $0x78] sm:$0xff] }
 0x27d   : > { %4162 = vst.msk [vmem:[#allocation3 + $0x18] sm:$0xff] %vm545_vm5, %v4146_v5  ;;  %v4144_v25 = vadd.f32 %v4128_v35, %v4067_v48  ;;  %v4133_v49 = vld [vmem:[#allocation3 + $0x30] sm:$0xff]  ;;  %v3638_v51 = vpop.f32.mrf.mxu0 }
 0x27e   : > { %v5766_v44 = vpop.f32.mrf.mxu1  ;;  %3711 = vst.msk [vmem:[#allocation3 + $0x50] sm:$0xff] %vm545_vm5, %v3695_v23  ;;  %v3693_v20 = vadd.f32 %v3677_v47, %v3638_v51  ;;  %v3682_v62 = vld [vmem:[#allocation3 + $0x68] sm:$0xff] }
 0x27f   : > { %4160 = vst.msk [vmem:[#allocation3 + $0x8] sm:$0xff] %vm545_vm5, %v4144_v25  ;;  %v4149_v24 = vadd.f32 %v5766_v44, %v4133_v49  ;;  %v4131_v43 = vld [vmem:[#allocation3 + $0x20] sm:$0xff]  ;;  %v5739_v8 = vpop.f32.mrf.mxu0  ;;  %v7357_v51 = vld [vmem:[%s7554_s6] ss:$0 sm:$0xff] }
 0x280   : > { %v4080_v38 = vpop.f32.mrf.mxu1  ;;  %3709 = vst.msk [vmem:[#allocation3 + $0x40] sm:$0xff] %vm545_vm5, %v3693_v20  ;;  %v3696_v10 = vadd.f32 %v5739_v8, %v3680_v9  ;;  %v4475_v63 = vld [vmem:[#allocation3 + $0x10] sm:$0xff] }
 0x281   : > { %4165 = vst.msk [vmem:[#allocation3 + $0x30] sm:$0xff] %vm545_vm5, %v4149_v24  ;;  %v4147_v39 = vadd.f32 %v4131_v43, %v4080_v38  ;;  %v4134_v2 = vld [vmem:[#allocation3 + $0x38] sm:$0xff]  ;;  %v3641_v60 = vpop.f32.mrf.mxu0 }
 0x282   : > { %v5767_v41 = vpop.f32.mrf.mxu1  ;;  %3712 = vst.msk [vmem:[#allocation3 + $0x58] sm:$0xff] %vm545_vm5, %v3696_v10  ;;  %v3694_v53 = vadd.f32 %v3678_v36, %v3641_v60  ;;  %v4473_v17 = vld [vmem:[#allocation3] sm:$0xff] }
 0x283   : > { %4163 = vst.msk [vmem:[#allocation3 + $0x20] sm:$0xff] %vm545_vm5, %v4147_v39  ;;  %v4150_v3 = vadd.f32 %v5767_v41, %v4134_v2  ;;  %v4132_v4 = vld [vmem:[#allocation3 + $0x28] sm:$0xff]  ;;  %v5742_v45 = vpop.f32.mrf.mxu0 }
 0x284   : > { %v4083_v42 = vpop.f32.mrf.mxu1  ;;  %3710 = vst.msk [vmem:[#allocation3 + $0x48] sm:$0xff] %vm545_vm5, %v3694_v53  ;;  %v3699_v0 = vadd.f32 %v5742_v45, %v3683_v40  ;;  %v4476_v28 = vld [vmem:[#allocation3 + $0x18] sm:$0xff] }
 0x285   : > { %4166 = vst.msk [vmem:[#allocation3 + $0x38] sm:$0xff] %vm545_vm5, %v4150_v3  ;;  %v4148_v14 = vadd.f32 %v4132_v4, %v4083_v42  ;;  %v4137_v18 = vld [vmem:[#allocation3 + $0x50] sm:$0xff]  ;;  %v3654_v59 = vpop.f32.mrf.mxu0 }
 0x286   : > { %v5770_v7 = vpop.f32.mrf.mxu1  ;;  %3715 = vst.msk [vmem:[#allocation3 + $0x70] sm:$0xff] %vm545_vm5, %v3699_v0  ;;  %v3697_v19 = vadd.f32 %v3681_v11, %v3654_v59  ;;  %v4474_v23 = vld [vmem:[#allocation3 + $0x8] sm:$0xff] }
 0x287   : > { %4164 = vst.msk [vmem:[#allocation3 + $0x28] sm:$0xff] %vm545_vm5, %v4148_v14  ;;  %v4153_v46 = vadd.f32 %v5770_v7, %v4137_v18  ;;  %v4135_v30 = vld [vmem:[#allocation3 + $0x40] sm:$0xff]  ;;  %v5743_v58 = vpop.f32.mrf.mxu0 }
 0x288   : > { %v4096_v22 = vpop.f32.mrf.mxu1  ;;  %3713 = vst.msk [vmem:[#allocation3 + $0x60] sm:$0xff] %vm545_vm5, %v3697_v19  ;;  %v3700_v61 = vadd.f32 %v5743_v58, %v3684_v57  ;;  %v4479_v38 = vld [vmem:[#allocation3 + $0x30] sm:$0xff] }
 0x289   : > { %4169 = vst.msk [vmem:[#allocation3 + $0x50] sm:$0xff] %vm545_vm5, %v4153_v46  ;;  %v4151_v55 = vadd.f32 %v4135_v30, %v4096_v22  ;;  %v4138_v32 = vld [vmem:[#allocation3 + $0x58] sm:$0xff]  ;;  %v3657_v33 = vpop.f32.mrf.mxu0 }
 0x28a   : > { %v5771_v29 = vpop.f32.mrf.mxu1  ;;  %3716 = vst.msk [vmem:[#allocation3 + $0x78] sm:$0xff] %vm545_vm5, %v3700_v61  ;;  %v3698_v6 = vadd.f32 %v3682_v62, %v3657_v33  ;;  %v4477_v41 = vld [vmem:[#allocation3 + $0x20] sm:$0xff] }
 0x28b   : > { %4167 = vst.msk [vmem:[#allocation3 + $0x40] sm:$0xff] %vm545_vm5, %v4151_v55  ;;  %v4154_v1 = vadd.f32 %v5771_v29, %v4138_v32  ;;  %v4136_v15 = vld [vmem:[#allocation3 + $0x48] sm:$0xff] }
 0x28c   : > { %v4099_v52 = vpop.f32.mrf.mxu1  ;;  %v5794_v50 = vpop.f32.mrf.mxu0  ;;  %3714 = vst.msk [vmem:[#allocation3 + $0x68] sm:$0xff] %vm545_vm5, %v3698_v6  ;;  %v4480_v4 = vld [vmem:[#allocation3 + $0x38] sm:$0xff] }
 0x28d   : > { %4170 = vst.msk [vmem:[#allocation3 + $0x58] sm:$0xff] %vm545_vm5, %v4154_v1  ;;  %v4152_v31 = vadd.f32 %v4136_v15, %v4099_v52  ;;  %v4491_v21 = vadd.f32 %v5794_v50, %v4475_v63  ;;  %v4141_v37 = vld [vmem:[#allocation3 + $0x70] sm:$0xff] }
 0x28e   : > { %v5774_v56 = vpop.f32.mrf.mxu1  ;;  %v4410_v26 = vpop.f32.mrf.mxu0  ;;  %v4478_v58 = vld [vmem:[#allocation3 + $0x28] sm:$0xff] }
 0x28f   : > { %4168 = vst.msk [vmem:[#allocation3 + $0x48] sm:$0xff] %vm545_vm5, %v4152_v31  ;;  %4507 = vst.msk [vmem:[#allocation3 + $0x10] sm:$0xff] %vm545_vm5, %v4491_v21  ;;  %v4157_v16 = vadd.f32 %v5774_v56, %v4141_v37  ;;  %v4489_v34 = vadd.f32 %v4473_v17, %v4410_v26  ;;  %v4139_v54 = vld [vmem:[#allocation3 + $0x60] sm:$0xff] }
 0x290   : > { %v4112_v13 = vpop.f32.mrf.mxu1  ;;  %v5795_v5 = vpop.f32.mrf.mxu0  ;;  %v4483_v1 = vld [vmem:[#allocation3 + $0x50] sm:$0xff] }
 0x291   : > { %4173 = vst.msk [vmem:[#allocation3 + $0x70] sm:$0xff] %vm545_vm5, %v4157_v16  ;;  %4505 = vst.msk [vmem:[#allocation3] sm:$0xff] %vm545_vm5, %v4489_v34  ;;  %v4155_v48 = vadd.f32 %v4139_v54, %v4112_v13  ;;  %v4492_v35 = vadd.f32 %v5795_v5, %v4476_v28  ;;  %v4142_v12 = vld [vmem:[#allocation3 + $0x78] sm:$0xff] }
 0x292   : > { %v5775_v27 = vpop.f32.mrf.mxu1  ;;  %v4413_v25 = vpop.f32.mrf.mxu0  ;;  %v4481_v26 = vld [vmem:[#allocation3 + $0x40] sm:$0xff] }
 0x293   : > { %4171 = vst.msk [vmem:[#allocation3 + $0x60] sm:$0xff] %vm545_vm5, %v4155_v48  ;;  %4508 = vst.msk [vmem:[#allocation3 + $0x18] sm:$0xff] %vm545_vm5, %v4492_v35  ;;  %v4158_v44 = vadd.f32 %v5775_v27, %v4142_v12  ;;  %v4490_v49 = vadd.f32 %v4474_v23, %v4413_v25  ;;  %v4140_v24 = vld [vmem:[#allocation3 + $0x68] sm:$0xff] }
 0x294   : > { %v4115_v47 = vpop.f32.mrf.mxu1  ;;  %v5798_v20 = vpop.f32.mrf.mxu0  ;;  %v4484_v48 = vld [vmem:[#allocation3 + $0x58] sm:$0xff] }
 0x295   : > { %4174 = vst.msk [vmem:[#allocation3 + $0x78] sm:$0xff] %vm545_vm5, %v4158_v44  ;;  %4506 = vst.msk [vmem:[#allocation3 + $0x8] sm:$0xff] %vm545_vm5, %v4490_v49  ;;  %v4156_v43 = vadd.f32 %v4140_v24, %v4115_v47  ;;  %v4495_v8 = vadd.f32 %v5798_v20, %v4479_v38 }
 0x296   : > { %v4523_v9 = vld [vmem:[#allocation3 + $0x10] sm:$0xff]  ;;  %v5806_v39 = vpop.f32.mrf.mxu1  ;;  %v4426_v10 = vpop.f32.mrf.mxu0  ;;  %v4482_v47 = vld [vmem:[#allocation3 + $0x48] sm:$0xff] }
 0x297   : > { %v7362_v2 = vadd.f32 %v7357_v51, %v4523_v9  ;;  %4172 = vst.msk [vmem:[#allocation3 + $0x68] sm:$0xff] %vm545_vm5, %v4156_v43  ;;  %4511 = vst.msk [vmem:[#allocation3 + $0x30] sm:$0xff] %vm545_vm5, %v4495_v8  ;;  %v4493_v60 = vadd.f32 %v4477_v41, %v4426_v10 }
 0x298   : > { %v4521_v36 = vld [vmem:[#allocation3] sm:$0xff]  ;;  %v4487_v3 = vld [vmem:[#allocation3 + $0x70] sm:$0xff]  ;;  %v4458_v53 = vpop.f32.mrf.mxu1  ;;  %v5799_v42 = vpop.f32.mrf.mxu0 }
 0x299   : > { %v4562_v45 = vmin.f32 %v7362_v2, 20.0  ;;  %v7368_v40 = vadd.f32 %v7357_v51, %v4521_v36  ;;  %v4503_v14 = vadd.f32 %v5806_v39, %v4487_v3  ;;  %4509 = vst.msk [vmem:[#allocation3 + $0x20] sm:$0xff] %vm545_vm5, %v4493_v60  ;;  %v4496_v0 = vadd.f32 %v5799_v42, %v4480_v4 }
 0x29a   : > { %v4524_v7 = vld [vmem:[#allocation3 + $0x18] sm:$0xff]  ;;  %v4485_v18 = vld [vmem:[#allocation3 + $0x60] sm:$0xff]  ;;  %v4429_v59 = vpop.f32.mrf.mxu0  ;;  %v5807_v30 = vpop.f32.mrf.mxu1 }
 0x29b   : > { %v4580_v11 = vmul.f32 1.442695, %v4562_v45  ;;  %v4560_v46 = vmin.f32 %v7368_v40, 20.0  ;;  %v7373_v19 = vadd.f32 %v7357_v51, %v4524_v7  ;;  %4519 = vst.msk [vmem:[#allocation3 + $0x70] sm:$0xff] %vm545_vm5, %v4503_v14  ;;  %v4501_v22 = vadd.f32 %v4485_v18, %v4458_v53  ;;  %4512 = vst.msk [vmem:[#allocation3 + $0x38] sm:$0xff] %vm545_vm5, %v4496_v0 }
 0x29c   : > { %v4522_v57 = vld [vmem:[#allocation3 + $0x8] sm:$0xff]  ;;  %v4488_v55 = vld [vmem:[#allocation3 + $0x78] sm:$0xff]  ;;  %v4494_v61 = vadd.f32 %v4478_v58, %v4429_v59  ;;  %v5802_v29 = vpop.f32.mrf.mxu0  ;;  %v4461_v37 = vpop.f32.mrf.mxu1 }
 0x29d   : > { %6043 = vpow2.f32 %v4580_v11  ;;  %v4576_v32 = vmul.f32 1.442695, %v4560_v46  ;;  %v4563_v33 = vmin.f32 %v7373_v19, 20.0  ;;  %v7379_v62 = vadd.f32 %v7357_v51, %v4522_v57  ;;  %4517 = vst.msk [vmem:[#allocation3 + $0x60] sm:$0xff] %vm545_vm5, %v4501_v22 }
 0x29e   : > { %v4527_v6 = vld [vmem:[#allocation3 + $0x30] sm:$0xff]  ;;  %v4504_v52 = vadd.f32 %v5807_v30, %v4488_v55  ;;  %4510 = vst.msk [vmem:[#allocation3 + $0x28] sm:$0xff] %vm545_vm5, %v4494_v61  ;;  %v4486_v15 = vld [vmem:[#allocation3 + $0x68] sm:$0xff]  ;;  %v4499_v50 = vadd.f32 %v5802_v29, %v4483_v1  ;;  %v4442_v63 = vpop.f32.mrf.mxu0 }
 0x29f   : > { %6045 = vpow2.f32 %v4576_v32  ;;  %v4582_v31 = vmul.f32 1.442695, %v4563_v33  ;;  %v4561_v21 = vmin.f32 %v7379_v62, 20.0  ;;  %v7385_v56 = vadd.f32 %v7357_v51, %v4527_v6 }
 0x2a0   : > { %v4525_v17 = vld [vmem:[#allocation3 + $0x20] sm:$0xff]  ;;  %4520 = vst.msk [vmem:[#allocation3 + $0x78] sm:$0xff] %vm545_vm5, %v4504_v52  ;;  %v4502_v16 = vadd.f32 %v4486_v15, %v4461_v37  ;;  %4515 = vst.msk [vmem:[#allocation3 + $0x50] sm:$0xff] %vm545_vm5, %v4499_v50  ;;  %v4497_v34 = vadd.f32 %v4481_v26, %v4442_v63  ;;  %v5803_v13 = vpop.f32.mrf.mxu0 }
 0x2a1   : > { %6047 = vpow2.f32 %v4582_v31  ;;  %v4578_v54 = vmul.f32 1.442695, %v4561_v21  ;;  %v4566_v5 = vmin.f32 %v7385_v56, 20.0  ;;  %v7391_v28 = vadd.f32 %v7357_v51, %v4525_v17 }
 0x2a2   : > { %v4535_v35 = vld [vmem:[#allocation3 + $0x70] sm:$0xff]  ;;  %v4528_v27 = vld [vmem:[#allocation3 + $0x38] sm:$0xff]  ;;  %4518 = vst.msk [vmem:[#allocation3 + $0x68] sm:$0xff] %vm545_vm5, %v4502_v16  ;;  %4513 = vst.msk [vmem:[#allocation3 + $0x40] sm:$0xff] %vm545_vm5, %v4497_v34  ;;  %v4500_v12 = vadd.f32 %v5803_v13, %v4484_v48  ;;  %v4445_v25 = vpop.f32.mrf.mxu0 }
 0x2a3   : > { %6049 = vpow2.f32 %v4578_v54  ;;  %v4588_v23 = vmul.f32 1.442695, %v4566_v5  ;;  %v7396_v44 = vadd.f32 %v7357_v51, %v4535_v35  ;;  %v4564_v49 = vmin.f32 %v7391_v28, 20.0 }
 0x2a4   : > { %v4533_v24 = vld [vmem:[#allocation3 + $0x60] sm:$0xff]  ;;  %v7400_v20 = vadd.f32 %v7357_v51, %v4528_v27  ;;  %4516 = vst.msk [vmem:[#allocation3 + $0x58] sm:$0xff] %vm545_vm5, %v4500_v12  ;;  %v4498_v38 = vadd.f32 %v4482_v47, %v4445_v25 }
 0x2a5   : > { %6051 = vpow2.f32 %v4588_v23  ;;  %v4574_v43 = vmin.f32 %v7396_v44, 20.0  ;;  %v4584_v8 = vmul.f32 1.442695, %v4564_v49  ;;  %v7405_v9 = vadd.f32 %v7357_v51, %v4533_v24  ;;  %v4526_v39 = vld [vmem:[#allocation3 + $0x28] sm:$0xff] }
 0x2a6   : > { %v4567_v10 = vmin.f32 %v7400_v20, 20.0  ;;  %v7409_v41 = vadd.f32 %v7357_v51, %v4526_v39  ;;  %4514 = vst.msk [vmem:[#allocation3 + $0x48] sm:$0xff] %vm545_vm5, %v4498_v38 }
 0x2a7   : > { %v4604_v60 = vmul.f32 1.442695, %v4574_v43  ;;  %6053 = vpow2.f32 %v4584_v8  ;;  %v4572_v36 = vmin.f32 %v7405_v9, 20.0  ;;  %v4536_v3 = vld [vmem:[#allocation3 + $0x78] sm:$0xff]  ;;  %v4531_v53 = vld [vmem:[#allocation3 + $0x50] sm:$0xff] }
 0x2a8   : > { %v4590_v42 = vmul.f32 1.442695, %v4567_v10  ;;  %v7414_v4 = vadd.f32 %v7357_v51, %v4536_v3  ;;  %v4565_v45 = vmin.f32 %v7409_v41, 20.0  ;;  %v7418_v14 = vadd.f32 %v7357_v51, %v4531_v53 }
 0x2a9   : > { %6055 = vpow2.f32 %v4604_v60  ;;  %v4600_v0 = vmul.f32 1.442695, %v4572_v36  ;;  %v4534_v7 = vld [vmem:[#allocation3 + $0x68] sm:$0xff]  ;;  %v4529_v18 = vld [vmem:[#allocation3 + $0x40] sm:$0xff] }
 0x2aa   : > { %v6044_v59 = vpop.eup %6043  ;;  %6057 = vpow2.f32 %v4590_v42  ;;  %v4575_v11 = vmin.f32 %v7414_v4, 20.0  ;;  %v4586_v46 = vmul.f32 1.442695, %v4565_v45  ;;  %v7422_v22 = vadd.f32 %v7357_v51, %v4534_v7 }
 0x2ab   : > { %v4610_v30 = vadd.f32 1.0, %v6044_v59  ;;  %6059 = vpow2.f32 %v4600_v0  ;;  %v4570_v58 = vmin.f32 %v7418_v14, 20.0  ;;  %v7426_v57 = vadd.f32 %v7357_v51, %v4529_v18  ;;  %v4532_v55 = vld [vmem:[#allocation3 + $0x58] sm:$0xff] }
 0x2ac   : > { %v6046_v61 = vpop.eup %6045  ;;  %v4606_v29 = vmul.f32 1.442695, %v4575_v11  ;;  %6061 = vpow2.f32 %v4586_v46  ;;  %v4573_v32 = vmin.f32 %v7422_v22, 20.0  ;;  %v7430_v33 = vadd.f32 %v7357_v51, %v4532_v55 }
 0x2ad   : > { %v4626_v1 = vmul.f32 %v4610_v30, %v4610_v30  ;;  %v4608_v6 = vadd.f32 1.0, %v6046_v61  ;;  %v4568_v52 = vmin.f32 %v7426_v57, 20.0  ;;  %v4530_v15 = vld [vmem:[#allocation3 + $0x48] sm:$0xff]  ;;  %v4596_v31 = vmul.f32 1.442695, %v4570_v58 }
 0x2ae   : > { %v6048_v50 = vpop.eup %6047  ;;  %6063 = vpow2.f32 %v4606_v29  ;;  %v4602_v63 = vmul.f32 1.442695, %v4573_v32  ;;  %v4571_v21 = vmin.f32 %v7430_v33, 20.0  ;;  %v7435_v16 = vadd.f32 %v7357_v51, %v4530_v15 }
 0x2af   : > { %v4674_v37 = vadd.f32 1.0, %v4626_v1  ;;  %v4624_v26 = vmul.f32 %v4608_v6, %v4608_v6  ;;  %v4611_v17 = vadd.f32 1.0, %v6048_v50  ;;  %v4592_v13 = vmul.f32 1.442695, %v4568_v52  ;;  %v4722_v50 = vld [vmem:[%s6267_s21 + $0x10] sm:$0xff] }
 0x2b0   : > { %v6050_v34 = vpop.eup %6049  ;;  %6065 = vpow2.f32 %v4602_v63  ;;  %v4598_v5 = vmul.f32 1.442695, %v4571_v21  ;;  %v4569_v25 = vmin.f32 %v7435_v16, 20.0  ;;  %v5295_v53 = vadd.f32 -1.0, %v4626_v1 }
 0x2b1   : > { %6067 = vrcp.f32 %v4674_v37  ;;  %v4672_v54 = vadd.f32 1.0, %v4624_v26  ;;  %v4627_v35 = vmul.f32 %v4611_v17, %v4611_v17  ;;  %v4609_v27 = vadd.f32 1.0, %v6050_v34 }
 0x2b2   : > { %v6052_v48 = vpop.eup %6051  ;;  %6069 = vpow2.f32 %v4596_v31  ;;  %v4594_v36 = vmul.f32 1.442695, %v4569_v25  ;;  %v5293_v30 = vadd.f32 -1.0, %v4624_v26  ;;  %v4658_v55 = vmul.f32 %v5295_v53, %v7362_v2  ;;  %v4721_v53 = vld [vmem:[%s6267_s21 + $0x8] sm:$0xff] }
 0x2b3   : > { %6071 = vrcp.f32 %v4672_v54  ;;  %v4614_v12 = vadd.f32 1.0, %v6052_v48  ;;  %v4675_v49 = vadd.f32 1.0, %v4627_v35  ;;  %v4625_v47 = vmul.f32 %v4609_v27, %v4609_v27 }
 0x2b4   : > { %v6054_v23 = vpop.eup %6053  ;;  %6073 = vpow2.f32 %v4592_v13  ;;  %v5296_v1 = vadd.f32 -1.0, %v4627_v35  ;;  %v4656_v37 = vmul.f32 %v5293_v30, %v7368_v40  ;;  %v4720_v13 = vld [vmem:[%s6267_s21] sm:$0xff]  ;;  %v4726_v30 = vld [vmem:[%s6267_s21 + $0x30] sm:$0xff] }
 0x2b5   : > { %v4630_v51 = vmul.f32 %v4614_v12, %v4614_v12  ;;  %v4612_v24 = vadd.f32 1.0, %v6054_v23  ;;  %6075 = vpow2.f32 %v4598_v5  ;;  %v4673_v43 = vadd.f32 1.0, %v4625_v47 }
 0x2b6   : > { %v6056_v38 = vpop.eup %6055  ;;  %6077 = vrcp.f32 %v4675_v49  ;;  %v5294_v63 = vadd.f32 -1.0, %v4625_v47  ;;  %v4659_v12 = vmul.f32 %v5296_v1, %v7373_v19 }
 0x2b7   : > { %v6058_v8 = vpop.eup %6057  ;;  %v4678_v39 = vadd.f32 1.0, %v4630_v51  ;;  %v4622_v10 = vadd.f32 1.0, %v6056_v38  ;;  %v4628_v60 = vmul.f32 %v4612_v24, %v4612_v24  ;;  %6079 = vrcp.f32 %v4673_v43  ;;  %v4723_v43 = vld [vmem:[%s6267_s21 + $0x18] sm:$0xff] }
 0x2b8   : > { %v6060_v3 = vpop.eup %6059  ;;  %v4615_v42 = vadd.f32 1.0, %v6058_v8  ;;  %v5299_v54 = vadd.f32 -1.0, %v4630_v51  ;;  %v4657_v49 = vmul.f32 %v5294_v63, %v7379_v62 }
 0x2b9   : > { %v6062_v45 = vpop.eup %6061  ;;  %6081 = vrcp.f32 %v4678_v39  ;;  %v4638_v0 = vmul.f32 %v4622_v10, %v4622_v10  ;;  %v4676_v7 = vadd.f32 1.0, %v4628_v60  ;;  %v4620_v18 = vadd.f32 1.0, %v6060_v3 }
 0x2ba   : > { %v4631_v59 = vmul.f32 %v4615_v42, %v4615_v42  ;;  %v4613_v11 = vadd.f32 1.0, %v6062_v45  ;;  %6083 = vpow2.f32 %v4594_v36  ;;  %v5297_v8 = vadd.f32 -1.0, %v4628_v60 }
 0x2bb   : > { %v6064_v46 = vpop.eup %6063  ;;  %v4686_v58 = vadd.f32 1.0, %v4638_v0  ;;  %6085 = vrcp.f32 %v4676_v7  ;;  %v7439_v61 = vmul.f32 %v4620_v18, %v4620_v18  ;;  %v4662_v10 = vmul.f32 %v5299_v54, %v7385_v56 }
 0x2bc   : > { %v4679_v29 = vadd.f32 1.0, %v4631_v59  ;;  %v4623_v6 = vadd.f32 1.0, %v6064_v46  ;;  %v7441_v52 = vmul.f32 %v4613_v11, %v4613_v11  ;;  %v5307_v62 = vadd.f32 -1.0, %v4638_v0 }
 0x2bd   : > { %v6066_v32 = vpop.eup %6065  ;;  %6087 = vrcp.f32 %v4686_v58  ;;  %v4684_v31 = vadd.f32 1.0, %v7439_v61  ;;  %v5300_v42 = vadd.f32 -1.0, %v4631_v59  ;;  %v4660_v0 = vmul.f32 %v5297_v8, %v7391_v28 }
 0x2be   : > { %v6068_v15 = vpop.eup %6067  ;;  %6089 = vrcp.f32 %v4679_v29  ;;  %v7446_v26 = vmul.f32 %v4623_v6, %v4623_v6  ;;  %v4677_v17 = vadd.f32 1.0, %v7441_v52  ;;  %v4621_v5 = vadd.f32 1.0, %v6066_v32 }
 0x2bf   : > { %v6070_v21 = vpop.eup %6069  ;;  %v4706_v2 = vmul.f32 %v6068_v15, %v4658_v55  ;;  %6091 = vrcp.f32 %v4684_v31  ;;  %v5305_v55 = vadd.f32 -1.0, %v7439_v61  ;;  %v4670_v15 = vmul.f32 %v5307_v62, %v7396_v44  ;;  %v4727_v44 = vld [vmem:[%s6267_s21 + $0x38] sm:$0xff] }
 0x2c0   : > { %v6072_v34 = vpop.eup %6071  ;;  %v4618_v48 = vadd.f32 1.0, %v6070_v21  ;;  %v4687_v25 = vadd.f32 1.0, %v7446_v26  ;;  %6093 = vrcp.f32 %v4677_v17  ;;  %v7460_v47 = vmul.f32 %v4621_v5, %v4621_v5  ;;  %v4734_v21 = vld [vmem:[%s6267_s21 + $0x70] sm:$0xff] }
 0x2c1   : > { %v6074_v35 = vpop.eup %6073  ;;  %v4738_v40 = vadd.f32 %v4722_v50, %v4706_v2  ;;  %v4704_v27 = vmul.f32 %v6072_v34, %v4656_v37  ;;  %v4724_v50 = vld [vmem:[%s6267_s21 + $0x20] sm:$0xff]  ;;  %v4663_v28 = vmul.f32 %v5300_v42, %v7400_v20  ;;  %v5298_v61 = vadd.f32 -1.0, %v7441_v52 }
 0x2c2   : > { %v6076_v23 = vpop.eup %6075  ;;  %v7462_v51 = vmul.f32 %v4618_v48, %v4618_v48  ;;  %6095 = vrcp.f32 %v4687_v25  ;;  %v4616_v19 = vadd.f32 1.0, %v6074_v35  ;;  %v4685_v36 = vadd.f32 1.0, %v7460_v47 }
 0x2c3   : > { %v6078_v24 = vpop.eup %6077  ;;  %4754 = vst.msk [vmem:[%s7454_s12 + $0x10] sm:$0xff] %vm545_vm5, %v4738_v40  ;;  %v4736_v38 = vadd.f32 %v4720_v13, %v4704_v27  ;;  %v4619_v60 = vadd.f32 1.0, %v6076_v23  ;;  %v5308_v13 = vadd.f32 -1.0, %v7446_v26  ;;  %v4668_v5 = vmul.f32 %v5305_v55, %v7405_v9  ;;  %v4732_v40 = vld [vmem:[%s6267_s21 + $0x60] sm:$0xff] }
 0x2c4   : > { %v4707_v39 = vmul.f32 %v6078_v24, %v4659_v12  ;;  %v6080_v3 = vpop.eup %6079  ;;  %v4682_v45 = vadd.f32 1.0, %v7462_v51  ;;  %v7473_v7 = vmul.f32 %v4616_v19, %v4616_v19  ;;  %6097 = vrcp.f32 %v4685_v36  ;;  %v4725_v24 = vld [vmem:[%s6267_s21 + $0x28] sm:$0xff]  ;;  %v4735_v19 = vld [vmem:[%s6267_s21 + $0x78] sm:$0xff] }
 0x2c5   : > { %4752 = vst.msk [vmem:[%s7454_s12] sm:$0xff] %vm545_vm5, %v4736_v38  ;;  %v4705_v46 = vmul.f32 %v6080_v3, %v4657_v49  ;;  %v4635_v32 = vmul.f32 %v4619_v60, %v4619_v60  ;;  %v4661_v26 = vmul.f32 %v5298_v61, %v7409_v41  ;;  %v5306_v23 = vadd.f32 -1.0, %v7460_v47  ;;  %v4733_v36 = vld [vmem:[%s6267_s21 + $0x68] sm:$0xff] }
 0x2c6   : > { %v6082_v18 = vpop.eup %6081  ;;  %v4739_v11 = vadd.f32 %v4723_v43, %v4707_v39  ;;  %6099 = vrcp.f32 %v4682_v45  ;;  %v4680_v29 = vadd.f32 1.0, %v7473_v7  ;;  %v4671_v9 = vmul.f32 %v5308_v13, %v7414_v4  ;;  %v4730_v45 = vld [vmem:[%s6267_s21 + $0x50] sm:$0xff] }
 0x2c7   : > { %v4710_v56 = vmul.f32 %v6082_v18, %v4662_v10  ;;  %v6084_v58 = vpop.eup %6083  ;;  %v4737_v59 = vadd.f32 %v4721_v53, %v4705_v46  ;;  %v4683_v37 = vadd.f32 1.0, %v4635_v32  ;;  %v5303_v38 = vadd.f32 -1.0, %v7462_v51 }
 0x2c8   : > { %4755 = vst.msk [vmem:[%s7454_s12 + $0x18] sm:$0xff] %vm545_vm5, %v4739_v11  ;;  %v6086_v1 = vpop.eup %6085  ;;  %v4617_v63 = vadd.f32 1.0, %v6084_v58  ;;  %6101 = vrcp.f32 %v4680_v29  ;;  %v4669_v4 = vmul.f32 %v5306_v23, %v7422_v22  ;;  %v5301_v10 = vadd.f32 -1.0, %v7473_v7 }
 0x2c9   : > { %v4742_v6 = vadd.f32 %v4726_v30, %v4710_v56  ;;  %4753 = vst.msk [vmem:[%s7454_s12 + $0x8] sm:$0xff] %vm545_vm5, %v4737_v59  ;;  %v4708_v2 = vmul.f32 %v6086_v1, %v4660_v0  ;;  %6103 = vrcp.f32 %v4683_v37  ;;  %v4666_v3 = vmul.f32 %v5303_v38, %v7418_v14  ;;  %v4728_v30 = vld [vmem:[%s6267_s21 + $0x40] sm:$0xff]  ;;  %v4731_v59 = vld [vmem:[%s6267_s21 + $0x58] sm:$0xff] }
 0x2ca   : > { %v6088_v31 = vpop.eup %6087  ;;  %v4633_v20 = vmul.f32 %v4617_v63, %v4617_v63  ;;  %v5304_v60 = vadd.f32 -1.0, %v4635_v32  ;;  %v4664_v7 = vmul.f32 %v5301_v10, %v7426_v57 }
 0x2cb   : > { %v6090_v17 = vpop.eup %6089  ;;  %4758 = vst.msk [vmem:[%s7454_s12 + $0x30] sm:$0xff] %vm545_vm5, %v4742_v6  ;;  %v4718_v34 = vmul.f32 %v6088_v31, %v4670_v15  ;;  %v4740_v54 = vadd.f32 %v4724_v50, %v4708_v2  ;;  %v4729_v6 = vld [vmem:[%s6267_s21 + $0x48] sm:$0xff] }
 0x2cc   : > { %v4711_v48 = vmul.f32 %v6090_v17, %v4663_v28  ;;  %v6092_v35 = vpop.eup %6091  ;;  %v4681_v27 = vadd.f32 1.0, %v4633_v20  ;;  %v5302_v14 = vadd.f32 -1.0, %v4633_v20  ;;  %v4667_v0 = vmul.f32 %v5304_v60, %v7430_v33 }
 0x2cd   : > { %v4750_v52 = vadd.f32 %v4734_v21, %v4718_v34  ;;  %4756 = vst.msk [vmem:[%s7454_s12 + $0x20] sm:$0xff] %vm545_vm5, %v4740_v54  ;;  %v4716_v12 = vmul.f32 %v6092_v35, %v4668_v5  ;;  %v6094_v49 = vpop.eup %6093 }
 0x2ce   : > { %v4743_v25 = vadd.f32 %v4727_v44, %v4711_v48  ;;  %6105 = vrcp.f32 %v4681_v27  ;;  %v4709_v41 = vmul.f32 %v6094_v49, %v4661_v26  ;;  %v4665_v57 = vmul.f32 %v5302_v14, %v7435_v16 }
 0x2cf   : > { %4766 = vst.msk [vmem:[%s7454_s12 + $0x70] sm:$0xff] %vm545_vm5, %v4750_v52  ;;  %v6096_v43 = vpop.eup %6095  ;;  %v4748_v8 = vadd.f32 %v4732_v40, %v4716_v12 }
 0x2d0   : > { %4759 = vst.msk [vmem:[%s7454_s12 + $0x38] sm:$0xff] %vm545_vm5, %v4743_v25  ;;  %v4719_v47 = vmul.f32 %v6096_v43, %v4671_v9  ;;  %v4741_v39 = vadd.f32 %v4725_v24, %v4709_v41 }
 0x2d1   : > { %4764 = vst.msk [vmem:[%s7454_s12 + $0x60] sm:$0xff] %vm545_vm5, %v4748_v8  ;;  %v6098_v51 = vpop.eup %6097 }
 0x2d2   : > { %v4751_v62 = vadd.f32 %v4735_v19, %v4719_v47  ;;  %4757 = vst.msk [vmem:[%s7454_s12 + $0x28] sm:$0xff] %vm545_vm5, %v4741_v39  ;;  %v4717_v42 = vmul.f32 %v6098_v51, %v4669_v4 }
 0x2d3   : > { %v6100_v53 = vpop.eup %6099 }
 0x2d4   : > { %4767 = vst.msk [vmem:[%s7454_s12 + $0x78] sm:$0xff] %vm545_vm5, %v4751_v62  ;;  %v4714_v22 = vmul.f32 %v6100_v53, %v4666_v3  ;;  %v4749_v18 = vadd.f32 %v4733_v36, %v4717_v42 }
 0x2d5   : > { %v6102_v11 = vpop.eup %6101 }
 0x2d6   : > { %v4746_v46 = vadd.f32 %v4730_v45, %v4714_v22  ;;  %4765 = vst.msk [vmem:[%s7454_s12 + $0x68] sm:$0xff] %vm545_vm5, %v4749_v18  ;;  %v4712_v56 = vmul.f32 %v6102_v11, %v4664_v7  ;;  %v6104_v58 = vpop.eup %6103 }
 0x2d7   : > { %v4715_v29 = vmul.f32 %v6104_v58, %v4667_v0 }
 0x2d8   : > { %4762 = vst.msk [vmem:[%s7454_s12 + $0x50] sm:$0xff] %vm545_vm5, %v4746_v46  ;;  %v4744_v55 = vadd.f32 %v4728_v30, %v4712_v56 }
 0x2d9   : > { %v4747_v1 = vadd.f32 %v4731_v59, %v4715_v29 }
 0x2da   : > { %4760 = vst.msk [vmem:[%s7454_s12 + $0x40] sm:$0xff] %vm545_vm5, %v4744_v55 }
 0x2db   : > { %v6106_v32 = vpop.eup %6105  ;;  %4763 = vst.msk [vmem:[%s7454_s12 + $0x58] sm:$0xff] %vm545_vm5, %v4747_v1 }
 0x2dc   : > { %v4713_v15 = vmul.f32 %v6106_v32, %v4665_v57 }
 0x2de   : > { %v4745_v50 = vadd.f32 %v4729_v6, %v4713_v15 }
 0x2e0   : > { %4761 = vst.msk [vmem:[%s7454_s12 + $0x48] sm:$0xff] %vm545_vm5, %v4745_v50 }
 0x2e1 PF: > { %s17_s28 = sadd.s32 1, %s6146_s28   ;;  %s7569_s24 = smov %s6138_s26 }
 0x2e2   : > { %p14_p12 = scmp.ge.s32.totalorder %s17_s28, 6   ;;  %s7570_s25 = smov %s6142_s27 }
 0x2e3   : > { %s7571_s26 = smov %s7574_s29  ;;  %s7572_s27 = smov %s7578_s30 }
 0x2e4   :  { %16 = sbr.rel (!%p14_p12) target bundleno = 3 (0x3), region = 95 }

</bundles_post_ra>
